<compile_context>
chip_gen: v5e
topology: v5e:2x2
jax: 0.10.0
libtpu: 0.0.40
codegen_flags: <defaults>
</compile_context>

<pallas_src>
import functools

import jax
import jax.numpy as jnp
from jax.experimental import pallas as pl
from jax.experimental.pallas import tpu as pltpu


LANE = 128   # lane-dense channel padding for every conv output / classifier out
CIN1 = 16    # conv1 input channels padded 1 -> 16 (friendly per-tap contraction dim)
COUT = 128   # padded output channels of both conv stages


# ----------------------------- Pallas kernels ------------------------------ #

def _conv_relu_pool_kernel(x_ref, w_ref, b_ref, o_ref, row_ref, *, ksize):
    """Fused "same" KxK conv + bias + ReLU + 2x2/stride-2 max-pool for ONE image.

    x_ref  : (1, Hc+K-1, Wc+K-1, Cin)  spatially pre-padded NHWC input (f32)
    w_ref  : (K*K, Cin, Cout)          tap-major weights, tap = kh*K + kw (f32)
    b_ref  : (1, Cout)                 f32 bias (padded channels are zero)
    o_ref  : (1, Hc//2, Wc//2, Cout)   pooled output (lane-dense Cout=128)
    row_ref: (Wc, Cout) f32 VMEM scratch holding one H-pooled conv row
    """
    Ho = o_ref.shape[1]
    Wo = o_ref.shape[2]
    Cout = o_ref.shape[3]
    Wc = 2 * Wo
    bias = b_ref[...]                                   # (1, Cout), hoisted

    def row_body(ho, carry):
        # two adjacent conv rows (the 2x2 pool window's H extent)
        acc0 = jnp.zeros((Wc, Cout), jnp.float32)
        acc1 = jnp.zeros((Wc, Cout), jnp.float32)
        for kh in range(ksize):
            r0 = 2 * ho + kh
            for kw in range(ksize):
                wk = w_ref[kh * ksize + kw]             # (Cin, Cout)
                win0 = x_ref[0, r0, kw:kw + Wc, :]      # (Wc, Cin) window taps
                win1 = x_ref[0, r0 + 1, kw:kw + Wc, :]
                acc0 = acc0 + jnp.dot(win0, wk, preferred_element_type=jnp.float32)
                acc1 = acc1 + jnp.dot(win1, wk, preferred_element_type=jnp.float32)
        row0 = jnp.maximum(acc0 + bias, 0.0)            # bias + ReLU (f32 epilogue)
        row1 = jnp.maximum(acc1 + bias, 0.0)
        row_ref[...] = jnp.maximum(row0, row1)          # pool over H
        pooled = jnp.maximum(                           # pool over W (strided reads)
            row_ref[pl.ds(0, Wo, stride=2), :],
            row_ref[pl.ds(1, Wo, stride=2), :])
        o_ref[0, ho] = pooled.astype(o_ref.dtype)       # lane-dense (Wo, 128) store
        return carry

    jax.lax.fori_loop(0, Ho, row_body, 0)


def conv_relu_pool(x_pad, w_taps, bias, *, ksize, out_dtype):
    """Grid over batch (one image per step, 'parallel' so v7x uses both TCs)."""
    B, Hp, Wp, Cin = x_pad.shape
    KK, Cin_w, Cout = w_taps.shape
    assert KK == ksize * ksize and Cin_w == Cin
    Hc, Wc = Hp - ksize + 1, Wp - ksize + 1
    assert Hc % 2 == 0 and Wc % 2 == 0, "max-pool(2) needs even conv output dims"
    Ho, Wo = Hc // 2, Wc // 2
    return pl.pallas_call(
        functools.partial(_conv_relu_pool_kernel, ksize=ksize),
        out_shape=jax.ShapeDtypeStruct((B, Ho, Wo, Cout), out_dtype),
        grid=(B,),
        in_specs=[
            pl.BlockSpec((1, Hp, Wp, Cin), lambda i: (i, 0, 0, 0)),
            pl.BlockSpec((KK, Cin, Cout), lambda i: (0, 0, 0)),   # weights resident
            pl.BlockSpec((1, Cout), lambda i: (0, 0)),
        ],
        out_specs=pl.BlockSpec((1, Ho, Wo, Cout), lambda i: (i, 0, 0, 0)),
        scratch_shapes=[pltpu.VMEM((Wc, Cout), jnp.float32)],
        compiler_params=pltpu.CompilerParams(
            dimension_semantics=("parallel",)),
    )(x_pad, w_taps, bias)


def _linear_kernel(x_ref, w_ref, b_ref, o_ref):
    acc = jnp.dot(x_ref[...], w_ref[...], preferred_element_type=jnp.float32)
    o_ref[...] = (acc + b_ref[...]).astype(o_ref.dtype)


def linear_bias(x, w, b, *, block_m=256):
    """M-tiled matmul + bias; bf16 operands, f32 accumulate, lane-dense N=128."""
    M, K = x.shape
    N = w.shape[1]
    tm = min(block_m, M)
    return pl.pallas_call(
        _linear_kernel,
        out_shape=jax.ShapeDtypeStruct((M, N), jnp.float32),
        grid=(pl.cdiv(M, tm),),
        in_specs=[
            pl.BlockSpec((tm, K), lambda i: (i, 0)),
            pl.BlockSpec((K, N), lambda i: (0, 0)),
            pl.BlockSpec((1, N), lambda i: (0, 0)),
        ],
        out_specs=pl.BlockSpec((tm, N), lambda i: (i, 0)),
        compiler_params=pltpu.CompilerParams(
            dimension_semantics=("parallel",)),
    )(x, w, b)


# --------------------------- parameter preparation -------------------------- #

def _prep_conv(w, b, cin_pad, cout_pad, dtype):
    # w: (O, I, K, K) torch OIHW -> (K*K, I_pad, O_pad), tap-major (kh*K + kw)
    O, I, K, _ = w.shape
    taps = jnp.transpose(w, (2, 3, 1, 0)).reshape(K * K, I, O)
    taps = jnp.pad(taps, ((0, 0), (0, cin_pad - I), (0, cout_pad - O))).astype(dtype)
    bias = jnp.pad(b, (0, cout_pad - O)).reshape(1, cout_pad).astype(jnp.float32)
    return taps, bias


def prepare_params(params):
    """One-time weight permutation / zero-padding (review: do layout work once)."""
    w1, b1, w2, b2, w_out, b_out = params
    w1t, b1p = _prep_conv(w1, b1, CIN1, COUT, jnp.float32)   # (25, 16, 128)
    w2t, b2p = _prep_conv(w2, b2, COUT, COUT, jnp.float32)   # (25, 128, 128)

    # Classifier consumes the NHWC (channel-padded) flatten directly so the
    # activation never needs a transpose: column order becomes (h, w, c_pad).
    O = w_out.shape[0]
    C, H, W = 32, 7, 7
    w_lin = w_out.reshape(O, C, H, W).transpose(2, 3, 1, 0)          # (h, w, c, o)
    w_lin = jnp.pad(w_lin, ((0, 0), (0, 0), (0, COUT - C), (0, LANE - O)))
    w_lin = w_lin.reshape(H * W * COUT, LANE).astype(jnp.bfloat16)   # (6272, 128)
    b_lin = jnp.pad(b_out, (0, LANE - O)).reshape(1, LANE).astype(jnp.float32)
    return (w1t, b1p, w2t, b2p, w_lin, b_lin)


# ------------------------------ forward pass -------------------------------- #

@jax.jit
def cnn_forward(x_nchw, prep):
    """Matches the PyTorch CNN forward exactly (up to bf16 classifier rounding)."""
    w1t, b1p, w2t, b2p, w_lin, b_lin = prep
    B = x_nchw.shape[0]

    # NCHW -> NHWC, spatial pad 2 ("same" conv), channel pad 1 -> CIN1 (zeros)
    x = jnp.transpose(x_nchw, (0, 2, 3, 1)).astype(jnp.float32)
    x = jnp.pad(x, ((0, 0), (2, 2), (2, 2), (0, CIN1 - x.shape[3])))   # (B,32,32,16)

    # conv1 + ReLU + pool (fused kernel)        -> (B,14,14,128)
    y1 = conv_relu_pool(x, w1t, b1p, ksize=5, out_dtype=jnp.float32)
    y1 = jnp.pad(y1, ((0, 0), (2, 2), (2, 2), (0, 0)))                 # (B,18,18,128)

    # conv2 + ReLU + pool (fused kernel), bf16 out feeds the classifier
    y2 = conv_relu_pool(y1, w2t, b2p, ksize=5, out_dtype=jnp.bfloat16)  # (B,7,7,128)

    # NHWC flatten (no transpose) -> bf16 classifier matmul, slice real logits
    flat = y2.reshape(B, -1)                                           # (B, 6272)
    logits = linear_bias(flat, w_lin, b_lin)                           # (B, 128) f32
    return logits[:, :10]


# ------------------------------ reference ----------------------------------- #

def reference_forward(x_nchw, params):
    """Pure-JAX reference (same semantics as the PyTorch module)."""
    w1, b1, w2, b2, w_out, b_out = params
    dn = ('NCHW', 'OIHW', 'NCHW')
    hp = jax.lax.Precision.HIGHEST

    y = jax.lax.conv_general_dilated(x_nchw, w1, (1, 1), ((2, 2), (2, 2)),
                                     dimension_numbers=dn, precision=hp)
    y = jax.nn.relu(y + b1[None, :, None, None])
    y = jax.lax.reduce_window(y, -jnp.inf, jax.lax.max, (1, 1, 2, 2), (1, 1, 2, 2), 'VALID')

    y = jax.lax.conv_general_dilated(y, w2, (1, 1), ((2, 2), (2, 2)),
                                     dimension_numbers=dn, precision=hp)
    y = jax.nn.relu(y + b2[None, :, None, None])
    y = jax.lax.reduce_window(y, -jnp.inf, jax.lax.max, (1, 1, 2, 2), (1, 1, 2, 2), 'VALID')

    flat = y.reshape(x_nchw.shape[0], -1)
    return jnp.dot(flat, w_out.T, precision=hp) + b_out


def init_params(key):
    ks = jax.random.split(key, 6)
    scale = 0.1
    w1 = scale * jax.random.normal(ks[0], (16, 1, 5, 5), jnp.float32)        # OIHW
    b1 = scale * jax.random.normal(ks[1], (16,), jnp.float32)
    w2 = scale * jax.random.normal(ks[2], (32, 16, 5, 5), jnp.float32)       # OIHW
    b2 = scale * jax.random.normal(ks[3], (32,), jnp.float32)
    w_out = scale * jax.random.normal(ks[4], (10, 32 * 7 * 7), jnp.float32)  # torch Linear (out,in)
    b_out = scale * jax.random.normal(ks[5], (10,), jnp.float32)
    return (w1, b1, w2, b2, w_out, b_out)


if __name__ == "__main__":
    key = jax.random.PRNGKey(0)
    k_x, k_p = jax.random.split(key)
    # batch=2, single-channel 28x28 (required by the 32*7*7 Linear)
    x = jax.random.normal(k_x, (2, 1, 28, 28), jnp.float32)
    params = init_params(k_p)
    prep = prepare_params(params)

    out = jax.block_until_ready(cnn_forward(x, prep))
    assert out.shape == (2, 10) and out.dtype == jnp.float32

    ref = jax.block_until_ready(reference_forward(x, params))
    # tolerance covers bf16 classifier operands (f32 accumulation everywhere)
    assert jnp.max(jnp.abs(out - ref)) < 5e-2, "Pallas output diverges from reference"

    print("KERNEL_OK")
</pallas_src>

<mosaic_0001>
module attributes {stable_mosaic.version = 11 : i64} {
  func.func @_conv_relu_pool_kernel(%arg0: i32, %arg1: memref<1x32x32x16xf32, #tpu.memory_space<vmem>>, %arg2: memref<25x16x128xf32, #tpu.memory_space<vmem>>, %arg3: memref<1x128xf32, #tpu.memory_space<vmem>>, %arg4: memref<1x14x14x128xf32, #tpu.memory_space<vmem>>, %arg5: memref<28x128xf32, #tpu.memory_space<vmem>>) attributes {dimension_semantics = [#tpu.dimension_semantics<parallel>], iteration_bounds = array<i64: 2>, scalar_prefetch = 0 : i64, scratch_operands = 1 : i64, tpu.core_type = #tpu.core_type<tc>, window_params = [{transform_indices = @transform_0, window_bounds = array<i64: 1, 32, 32, 16>}, {pipeline_mode = #tpu.pipeline_mode<synchronous>, transform_indices = @transform_1, window_bounds = array<i64: 25, 16, 128>}, {pipeline_mode = #tpu.pipeline_mode<synchronous>, transform_indices = @transform_2, window_bounds = array<i64: 1, 128>}, {transform_indices = @transform_3, window_bounds = array<i64: 1, 14, 14, 128>}]} {
    %c0 = arith.constant 0 : index
    %c0_0 = arith.constant 0 : index
    %0 = vector.load %arg3[%c0, %c0_0] : memref<1x128xf32, #tpu.memory_space<vmem>>, vector<1x128xf32>
    %c0_i32 = arith.constant 0 : i32
    %c14_i32 = arith.constant 14 : i32
    %1 = arith.addi %c0_i32, %c14_i32 : i32
    %c1_i32 = arith.constant 1 : i32
    scf.for %arg6 = %c0_i32 to %1 step %c1_i32  : i32 {
      %cst = arith.constant 0.000000e+00 : f32
      %2 = vector.broadcast %cst : f32 to vector<28x128xf32>
      %cst_2 = arith.constant 0.000000e+00 : f32
      %3 = vector.broadcast %cst_2 : f32 to vector<28x128xf32>
      %c2_i32 = arith.constant 2 : i32
      %4 = arith.muli %c2_i32, %arg6 : i32
      %c0_i32_3 = arith.constant 0 : i32
      %5 = arith.addi %4, %c0_i32_3 : i32
      %c0_4 = arith.constant 0 : index
      %c0_5 = arith.constant 0 : index
      %c0_6 = arith.constant 0 : index
      %6 = vector.load %arg2[%c0_4, %c0_5, %c0_6] : memref<25x16x128xf32, #tpu.memory_space<vmem>>, vector<1x16x128xf32>
      %7 = vector.shape_cast %6 : vector<1x16x128xf32> to vector<16x128xf32>
      %c0_7 = arith.constant 0 : index
      %8 = arith.index_cast %5 : i32 to index
      %c0_8 = arith.constant 0 : index
      %c0_9 = arith.constant 0 : index
      %9 = vector.load %arg1[%c0_7, %8, %c0_8, %c0_9] : memref<1x32x32x16xf32, #tpu.memory_space<vmem>>, vector<1x1x28x16xf32>
      %10 = vector.shape_cast %9 : vector<1x1x28x16xf32> to vector<28x16xf32>
      %c1_i32_10 = arith.constant 1 : i32
      %11 = arith.addi %5, %c1_i32_10 : i32
      %c0_11 = arith.constant 0 : index
      %12 = arith.index_cast %11 : i32 to index
      %c0_12 = arith.constant 0 : index
      %c0_13 = arith.constant 0 : index
      %13 = vector.load %arg1[%c0_11, %12, %c0_12, %c0_13] : memref<1x32x32x16xf32, #tpu.memory_space<vmem>>, vector<1x1x28x16xf32>
      %14 = vector.shape_cast %13 : vector<1x1x28x16xf32> to vector<28x16xf32>
      %cst_14 = arith.constant dense<0.000000e+00> : vector<28x128xf32>
      %15 = tpu.matmul %10, %7, %cst_14 {dimension_numbers = #tpu.dot_dimension_numbers<[1], [0], [0], [1], [0, 0, 1, 1], [], []>} : vector<28x16xf32>, vector<16x128xf32>, vector<28x128xf32> -> vector<28x128xf32>
      %16 = arith.addf %2, %15 : vector<28x128xf32>
      %cst_15 = arith.constant dense<0.000000e+00> : vector<28x128xf32>
      %17 = tpu.matmul %14, %7, %cst_15 {dimension_numbers = #tpu.dot_dimension_numbers<[1], [0], [0], [1], [0, 0, 1, 1], [], []>} : vector<28x16xf32>, vector<16x128xf32>, vector<28x128xf32> -> vector<28x128xf32>
      %18 = arith.addf %3, %17 : vector<28x128xf32>
      %c1 = arith.constant 1 : index
      %c0_16 = arith.constant 0 : index
      %c0_17 = arith.constant 0 : index
      %19 = vector.load %arg2[%c1, %c0_16, %c0_17] : memref<25x16x128xf32, #tpu.memory_space<vmem>>, vector<1x16x128xf32>
      %20 = vector.shape_cast %19 : vector<1x16x128xf32> to vector<16x128xf32>
      %c0_18 = arith.constant 0 : index
      %21 = arith.index_cast %5 : i32 to index
      %c1_19 = arith.constant 1 : index
      %c0_20 = arith.constant 0 : index
      %22 = vector.load %arg1[%c0_18, %21, %c1_19, %c0_20] : memref<1x32x32x16xf32, #tpu.memory_space<vmem>>, vector<1x1x28x16xf32>
      %23 = vector.shape_cast %22 : vector<1x1x28x16xf32> to vector<28x16xf32>
      %c1_i32_21 = arith.constant 1 : i32
      %24 = arith.addi %5, %c1_i32_21 : i32
      %c0_22 = arith.constant 0 : index
      %25 = arith.index_cast %24 : i32 to index
      %c1_23 = arith.constant 1 : index
      %c0_24 = arith.constant 0 : index
      %26 = vector.load %arg1[%c0_22, %25, %c1_23, %c0_24] : memref<1x32x32x16xf32, #tpu.memory_space<vmem>>, vector<1x1x28x16xf32>
      %27 = vector.shape_cast %26 : vector<1x1x28x16xf32> to vector<28x16xf32>
      %cst_25 = arith.constant dense<0.000000e+00> : vector<28x128xf32>
      %28 = tpu.matmul %23, %20, %cst_25 {dimension_numbers = #tpu.dot_dimension_numbers<[1], [0], [0], [1], [0, 0, 1, 1], [], []>} : vector<28x16xf32>, vector<16x128xf32>, vector<28x128xf32> -> vector<28x128xf32>
      %29 = arith.addf %16, %28 : vector<28x128xf32>
      %cst_26 = arith.constant dense<0.000000e+00> : vector<28x128xf32>
      %30 = tpu.matmul %27, %20, %cst_26 {dimension_numbers = #tpu.dot_dimension_numbers<[1], [0], [0], [1], [0, 0, 1, 1], [], []>} : vector<28x16xf32>, vector<16x128xf32>, vector<28x128xf32> -> vector<28x128xf32>
      %31 = arith.addf %18, %30 : vector<28x128xf32>
      %c2 = arith.constant 2 : index
      %c0_27 = arith.constant 0 : index
      %c0_28 = arith.constant 0 : index
      %32 = vector.load %arg2[%c2, %c0_27, %c0_28] : memref<25x16x128xf32, #tpu.memory_space<vmem>>, vector<1x16x128xf32>
      %33 = vector.shape_cast %32 : vector<1x16x128xf32> to vector<16x128xf32>
      %c0_29 = arith.constant 0 : index
      %34 = arith.index_cast %5 : i32 to index
      %c2_30 = arith.constant 2 : index
      %c0_31 = arith.constant 0 : index
      %35 = vector.load %arg1[%c0_29, %34, %c2_30, %c0_31] : memref<1x32x32x16xf32, #tpu.memory_space<vmem>>, vector<1x1x28x16xf32>
      %36 = vector.shape_cast %35 : vector<1x1x28x16xf32> to vector<28x16xf32>
      %c1_i32_32 = arith.constant 1 : i32
      %37 = arith.addi %5, %c1_i32_32 : i32
      %c0_33 = arith.constant 0 : index
      %38 = arith.index_cast %37 : i32 to index
      %c2_34 = arith.constant 2 : index
      %c0_35 = arith.constant 0 : index
      %39 = vector.load %arg1[%c0_33, %38, %c2_34, %c0_35] : memref<1x32x32x16xf32, #tpu.memory_space<vmem>>, vector<1x1x28x16xf32>
      %40 = vector.shape_cast %39 : vector<1x1x28x16xf32> to vector<28x16xf32>
      %cst_36 = arith.constant dense<0.000000e+00> : vector<28x128xf32>
      %41 = tpu.matmul %36, %33, %cst_36 {dimension_numbers = #tpu.dot_dimension_numbers<[1], [0], [0], [1], [0, 0, 1, 1], [], []>} : vector<28x16xf32>, vector<16x128xf32>, vector<28x128xf32> -> vector<28x128xf32>
      %42 = arith.addf %29, %41 : vector<28x128xf32>
      %cst_37 = arith.constant dense<0.000000e+00> : vector<28x128xf32>
      %43 = tpu.matmul %40, %33, %cst_37 {dimension_numbers = #tpu.dot_dimension_numbers<[1], [0], [0], [1], [0, 0, 1, 1], [], []>} : vector<28x16xf32>, vector<16x128xf32>, vector<28x128xf32> -> vector<28x128xf32>
      %44 = arith.addf %31, %43 : vector<28x128xf32>
      %c3 = arith.constant 3 : index
      %c0_38 = arith.constant 0 : index
      %c0_39 = arith.constant 0 : index
      %45 = vector.load %arg2[%c3, %c0_38, %c0_39] : memref<25x16x128xf32, #tpu.memory_space<vmem>>, vector<1x16x128xf32>
      %46 = vector.shape_cast %45 : vector<1x16x128xf32> to vector<16x128xf32>
      %c0_40 = arith.constant 0 : index
      %47 = arith.index_cast %5 : i32 to index
      %c3_41 = arith.constant 3 : index
      %c0_42 = arith.constant 0 : index
      %48 = vector.load %arg1[%c0_40, %47, %c3_41, %c0_42] : memref<1x32x32x16xf32, #tpu.memory_space<vmem>>, vector<1x1x28x16xf32>
      %49 = vector.shape_cast %48 : vector<1x1x28x16xf32> to vector<28x16xf32>
      %c1_i32_43 = arith.constant 1 : i32
      %50 = arith.addi %5, %c1_i32_43 : i32
      %c0_44 = arith.constant 0 : index
      %51 = arith.index_cast %50 : i32 to index
      %c3_45 = arith.constant 3 : index
      %c0_46 = arith.constant 0 : index
      %52 = vector.load %arg1[%c0_44, %51, %c3_45, %c0_46] : memref<1x32x32x16xf32, #tpu.memory_space<vmem>>, vector<1x1x28x16xf32>
      %53 = vector.shape_cast %52 : vector<1x1x28x16xf32> to vector<28x16xf32>
      %cst_47 = arith.constant dense<0.000000e+00> : vector<28x128xf32>
      %54 = tpu.matmul %49, %46, %cst_47 {dimension_numbers = #tpu.dot_dimension_numbers<[1], [0], [0], [1], [0, 0, 1, 1], [], []>} : vector<28x16xf32>, vector<16x128xf32>, vector<28x128xf32> -> vector<28x128xf32>
      %55 = arith.addf %42, %54 : vector<28x128xf32>
      %cst_48 = arith.constant dense<0.000000e+00> : vector<28x128xf32>
      %56 = tpu.matmul %53, %46, %cst_48 {dimension_numbers = #tpu.dot_dimension_numbers<[1], [0], [0], [1], [0, 0, 1, 1], [], []>} : vector<28x16xf32>, vector<16x128xf32>, vector<28x128xf32> -> vector<28x128xf32>
      %57 = arith.addf %44, %56 : vector<28x128xf32>
      %c4 = arith.constant 4 : index
      %c0_49 = arith.constant 0 : index
      %c0_50 = arith.constant 0 : index
      %58 = vector.load %arg2[%c4, %c0_49, %c0_50] : memref<25x16x128xf32, #tpu.memory_space<vmem>>, vector<1x16x128xf32>
      %59 = vector.shape_cast %58 : vector<1x16x128xf32> to vector<16x128xf32>
      %c0_51 = arith.constant 0 : index
      %60 = arith.index_cast %5 : i32 to index
      %c4_52 = arith.constant 4 : index
      %c0_53 = arith.constant 0 : index
      %61 = vector.load %arg1[%c0_51, %60, %c4_52, %c0_53] : memref<1x32x32x16xf32, #tpu.memory_space<vmem>>, vector<1x1x28x16xf32>
      %62 = vector.shape_cast %61 : vector<1x1x28x16xf32> to vector<28x16xf32>
      %c1_i32_54 = arith.constant 1 : i32
      %63 = arith.addi %5, %c1_i32_54 : i32
      %c0_55 = arith.constant 0 : index
      %64 = arith.index_cast %63 : i32 to index
      %c4_56 = arith.constant 4 : index
      %c0_57 = arith.constant 0 : index
      %65 = vector.load %arg1[%c0_55, %64, %c4_56, %c0_57] : memref<1x32x32x16xf32, #tpu.memory_space<vmem>>, vector<1x1x28x16xf32>
      %66 = vector.shape_cast %65 : vector<1x1x28x16xf32> to vector<28x16xf32>
      %cst_58 = arith.constant dense<0.000000e+00> : vector<28x128xf32>
      %67 = tpu.matmul %62, %59, %cst_58 {dimension_numbers = #tpu.dot_dimension_numbers<[1], [0], [0], [1], [0, 0, 1, 1], [], []>} : vector<28x16xf32>, vector<16x128xf32>, vector<28x128xf32> -> vector<28x128xf32>
      %68 = arith.addf %55, %67 : vector<28x128xf32>
      %cst_59 = arith.constant dense<0.000000e+00> : vector<28x128xf32>
      %69 = tpu.matmul %66, %59, %cst_59 {dimension_numbers = #tpu.dot_dimension_numbers<[1], [0], [0], [1], [0, 0, 1, 1], [], []>} : vector<28x16xf32>, vector<16x128xf32>, vector<28x128xf32> -> vector<28x128xf32>
      %70 = arith.addf %57, %69 : vector<28x128xf32>
      %c2_i32_60 = arith.constant 2 : i32
      %71 = arith.muli %c2_i32_60, %arg6 : i32
      %c1_i32_61 = arith.constant 1 : i32
      %72 = arith.addi %71, %c1_i32_61 : i32
      %c5 = arith.constant 5 : index
      %c0_62 = arith.constant 0 : index
      %c0_63 = arith.constant 0 : index
      %73 = vector.load %arg2[%c5, %c0_62, %c0_63] : memref<25x16x128xf32, #tpu.memory_space<vmem>>, vector<1x16x128xf32>
      %74 = vector.shape_cast %73 : vector<1x16x128xf32> to vector<16x128xf32>
      %c0_64 = arith.constant 0 : index
      %75 = arith.index_cast %72 : i32 to index
      %c0_65 = arith.constant 0 : index
      %c0_66 = arith.constant 0 : index
      %76 = vector.load %arg1[%c0_64, %75, %c0_65, %c0_66] : memref<1x32x32x16xf32, #tpu.memory_space<vmem>>, vector<1x1x28x16xf32>
      %77 = vector.shape_cast %76 : vector<1x1x28x16xf32> to vector<28x16xf32>
      %c1_i32_67 = arith.constant 1 : i32
      %78 = arith.addi %72, %c1_i32_67 : i32
      %c0_68 = arith.constant 0 : index
      %79 = arith.index_cast %78 : i32 to index
      %c0_69 = arith.constant 0 : index
      %c0_70 = arith.constant 0 : index
      %80 = vector.load %arg1[%c0_68, %79, %c0_69, %c0_70] : memref<1x32x32x16xf32, #tpu.memory_space<vmem>>, vector<1x1x28x16xf32>
      %81 = vector.shape_cast %80 : vector<1x1x28x16xf32> to vector<28x16xf32>
      %cst_71 = arith.constant dense<0.000000e+00> : vector<28x128xf32>
      %82 = tpu.matmul %77, %74, %cst_71 {dimension_numbers = #tpu.dot_dimension_numbers<[1], [0], [0], [1], [0, 0, 1, 1], [], []>} : vector<28x16xf32>, vector<16x128xf32>, vector<28x128xf32> -> vector<28x128xf32>
      %83 = arith.addf %68, %82 : vector<28x128xf32>
      %cst_72 = arith.constant dense<0.000000e+00> : vector<28x128xf32>
      %84 = tpu.matmul %81, %74, %cst_72 {dimension_numbers = #tpu.dot_dimension_numbers<[1], [0], [0], [1], [0, 0, 1, 1], [], []>} : vector<28x16xf32>, vector<16x128xf32>, vector<28x128xf32> -> vector<28x128xf32>
      %85 = arith.addf %70, %84 : vector<28x128xf32>
      %c6 = arith.constant 6 : index
      %c0_73 = arith.constant 0 : index
      %c0_74 = arith.constant 0 : index
      %86 = vector.load %arg2[%c6, %c0_73, %c0_74] : memref<25x16x128xf32, #tpu.memory_space<vmem>>, vector<1x16x128xf32>
      %87 = vector.shape_cast %86 : vector<1x16x128xf32> to vector<16x128xf32>
      %c0_75 = arith.constant 0 : index
      %88 = arith.index_cast %72 : i32 to index
      %c1_76 = arith.constant 1 : index
      %c0_77 = arith.constant 0 : index
      %89 = vector.load %arg1[%c0_75, %88, %c1_76, %c0_77] : memref<1x32x32x16xf32, #tpu.memory_space<vmem>>, vector<1x1x28x16xf32>
      %90 = vector.shape_cast %89 : vector<1x1x28x16xf32> to vector<28x16xf32>
      %c1_i32_78 = arith.constant 1 : i32
      %91 = arith.addi %72, %c1_i32_78 : i32
      %c0_79 = arith.constant 0 : index
      %92 = arith.index_cast %91 : i32 to index
      %c1_80 = arith.constant 1 : index
      %c0_81 = arith.constant 0 : index
      %93 = vector.load %arg1[%c0_79, %92, %c1_80, %c0_81] : memref<1x32x32x16xf32, #tpu.memory_space<vmem>>, vector<1x1x28x16xf32>
      %94 = vector.shape_cast %93 : vector<1x1x28x16xf32> to vector<28x16xf32>
      %cst_82 = arith.constant dense<0.000000e+00> : vector<28x128xf32>
      %95 = tpu.matmul %90, %87, %cst_82 {dimension_numbers = #tpu.dot_dimension_numbers<[1], [0], [0], [1], [0, 0, 1, 1], [], []>} : vector<28x16xf32>, vector<16x128xf32>, vector<28x128xf32> -> vector<28x128xf32>
      %96 = arith.addf %83, %95 : vector<28x128xf32>
      %cst_83 = arith.constant dense<0.000000e+00> : vector<28x128xf32>
      %97 = tpu.matmul %94, %87, %cst_83 {dimension_numbers = #tpu.dot_dimension_numbers<[1], [0], [0], [1], [0, 0, 1, 1], [], []>} : vector<28x16xf32>, vector<16x128xf32>, vector<28x128xf32> -> vector<28x128xf32>
      %98 = arith.addf %85, %97 : vector<28x128xf32>
      %c7 = arith.constant 7 : index
      %c0_84 = arith.constant 0 : index
      %c0_85 = arith.constant 0 : index
      %99 = vector.load %arg2[%c7, %c0_84, %c0_85] : memref<25x16x128xf32, #tpu.memory_space<vmem>>, vector<1x16x128xf32>
      %100 = vector.shape_cast %99 : vector<1x16x128xf32> to vector<16x128xf32>
      %c0_86 = arith.constant 0 : index
      %101 = arith.index_cast %72 : i32 to index
      %c2_87 = arith.constant 2 : index
      %c0_88 = arith.constant 0 : index
      %102 = vector.load %arg1[%c0_86, %101, %c2_87, %c0_88] : memref<1x32x32x16xf32, #tpu.memory_space<vmem>>, vector<1x1x28x16xf32>
      %103 = vector.shape_cast %102 : vector<1x1x28x16xf32> to vector<28x16xf32>
      %c1_i32_89 = arith.constant 1 : i32
      %104 = arith.addi %72, %c1_i32_89 : i32
      %c0_90 = arith.constant 0 : index
      %105 = arith.index_cast %104 : i32 to index
      %c2_91 = arith.constant 2 : index
      %c0_92 = arith.constant 0 : index
      %106 = vector.load %arg1[%c0_90, %105, %c2_91, %c0_92] : memref<1x32x32x16xf32, #tpu.memory_space<vmem>>, vector<1x1x28x16xf32>
      %107 = vector.shape_cast %106 : vector<1x1x28x16xf32> to vector<28x16xf32>
      %cst_93 = arith.constant dense<0.000000e+00> : vector<28x128xf32>
      %108 = tpu.matmul %103, %100, %cst_93 {dimension_numbers = #tpu.dot_dimension_numbers<[1], [0], [0], [1], [0, 0, 1, 1], [], []>} : vector<28x16xf32>, vector<16x128xf32>, vector<28x128xf32> -> vector<28x128xf32>
      %109 = arith.addf %96, %108 : vector<28x128xf32>
      %cst_94 = arith.constant dense<0.000000e+00> : vector<28x128xf32>
      %110 = tpu.matmul %107, %100, %cst_94 {dimension_numbers = #tpu.dot_dimension_numbers<[1], [0], [0], [1], [0, 0, 1, 1], [], []>} : vector<28x16xf32>, vector<16x128xf32>, vector<28x128xf32> -> vector<28x128xf32>
      %111 = arith.addf %98, %110 : vector<28x128xf32>
      %c8 = arith.constant 8 : index
      %c0_95 = arith.constant 0 : index
      %c0_96 = arith.constant 0 : index
      %112 = vector.load %arg2[%c8, %c0_95, %c0_96] : memref<25x16x128xf32, #tpu.memory_space<vmem>>, vector<1x16x128xf32>
      %113 = vector.shape_cast %112 : vector<1x16x128xf32> to vector<16x128xf32>
      %c0_97 = arith.constant 0 : index
      %114 = arith.index_cast %72 : i32 to index
      %c3_98 = arith.constant 3 : index
      %c0_99 = arith.constant 0 : index
      %115 = vector.load %arg1[%c0_97, %114, %c3_98, %c0_99] : memref<1x32x32x16xf32, #tpu.memory_space<vmem>>, vector<1x1x28x16xf32>
      %116 = vector.shape_cast %115 : vector<1x1x28x16xf32> to vector<28x16xf32>
      %c1_i32_100 = arith.constant 1 : i32
      %117 = arith.addi %72, %c1_i32_100 : i32
      %c0_101 = arith.constant 0 : index
      %118 = arith.index_cast %117 : i32 to index
      %c3_102 = arith.constant 3 : index
      %c0_103 = arith.constant 0 : index
      %119 = vector.load %arg1[%c0_101, %118, %c3_102, %c0_103] : memref<1x32x32x16xf32, #tpu.memory_space<vmem>>, vector<1x1x28x16xf32>
      %120 = vector.shape_cast %119 : vector<1x1x28x16xf32> to vector<28x16xf32>
      %cst_104 = arith.constant dense<0.000000e+00> : vector<28x128xf32>
      %121 = tpu.matmul %116, %113, %cst_104 {dimension_numbers = #tpu.dot_dimension_numbers<[1], [0], [0], [1], [0, 0, 1, 1], [], []>} : vector<28x16xf32>, vector<16x128xf32>, vector<28x128xf32> -> vector<28x128xf32>
      %122 = arith.addf %109, %121 : vector<28x128xf32>
      %cst_105 = arith.constant dense<0.000000e+00> : vector<28x128xf32>
      %123 = tpu.matmul %120, %113, %cst_105 {dimension_numbers = #tpu.dot_dimension_numbers<[1], [0], [0], [1], [0, 0, 1, 1], [], []>} : vector<28x16xf32>, vector<16x128xf32>, vector<28x128xf32> -> vector<28x128xf32>
      %124 = arith.addf %111, %123 : vector<28x128xf32>
      %c9 = arith.constant 9 : index
      %c0_106 = arith.constant 0 : index
      %c0_107 = arith.constant 0 : index
      %125 = vector.load %arg2[%c9, %c0_106, %c0_107] : memref<25x16x128xf32, #tpu.memory_space<vmem>>, vector<1x16x128xf32>
      %126 = vector.shape_cast %125 : vector<1x16x128xf32> to vector<16x128xf32>
      %c0_108 = arith.constant 0 : index
      %127 = arith.index_cast %72 : i32 to index
      %c4_109 = arith.constant 4 : index
      %c0_110 = arith.constant 0 : index
      %128 = vector.load %arg1[%c0_108, %127, %c4_109, %c0_110] : memref<1x32x32x16xf32, #tpu.memory_space<vmem>>, vector<1x1x28x16xf32>
      %129 = vector.shape_cast %128 : vector<1x1x28x16xf32> to vector<28x16xf32>
      %c1_i32_111 = arith.constant 1 : i32
      %130 = arith.addi %72, %c1_i32_111 : i32
      %c0_112 = arith.constant 0 : index
      %131 = arith.index_cast %130 : i32 to index
      %c4_113 = arith.constant 4 : index
      %c0_114 = arith.constant 0 : index
      %132 = vector.load %arg1[%c0_112, %131, %c4_113, %c0_114] : memref<1x32x32x16xf32, #tpu.memory_space<vmem>>, vector<1x1x28x16xf32>
      %133 = vector.shape_cast %132 : vector<1x1x28x16xf32> to vector<28x16xf32>
      %cst_115 = arith.constant dense<0.000000e+00> : vector<28x128xf32>
      %134 = tpu.matmul %129, %126, %cst_115 {dimension_numbers = #tpu.dot_dimension_numbers<[1], [0], [0], [1], [0, 0, 1, 1], [], []>} : vector<28x16xf32>, vector<16x128xf32>, vector<28x128xf32> -> vector<28x128xf32>
      %135 = arith.addf %122, %134 : vector<28x128xf32>
      %cst_116 = arith.constant dense<0.000000e+00> : vector<28x128xf32>
      %136 = tpu.matmul %133, %126, %cst_116 {dimension_numbers = #tpu.dot_dimension_numbers<[1], [0], [0], [1], [0, 0, 1, 1], [], []>} : vector<28x16xf32>, vector<16x128xf32>, vector<28x128xf32> -> vector<28x128xf32>
      %137 = arith.addf %124, %136 : vector<28x128xf32>
      %c2_i32_117 = arith.constant 2 : i32
      %138 = arith.muli %c2_i32_117, %arg6 : i32
      %c2_i32_118 = arith.constant 2 : i32
      %139 = arith.addi %138, %c2_i32_118 : i32
      %c10 = arith.constant 10 : index
      %c0_119 = arith.constant 0 : index
      %c0_120 = arith.constant 0 : index
      %140 = vector.load %arg2[%c10, %c0_119, %c0_120] : memref<25x16x128xf32, #tpu.memory_space<vmem>>, vector<1x16x128xf32>
      %141 = vector.shape_cast %140 : vector<1x16x128xf32> to vector<16x128xf32>
      %c0_121 = arith.constant 0 : index
      %142 = arith.index_cast %139 : i32 to index
      %c0_122 = arith.constant 0 : index
      %c0_123 = arith.constant 0 : index
      %143 = vector.load %arg1[%c0_121, %142, %c0_122, %c0_123] : memref<1x32x32x16xf32, #tpu.memory_space<vmem>>, vector<1x1x28x16xf32>
      %144 = vector.shape_cast %143 : vector<1x1x28x16xf32> to vector<28x16xf32>
      %c1_i32_124 = arith.constant 1 : i32
      %145 = arith.addi %139, %c1_i32_124 : i32
      %c0_125 = arith.constant 0 : index
      %146 = arith.index_cast %145 : i32 to index
      %c0_126 = arith.constant 0 : index
      %c0_127 = arith.constant 0 : index
      %147 = vector.load %arg1[%c0_125, %146, %c0_126, %c0_127] : memref<1x32x32x16xf32, #tpu.memory_space<vmem>>, vector<1x1x28x16xf32>
      %148 = vector.shape_cast %147 : vector<1x1x28x16xf32> to vector<28x16xf32>
      %cst_128 = arith.constant dense<0.000000e+00> : vector<28x128xf32>
      %149 = tpu.matmul %144, %141, %cst_128 {dimension_numbers = #tpu.dot_dimension_numbers<[1], [0], [0], [1], [0, 0, 1, 1], [], []>} : vector<28x16xf32>, vector<16x128xf32>, vector<28x128xf32> -> vector<28x128xf32>
      %150 = arith.addf %135, %149 : vector<28x128xf32>
      %cst_129 = arith.constant dense<0.000000e+00> : vector<28x128xf32>
      %151 = tpu.matmul %148, %141, %cst_129 {dimension_numbers = #tpu.dot_dimension_numbers<[1], [0], [0], [1], [0, 0, 1, 1], [], []>} : vector<28x16xf32>, vector<16x128xf32>, vector<28x128xf32> -> vector<28x128xf32>
      %152 = arith.addf %137, %151 : vector<28x128xf32>
      %c11 = arith.constant 11 : index
      %c0_130 = arith.constant 0 : index
      %c0_131 = arith.constant 0 : index
      %153 = vector.load %arg2[%c11, %c0_130, %c0_131] : memref<25x16x128xf32, #tpu.memory_space<vmem>>, vector<1x16x128xf32>
      %154 = vector.shape_cast %153 : vector<1x16x128xf32> to vector<16x128xf32>
      %c0_132 = arith.constant 0 : index
      %155 = arith.index_cast %139 : i32 to index
      %c1_133 = arith.constant 1 : index
      %c0_134 = arith.constant 0 : index
      %156 = vector.load %arg1[%c0_132, %155, %c1_133, %c0_134] : memref<1x32x32x16xf32, #tpu.memory_space<vmem>>, vector<1x1x28x16xf32>
      %157 = vector.shape_cast %156 : vector<1x1x28x16xf32> to vector<28x16xf32>
      %c1_i32_135 = arith.constant 1 : i32
      %158 = arith.addi %139, %c1_i32_135 : i32
      %c0_136 = arith.constant 0 : index
      %159 = arith.index_cast %158 : i32 to index
      %c1_137 = arith.constant 1 : index
      %c0_138 = arith.constant 0 : index
      %160 = vector.load %arg1[%c0_136, %159, %c1_137, %c0_138] : memref<1x32x32x16xf32, #tpu.memory_space<vmem>>, vector<1x1x28x16xf32>
      %161 = vector.shape_cast %160 : vector<1x1x28x16xf32> to vector<28x16xf32>
      %cst_139 = arith.constant dense<0.000000e+00> : vector<28x128xf32>
      %162 = tpu.matmul %157, %154, %cst_139 {dimension_numbers = #tpu.dot_dimension_numbers<[1], [0], [0], [1], [0, 0, 1, 1], [], []>} : vector<28x16xf32>, vector<16x128xf32>, vector<28x128xf32> -> vector<28x128xf32>
      %163 = arith.addf %150, %162 : vector<28x128xf32>
      %cst_140 = arith.constant dense<0.000000e+00> : vector<28x128xf32>
      %164 = tpu.matmul %161, %154, %cst_140 {dimension_numbers = #tpu.dot_dimension_numbers<[1], [0], [0], [1], [0, 0, 1, 1], [], []>} : vector<28x16xf32>, vector<16x128xf32>, vector<28x128xf32> -> vector<28x128xf32>
      %165 = arith.addf %152, %164 : vector<28x128xf32>
      %c12 = arith.constant 12 : index
      %c0_141 = arith.constant 0 : index
      %c0_142 = arith.constant 0 : index
      %166 = vector.load %arg2[%c12, %c0_141, %c0_142] : memref<25x16x128xf32, #tpu.memory_space<vmem>>, vector<1x16x128xf32>
      %167 = vector.shape_cast %166 : vector<1x16x128xf32> to vector<16x128xf32>
      %c0_143 = arith.constant 0 : index
      %168 = arith.index_cast %139 : i32 to index
      %c2_144 = arith.constant 2 : index
      %c0_145 = arith.constant 0 : index
      %169 = vector.load %arg1[%c0_143, %168, %c2_144, %c0_145] : memref<1x32x32x16xf32, #tpu.memory_space<vmem>>, vector<1x1x28x16xf32>
      %170 = vector.shape_cast %169 : vector<1x1x28x16xf32> to vector<28x16xf32>
      %c1_i32_146 = arith.constant 1 : i32
      %171 = arith.addi %139, %c1_i32_146 : i32
      %c0_147 = arith.constant 0 : index
      %172 = arith.index_cast %171 : i32 to index
      %c2_148 = arith.constant 2 : index
      %c0_149 = arith.constant 0 : index
      %173 = vector.load %arg1[%c0_147, %172, %c2_148, %c0_149] : memref<1x32x32x16xf32, #tpu.memory_space<vmem>>, vector<1x1x28x16xf32>
      %174 = vector.shape_cast %173 : vector<1x1x28x16xf32> to vector<28x16xf32>
      %cst_150 = arith.constant dense<0.000000e+00> : vector<28x128xf32>
      %175 = tpu.matmul %170, %167, %cst_150 {dimension_numbers = #tpu.dot_dimension_numbers<[1], [0], [0], [1], [0, 0, 1, 1], [], []>} : vector<28x16xf32>, vector<16x128xf32>, vector<28x128xf32> -> vector<28x128xf32>
      %176 = arith.addf %163, %175 : vector<28x128xf32>
      %cst_151 = arith.constant dense<0.000000e+00> : vector<28x128xf32>
      %177 = tpu.matmul %174, %167, %cst_151 {dimension_numbers = #tpu.dot_dimension_numbers<[1], [0], [0], [1], [0, 0, 1, 1], [], []>} : vector<28x16xf32>, vector<16x128xf32>, vector<28x128xf32> -> vector<28x128xf32>
      %178 = arith.addf %165, %177 : vector<28x128xf32>
      %c13 = arith.constant 13 : index
      %c0_152 = arith.constant 0 : index
      %c0_153 = arith.constant 0 : index
      %179 = vector.load %arg2[%c13, %c0_152, %c0_153] : memref<25x16x128xf32, #tpu.memory_space<vmem>>, vector<1x16x128xf32>
      %180 = vector.shape_cast %179 : vector<1x16x128xf32> to vector<16x128xf32>
      %c0_154 = arith.constant 0 : index
      %181 = arith.index_cast %139 : i32 to index
      %c3_155 = arith.constant 3 : index
      %c0_156 = arith.constant 0 : index
      %182 = vector.load %arg1[%c0_154, %181, %c3_155, %c0_156] : memref<1x32x32x16xf32, #tpu.memory_space<vmem>>, vector<1x1x28x16xf32>
      %183 = vector.shape_cast %182 : vector<1x1x28x16xf32> to vector<28x16xf32>
      %c1_i32_157 = arith.constant 1 : i32
      %184 = arith.addi %139, %c1_i32_157 : i32
      %c0_158 = arith.constant 0 : index
      %185 = arith.index_cast %184 : i32 to index
      %c3_159 = arith.constant 3 : index
      %c0_160 = arith.constant 0 : index
      %186 = vector.load %arg1[%c0_158, %185, %c3_159, %c0_160] : memref<1x32x32x16xf32, #tpu.memory_space<vmem>>, vector<1x1x28x16xf32>
      %187 = vector.shape_cast %186 : vector<1x1x28x16xf32> to vector<28x16xf32>
      %cst_161 = arith.constant dense<0.000000e+00> : vector<28x128xf32>
      %188 = tpu.matmul %183, %180, %cst_161 {dimension_numbers = #tpu.dot_dimension_numbers<[1], [0], [0], [1], [0, 0, 1, 1], [], []>} : vector<28x16xf32>, vector<16x128xf32>, vector<28x128xf32> -> vector<28x128xf32>
      %189 = arith.addf %176, %188 : vector<28x128xf32>
      %cst_162 = arith.constant dense<0.000000e+00> : vector<28x128xf32>
      %190 = tpu.matmul %187, %180, %cst_162 {dimension_numbers = #tpu.dot_dimension_numbers<[1], [0], [0], [1], [0, 0, 1, 1], [], []>} : vector<28x16xf32>, vector<16x128xf32>, vector<28x128xf32> -> vector<28x128xf32>
      %191 = arith.addf %178, %190 : vector<28x128xf32>
      %c14 = arith.constant 14 : index
      %c0_163 = arith.constant 0 : index
      %c0_164 = arith.constant 0 : index
      %192 = vector.load %arg2[%c14, %c0_163, %c0_164] : memref<25x16x128xf32, #tpu.memory_space<vmem>>, vector<1x16x128xf32>
      %193 = vector.shape_cast %192 : vector<1x16x128xf32> to vector<16x128xf32>
      %c0_165 = arith.constant 0 : index
      %194 = arith.index_cast %139 : i32 to index
      %c4_166 = arith.constant 4 : index
      %c0_167 = arith.constant 0 : index
      %195 = vector.load %arg1[%c0_165, %194, %c4_166, %c0_167] : memref<1x32x32x16xf32, #tpu.memory_space<vmem>>, vector<1x1x28x16xf32>
      %196 = vector.shape_cast %195 : vector<1x1x28x16xf32> to vector<28x16xf32>
      %c1_i32_168 = arith.constant 1 : i32
      %197 = arith.addi %139, %c1_i32_168 : i32
      %c0_169 = arith.constant 0 : index
      %198 = arith.index_cast %197 : i32 to index
      %c4_170 = arith.constant 4 : index
      %c0_171 = arith.constant 0 : index
      %199 = vector.load %arg1[%c0_169, %198, %c4_170, %c0_171] : memref<1x32x32x16xf32, #tpu.memory_space<vmem>>, vector<1x1x28x16xf32>
      %200 = vector.shape_cast %199 : vector<1x1x28x16xf32> to vector<28x16xf32>
      %cst_172 = arith.constant dense<0.000000e+00> : vector<28x128xf32>
      %201 = tpu.matmul %196, %193, %cst_172 {dimension_numbers = #tpu.dot_dimension_numbers<[1], [0], [0], [1], [0, 0, 1, 1], [], []>} : vector<28x16xf32>, vector<16x128xf32>, vector<28x128xf32> -> vector<28x128xf32>
      %202 = arith.addf %189, %201 : vector<28x128xf32>
      %cst_173 = arith.constant dense<0.000000e+00> : vector<28x128xf32>
      %203 = tpu.matmul %200, %193, %cst_173 {dimension_numbers = #tpu.dot_dimension_numbers<[1], [0], [0], [1], [0, 0, 1, 1], [], []>} : vector<28x16xf32>, vector<16x128xf32>, vector<28x128xf32> -> vector<28x128xf32>
      %204 = arith.addf %191, %203 : vector<28x128xf32>
      %c2_i32_174 = arith.constant 2 : i32
      %205 = arith.muli %c2_i32_174, %arg6 : i32
      %c3_i32 = arith.constant 3 : i32
      %206 = arith.addi %205, %c3_i32 : i32
      %c15 = arith.constant 15 : index
      %c0_175 = arith.constant 0 : index
      %c0_176 = arith.constant 0 : index
      %207 = vector.load %arg2[%c15, %c0_175, %c0_176] : memref<25x16x128xf32, #tpu.memory_space<vmem>>, vector<1x16x128xf32>
      %208 = vector.shape_cast %207 : vector<1x16x128xf32> to vector<16x128xf32>
      %c0_177 = arith.constant 0 : index
      %209 = arith.index_cast %206 : i32 to index
      %c0_178 = arith.constant 0 : index
      %c0_179 = arith.constant 0 : index
      %210 = vector.load %arg1[%c0_177, %209, %c0_178, %c0_179] : memref<1x32x32x16xf32, #tpu.memory_space<vmem>>, vector<1x1x28x16xf32>
      %211 = vector.shape_cast %210 : vector<1x1x28x16xf32> to vector<28x16xf32>
      %c1_i32_180 = arith.constant 1 : i32
      %212 = arith.addi %206, %c1_i32_180 : i32
      %c0_181 = arith.constant 0 : index
      %213 = arith.index_cast %212 : i32 to index
      %c0_182 = arith.constant 0 : index
      %c0_183 = arith.constant 0 : index
      %214 = vector.load %arg1[%c0_181, %213, %c0_182, %c0_183] : memref<1x32x32x16xf32, #tpu.memory_space<vmem>>, vector<1x1x28x16xf32>
      %215 = vector.shape_cast %214 : vector<1x1x28x16xf32> to vector<28x16xf32>
      %cst_184 = arith.constant dense<0.000000e+00> : vector<28x128xf32>
      %216 = tpu.matmul %211, %208, %cst_184 {dimension_numbers = #tpu.dot_dimension_numbers<[1], [0], [0], [1], [0, 0, 1, 1], [], []>} : vector<28x16xf32>, vector<16x128xf32>, vector<28x128xf32> -> vector<28x128xf32>
      %217 = arith.addf %202, %216 : vector<28x128xf32>
      %cst_185 = arith.constant dense<0.000000e+00> : vector<28x128xf32>
      %218 = tpu.matmul %215, %208, %cst_185 {dimension_numbers = #tpu.dot_dimension_numbers<[1], [0], [0], [1], [0, 0, 1, 1], [], []>} : vector<28x16xf32>, vector<16x128xf32>, vector<28x128xf32> -> vector<28x128xf32>
      %219 = arith.addf %204, %218 : vector<28x128xf32>
      %c16 = arith.constant 16 : index
      %c0_186 = arith.constant 0 : index
      %c0_187 = arith.constant 0 : index
      %220 = vector.load %arg2[%c16, %c0_186, %c0_187] : memref<25x16x128xf32, #tpu.memory_space<vmem>>, vector<1x16x128xf32>
      %221 = vector.shape_cast %220 : vector<1x16x128xf32> to vector<16x128xf32>
      %c0_188 = arith.constant 0 : index
      %222 = arith.index_cast %206 : i32 to index
      %c1_189 = arith.constant 1 : index
      %c0_190 = arith.constant 0 : index
      %223 = vector.load %arg1[%c0_188, %222, %c1_189, %c0_190] : memref<1x32x32x16xf32, #tpu.memory_space<vmem>>, vector<1x1x28x16xf32>
      %224 = vector.shape_cast %223 : vector<1x1x28x16xf32> to vector<28x16xf32>
      %c1_i32_191 = arith.constant 1 : i32
      %225 = arith.addi %206, %c1_i32_191 : i32
      %c0_192 = arith.constant 0 : index
      %226 = arith.index_cast %225 : i32 to index
      %c1_193 = arith.constant 1 : index
      %c0_194 = arith.constant 0 : index
      %227 = vector.load %arg1[%c0_192, %226, %c1_193, %c0_194] : memref<1x32x32x16xf32, #tpu.memory_space<vmem>>, vector<1x1x28x16xf32>
      %228 = vector.shape_cast %227 : vector<1x1x28x16xf32> to vector<28x16xf32>
      %cst_195 = arith.constant dense<0.000000e+00> : vector<28x128xf32>
      %229 = tpu.matmul %224, %221, %cst_195 {dimension_numbers = #tpu.dot_dimension_numbers<[1], [0], [0], [1], [0, 0, 1, 1], [], []>} : vector<28x16xf32>, vector<16x128xf32>, vector<28x128xf32> -> vector<28x128xf32>
      %230 = arith.addf %217, %229 : vector<28x128xf32>
      %cst_196 = arith.constant dense<0.000000e+00> : vector<28x128xf32>
      %231 = tpu.matmul %228, %221, %cst_196 {dimension_numbers = #tpu.dot_dimension_numbers<[1], [0], [0], [1], [0, 0, 1, 1], [], []>} : vector<28x16xf32>, vector<16x128xf32>, vector<28x128xf32> -> vector<28x128xf32>
      %232 = arith.addf %219, %231 : vector<28x128xf32>
      %c17 = arith.constant 17 : index
      %c0_197 = arith.constant 0 : index
      %c0_198 = arith.constant 0 : index
      %233 = vector.load %arg2[%c17, %c0_197, %c0_198] : memref<25x16x128xf32, #tpu.memory_space<vmem>>, vector<1x16x128xf32>
      %234 = vector.shape_cast %233 : vector<1x16x128xf32> to vector<16x128xf32>
      %c0_199 = arith.constant 0 : index
      %235 = arith.index_cast %206 : i32 to index
      %c2_200 = arith.constant 2 : index
      %c0_201 = arith.constant 0 : index
      %236 = vector.load %arg1[%c0_199, %235, %c2_200, %c0_201] : memref<1x32x32x16xf32, #tpu.memory_space<vmem>>, vector<1x1x28x16xf32>
      %237 = vector.shape_cast %236 : vector<1x1x28x16xf32> to vector<28x16xf32>
      %c1_i32_202 = arith.constant 1 : i32
      %238 = arith.addi %206, %c1_i32_202 : i32
      %c0_203 = arith.constant 0 : index
      %239 = arith.index_cast %238 : i32 to index
      %c2_204 = arith.constant 2 : index
      %c0_205 = arith.constant 0 : index
      %240 = vector.load %arg1[%c0_203, %239, %c2_204, %c0_205] : memref<1x32x32x16xf32, #tpu.memory_space<vmem>>, vector<1x1x28x16xf32>
      %241 = vector.shape_cast %240 : vector<1x1x28x16xf32> to vector<28x16xf32>
      %cst_206 = arith.constant dense<0.000000e+00> : vector<28x128xf32>
      %242 = tpu.matmul %237, %234, %cst_206 {dimension_numbers = #tpu.dot_dimension_numbers<[1], [0], [0], [1], [0, 0, 1, 1], [], []>} : vector<28x16xf32>, vector<16x128xf32>, vector<28x128xf32> -> vector<28x128xf32>
      %243 = arith.addf %230, %242 : vector<28x128xf32>
      %cst_207 = arith.constant dense<0.000000e+00> : vector<28x128xf32>
      %244 = tpu.matmul %241, %234, %cst_207 {dimension_numbers = #tpu.dot_dimension_numbers<[1], [0], [0], [1], [0, 0, 1, 1], [], []>} : vector<28x16xf32>, vector<16x128xf32>, vector<28x128xf32> -> vector<28x128xf32>
      %245 = arith.addf %232, %244 : vector<28x128xf32>
      %c18 = arith.constant 18 : index
      %c0_208 = arith.constant 0 : index
      %c0_209 = arith.constant 0 : index
      %246 = vector.load %arg2[%c18, %c0_208, %c0_209] : memref<25x16x128xf32, #tpu.memory_space<vmem>>, vector<1x16x128xf32>
      %247 = vector.shape_cast %246 : vector<1x16x128xf32> to vector<16x128xf32>
      %c0_210 = arith.constant 0 : index
      %248 = arith.index_cast %206 : i32 to index
      %c3_211 = arith.constant 3 : index
      %c0_212 = arith.constant 0 : index
      %249 = vector.load %arg1[%c0_210, %248, %c3_211, %c0_212] : memref<1x32x32x16xf32, #tpu.memory_space<vmem>>, vector<1x1x28x16xf32>
      %250 = vector.shape_cast %249 : vector<1x1x28x16xf32> to vector<28x16xf32>
      %c1_i32_213 = arith.constant 1 : i32
      %251 = arith.addi %206, %c1_i32_213 : i32
      %c0_214 = arith.constant 0 : index
      %252 = arith.index_cast %251 : i32 to index
      %c3_215 = arith.constant 3 : index
      %c0_216 = arith.constant 0 : index
      %253 = vector.load %arg1[%c0_214, %252, %c3_215, %c0_216] : memref<1x32x32x16xf32, #tpu.memory_space<vmem>>, vector<1x1x28x16xf32>
      %254 = vector.shape_cast %253 : vector<1x1x28x16xf32> to vector<28x16xf32>
      %cst_217 = arith.constant dense<0.000000e+00> : vector<28x128xf32>
      %255 = tpu.matmul %250, %247, %cst_217 {dimension_numbers = #tpu.dot_dimension_numbers<[1], [0], [0], [1], [0, 0, 1, 1], [], []>} : vector<28x16xf32>, vector<16x128xf32>, vector<28x128xf32> -> vector<28x128xf32>
      %256 = arith.addf %243, %255 : vector<28x128xf32>
      %cst_218 = arith.constant dense<0.000000e+00> : vector<28x128xf32>
      %257 = tpu.matmul %254, %247, %cst_218 {dimension_numbers = #tpu.dot_dimension_numbers<[1], [0], [0], [1], [0, 0, 1, 1], [], []>} : vector<28x16xf32>, vector<16x128xf32>, vector<28x128xf32> -> vector<28x128xf32>
      %258 = arith.addf %245, %257 : vector<28x128xf32>
      %c19 = arith.constant 19 : index
      %c0_219 = arith.constant 0 : index
      %c0_220 = arith.constant 0 : index
      %259 = vector.load %arg2[%c19, %c0_219, %c0_220] : memref<25x16x128xf32, #tpu.memory_space<vmem>>, vector<1x16x128xf32>
      %260 = vector.shape_cast %259 : vector<1x16x128xf32> to vector<16x128xf32>
      %c0_221 = arith.constant 0 : index
      %261 = arith.index_cast %206 : i32 to index
      %c4_222 = arith.constant 4 : index
      %c0_223 = arith.constant 0 : index
      %262 = vector.load %arg1[%c0_221, %261, %c4_222, %c0_223] : memref<1x32x32x16xf32, #tpu.memory_space<vmem>>, vector<1x1x28x16xf32>
      %263 = vector.shape_cast %262 : vector<1x1x28x16xf32> to vector<28x16xf32>
      %c1_i32_224 = arith.constant 1 : i32
      %264 = arith.addi %206, %c1_i32_224 : i32
      %c0_225 = arith.constant 0 : index
      %265 = arith.index_cast %264 : i32 to index
      %c4_226 = arith.constant 4 : index
      %c0_227 = arith.constant 0 : index
      %266 = vector.load %arg1[%c0_225, %265, %c4_226, %c0_227] : memref<1x32x32x16xf32, #tpu.memory_space<vmem>>, vector<1x1x28x16xf32>
      %267 = vector.shape_cast %266 : vector<1x1x28x16xf32> to vector<28x16xf32>
      %cst_228 = arith.constant dense<0.000000e+00> : vector<28x128xf32>
      %268 = tpu.matmul %263, %260, %cst_228 {dimension_numbers = #tpu.dot_dimension_numbers<[1], [0], [0], [1], [0, 0, 1, 1], [], []>} : vector<28x16xf32>, vector<16x128xf32>, vector<28x128xf32> -> vector<28x128xf32>
      %269 = arith.addf %256, %268 : vector<28x128xf32>
      %cst_229 = arith.constant dense<0.000000e+00> : vector<28x128xf32>
      %270 = tpu.matmul %267, %260, %cst_229 {dimension_numbers = #tpu.dot_dimension_numbers<[1], [0], [0], [1], [0, 0, 1, 1], [], []>} : vector<28x16xf32>, vector<16x128xf32>, vector<28x128xf32> -> vector<28x128xf32>
      %271 = arith.addf %258, %270 : vector<28x128xf32>
      %c2_i32_230 = arith.constant 2 : i32
      %272 = arith.muli %c2_i32_230, %arg6 : i32
      %c4_i32 = arith.constant 4 : i32
      %273 = arith.addi %272, %c4_i32 : i32
      %c20 = arith.constant 20 : index
      %c0_231 = arith.constant 0 : index
      %c0_232 = arith.constant 0 : index
      %274 = vector.load %arg2[%c20, %c0_231, %c0_232] : memref<25x16x128xf32, #tpu.memory_space<vmem>>, vector<1x16x128xf32>
      %275 = vector.shape_cast %274 : vector<1x16x128xf32> to vector<16x128xf32>
      %c0_233 = arith.constant 0 : index
      %276 = arith.index_cast %273 : i32 to index
      %c0_234 = arith.constant 0 : index
      %c0_235 = arith.constant 0 : index
      %277 = vector.load %arg1[%c0_233, %276, %c0_234, %c0_235] : memref<1x32x32x16xf32, #tpu.memory_space<vmem>>, vector<1x1x28x16xf32>
      %278 = vector.shape_cast %277 : vector<1x1x28x16xf32> to vector<28x16xf32>
      %c1_i32_236 = arith.constant 1 : i32
      %279 = arith.addi %273, %c1_i32_236 : i32
      %c0_237 = arith.constant 0 : index
      %280 = arith.index_cast %279 : i32 to index
      %c0_238 = arith.constant 0 : index
      %c0_239 = arith.constant 0 : index
      %281 = vector.load %arg1[%c0_237, %280, %c0_238, %c0_239] : memref<1x32x32x16xf32, #tpu.memory_space<vmem>>, vector<1x1x28x16xf32>
      %282 = vector.shape_cast %281 : vector<1x1x28x16xf32> to vector<28x16xf32>
      %cst_240 = arith.constant dense<0.000000e+00> : vector<28x128xf32>
      %283 = tpu.matmul %278, %275, %cst_240 {dimension_numbers = #tpu.dot_dimension_numbers<[1], [0], [0], [1], [0, 0, 1, 1], [], []>} : vector<28x16xf32>, vector<16x128xf32>, vector<28x128xf32> -> vector<28x128xf32>
      %284 = arith.addf %269, %283 : vector<28x128xf32>
      %cst_241 = arith.constant dense<0.000000e+00> : vector<28x128xf32>
      %285 = tpu.matmul %282, %275, %cst_241 {dimension_numbers = #tpu.dot_dimension_numbers<[1], [0], [0], [1], [0, 0, 1, 1], [], []>} : vector<28x16xf32>, vector<16x128xf32>, vector<28x128xf32> -> vector<28x128xf32>
      %286 = arith.addf %271, %285 : vector<28x128xf32>
      %c21 = arith.constant 21 : index
      %c0_242 = arith.constant 0 : index
      %c0_243 = arith.constant 0 : index
      %287 = vector.load %arg2[%c21, %c0_242, %c0_243] : memref<25x16x128xf32, #tpu.memory_space<vmem>>, vector<1x16x128xf32>
      %288 = vector.shape_cast %287 : vector<1x16x128xf32> to vector<16x128xf32>
      %c0_244 = arith.constant 0 : index
      %289 = arith.index_cast %273 : i32 to index
      %c1_245 = arith.constant 1 : index
      %c0_246 = arith.constant 0 : index
      %290 = vector.load %arg1[%c0_244, %289, %c1_245, %c0_246] : memref<1x32x32x16xf32, #tpu.memory_space<vmem>>, vector<1x1x28x16xf32>
      %291 = vector.shape_cast %290 : vector<1x1x28x16xf32> to vector<28x16xf32>
      %c1_i32_247 = arith.constant 1 : i32
      %292 = arith.addi %273, %c1_i32_247 : i32
      %c0_248 = arith.constant 0 : index
      %293 = arith.index_cast %292 : i32 to index
      %c1_249 = arith.constant 1 : index
      %c0_250 = arith.constant 0 : index
      %294 = vector.load %arg1[%c0_248, %293, %c1_249, %c0_250] : memref<1x32x32x16xf32, #tpu.memory_space<vmem>>, vector<1x1x28x16xf32>
      %295 = vector.shape_cast %294 : vector<1x1x28x16xf32> to vector<28x16xf32>
      %cst_251 = arith.constant dense<0.000000e+00> : vector<28x128xf32>
      %296 = tpu.matmul %291, %288, %cst_251 {dimension_numbers = #tpu.dot_dimension_numbers<[1], [0], [0], [1], [0, 0, 1, 1], [], []>} : vector<28x16xf32>, vector<16x128xf32>, vector<28x128xf32> -> vector<28x128xf32>
      %297 = arith.addf %284, %296 : vector<28x128xf32>
      %cst_252 = arith.constant dense<0.000000e+00> : vector<28x128xf32>
      %298 = tpu.matmul %295, %288, %cst_252 {dimension_numbers = #tpu.dot_dimension_numbers<[1], [0], [0], [1], [0, 0, 1, 1], [], []>} : vector<28x16xf32>, vector<16x128xf32>, vector<28x128xf32> -> vector<28x128xf32>
      %299 = arith.addf %286, %298 : vector<28x128xf32>
      %c22 = arith.constant 22 : index
      %c0_253 = arith.constant 0 : index
      %c0_254 = arith.constant 0 : index
      %300 = vector.load %arg2[%c22, %c0_253, %c0_254] : memref<25x16x128xf32, #tpu.memory_space<vmem>>, vector<1x16x128xf32>
      %301 = vector.shape_cast %300 : vector<1x16x128xf32> to vector<16x128xf32>
      %c0_255 = arith.constant 0 : index
      %302 = arith.index_cast %273 : i32 to index
      %c2_256 = arith.constant 2 : index
      %c0_257 = arith.constant 0 : index
      %303 = vector.load %arg1[%c0_255, %302, %c2_256, %c0_257] : memref<1x32x32x16xf32, #tpu.memory_space<vmem>>, vector<1x1x28x16xf32>
      %304 = vector.shape_cast %303 : vector<1x1x28x16xf32> to vector<28x16xf32>
      %c1_i32_258 = arith.constant 1 : i32
      %305 = arith.addi %273, %c1_i32_258 : i32
      %c0_259 = arith.constant 0 : index
      %306 = arith.index_cast %305 : i32 to index
      %c2_260 = arith.constant 2 : index
      %c0_261 = arith.constant 0 : index
      %307 = vector.load %arg1[%c0_259, %306, %c2_260, %c0_261] : memref<1x32x32x16xf32, #tpu.memory_space<vmem>>, vector<1x1x28x16xf32>
      %308 = vector.shape_cast %307 : vector<1x1x28x16xf32> to vector<28x16xf32>
      %cst_262 = arith.constant dense<0.000000e+00> : vector<28x128xf32>
      %309 = tpu.matmul %304, %301, %cst_262 {dimension_numbers = #tpu.dot_dimension_numbers<[1], [0], [0], [1], [0, 0, 1, 1], [], []>} : vector<28x16xf32>, vector<16x128xf32>, vector<28x128xf32> -> vector<28x128xf32>
      %310 = arith.addf %297, %309 : vector<28x128xf32>
      %cst_263 = arith.constant dense<0.000000e+00> : vector<28x128xf32>
      %311 = tpu.matmul %308, %301, %cst_263 {dimension_numbers = #tpu.dot_dimension_numbers<[1], [0], [0], [1], [0, 0, 1, 1], [], []>} : vector<28x16xf32>, vector<16x128xf32>, vector<28x128xf32> -> vector<28x128xf32>
      %312 = arith.addf %299, %311 : vector<28x128xf32>
      %c23 = arith.constant 23 : index
      %c0_264 = arith.constant 0 : index
      %c0_265 = arith.constant 0 : index
      %313 = vector.load %arg2[%c23, %c0_264, %c0_265] : memref<25x16x128xf32, #tpu.memory_space<vmem>>, vector<1x16x128xf32>
      %314 = vector.shape_cast %313 : vector<1x16x128xf32> to vector<16x128xf32>
      %c0_266 = arith.constant 0 : index
      %315 = arith.index_cast %273 : i32 to index
      %c3_267 = arith.constant 3 : index
      %c0_268 = arith.constant 0 : index
      %316 = vector.load %arg1[%c0_266, %315, %c3_267, %c0_268] : memref<1x32x32x16xf32, #tpu.memory_space<vmem>>, vector<1x1x28x16xf32>
      %317 = vector.shape_cast %316 : vector<1x1x28x16xf32> to vector<28x16xf32>
      %c1_i32_269 = arith.constant 1 : i32
      %318 = arith.addi %273, %c1_i32_269 : i32
      %c0_270 = arith.constant 0 : index
      %319 = arith.index_cast %318 : i32 to index
      %c3_271 = arith.constant 3 : index
      %c0_272 = arith.constant 0 : index
      %320 = vector.load %arg1[%c0_270, %319, %c3_271, %c0_272] : memref<1x32x32x16xf32, #tpu.memory_space<vmem>>, vector<1x1x28x16xf32>
      %321 = vector.shape_cast %320 : vector<1x1x28x16xf32> to vector<28x16xf32>
      %cst_273 = arith.constant dense<0.000000e+00> : vector<28x128xf32>
      %322 = tpu.matmul %317, %314, %cst_273 {dimension_numbers = #tpu.dot_dimension_numbers<[1], [0], [0], [1], [0, 0, 1, 1], [], []>} : vector<28x16xf32>, vector<16x128xf32>, vector<28x128xf32> -> vector<28x128xf32>
      %323 = arith.addf %310, %322 : vector<28x128xf32>
      %cst_274 = arith.constant dense<0.000000e+00> : vector<28x128xf32>
      %324 = tpu.matmul %321, %314, %cst_274 {dimension_numbers = #tpu.dot_dimension_numbers<[1], [0], [0], [1], [0, 0, 1, 1], [], []>} : vector<28x16xf32>, vector<16x128xf32>, vector<28x128xf32> -> vector<28x128xf32>
      %325 = arith.addf %312, %324 : vector<28x128xf32>
      %c24 = arith.constant 24 : index
      %c0_275 = arith.constant 0 : index
      %c0_276 = arith.constant 0 : index
      %326 = vector.load %arg2[%c24, %c0_275, %c0_276] : memref<25x16x128xf32, #tpu.memory_space<vmem>>, vector<1x16x128xf32>
      %327 = vector.shape_cast %326 : vector<1x16x128xf32> to vector<16x128xf32>
      %c0_277 = arith.constant 0 : index
      %328 = arith.index_cast %273 : i32 to index
      %c4_278 = arith.constant 4 : index
      %c0_279 = arith.constant 0 : index
      %329 = vector.load %arg1[%c0_277, %328, %c4_278, %c0_279] : memref<1x32x32x16xf32, #tpu.memory_space<vmem>>, vector<1x1x28x16xf32>
      %330 = vector.shape_cast %329 : vector<1x1x28x16xf32> to vector<28x16xf32>
      %c1_i32_280 = arith.constant 1 : i32
      %331 = arith.addi %273, %c1_i32_280 : i32
      %c0_281 = arith.constant 0 : index
      %332 = arith.index_cast %331 : i32 to index
      %c4_282 = arith.constant 4 : index
      %c0_283 = arith.constant 0 : index
      %333 = vector.load %arg1[%c0_281, %332, %c4_282, %c0_283] : memref<1x32x32x16xf32, #tpu.memory_space<vmem>>, vector<1x1x28x16xf32>
      %334 = vector.shape_cast %333 : vector<1x1x28x16xf32> to vector<28x16xf32>
      %cst_284 = arith.constant dense<0.000000e+00> : vector<28x128xf32>
      %335 = tpu.matmul %330, %327, %cst_284 {dimension_numbers = #tpu.dot_dimension_numbers<[1], [0], [0], [1], [0, 0, 1, 1], [], []>} : vector<28x16xf32>, vector<16x128xf32>, vector<28x128xf32> -> vector<28x128xf32>
      %336 = arith.addf %323, %335 : vector<28x128xf32>
      %cst_285 = arith.constant dense<0.000000e+00> : vector<28x128xf32>
      %337 = tpu.matmul %334, %327, %cst_285 {dimension_numbers = #tpu.dot_dimension_numbers<[1], [0], [0], [1], [0, 0, 1, 1], [], []>} : vector<28x16xf32>, vector<16x128xf32>, vector<28x128xf32> -> vector<28x128xf32>
      %338 = arith.addf %325, %337 : vector<28x128xf32>
      %339 = vector.broadcast %0 : vector<1x128xf32> to vector<28x128xf32>
      %340 = arith.addf %336, %339 : vector<28x128xf32>
      %cst_286 = arith.constant 0.000000e+00 : f32
      %341 = vector.broadcast %cst_286 : f32 to vector<28x128xf32>
      %342 = arith.maximumf %340, %341 : vector<28x128xf32>
      %343 = vector.broadcast %0 : vector<1x128xf32> to vector<28x128xf32>
      %344 = arith.addf %338, %343 : vector<28x128xf32>
      %cst_287 = arith.constant 0.000000e+00 : f32
      %345 = vector.broadcast %cst_287 : f32 to vector<28x128xf32>
      %346 = arith.maximumf %344, %345 : vector<28x128xf32>
      %347 = arith.maximumf %342, %346 : vector<28x128xf32>
      %c0_288 = arith.constant 0 : index
      %c0_289 = arith.constant 0 : index
      %348 = vector.load %arg5[%c0_288, %c0_289] : memref<28x128xf32, #tpu.memory_space<vmem>>, vector<28x128xf32>
      tpu.vector_store %arg5[%c0_288, %c0_289], %347 {strides = array<i32>} : memref<28x128xf32, #tpu.memory_space<vmem>>, vector<28x128xf32>,
      %c0_290 = arith.constant 0 : index
      %c0_291 = arith.constant 0 : index
      %349 = tpu.strided_load %arg5[%c0_290, %c0_291] {strides = array<i32: 2, 1>} : memref<28x128xf32, #tpu.memory_space<vmem>>, vector<14x128xf32>
      %c1_292 = arith.constant 1 : index
      %c0_293 = arith.constant 0 : index
      %350 = tpu.strided_load %arg5[%c1_292, %c0_293] {strides = array<i32: 2, 1>} : memref<28x128xf32, #tpu.memory_space<vmem>>, vector<14x128xf32>
      %351 = arith.maximumf %349, %350 : vector<14x128xf32>
      %c0_294 = arith.constant 0 : index
      %352 = arith.index_cast %arg6 : i32 to index
      %c0_295 = arith.constant 0 : index
      %c0_296 = arith.constant 0 : index
      %353 = vector.load %arg4[%c0_294, %352, %c0_295, %c0_296] : memref<1x14x14x128xf32, #tpu.memory_space<vmem>>, vector<1x1x14x128xf32>
      %354 = vector.shape_cast %353 : vector<1x1x14x128xf32> to vector<14x128xf32>
      %355 = vector.shape_cast %351 : vector<14x128xf32> to vector<1x1x14x128xf32>
      tpu.vector_store %arg4[%c0_294, %352, %c0_295, %c0_296], %355 {strides = array<i32>} : memref<1x14x14x128xf32, #tpu.memory_space<vmem>>, vector<1x1x14x128xf32>,
    }
    %c14_i32_1 = arith.constant 14 : i32
    return
  }
  func.func @transform_0(%arg0: i32) -> (i32, i32, i32, i32) {
    %c0_i32 = arith.constant 0 : i32
    %c0_i32_0 = arith.constant 0 : i32
    %c0_i32_1 = arith.constant 0 : i32
    %c0_i32_2 = arith.constant 0 : i32
    return %arg0, %c0_i32, %c0_i32_0, %c0_i32_1 : i32, i32, i32, i32
  }
  func.func @transform_1(%arg0: i32) -> (i32, i32, i32) {
    %c0_i32 = arith.constant 0 : i32
    %c0_i32_0 = arith.constant 0 : i32
    %c0_i32_1 = arith.constant 0 : i32
    %c0_i32_2 = arith.constant 0 : i32
    return %c0_i32, %c0_i32_0, %c0_i32_1 : i32, i32, i32
  }
  func.func @transform_2(%arg0: i32) -> (i32, i32) {
    %c0_i32 = arith.constant 0 : i32
    %c0_i32_0 = arith.constant 0 : i32
    %c0_i32_1 = arith.constant 0 : i32
    return %c0_i32, %c0_i32_0 : i32, i32
  }
  func.func @transform_3(%arg0: i32) -> (i32, i32, i32, i32) {
    %c0_i32 = arith.constant 0 : i32
    %c0_i32_0 = arith.constant 0 : i32
    %c0_i32_1 = arith.constant 0 : i32
    %c0_i32_2 = arith.constant 0 : i32
    return %arg0, %c0_i32, %c0_i32_0, %c0_i32_1 : i32, i32, i32, i32
  }
}

module attributes {stable_mosaic.version = 11 : i64} {
  func.func @_linear_kernel(%arg0: i32, %arg1: memref<2x6272xbf16, #tpu.memory_space<vmem>>, %arg2: memref<6272x128xbf16, #tpu.memory_space<vmem>>, %arg3: memref<1x128xf32, #tpu.memory_space<vmem>>, %arg4: memref<2x128xf32, #tpu.memory_space<vmem>>) attributes {dimension_semantics = [#tpu.dimension_semantics<parallel>], iteration_bounds = array<i64: 1>, scalar_prefetch = 0 : i64, scratch_operands = 0 : i64, tpu.core_type = #tpu.core_type<tc>, window_params = [{transform_indices = @transform_0, window_bounds = array<i64: 2, 6272>}, {pipeline_mode = #tpu.pipeline_mode<synchronous>, transform_indices = @transform_1, window_bounds = array<i64: 6272, 128>}, {pipeline_mode = #tpu.pipeline_mode<synchronous>, transform_indices = @transform_2, window_bounds = array<i64: 1, 128>}, {transform_indices = @transform_3, window_bounds = array<i64: 2, 128>}]} {
    %c0 = arith.constant 0 : index
    %c0_0 = arith.constant 0 : index
    %0 = vector.load %arg1[%c0, %c0_0] : memref<2x6272xbf16, #tpu.memory_space<vmem>>, vector<2x6272xbf16>
    %c0_1 = arith.constant 0 : index
    %c0_2 = arith.constant 0 : index
    %1 = vector.load %arg2[%c0_1, %c0_2] : memref<6272x128xbf16, #tpu.memory_space<vmem>>, vector<6272x128xbf16>
    %cst = arith.constant dense<0.000000e+00> : vector<2x128xf32>
    %2 = tpu.matmul %0, %1, %cst {dimension_numbers = #tpu.dot_dimension_numbers<[1], [0], [0], [1], [0, 0, 1, 1], [], []>} : vector<2x6272xbf16>, vector<6272x128xbf16>, vector<2x128xf32> -> vector<2x128xf32>
    %c0_3 = arith.constant 0 : index
    %c0_4 = arith.constant 0 : index
    %3 = vector.load %arg3[%c0_3, %c0_4] : memref<1x128xf32, #tpu.memory_space<vmem>>, vector<1x128xf32>
    %4 = vector.broadcast %3 : vector<1x128xf32> to vector<2x128xf32>
    %5 = arith.addf %2, %4 : vector<2x128xf32>
    %c0_5 = arith.constant 0 : index
    %c0_6 = arith.constant 0 : index
    %6 = vector.load %arg4[%c0_5, %c0_6] : memref<2x128xf32, #tpu.memory_space<vmem>>, vector<2x128xf32>
    tpu.vector_store %arg4[%c0_5, %c0_6], %5 {strides = array<i32>} : memref<2x128xf32, #tpu.memory_space<vmem>>, vector<2x128xf32>,
    return
  }
  func.func @transform_0(%arg0: i32) -> (i32, i32) {
    %c0_i32 = arith.constant 0 : i32
    %c0_i32_0 = arith.constant 0 : i32
    return %arg0, %c0_i32 : i32, i32
  }
  func.func @transform_1(%arg0: i32) -> (i32, i32) {
    %c0_i32 = arith.constant 0 : i32
    %c0_i32_0 = arith.constant 0 : i32
    %c0_i32_1 = arith.constant 0 : i32
    return %c0_i32, %c0_i32_0 : i32, i32
  }
  func.func @transform_2(%arg0: i32) -> (i32, i32) {
    %c0_i32 = arith.constant 0 : i32
    %c0_i32_0 = arith.constant 0 : i32
    %c0_i32_1 = arith.constant 0 : i32
    return %c0_i32, %c0_i32_0 : i32, i32
  }
  func.func @transform_3(%arg0: i32) -> (i32, i32) {
    %c0_i32 = arith.constant 0 : i32
    %c0_i32_0 = arith.constant 0 : i32
    return %arg0, %c0_i32 : i32, i32
  }
}

module attributes {stable_mosaic.version = 11 : i64} {
  func.func @_conv_relu_pool_kernel(%arg0: i32, %arg1: memref<1x18x18x128xf32, #tpu.memory_space<vmem>>, %arg2: memref<25x128x128xf32, #tpu.memory_space<vmem>>, %arg3: memref<1x128xf32, #tpu.memory_space<vmem>>, %arg4: memref<1x7x7x128xbf16, #tpu.memory_space<vmem>>, %arg5: memref<14x128xf32, #tpu.memory_space<vmem>>) attributes {dimension_semantics = [#tpu.dimension_semantics<parallel>], iteration_bounds = array<i64: 2>, scalar_prefetch = 0 : i64, scratch_operands = 1 : i64, tpu.core_type = #tpu.core_type<tc>, window_params = [{transform_indices = @transform_0, window_bounds = array<i64: 1, 18, 18, 128>}, {pipeline_mode = #tpu.pipeline_mode<synchronous>, transform_indices = @transform_1, window_bounds = array<i64: 25, 128, 128>}, {pipeline_mode = #tpu.pipeline_mode<synchronous>, transform_indices = @transform_2, window_bounds = array<i64: 1, 128>}, {transform_indices = @transform_3, window_bounds = array<i64: 1, 7, 7, 128>}]} {
    %c0 = arith.constant 0 : index
    %c0_0 = arith.constant 0 : index
    %0 = vector.load %arg3[%c0, %c0_0] : memref<1x128xf32, #tpu.memory_space<vmem>>, vector<1x128xf32>
    %c0_i32 = arith.constant 0 : i32
    %c7_i32 = arith.constant 7 : i32
    %1 = arith.addi %c0_i32, %c7_i32 : i32
    %c1_i32 = arith.constant 1 : i32
    scf.for %arg6 = %c0_i32 to %1 step %c1_i32  : i32 {
      %cst = arith.constant 0.000000e+00 : f32
      %2 = vector.broadcast %cst : f32 to vector<14x128xf32>
      %cst_2 = arith.constant 0.000000e+00 : f32
      %3 = vector.broadcast %cst_2 : f32 to vector<14x128xf32>
      %c2_i32 = arith.constant 2 : i32
      %4 = arith.muli %c2_i32, %arg6 : i32
      %c0_i32_3 = arith.constant 0 : i32
      %5 = arith.addi %4, %c0_i32_3 : i32
      %c0_4 = arith.constant 0 : index
      %c0_5 = arith.constant 0 : index
      %c0_6 = arith.constant 0 : index
      %6 = vector.load %arg2[%c0_4, %c0_5, %c0_6] : memref<25x128x128xf32, #tpu.memory_space<vmem>>, vector<1x128x128xf32>
      %7 = vector.shape_cast %6 : vector<1x128x128xf32> to vector<128x128xf32>
      %c0_7 = arith.constant 0 : index
      %8 = arith.index_cast %5 : i32 to index
      %c0_8 = arith.constant 0 : index
      %c0_9 = arith.constant 0 : index
      %9 = vector.load %arg1[%c0_7, %8, %c0_8, %c0_9] : memref<1x18x18x128xf32, #tpu.memory_space<vmem>>, vector<1x1x14x128xf32>
      %10 = vector.shape_cast %9 : vector<1x1x14x128xf32> to vector<14x128xf32>
      %c1_i32_10 = arith.constant 1 : i32
      %11 = arith.addi %5, %c1_i32_10 : i32
      %c0_11 = arith.constant 0 : index
      %12 = arith.index_cast %11 : i32 to index
      %c0_12 = arith.constant 0 : index
      %c0_13 = arith.constant 0 : index
      %13 = vector.load %arg1[%c0_11, %12, %c0_12, %c0_13] : memref<1x18x18x128xf32, #tpu.memory_space<vmem>>, vector<1x1x14x128xf32>
      %14 = vector.shape_cast %13 : vector<1x1x14x128xf32> to vector<14x128xf32>
      %cst_14 = arith.constant dense<0.000000e+00> : vector<14x128xf32>
      %15 = tpu.matmul %10, %7, %cst_14 {dimension_numbers = #tpu.dot_dimension_numbers<[1], [0], [0], [1], [0, 0, 1, 1], [], []>} : vector<14x128xf32>, vector<128x128xf32>, vector<14x128xf32> -> vector<14x128xf32>
      %16 = arith.addf %2, %15 : vector<14x128xf32>
      %cst_15 = arith.constant dense<0.000000e+00> : vector<14x128xf32>
      %17 = tpu.matmul %14, %7, %cst_15 {dimension_numbers = #tpu.dot_dimension_numbers<[1], [0], [0], [1], [0, 0, 1, 1], [], []>} : vector<14x128xf32>, vector<128x128xf32>, vector<14x128xf32> -> vector<14x128xf32>
      %18 = arith.addf %3, %17 : vector<14x128xf32>
      %c1 = arith.constant 1 : index
      %c0_16 = arith.constant 0 : index
      %c0_17 = arith.constant 0 : index
      %19 = vector.load %arg2[%c1, %c0_16, %c0_17] : memref<25x128x128xf32, #tpu.memory_space<vmem>>, vector<1x128x128xf32>
      %20 = vector.shape_cast %19 : vector<1x128x128xf32> to vector<128x128xf32>
      %c0_18 = arith.constant 0 : index
      %21 = arith.index_cast %5 : i32 to index
      %c1_19 = arith.constant 1 : index
      %c0_20 = arith.constant 0 : index
      %22 = vector.load %arg1[%c0_18, %21, %c1_19, %c0_20] : memref<1x18x18x128xf32, #tpu.memory_space<vmem>>, vector<1x1x14x128xf32>
      %23 = vector.shape_cast %22 : vector<1x1x14x128xf32> to vector<14x128xf32>
      %c1_i32_21 = arith.constant 1 : i32
      %24 = arith.addi %5, %c1_i32_21 : i32
      %c0_22 = arith.constant 0 : index
      %25 = arith.index_cast %24 : i32 to index
      %c1_23 = arith.constant 1 : index
      %c0_24 = arith.constant 0 : index
      %26 = vector.load %arg1[%c0_22, %25, %c1_23, %c0_24] : memref<1x18x18x128xf32, #tpu.memory_space<vmem>>, vector<1x1x14x128xf32>
      %27 = vector.shape_cast %26 : vector<1x1x14x128xf32> to vector<14x128xf32>
      %cst_25 = arith.constant dense<0.000000e+00> : vector<14x128xf32>
      %28 = tpu.matmul %23, %20, %cst_25 {dimension_numbers = #tpu.dot_dimension_numbers<[1], [0], [0], [1], [0, 0, 1, 1], [], []>} : vector<14x128xf32>, vector<128x128xf32>, vector<14x128xf32> -> vector<14x128xf32>
      %29 = arith.addf %16, %28 : vector<14x128xf32>
      %cst_26 = arith.constant dense<0.000000e+00> : vector<14x128xf32>
      %30 = tpu.matmul %27, %20, %cst_26 {dimension_numbers = #tpu.dot_dimension_numbers<[1], [0], [0], [1], [0, 0, 1, 1], [], []>} : vector<14x128xf32>, vector<128x128xf32>, vector<14x128xf32> -> vector<14x128xf32>
      %31 = arith.addf %18, %30 : vector<14x128xf32>
      %c2 = arith.constant 2 : index
      %c0_27 = arith.constant 0 : index
      %c0_28 = arith.constant 0 : index
      %32 = vector.load %arg2[%c2, %c0_27, %c0_28] : memref<25x128x128xf32, #tpu.memory_space<vmem>>, vector<1x128x128xf32>
      %33 = vector.shape_cast %32 : vector<1x128x128xf32> to vector<128x128xf32>
      %c0_29 = arith.constant 0 : index
      %34 = arith.index_cast %5 : i32 to index
      %c2_30 = arith.constant 2 : index
      %c0_31 = arith.constant 0 : index
      %35 = vector.load %arg1[%c0_29, %34, %c2_30, %c0_31] : memref<1x18x18x128xf32, #tpu.memory_space<vmem>>, vector<1x1x14x128xf32>
      %36 = vector.shape_cast %35 : vector<1x1x14x128xf32> to vector<14x128xf32>
      %c1_i32_32 = arith.constant 1 : i32
      %37 = arith.addi %5, %c1_i32_32 : i32
      %c0_33 = arith.constant 0 : index
      %38 = arith.index_cast %37 : i32 to index
      %c2_34 = arith.constant 2 : index
      %c0_35 = arith.constant 0 : index
      %39 = vector.load %arg1[%c0_33, %38, %c2_34, %c0_35] : memref<1x18x18x128xf32, #tpu.memory_space<vmem>>, vector<1x1x14x128xf32>
      %40 = vector.shape_cast %39 : vector<1x1x14x128xf32> to vector<14x128xf32>
      %cst_36 = arith.constant dense<0.000000e+00> : vector<14x128xf32>
      %41 = tpu.matmul %36, %33, %cst_36 {dimension_numbers = #tpu.dot_dimension_numbers<[1], [0], [0], [1], [0, 0, 1, 1], [], []>} : vector<14x128xf32>, vector<128x128xf32>, vector<14x128xf32> -> vector<14x128xf32>
      %42 = arith.addf %29, %41 : vector<14x128xf32>
      %cst_37 = arith.constant dense<0.000000e+00> : vector<14x128xf32>
      %43 = tpu.matmul %40, %33, %cst_37 {dimension_numbers = #tpu.dot_dimension_numbers<[1], [0], [0], [1], [0, 0, 1, 1], [], []>} : vector<14x128xf32>, vector<128x128xf32>, vector<14x128xf32> -> vector<14x128xf32>
      %44 = arith.addf %31, %43 : vector<14x128xf32>
      %c3 = arith.constant 3 : index
      %c0_38 = arith.constant 0 : index
      %c0_39 = arith.constant 0 : index
      %45 = vector.load %arg2[%c3, %c0_38, %c0_39] : memref<25x128x128xf32, #tpu.memory_space<vmem>>, vector<1x128x128xf32>
      %46 = vector.shape_cast %45 : vector<1x128x128xf32> to vector<128x128xf32>
      %c0_40 = arith.constant 0 : index
      %47 = arith.index_cast %5 : i32 to index
      %c3_41 = arith.constant 3 : index
      %c0_42 = arith.constant 0 : index
      %48 = vector.load %arg1[%c0_40, %47, %c3_41, %c0_42] : memref<1x18x18x128xf32, #tpu.memory_space<vmem>>, vector<1x1x14x128xf32>
      %49 = vector.shape_cast %48 : vector<1x1x14x128xf32> to vector<14x128xf32>
      %c1_i32_43 = arith.constant 1 : i32
      %50 = arith.addi %5, %c1_i32_43 : i32
      %c0_44 = arith.constant 0 : index
      %51 = arith.index_cast %50 : i32 to index
      %c3_45 = arith.constant 3 : index
      %c0_46 = arith.constant 0 : index
      %52 = vector.load %arg1[%c0_44, %51, %c3_45, %c0_46] : memref<1x18x18x128xf32, #tpu.memory_space<vmem>>, vector<1x1x14x128xf32>
      %53 = vector.shape_cast %52 : vector<1x1x14x128xf32> to vector<14x128xf32>
      %cst_47 = arith.constant dense<0.000000e+00> : vector<14x128xf32>
      %54 = tpu.matmul %49, %46, %cst_47 {dimension_numbers = #tpu.dot_dimension_numbers<[1], [0], [0], [1], [0, 0, 1, 1], [], []>} : vector<14x128xf32>, vector<128x128xf32>, vector<14x128xf32> -> vector<14x128xf32>
      %55 = arith.addf %42, %54 : vector<14x128xf32>
      %cst_48 = arith.constant dense<0.000000e+00> : vector<14x128xf32>
      %56 = tpu.matmul %53, %46, %cst_48 {dimension_numbers = #tpu.dot_dimension_numbers<[1], [0], [0], [1], [0, 0, 1, 1], [], []>} : vector<14x128xf32>, vector<128x128xf32>, vector<14x128xf32> -> vector<14x128xf32>
      %57 = arith.addf %44, %56 : vector<14x128xf32>
      %c4 = arith.constant 4 : index
      %c0_49 = arith.constant 0 : index
      %c0_50 = arith.constant 0 : index
      %58 = vector.load %arg2[%c4, %c0_49, %c0_50] : memref<25x128x128xf32, #tpu.memory_space<vmem>>, vector<1x128x128xf32>
      %59 = vector.shape_cast %58 : vector<1x128x128xf32> to vector<128x128xf32>
      %c0_51 = arith.constant 0 : index
      %60 = arith.index_cast %5 : i32 to index
      %c4_52 = arith.constant 4 : index
      %c0_53 = arith.constant 0 : index
      %61 = vector.load %arg1[%c0_51, %60, %c4_52, %c0_53] : memref<1x18x18x128xf32, #tpu.memory_space<vmem>>, vector<1x1x14x128xf32>
      %62 = vector.shape_cast %61 : vector<1x1x14x128xf32> to vector<14x128xf32>
      %c1_i32_54 = arith.constant 1 : i32
      %63 = arith.addi %5, %c1_i32_54 : i32
      %c0_55 = arith.constant 0 : index
      %64 = arith.index_cast %63 : i32 to index
      %c4_56 = arith.constant 4 : index
      %c0_57 = arith.constant 0 : index
      %65 = vector.load %arg1[%c0_55, %64, %c4_56, %c0_57] : memref<1x18x18x128xf32, #tpu.memory_space<vmem>>, vector<1x1x14x128xf32>
      %66 = vector.shape_cast %65 : vector<1x1x14x128xf32> to vector<14x128xf32>
      %cst_58 = arith.constant dense<0.000000e+00> : vector<14x128xf32>
      %67 = tpu.matmul %62, %59, %cst_58 {dimension_numbers = #tpu.dot_dimension_numbers<[1], [0], [0], [1], [0, 0, 1, 1], [], []>} : vector<14x128xf32>, vector<128x128xf32>, vector<14x128xf32> -> vector<14x128xf32>
      %68 = arith.addf %55, %67 : vector<14x128xf32>
      %cst_59 = arith.constant dense<0.000000e+00> : vector<14x128xf32>
      %69 = tpu.matmul %66, %59, %cst_59 {dimension_numbers = #tpu.dot_dimension_numbers<[1], [0], [0], [1], [0, 0, 1, 1], [], []>} : vector<14x128xf32>, vector<128x128xf32>, vector<14x128xf32> -> vector<14x128xf32>
      %70 = arith.addf %57, %69 : vector<14x128xf32>
      %c2_i32_60 = arith.constant 2 : i32
      %71 = arith.muli %c2_i32_60, %arg6 : i32
      %c1_i32_61 = arith.constant 1 : i32
      %72 = arith.addi %71, %c1_i32_61 : i32
      %c5 = arith.constant 5 : index
      %c0_62 = arith.constant 0 : index
      %c0_63 = arith.constant 0 : index
      %73 = vector.load %arg2[%c5, %c0_62, %c0_63] : memref<25x128x128xf32, #tpu.memory_space<vmem>>, vector<1x128x128xf32>
      %74 = vector.shape_cast %73 : vector<1x128x128xf32> to vector<128x128xf32>
      %c0_64 = arith.constant 0 : index
      %75 = arith.index_cast %72 : i32 to index
      %c0_65 = arith.constant 0 : index
      %c0_66 = arith.constant 0 : index
      %76 = vector.load %arg1[%c0_64, %75, %c0_65, %c0_66] : memref<1x18x18x128xf32, #tpu.memory_space<vmem>>, vector<1x1x14x128xf32>
      %77 = vector.shape_cast %76 : vector<1x1x14x128xf32> to vector<14x128xf32>
      %c1_i32_67 = arith.constant 1 : i32
      %78 = arith.addi %72, %c1_i32_67 : i32
      %c0_68 = arith.constant 0 : index
      %79 = arith.index_cast %78 : i32 to index
      %c0_69 = arith.constant 0 : index
      %c0_70 = arith.constant 0 : index
      %80 = vector.load %arg1[%c0_68, %79, %c0_69, %c0_70] : memref<1x18x18x128xf32, #tpu.memory_space<vmem>>, vector<1x1x14x128xf32>
      %81 = vector.shape_cast %80 : vector<1x1x14x128xf32> to vector<14x128xf32>
      %cst_71 = arith.constant dense<0.000000e+00> : vector<14x128xf32>
      %82 = tpu.matmul %77, %74, %cst_71 {dimension_numbers = #tpu.dot_dimension_numbers<[1], [0], [0], [1], [0, 0, 1, 1], [], []>} : vector<14x128xf32>, vector<128x128xf32>, vector<14x128xf32> -> vector<14x128xf32>
      %83 = arith.addf %68, %82 : vector<14x128xf32>
      %cst_72 = arith.constant dense<0.000000e+00> : vector<14x128xf32>
      %84 = tpu.matmul %81, %74, %cst_72 {dimension_numbers = #tpu.dot_dimension_numbers<[1], [0], [0], [1], [0, 0, 1, 1], [], []>} : vector<14x128xf32>, vector<128x128xf32>, vector<14x128xf32> -> vector<14x128xf32>
      %85 = arith.addf %70, %84 : vector<14x128xf32>
      %c6 = arith.constant 6 : index
      %c0_73 = arith.constant 0 : index
      %c0_74 = arith.constant 0 : index
      %86 = vector.load %arg2[%c6, %c0_73, %c0_74] : memref<25x128x128xf32, #tpu.memory_space<vmem>>, vector<1x128x128xf32>
      %87 = vector.shape_cast %86 : vector<1x128x128xf32> to vector<128x128xf32>
      %c0_75 = arith.constant 0 : index
      %88 = arith.index_cast %72 : i32 to index
      %c1_76 = arith.constant 1 : index
      %c0_77 = arith.constant 0 : index
      %89 = vector.load %arg1[%c0_75, %88, %c1_76, %c0_77] : memref<1x18x18x128xf32, #tpu.memory_space<vmem>>, vector<1x1x14x128xf32>
      %90 = vector.shape_cast %89 : vector<1x1x14x128xf32> to vector<14x128xf32>
      %c1_i32_78 = arith.constant 1 : i32
      %91 = arith.addi %72, %c1_i32_78 : i32
      %c0_79 = arith.constant 0 : index
      %92 = arith.index_cast %91 : i32 to index
      %c1_80 = arith.constant 1 : index
      %c0_81 = arith.constant 0 : index
      %93 = vector.load %arg1[%c0_79, %92, %c1_80, %c0_81] : memref<1x18x18x128xf32, #tpu.memory_space<vmem>>, vector<1x1x14x128xf32>
      %94 = vector.shape_cast %93 : vector<1x1x14x128xf32> to vector<14x128xf32>
      %cst_82 = arith.constant dense<0.000000e+00> : vector<14x128xf32>
      %95 = tpu.matmul %90, %87, %cst_82 {dimension_numbers = #tpu.dot_dimension_numbers<[1], [0], [0], [1], [0, 0, 1, 1], [], []>} : vector<14x128xf32>, vector<128x128xf32>, vector<14x128xf32> -> vector<14x128xf32>
      %96 = arith.addf %83, %95 : vector<14x128xf32>
      %cst_83 = arith.constant dense<0.000000e+00> : vector<14x128xf32>
      %97 = tpu.matmul %94, %87, %cst_83 {dimension_numbers = #tpu.dot_dimension_numbers<[1], [0], [0], [1], [0, 0, 1, 1], [], []>} : vector<14x128xf32>, vector<128x128xf32>, vector<14x128xf32> -> vector<14x128xf32>
      %98 = arith.addf %85, %97 : vector<14x128xf32>
      %c7 = arith.constant 7 : index
      %c0_84 = arith.constant 0 : index
      %c0_85 = arith.constant 0 : index
      %99 = vector.load %arg2[%c7, %c0_84, %c0_85] : memref<25x128x128xf32, #tpu.memory_space<vmem>>, vector<1x128x128xf32>
      %100 = vector.shape_cast %99 : vector<1x128x128xf32> to vector<128x128xf32>
      %c0_86 = arith.constant 0 : index
      %101 = arith.index_cast %72 : i32 to index
      %c2_87 = arith.constant 2 : index
      %c0_88 = arith.constant 0 : index
      %102 = vector.load %arg1[%c0_86, %101, %c2_87, %c0_88] : memref<1x18x18x128xf32, #tpu.memory_space<vmem>>, vector<1x1x14x128xf32>
      %103 = vector.shape_cast %102 : vector<1x1x14x128xf32> to vector<14x128xf32>
      %c1_i32_89 = arith.constant 1 : i32
      %104 = arith.addi %72, %c1_i32_89 : i32
      %c0_90 = arith.constant 0 : index
      %105 = arith.index_cast %104 : i32 to index
      %c2_91 = arith.constant 2 : index
      %c0_92 = arith.constant 0 : index
      %106 = vector.load %arg1[%c0_90, %105, %c2_91, %c0_92] : memref<1x18x18x128xf32, #tpu.memory_space<vmem>>, vector<1x1x14x128xf32>
      %107 = vector.shape_cast %106 : vector<1x1x14x128xf32> to vector<14x128xf32>
      %cst_93 = arith.constant dense<0.000000e+00> : vector<14x128xf32>
      %108 = tpu.matmul %103, %100, %cst_93 {dimension_numbers = #tpu.dot_dimension_numbers<[1], [0], [0], [1], [0, 0, 1, 1], [], []>} : vector<14x128xf32>, vector<128x128xf32>, vector<14x128xf32> -> vector<14x128xf32>
      %109 = arith.addf %96, %108 : vector<14x128xf32>
      %cst_94 = arith.constant dense<0.000000e+00> : vector<14x128xf32>
      %110 = tpu.matmul %107, %100, %cst_94 {dimension_numbers = #tpu.dot_dimension_numbers<[1], [0], [0], [1], [0, 0, 1, 1], [], []>} : vector<14x128xf32>, vector<128x128xf32>, vector<14x128xf32> -> vector<14x128xf32>
      %111 = arith.addf %98, %110 : vector<14x128xf32>
      %c8 = arith.constant 8 : index
      %c0_95 = arith.constant 0 : index
      %c0_96 = arith.constant 0 : index
      %112 = vector.load %arg2[%c8, %c0_95, %c0_96] : memref<25x128x128xf32, #tpu.memory_space<vmem>>, vector<1x128x128xf32>
      %113 = vector.shape_cast %112 : vector<1x128x128xf32> to vector<128x128xf32>
      %c0_97 = arith.constant 0 : index
      %114 = arith.index_cast %72 : i32 to index
      %c3_98 = arith.constant 3 : index
      %c0_99 = arith.constant 0 : index
      %115 = vector.load %arg1[%c0_97, %114, %c3_98, %c0_99] : memref<1x18x18x128xf32, #tpu.memory_space<vmem>>, vector<1x1x14x128xf32>
      %116 = vector.shape_cast %115 : vector<1x1x14x128xf32> to vector<14x128xf32>
      %c1_i32_100 = arith.constant 1 : i32
      %117 = arith.addi %72, %c1_i32_100 : i32
      %c0_101 = arith.constant 0 : index
      %118 = arith.index_cast %117 : i32 to index
      %c3_102 = arith.constant 3 : index
      %c0_103 = arith.constant 0 : index
      %119 = vector.load %arg1[%c0_101, %118, %c3_102, %c0_103] : memref<1x18x18x128xf32, #tpu.memory_space<vmem>>, vector<1x1x14x128xf32>
      %120 = vector.shape_cast %119 : vector<1x1x14x128xf32> to vector<14x128xf32>
      %cst_104 = arith.constant dense<0.000000e+00> : vector<14x128xf32>
      %121 = tpu.matmul %116, %113, %cst_104 {dimension_numbers = #tpu.dot_dimension_numbers<[1], [0], [0], [1], [0, 0, 1, 1], [], []>} : vector<14x128xf32>, vector<128x128xf32>, vector<14x128xf32> -> vector<14x128xf32>
      %122 = arith.addf %109, %121 : vector<14x128xf32>
      %cst_105 = arith.constant dense<0.000000e+00> : vector<14x128xf32>
      %123 = tpu.matmul %120, %113, %cst_105 {dimension_numbers = #tpu.dot_dimension_numbers<[1], [0], [0], [1], [0, 0, 1, 1], [], []>} : vector<14x128xf32>, vector<128x128xf32>, vector<14x128xf32> -> vector<14x128xf32>
      %124 = arith.addf %111, %123 : vector<14x128xf32>
      %c9 = arith.constant 9 : index
      %c0_106 = arith.constant 0 : index
      %c0_107 = arith.constant 0 : index
      %125 = vector.load %arg2[%c9, %c0_106, %c0_107] : memref<25x128x128xf32, #tpu.memory_space<vmem>>, vector<1x128x128xf32>
      %126 = vector.shape_cast %125 : vector<1x128x128xf32> to vector<128x128xf32>
      %c0_108 = arith.constant 0 : index
      %127 = arith.index_cast %72 : i32 to index
      %c4_109 = arith.constant 4 : index
      %c0_110 = arith.constant 0 : index
      %128 = vector.load %arg1[%c0_108, %127, %c4_109, %c0_110] : memref<1x18x18x128xf32, #tpu.memory_space<vmem>>, vector<1x1x14x128xf32>
      %129 = vector.shape_cast %128 : vector<1x1x14x128xf32> to vector<14x128xf32>
      %c1_i32_111 = arith.constant 1 : i32
      %130 = arith.addi %72, %c1_i32_111 : i32
      %c0_112 = arith.constant 0 : index
      %131 = arith.index_cast %130 : i32 to index
      %c4_113 = arith.constant 4 : index
      %c0_114 = arith.constant 0 : index
      %132 = vector.load %arg1[%c0_112, %131, %c4_113, %c0_114] : memref<1x18x18x128xf32, #tpu.memory_space<vmem>>, vector<1x1x14x128xf32>
      %133 = vector.shape_cast %132 : vector<1x1x14x128xf32> to vector<14x128xf32>
      %cst_115 = arith.constant dense<0.000000e+00> : vector<14x128xf32>
      %134 = tpu.matmul %129, %126, %cst_115 {dimension_numbers = #tpu.dot_dimension_numbers<[1], [0], [0], [1], [0, 0, 1, 1], [], []>} : vector<14x128xf32>, vector<128x128xf32>, vector<14x128xf32> -> vector<14x128xf32>
      %135 = arith.addf %122, %134 : vector<14x128xf32>
      %cst_116 = arith.constant dense<0.000000e+00> : vector<14x128xf32>
      %136 = tpu.matmul %133, %126, %cst_116 {dimension_numbers = #tpu.dot_dimension_numbers<[1], [0], [0], [1], [0, 0, 1, 1], [], []>} : vector<14x128xf32>, vector<128x128xf32>, vector<14x128xf32> -> vector<14x128xf32>
      %137 = arith.addf %124, %136 : vector<14x128xf32>
      %c2_i32_117 = arith.constant 2 : i32
      %138 = arith.muli %c2_i32_117, %arg6 : i32
      %c2_i32_118 = arith.constant 2 : i32
      %139 = arith.addi %138, %c2_i32_118 : i32
      %c10 = arith.constant 10 : index
      %c0_119 = arith.constant 0 : index
      %c0_120 = arith.constant 0 : index
      %140 = vector.load %arg2[%c10, %c0_119, %c0_120] : memref<25x128x128xf32, #tpu.memory_space<vmem>>, vector<1x128x128xf32>
      %141 = vector.shape_cast %140 : vector<1x128x128xf32> to vector<128x128xf32>
      %c0_121 = arith.constant 0 : index
      %142 = arith.index_cast %139 : i32 to index
      %c0_122 = arith.constant 0 : index
      %c0_123 = arith.constant 0 : index
      %143 = vector.load %arg1[%c0_121, %142, %c0_122, %c0_123] : memref<1x18x18x128xf32, #tpu.memory_space<vmem>>, vector<1x1x14x128xf32>
      %144 = vector.shape_cast %143 : vector<1x1x14x128xf32> to vector<14x128xf32>
      %c1_i32_124 = arith.constant 1 : i32
      %145 = arith.addi %139, %c1_i32_124 : i32
      %c0_125 = arith.constant 0 : index
      %146 = arith.index_cast %145 : i32 to index
      %c0_126 = arith.constant 0 : index
      %c0_127 = arith.constant 0 : index
      %147 = vector.load %arg1[%c0_125, %146, %c0_126, %c0_127] : memref<1x18x18x128xf32, #tpu.memory_space<vmem>>, vector<1x1x14x128xf32>
      %148 = vector.shape_cast %147 : vector<1x1x14x128xf32> to vector<14x128xf32>
      %cst_128 = arith.constant dense<0.000000e+00> : vector<14x128xf32>
      %149 = tpu.matmul %144, %141, %cst_128 {dimension_numbers = #tpu.dot_dimension_numbers<[1], [0], [0], [1], [0, 0, 1, 1], [], []>} : vector<14x128xf32>, vector<128x128xf32>, vector<14x128xf32> -> vector<14x128xf32>
      %150 = arith.addf %135, %149 : vector<14x128xf32>
      %cst_129 = arith.constant dense<0.000000e+00> : vector<14x128xf32>
      %151 = tpu.matmul %148, %141, %cst_129 {dimension_numbers = #tpu.dot_dimension_numbers<[1], [0], [0], [1], [0, 0, 1, 1], [], []>} : vector<14x128xf32>, vector<128x128xf32>, vector<14x128xf32> -> vector<14x128xf32>
      %152 = arith.addf %137, %151 : vector<14x128xf32>
      %c11 = arith.constant 11 : index
      %c0_130 = arith.constant 0 : index
      %c0_131 = arith.constant 0 : index
      %153 = vector.load %arg2[%c11, %c0_130, %c0_131] : memref<25x128x128xf32, #tpu.memory_space<vmem>>, vector<1x128x128xf32>
      %154 = vector.shape_cast %153 : vector<1x128x128xf32> to vector<128x128xf32>
      %c0_132 = arith.constant 0 : index
      %155 = arith.index_cast %139 : i32 to index
      %c1_133 = arith.constant 1 : index
      %c0_134 = arith.constant 0 : index
      %156 = vector.load %arg1[%c0_132, %155, %c1_133, %c0_134] : memref<1x18x18x128xf32, #tpu.memory_space<vmem>>, vector<1x1x14x128xf32>
      %157 = vector.shape_cast %156 : vector<1x1x14x128xf32> to vector<14x128xf32>
      %c1_i32_135 = arith.constant 1 : i32
      %158 = arith.addi %139, %c1_i32_135 : i32
      %c0_136 = arith.constant 0 : index
      %159 = arith.index_cast %158 : i32 to index
      %c1_137 = arith.constant 1 : index
      %c0_138 = arith.constant 0 : index
      %160 = vector.load %arg1[%c0_136, %159, %c1_137, %c0_138] : memref<1x18x18x128xf32, #tpu.memory_space<vmem>>, vector<1x1x14x128xf32>
      %161 = vector.shape_cast %160 : vector<1x1x14x128xf32> to vector<14x128xf32>
      %cst_139 = arith.constant dense<0.000000e+00> : vector<14x128xf32>
      %162 = tpu.matmul %157, %154, %cst_139 {dimension_numbers = #tpu.dot_dimension_numbers<[1], [0], [0], [1], [0, 0, 1, 1], [], []>} : vector<14x128xf32>, vector<128x128xf32>, vector<14x128xf32> -> vector<14x128xf32>
      %163 = arith.addf %150, %162 : vector<14x128xf32>
      %cst_140 = arith.constant dense<0.000000e+00> : vector<14x128xf32>
      %164 = tpu.matmul %161, %154, %cst_140 {dimension_numbers = #tpu.dot_dimension_numbers<[1], [0], [0], [1], [0, 0, 1, 1], [], []>} : vector<14x128xf32>, vector<128x128xf32>, vector<14x128xf32> -> vector<14x128xf32>
      %165 = arith.addf %152, %164 : vector<14x128xf32>
      %c12 = arith.constant 12 : index
      %c0_141 = arith.constant 0 : index
      %c0_142 = arith.constant 0 : index
      %166 = vector.load %arg2[%c12, %c0_141, %c0_142] : memref<25x128x128xf32, #tpu.memory_space<vmem>>, vector<1x128x128xf32>
      %167 = vector.shape_cast %166 : vector<1x128x128xf32> to vector<128x128xf32>
      %c0_143 = arith.constant 0 : index
      %168 = arith.index_cast %139 : i32 to index
      %c2_144 = arith.constant 2 : index
      %c0_145 = arith.constant 0 : index
      %169 = vector.load %arg1[%c0_143, %168, %c2_144, %c0_145] : memref<1x18x18x128xf32, #tpu.memory_space<vmem>>, vector<1x1x14x128xf32>
      %170 = vector.shape_cast %169 : vector<1x1x14x128xf32> to vector<14x128xf32>
      %c1_i32_146 = arith.constant 1 : i32
      %171 = arith.addi %139, %c1_i32_146 : i32
      %c0_147 = arith.constant 0 : index
      %172 = arith.index_cast %171 : i32 to index
      %c2_148 = arith.constant 2 : index
      %c0_149 = arith.constant 0 : index
      %173 = vector.load %arg1[%c0_147, %172, %c2_148, %c0_149] : memref<1x18x18x128xf32, #tpu.memory_space<vmem>>, vector<1x1x14x128xf32>
      %174 = vector.shape_cast %173 : vector<1x1x14x128xf32> to vector<14x128xf32>
      %cst_150 = arith.constant dense<0.000000e+00> : vector<14x128xf32>
      %175 = tpu.matmul %170, %167, %cst_150 {dimension_numbers = #tpu.dot_dimension_numbers<[1], [0], [0], [1], [0, 0, 1, 1], [], []>} : vector<14x128xf32>, vector<128x128xf32>, vector<14x128xf32> -> vector<14x128xf32>
      %176 = arith.addf %163, %175 : vector<14x128xf32>
      %cst_151 = arith.constant dense<0.000000e+00> : vector<14x128xf32>
      %177 = tpu.matmul %174, %167, %cst_151 {dimension_numbers = #tpu.dot_dimension_numbers<[1], [0], [0], [1], [0, 0, 1, 1], [], []>} : vector<14x128xf32>, vector<128x128xf32>, vector<14x128xf32> -> vector<14x128xf32>
      %178 = arith.addf %165, %177 : vector<14x128xf32>
      %c13 = arith.constant 13 : index
      %c0_152 = arith.constant 0 : index
      %c0_153 = arith.constant 0 : index
      %179 = vector.load %arg2[%c13, %c0_152, %c0_153] : memref<25x128x128xf32, #tpu.memory_space<vmem>>, vector<1x128x128xf32>
      %180 = vector.shape_cast %179 : vector<1x128x128xf32> to vector<128x128xf32>
      %c0_154 = arith.constant 0 : index
      %181 = arith.index_cast %139 : i32 to index
      %c3_155 = arith.constant 3 : index
      %c0_156 = arith.constant 0 : index
      %182 = vector.load %arg1[%c0_154, %181, %c3_155, %c0_156] : memref<1x18x18x128xf32, #tpu.memory_space<vmem>>, vector<1x1x14x128xf32>
      %183 = vector.shape_cast %182 : vector<1x1x14x128xf32> to vector<14x128xf32>
      %c1_i32_157 = arith.constant 1 : i32
      %184 = arith.addi %139, %c1_i32_157 : i32
      %c0_158 = arith.constant 0 : index
      %185 = arith.index_cast %184 : i32 to index
      %c3_159 = arith.constant 3 : index
      %c0_160 = arith.constant 0 : index
      %186 = vector.load %arg1[%c0_158, %185, %c3_159, %c0_160] : memref<1x18x18x128xf32, #tpu.memory_space<vmem>>, vector<1x1x14x128xf32>
      %187 = vector.shape_cast %186 : vector<1x1x14x128xf32> to vector<14x128xf32>
      %cst_161 = arith.constant dense<0.000000e+00> : vector<14x128xf32>
      %188 = tpu.matmul %183, %180, %cst_161 {dimension_numbers = #tpu.dot_dimension_numbers<[1], [0], [0], [1], [0, 0, 1, 1], [], []>} : vector<14x128xf32>, vector<128x128xf32>, vector<14x128xf32> -> vector<14x128xf32>
      %189 = arith.addf %176, %188 : vector<14x128xf32>
      %cst_162 = arith.constant dense<0.000000e+00> : vector<14x128xf32>
      %190 = tpu.matmul %187, %180, %cst_162 {dimension_numbers = #tpu.dot_dimension_numbers<[1], [0], [0], [1], [0, 0, 1, 1], [], []>} : vector<14x128xf32>, vector<128x128xf32>, vector<14x128xf32> -> vector<14x128xf32>
      %191 = arith.addf %178, %190 : vector<14x128xf32>
      %c14 = arith.constant 14 : index
      %c0_163 = arith.constant 0 : index
      %c0_164 = arith.constant 0 : index
      %192 = vector.load %arg2[%c14, %c0_163, %c0_164] : memref<25x128x128xf32, #tpu.memory_space<vmem>>, vector<1x128x128xf32>
      %193 = vector.shape_cast %192 : vector<1x128x128xf32> to vector<128x128xf32>
      %c0_165 = arith.constant 0 : index
      %194 = arith.index_cast %139 : i32 to index
      %c4_166 = arith.constant 4 : index
      %c0_167 = arith.constant 0 : index
      %195 = vector.load %arg1[%c0_165, %194, %c4_166, %c0_167] : memref<1x18x18x128xf32, #tpu.memory_space<vmem>>, vector<1x1x14x128xf32>
      %196 = vector.shape_cast %195 : vector<1x1x14x128xf32> to vector<14x128xf32>
      %c1_i32_168 = arith.constant 1 : i32
      %197 = arith.addi %139, %c1_i32_168 : i32
      %c0_169 = arith.constant 0 : index
      %198 = arith.index_cast %197 : i32 to index
      %c4_170 = arith.constant 4 : index
      %c0_171 = arith.constant 0 : index
      %199 = vector.load %arg1[%c0_169, %198, %c4_170, %c0_171] : memref<1x18x18x128xf32, #tpu.memory_space<vmem>>, vector<1x1x14x128xf32>
      %200 = vector.shape_cast %199 : vector<1x1x14x128xf32> to vector<14x128xf32>
      %cst_172 = arith.constant dense<0.000000e+00> : vector<14x128xf32>
      %201 = tpu.matmul %196, %193, %cst_172 {dimension_numbers = #tpu.dot_dimension_numbers<[1], [0], [0], [1], [0, 0, 1, 1], [], []>} : vector<14x128xf32>, vector<128x128xf32>, vector<14x128xf32> -> vector<14x128xf32>
      %202 = arith.addf %189, %201 : vector<14x128xf32>
      %cst_173 = arith.constant dense<0.000000e+00> : vector<14x128xf32>
      %203 = tpu.matmul %200, %193, %cst_173 {dimension_numbers = #tpu.dot_dimension_numbers<[1], [0], [0], [1], [0, 0, 1, 1], [], []>} : vector<14x128xf32>, vector<128x128xf32>, vector<14x128xf32> -> vector<14x128xf32>
      %204 = arith.addf %191, %203 : vector<14x128xf32>
      %c2_i32_174 = arith.constant 2 : i32
      %205 = arith.muli %c2_i32_174, %arg6 : i32
      %c3_i32 = arith.constant 3 : i32
      %206 = arith.addi %205, %c3_i32 : i32
      %c15 = arith.constant 15 : index
      %c0_175 = arith.constant 0 : index
      %c0_176 = arith.constant 0 : index
      %207 = vector.load %arg2[%c15, %c0_175, %c0_176] : memref<25x128x128xf32, #tpu.memory_space<vmem>>, vector<1x128x128xf32>
      %208 = vector.shape_cast %207 : vector<1x128x128xf32> to vector<128x128xf32>
      %c0_177 = arith.constant 0 : index
      %209 = arith.index_cast %206 : i32 to index
      %c0_178 = arith.constant 0 : index
      %c0_179 = arith.constant 0 : index
      %210 = vector.load %arg1[%c0_177, %209, %c0_178, %c0_179] : memref<1x18x18x128xf32, #tpu.memory_space<vmem>>, vector<1x1x14x128xf32>
      %211 = vector.shape_cast %210 : vector<1x1x14x128xf32> to vector<14x128xf32>
      %c1_i32_180 = arith.constant 1 : i32
      %212 = arith.addi %206, %c1_i32_180 : i32
      %c0_181 = arith.constant 0 : index
      %213 = arith.index_cast %212 : i32 to index
      %c0_182 = arith.constant 0 : index
      %c0_183 = arith.constant 0 : index
      %214 = vector.load %arg1[%c0_181, %213, %c0_182, %c0_183] : memref<1x18x18x128xf32, #tpu.memory_space<vmem>>, vector<1x1x14x128xf32>
      %215 = vector.shape_cast %214 : vector<1x1x14x128xf32> to vector<14x128xf32>
      %cst_184 = arith.constant dense<0.000000e+00> : vector<14x128xf32>
      %216 = tpu.matmul %211, %208, %cst_184 {dimension_numbers = #tpu.dot_dimension_numbers<[1], [0], [0], [1], [0, 0, 1, 1], [], []>} : vector<14x128xf32>, vector<128x128xf32>, vector<14x128xf32> -> vector<14x128xf32>
      %217 = arith.addf %202, %216 : vector<14x128xf32>
      %cst_185 = arith.constant dense<0.000000e+00> : vector<14x128xf32>
      %218 = tpu.matmul %215, %208, %cst_185 {dimension_numbers = #tpu.dot_dimension_numbers<[1], [0], [0], [1], [0, 0, 1, 1], [], []>} : vector<14x128xf32>, vector<128x128xf32>, vector<14x128xf32> -> vector<14x128xf32>
      %219 = arith.addf %204, %218 : vector<14x128xf32>
      %c16 = arith.constant 16 : index
      %c0_186 = arith.constant 0 : index
      %c0_187 = arith.constant 0 : index
      %220 = vector.load %arg2[%c16, %c0_186, %c0_187] : memref<25x128x128xf32, #tpu.memory_space<vmem>>, vector<1x128x128xf32>
      %221 = vector.shape_cast %220 : vector<1x128x128xf32> to vector<128x128xf32>
      %c0_188 = arith.constant 0 : index
      %222 = arith.index_cast %206 : i32 to index
      %c1_189 = arith.constant 1 : index
      %c0_190 = arith.constant 0 : index
      %223 = vector.load %arg1[%c0_188, %222, %c1_189, %c0_190] : memref<1x18x18x128xf32, #tpu.memory_space<vmem>>, vector<1x1x14x128xf32>
      %224 = vector.shape_cast %223 : vector<1x1x14x128xf32> to vector<14x128xf32>
      %c1_i32_191 = arith.constant 1 : i32
      %225 = arith.addi %206, %c1_i32_191 : i32
      %c0_192 = arith.constant 0 : index
      %226 = arith.index_cast %225 : i32 to index
      %c1_193 = arith.constant 1 : index
      %c0_194 = arith.constant 0 : index
      %227 = vector.load %arg1[%c0_192, %226, %c1_193, %c0_194] : memref<1x18x18x128xf32, #tpu.memory_space<vmem>>, vector<1x1x14x128xf32>
      %228 = vector.shape_cast %227 : vector<1x1x14x128xf32> to vector<14x128xf32>
      %cst_195 = arith.constant dense<0.000000e+00> : vector<14x128xf32>
      %229 = tpu.matmul %224, %221, %cst_195 {dimension_numbers = #tpu.dot_dimension_numbers<[1], [0], [0], [1], [0, 0, 1, 1], [], []>} : vector<14x128xf32>, vector<128x128xf32>, vector<14x128xf32> -> vector<14x128xf32>
      %230 = arith.addf %217, %229 : vector<14x128xf32>
      %cst_196 = arith.constant dense<0.000000e+00> : vector<14x128xf32>
      %231 = tpu.matmul %228, %221, %cst_196 {dimension_numbers = #tpu.dot_dimension_numbers<[1], [0], [0], [1], [0, 0, 1, 1], [], []>} : vector<14x128xf32>, vector<128x128xf32>, vector<14x128xf32> -> vector<14x128xf32>
      %232 = arith.addf %219, %231 : vector<14x128xf32>
      %c17 = arith.constant 17 : index
      %c0_197 = arith.constant 0 : index
      %c0_198 = arith.constant 0 : index
      %233 = vector.load %arg2[%c17, %c0_197, %c0_198] : memref<25x128x128xf32, #tpu.memory_space<vmem>>, vector<1x128x128xf32>
      %234 = vector.shape_cast %233 : vector<1x128x128xf32> to vector<128x128xf32>
      %c0_199 = arith.constant 0 : index
      %235 = arith.index_cast %206 : i32 to index
      %c2_200 = arith.constant 2 : index
      %c0_201 = arith.constant 0 : index
      %236 = vector.load %arg1[%c0_199, %235, %c2_200, %c0_201] : memref<1x18x18x128xf32, #tpu.memory_space<vmem>>, vector<1x1x14x128xf32>
      %237 = vector.shape_cast %236 : vector<1x1x14x128xf32> to vector<14x128xf32>
      %c1_i32_202 = arith.constant 1 : i32
      %238 = arith.addi %206, %c1_i32_202 : i32
      %c0_203 = arith.constant 0 : index
      %239 = arith.index_cast %238 : i32 to index
      %c2_204 = arith.constant 2 : index
      %c0_205 = arith.constant 0 : index
      %240 = vector.load %arg1[%c0_203, %239, %c2_204, %c0_205] : memref<1x18x18x128xf32, #tpu.memory_space<vmem>>, vector<1x1x14x128xf32>
      %241 = vector.shape_cast %240 : vector<1x1x14x128xf32> to vector<14x128xf32>
      %cst_206 = arith.constant dense<0.000000e+00> : vector<14x128xf32>
      %242 = tpu.matmul %237, %234, %cst_206 {dimension_numbers = #tpu.dot_dimension_numbers<[1], [0], [0], [1], [0, 0, 1, 1], [], []>} : vector<14x128xf32>, vector<128x128xf32>, vector<14x128xf32> -> vector<14x128xf32>
      %243 = arith.addf %230, %242 : vector<14x128xf32>
      %cst_207 = arith.constant dense<0.000000e+00> : vector<14x128xf32>
      %244 = tpu.matmul %241, %234, %cst_207 {dimension_numbers = #tpu.dot_dimension_numbers<[1], [0], [0], [1], [0, 0, 1, 1], [], []>} : vector<14x128xf32>, vector<128x128xf32>, vector<14x128xf32> -> vector<14x128xf32>
      %245 = arith.addf %232, %244 : vector<14x128xf32>
      %c18 = arith.constant 18 : index
      %c0_208 = arith.constant 0 : index
      %c0_209 = arith.constant 0 : index
      %246 = vector.load %arg2[%c18, %c0_208, %c0_209] : memref<25x128x128xf32, #tpu.memory_space<vmem>>, vector<1x128x128xf32>
      %247 = vector.shape_cast %246 : vector<1x128x128xf32> to vector<128x128xf32>
      %c0_210 = arith.constant 0 : index
      %248 = arith.index_cast %206 : i32 to index
      %c3_211 = arith.constant 3 : index
      %c0_212 = arith.constant 0 : index
      %249 = vector.load %arg1[%c0_210, %248, %c3_211, %c0_212] : memref<1x18x18x128xf32, #tpu.memory_space<vmem>>, vector<1x1x14x128xf32>
      %250 = vector.shape_cast %249 : vector<1x1x14x128xf32> to vector<14x128xf32>
      %c1_i32_213 = arith.constant 1 : i32
      %251 = arith.addi %206, %c1_i32_213 : i32
      %c0_214 = arith.constant 0 : index
      %252 = arith.index_cast %251 : i32 to index
      %c3_215 = arith.constant 3 : index
      %c0_216 = arith.constant 0 : index
      %253 = vector.load %arg1[%c0_214, %252, %c3_215, %c0_216] : memref<1x18x18x128xf32, #tpu.memory_space<vmem>>, vector<1x1x14x128xf32>
      %254 = vector.shape_cast %253 : vector<1x1x14x128xf32> to vector<14x128xf32>
      %cst_217 = arith.constant dense<0.000000e+00> : vector<14x128xf32>
      %255 = tpu.matmul %250, %247, %cst_217 {dimension_numbers = #tpu.dot_dimension_numbers<[1], [0], [0], [1], [0, 0, 1, 1], [], []>} : vector<14x128xf32>, vector<128x128xf32>, vector<14x128xf32> -> vector<14x128xf32>
      %256 = arith.addf %243, %255 : vector<14x128xf32>
      %cst_218 = arith.constant dense<0.000000e+00> : vector<14x128xf32>
      %257 = tpu.matmul %254, %247, %cst_218 {dimension_numbers = #tpu.dot_dimension_numbers<[1], [0], [0], [1], [0, 0, 1, 1], [], []>} : vector<14x128xf32>, vector<128x128xf32>, vector<14x128xf32> -> vector<14x128xf32>
      %258 = arith.addf %245, %257 : vector<14x128xf32>
      %c19 = arith.constant 19 : index
      %c0_219 = arith.constant 0 : index
      %c0_220 = arith.constant 0 : index
      %259 = vector.load %arg2[%c19, %c0_219, %c0_220] : memref<25x128x128xf32, #tpu.memory_space<vmem>>, vector<1x128x128xf32>
      %260 = vector.shape_cast %259 : vector<1x128x128xf32> to vector<128x128xf32>
      %c0_221 = arith.constant 0 : index
      %261 = arith.index_cast %206 : i32 to index
      %c4_222 = arith.constant 4 : index
      %c0_223 = arith.constant 0 : index
      %262 = vector.load %arg1[%c0_221, %261, %c4_222, %c0_223] : memref<1x18x18x128xf32, #tpu.memory_space<vmem>>, vector<1x1x14x128xf32>
      %263 = vector.shape_cast %262 : vector<1x1x14x128xf32> to vector<14x128xf32>
      %c1_i32_224 = arith.constant 1 : i32
      %264 = arith.addi %206, %c1_i32_224 : i32
      %c0_225 = arith.constant 0 : index
      %265 = arith.index_cast %264 : i32 to index
      %c4_226 = arith.constant 4 : index
      %c0_227 = arith.constant 0 : index
      %266 = vector.load %arg1[%c0_225, %265, %c4_226, %c0_227] : memref<1x18x18x128xf32, #tpu.memory_space<vmem>>, vector<1x1x14x128xf32>
      %267 = vector.shape_cast %266 : vector<1x1x14x128xf32> to vector<14x128xf32>
      %cst_228 = arith.constant dense<0.000000e+00> : vector<14x128xf32>
      %268 = tpu.matmul %263, %260, %cst_228 {dimension_numbers = #tpu.dot_dimension_numbers<[1], [0], [0], [1], [0, 0, 1, 1], [], []>} : vector<14x128xf32>, vector<128x128xf32>, vector<14x128xf32> -> vector<14x128xf32>
      %269 = arith.addf %256, %268 : vector<14x128xf32>
      %cst_229 = arith.constant dense<0.000000e+00> : vector<14x128xf32>
      %270 = tpu.matmul %267, %260, %cst_229 {dimension_numbers = #tpu.dot_dimension_numbers<[1], [0], [0], [1], [0, 0, 1, 1], [], []>} : vector<14x128xf32>, vector<128x128xf32>, vector<14x128xf32> -> vector<14x128xf32>
      %271 = arith.addf %258, %270 : vector<14x128xf32>
      %c2_i32_230 = arith.constant 2 : i32
      %272 = arith.muli %c2_i32_230, %arg6 : i32
      %c4_i32 = arith.constant 4 : i32
      %273 = arith.addi %272, %c4_i32 : i32
      %c20 = arith.constant 20 : index
      %c0_231 = arith.constant 0 : index
      %c0_232 = arith.constant 0 : index
      %274 = vector.load %arg2[%c20, %c0_231, %c0_232] : memref<25x128x128xf32, #tpu.memory_space<vmem>>, vector<1x128x128xf32>
      %275 = vector.shape_cast %274 : vector<1x128x128xf32> to vector<128x128xf32>
      %c0_233 = arith.constant 0 : index
      %276 = arith.index_cast %273 : i32 to index
      %c0_234 = arith.constant 0 : index
      %c0_235 = arith.constant 0 : index
      %277 = vector.load %arg1[%c0_233, %276, %c0_234, %c0_235] : memref<1x18x18x128xf32, #tpu.memory_space<vmem>>, vector<1x1x14x128xf32>
      %278 = vector.shape_cast %277 : vector<1x1x14x128xf32> to vector<14x128xf32>
      %c1_i32_236 = arith.constant 1 : i32
      %279 = arith.addi %273, %c1_i32_236 : i32
      %c0_237 = arith.constant 0 : index
      %280 = arith.index_cast %279 : i32 to index
      %c0_238 = arith.constant 0 : index
      %c0_239 = arith.constant 0 : index
      %281 = vector.load %arg1[%c0_237, %280, %c0_238, %c0_239] : memref<1x18x18x128xf32, #tpu.memory_space<vmem>>, vector<1x1x14x128xf32>
      %282 = vector.shape_cast %281 : vector<1x1x14x128xf32> to vector<14x128xf32>
      %cst_240 = arith.constant dense<0.000000e+00> : vector<14x128xf32>
      %283 = tpu.matmul %278, %275, %cst_240 {dimension_numbers = #tpu.dot_dimension_numbers<[1], [0], [0], [1], [0, 0, 1, 1], [], []>} : vector<14x128xf32>, vector<128x128xf32>, vector<14x128xf32> -> vector<14x128xf32>
      %284 = arith.addf %269, %283 : vector<14x128xf32>
      %cst_241 = arith.constant dense<0.000000e+00> : vector<14x128xf32>
      %285 = tpu.matmul %282, %275, %cst_241 {dimension_numbers = #tpu.dot_dimension_numbers<[1], [0], [0], [1], [0, 0, 1, 1], [], []>} : vector<14x128xf32>, vector<128x128xf32>, vector<14x128xf32> -> vector<14x128xf32>
      %286 = arith.addf %271, %285 : vector<14x128xf32>
      %c21 = arith.constant 21 : index
      %c0_242 = arith.constant 0 : index
      %c0_243 = arith.constant 0 : index
      %287 = vector.load %arg2[%c21, %c0_242, %c0_243] : memref<25x128x128xf32, #tpu.memory_space<vmem>>, vector<1x128x128xf32>
      %288 = vector.shape_cast %287 : vector<1x128x128xf32> to vector<128x128xf32>
      %c0_244 = arith.constant 0 : index
      %289 = arith.index_cast %273 : i32 to index
      %c1_245 = arith.constant 1 : index
      %c0_246 = arith.constant 0 : index
      %290 = vector.load %arg1[%c0_244, %289, %c1_245, %c0_246] : memref<1x18x18x128xf32, #tpu.memory_space<vmem>>, vector<1x1x14x128xf32>
      %291 = vector.shape_cast %290 : vector<1x1x14x128xf32> to vector<14x128xf32>
      %c1_i32_247 = arith.constant 1 : i32
      %292 = arith.addi %273, %c1_i32_247 : i32
      %c0_248 = arith.constant 0 : index
      %293 = arith.index_cast %292 : i32 to index
      %c1_249 = arith.constant 1 : index
      %c0_250 = arith.constant 0 : index
      %294 = vector.load %arg1[%c0_248, %293, %c1_249, %c0_250] : memref<1x18x18x128xf32, #tpu.memory_space<vmem>>, vector<1x1x14x128xf32>
      %295 = vector.shape_cast %294 : vector<1x1x14x128xf32> to vector<14x128xf32>
      %cst_251 = arith.constant dense<0.000000e+00> : vector<14x128xf32>
      %296 = tpu.matmul %291, %288, %cst_251 {dimension_numbers = #tpu.dot_dimension_numbers<[1], [0], [0], [1], [0, 0, 1, 1], [], []>} : vector<14x128xf32>, vector<128x128xf32>, vector<14x128xf32> -> vector<14x128xf32>
      %297 = arith.addf %284, %296 : vector<14x128xf32>
      %cst_252 = arith.constant dense<0.000000e+00> : vector<14x128xf32>
      %298 = tpu.matmul %295, %288, %cst_252 {dimension_numbers = #tpu.dot_dimension_numbers<[1], [0], [0], [1], [0, 0, 1, 1], [], []>} : vector<14x128xf32>, vector<128x128xf32>, vector<14x128xf32> -> vector<14x128xf32>
      %299 = arith.addf %286, %298 : vector<14x128xf32>
      %c22 = arith.constant 22 : index
      %c0_253 = arith.constant 0 : index
      %c0_254 = arith.constant 0 : index
      %300 = vector.load %arg2[%c22, %c0_253, %c0_254] : memref<25x128x128xf32, #tpu.memory_space<vmem>>, vector<1x128x128xf32>
      %301 = vector.shape_cast %300 : vector<1x128x128xf32> to vector<128x128xf32>
      %c0_255 = arith.constant 0 : index
      %302 = arith.index_cast %273 : i32 to index
      %c2_256 = arith.constant 2 : index
      %c0_257 = arith.constant 0 : index
      %303 = vector.load %arg1[%c0_255, %302, %c2_256, %c0_257] : memref<1x18x18x128xf32, #tpu.memory_space<vmem>>, vector<1x1x14x128xf32>
      %304 = vector.shape_cast %303 : vector<1x1x14x128xf32> to vector<14x128xf32>
      %c1_i32_258 = arith.constant 1 : i32
      %305 = arith.addi %273, %c1_i32_258 : i32
      %c0_259 = arith.constant 0 : index
      %306 = arith.index_cast %305 : i32 to index
      %c2_260 = arith.constant 2 : index
      %c0_261 = arith.constant 0 : index
      %307 = vector.load %arg1[%c0_259, %306, %c2_260, %c0_261] : memref<1x18x18x128xf32, #tpu.memory_space<vmem>>, vector<1x1x14x128xf32>
      %308 = vector.shape_cast %307 : vector<1x1x14x128xf32> to vector<14x128xf32>
      %cst_262 = arith.constant dense<0.000000e+00> : vector<14x128xf32>
      %309 = tpu.matmul %304, %301, %cst_262 {dimension_numbers = #tpu.dot_dimension_numbers<[1], [0], [0], [1], [0, 0, 1, 1], [], []>} : vector<14x128xf32>, vector<128x128xf32>, vector<14x128xf32> -> vector<14x128xf32>
      %310 = arith.addf %297, %309 : vector<14x128xf32>
      %cst_263 = arith.constant dense<0.000000e+00> : vector<14x128xf32>
      %311 = tpu.matmul %308, %301, %cst_263 {dimension_numbers = #tpu.dot_dimension_numbers<[1], [0], [0], [1], [0, 0, 1, 1], [], []>} : vector<14x128xf32>, vector<128x128xf32>, vector<14x128xf32> -> vector<14x128xf32>
      %312 = arith.addf %299, %311 : vector<14x128xf32>
      %c23 = arith.constant 23 : index
      %c0_264 = arith.constant 0 : index
      %c0_265 = arith.constant 0 : index
      %313 = vector.load %arg2[%c23, %c0_264, %c0_265] : memref<25x128x128xf32, #tpu.memory_space<vmem>>, vector<1x128x128xf32>
      %314 = vector.shape_cast %313 : vector<1x128x128xf32> to vector<128x128xf32>
      %c0_266 = arith.constant 0 : index
      %315 = arith.index_cast %273 : i32 to index
      %c3_267 = arith.constant 3 : index
      %c0_268 = arith.constant 0 : index
      %316 = vector.load %arg1[%c0_266, %315, %c3_267, %c0_268] : memref<1x18x18x128xf32, #tpu.memory_space<vmem>>, vector<1x1x14x128xf32>
      %317 = vector.shape_cast %316 : vector<1x1x14x128xf32> to vector<14x128xf32>
      %c1_i32_269 = arith.constant 1 : i32
      %318 = arith.addi %273, %c1_i32_269 : i32
      %c0_270 = arith.constant 0 : index
      %319 = arith.index_cast %318 : i32 to index
      %c3_271 = arith.constant 3 : index
      %c0_272 = arith.constant 0 : index
      %320 = vector.load %arg1[%c0_270, %319, %c3_271, %c0_272] : memref<1x18x18x128xf32, #tpu.memory_space<vmem>>, vector<1x1x14x128xf32>
      %321 = vector.shape_cast %320 : vector<1x1x14x128xf32> to vector<14x128xf32>
      %cst_273 = arith.constant dense<0.000000e+00> : vector<14x128xf32>
      %322 = tpu.matmul %317, %314, %cst_273 {dimension_numbers = #tpu.dot_dimension_numbers<[1], [0], [0], [1], [0, 0, 1, 1], [], []>} : vector<14x128xf32>, vector<128x128xf32>, vector<14x128xf32> -> vector<14x128xf32>
      %323 = arith.addf %310, %322 : vector<14x128xf32>
      %cst_274 = arith.constant dense<0.000000e+00> : vector<14x128xf32>
      %324 = tpu.matmul %321, %314, %cst_274 {dimension_numbers = #tpu.dot_dimension_numbers<[1], [0], [0], [1], [0, 0, 1, 1], [], []>} : vector<14x128xf32>, vector<128x128xf32>, vector<14x128xf32> -> vector<14x128xf32>
      %325 = arith.addf %312, %324 : vector<14x128xf32>
      %c24 = arith.constant 24 : index
      %c0_275 = arith.constant 0 : index
      %c0_276 = arith.constant 0 : index
      %326 = vector.load %arg2[%c24, %c0_275, %c0_276] : memref<25x128x128xf32, #tpu.memory_space<vmem>>, vector<1x128x128xf32>
      %327 = vector.shape_cast %326 : vector<1x128x128xf32> to vector<128x128xf32>
      %c0_277 = arith.constant 0 : index
      %328 = arith.index_cast %273 : i32 to index
      %c4_278 = arith.constant 4 : index
      %c0_279 = arith.constant 0 : index
      %329 = vector.load %arg1[%c0_277, %328, %c4_278, %c0_279] : memref<1x18x18x128xf32, #tpu.memory_space<vmem>>, vector<1x1x14x128xf32>
      %330 = vector.shape_cast %329 : vector<1x1x14x128xf32> to vector<14x128xf32>
      %c1_i32_280 = arith.constant 1 : i32
      %331 = arith.addi %273, %c1_i32_280 : i32
      %c0_281 = arith.constant 0 : index
      %332 = arith.index_cast %331 : i32 to index
      %c4_282 = arith.constant 4 : index
      %c0_283 = arith.constant 0 : index
      %333 = vector.load %arg1[%c0_281, %332, %c4_282, %c0_283] : memref<1x18x18x128xf32, #tpu.memory_space<vmem>>, vector<1x1x14x128xf32>
      %334 = vector.shape_cast %333 : vector<1x1x14x128xf32> to vector<14x128xf32>
      %cst_284 = arith.constant dense<0.000000e+00> : vector<14x128xf32>
      %335 = tpu.matmul %330, %327, %cst_284 {dimension_numbers = #tpu.dot_dimension_numbers<[1], [0], [0], [1], [0, 0, 1, 1], [], []>} : vector<14x128xf32>, vector<128x128xf32>, vector<14x128xf32> -> vector<14x128xf32>
      %336 = arith.addf %323, %335 : vector<14x128xf32>
      %cst_285 = arith.constant dense<0.000000e+00> : vector<14x128xf32>
      %337 = tpu.matmul %334, %327, %cst_285 {dimension_numbers = #tpu.dot_dimension_numbers<[1], [0], [0], [1], [0, 0, 1, 1], [], []>} : vector<14x128xf32>, vector<128x128xf32>, vector<14x128xf32> -> vector<14x128xf32>
      %338 = arith.addf %325, %337 : vector<14x128xf32>
      %339 = vector.broadcast %0 : vector<1x128xf32> to vector<14x128xf32>
      %340 = arith.addf %336, %339 : vector<14x128xf32>
      %cst_286 = arith.constant 0.000000e+00 : f32
      %341 = vector.broadcast %cst_286 : f32 to vector<14x128xf32>
      %342 = arith.maximumf %340, %341 : vector<14x128xf32>
      %343 = vector.broadcast %0 : vector<1x128xf32> to vector<14x128xf32>
      %344 = arith.addf %338, %343 : vector<14x128xf32>
      %cst_287 = arith.constant 0.000000e+00 : f32
      %345 = vector.broadcast %cst_287 : f32 to vector<14x128xf32>
      %346 = arith.maximumf %344, %345 : vector<14x128xf32>
      %347 = arith.maximumf %342, %346 : vector<14x128xf32>
      %c0_288 = arith.constant 0 : index
      %c0_289 = arith.constant 0 : index
      %348 = vector.load %arg5[%c0_288, %c0_289] : memref<14x128xf32, #tpu.memory_space<vmem>>, vector<14x128xf32>
      tpu.vector_store %arg5[%c0_288, %c0_289], %347 {strides = array<i32>} : memref<14x128xf32, #tpu.memory_space<vmem>>, vector<14x128xf32>,
      %c0_290 = arith.constant 0 : index
      %c0_291 = arith.constant 0 : index
      %349 = tpu.strided_load %arg5[%c0_290, %c0_291] {strides = array<i32: 2, 1>} : memref<14x128xf32, #tpu.memory_space<vmem>>, vector<7x128xf32>
      %c1_292 = arith.constant 1 : index
      %c0_293 = arith.constant 0 : index
      %350 = tpu.strided_load %arg5[%c1_292, %c0_293] {strides = array<i32: 2, 1>} : memref<14x128xf32, #tpu.memory_space<vmem>>, vector<7x128xf32>
      %351 = arith.maximumf %349, %350 : vector<7x128xf32>
      %352 = arith.truncf %351 : vector<7x128xf32> to vector<7x128xbf16>
      %c0_294 = arith.constant 0 : index
      %353 = arith.index_cast %arg6 : i32 to index
      %c0_295 = arith.constant 0 : index
      %c0_296 = arith.constant 0 : index
      %354 = vector.load %arg4[%c0_294, %353, %c0_295, %c0_296] : memref<1x7x7x128xbf16, #tpu.memory_space<vmem>>, vector<1x1x7x128xbf16>
      %355 = vector.shape_cast %354 : vector<1x1x7x128xbf16> to vector<7x128xbf16>
      %356 = vector.shape_cast %352 : vector<7x128xbf16> to vector<1x1x7x128xbf16>
      tpu.vector_store %arg4[%c0_294, %353, %c0_295, %c0_296], %356 {strides = array<i32>} : memref<1x7x7x128xbf16, #tpu.memory_space<vmem>>, vector<1x1x7x128xbf16>,
    }
    %c7_i32_1 = arith.constant 7 : i32
    return
  }
  func.func @transform_0(%arg0: i32) -> (i32, i32, i32, i32) {
    %c0_i32 = arith.constant 0 : i32
    %c0_i32_0 = arith.constant 0 : i32
    %c0_i32_1 = arith.constant 0 : i32
    %c0_i32_2 = arith.constant 0 : i32
    return %arg0, %c0_i32, %c0_i32_0, %c0_i32_1 : i32, i32, i32, i32
  }
  func.func @transform_1(%arg0: i32) -> (i32, i32, i32) {
    %c0_i32 = arith.constant 0 : i32
    %c0_i32_0 = arith.constant 0 : i32
    %c0_i32_1 = arith.constant 0 : i32
    %c0_i32_2 = arith.constant 0 : i32
    return %c0_i32, %c0_i32_0, %c0_i32_1 : i32, i32, i32
  }
  func.func @transform_2(%arg0: i32) -> (i32, i32) {
    %c0_i32 = arith.constant 0 : i32
    %c0_i32_0 = arith.constant 0 : i32
    %c0_i32_1 = arith.constant 0 : i32
    return %c0_i32, %c0_i32_0 : i32, i32
  }
  func.func @transform_3(%arg0: i32) -> (i32, i32, i32, i32) {
    %c0_i32 = arith.constant 0 : i32
    %c0_i32_0 = arith.constant 0 : i32
    %c0_i32_1 = arith.constant 0 : i32
    %c0_i32_2 = arith.constant 0 : i32
    return %arg0, %c0_i32, %c0_i32_0, %c0_i32_1 : i32, i32, i32, i32
  }
}

</mosaic_0001>

<bundles_post_ra>
// kernel: cnn_forward.3
= control target key start
LH: loop header
LB: loop body
LE: loop exit
PB: predicated region body
PF: predicated region fallthrough
CT: control target
= control target key end

     0   :  { %s2944_s12 = smov 0   ;;  %s3950_s0 = inlined_call_operand.vmem [shape: f32[2,32,32,16], index: 0, kind: input, shape index: {}]   ;;  %s3951_s1 = inlined_call_operand.vmem [shape: f32[25,16,128], index: 1, kind: input, shape index: {}]   ;;  %s3952_s2 = inlined_call_operand.vmem [shape: f32[1,128], index: 2, kind: input, shape index: {}]   ;;  %s3953_s3 = inlined_call_operand.vmem [shape: f32[2,14,14,128], index: 3, kind: output, shape index: {}]  }
   0x1 LB: > { %s2509_s13 = sadd.s32 4294967295, %s2918_s12   ;;  %p2513_p0 = scmp.ge.s32.totalorder %s2918_s12, 1  ;;  %s2918_s12 = sphi %s2944_s12, %s13_s12  }
   0x2   : > { %p137_p1 = scmp.lt.s32.totalorder %s2918_s12, 3 }
   0x4   : > { %p138_p2 = pnand %p2513_p0, %p137_p1 }
   0x5   : > { %p161_p3 = scmp.lt.s32.totalorder (!%p138_p2), %s2509_s13, 1  ;;  %s2967_s24 = smov (!%p138_p2), 0  }
   0x6   : > { %141 = sbr.rel (%p138_p2) target bundleno = 566 (0x236), region = 32 }
   0xb   : > { %v2955_v0 = vld [vmem:[%s3952_s2] sm:$0x1]  ;;  %s3955_s13 = smov (!%p161_p3, %s2509_s13), 1 }
   0xc   : > { %s2880_s16 = sshll.u32 %s3955_s13, 10  ;;  %s2891_s17 = smul.u32 224, %s3955_s13 }
   0xd   : > { %s2960_s20 = scalar_lea.vmem %s3950_s0, %s2880_s16 }
   0xe   : > { %s2965_s23 = scalar_lea.vmem %s3953_s3, %s2891_s17 }
   0xf LB: >> { %v2526_v1 = vld [vmem:[%s3951_s1 + $0x18] sm:$0xff]  ;;  %v180_v2 = vld [vmem:[%s3951_s1 + $0x8] sm:$0xff]  ;;  %v2525_v3 = vld [vmem:[%s3951_s1 + $0x10] sm:$0xff]  ;;  %s2881_s6 = sshll.u32 %s2922_s24, 6  ;;  %vm205_vm0 = vcmask 130048   ;;  %s2922_s24 = sphi %s2967_s24, %s177_s24  }
  0x10   : >> { %232 = vmatpush.msra.mxu0 %v2526_v1  ;;  %2887 = vmatpush.msra.mxu2 %v2526_v1  ;;  %v179_v4 = vld [vmem:[%s3951_s1] sm:$0xff]  ;;  %s2986_s7 = scalar_lea.vmem %s2960_s20, %s2881_s6  ;;  %v2548_v9 = vld [vmem:[%s3951_s1 + $0x28] sm:$0xff]  ;;  %v2562_v11 = vld [vmem:[%s3951_s1 + $0x38] sm:$0xff] }
  0x11   : >> { %2889 = vmatpush.msra.mxu3 %v180_v2  ;;  %273 = vmatpush.msra.mxu1 %v180_v2  ;;  %v197_v5 = vld [vmem:[%s2986_s7 + $0x1] sm:$0xff]  ;;  %v199_v6 = vld [vmem:[%s2986_s7 + $0x11] sm:$0xff]  ;;  %v198_v13 = vld [vmem:[%s2986_s7 + $0x9] sm:$0xff] }
  0x12   : >> { %233 = vmatpush.msra.mxu0 %v2525_v3  ;;  %2888 = vmatpush.msra.mxu2 %v2525_v3  ;;  %v185_v7 = vld [vmem:[%s2986_s7 + $0x10] sm:$0xff]  ;;  %v183_v8 = vld [vmem:[%s2986_s7] sm:$0xff]  ;;  %v2576_v12 = vld [vmem:[%s3951_s1 + $0x48] sm:$0xff] }
  0x13   : >> { %2890 = vmatpush.msra.mxu3 %v179_v4  ;;  %2531 = vmatmul.msk.f32.vlgmr.msra.gmra.mxu0 %vm205_vm0, %v197_v5  ;;  %v2547_v10 = vld [vmem:[%s3951_s1 + $0x20] sm:$0xff]  ;;  %v200_v14 = vld [vmem:[%s2986_s7 + $0x19] sm:$0xf]  ;;  %v2561_v16 = vld [vmem:[%s3951_s1 + $0x30] sm:$0xff] }
  0x14   : >> { %314 = vmatpush.msrb.mxu2 %v2526_v1  ;;  %2537 = vmatmul.msk.f32.vlgmr.msra.gmra.mxu3 %vm205_vm0, %v185_v7  ;;  %v186_v15 = vld [vmem:[%s2986_s7 + $0x18] sm:$0xf]  ;;  %v184_v17 = vld [vmem:[%s2986_s7 + $0x8] sm:$0xff]  ;;  %v2575_v18 = vld [vmem:[%s3951_s1 + $0x40] sm:$0xff] }
  0x15   : >> { %2533 = vmatmul.msk.f32.vlgmr.msra.gmra.mxu2 %vm205_vm0, %v199_v6  ;;  %274 = vmatpush.msra.mxu1 %v179_v4  ;;  %v3023_v19 = vld [vmem:[%s2986_s7 + $0x21] sm:$0xff]  ;;  %v2590_v23 = vld [vmem:[%s3951_s1 + $0x58] sm:$0xff]  ;;  %v3043_v24 = vld [vmem:[%s2986_s7 + $0x29] sm:$0xff] }
  0x16   : >> { %355 = vmatpush.msrb.mxu3 %v180_v2  ;;  %2535 = vmatmul.msk.f32.vlgmr.msra.gmra.mxu1 %vm205_vm0, %v183_v8  ;;  %v373_v20 = vld [vmem:[%s2986_s7 + $0x2] sm:$0xff]  ;;  %v374_v25 = vld [vmem:[%s2986_s7 + $0xa] sm:$0xff]  ;;  %v375_v30 = vld [vmem:[%s2986_s7 + $0x12] sm:$0xff] }
  0x17   : >> { %315 = vmatpush.msrb.mxu2 %v2525_v3  ;;  %407 = vmatpush.msrb.mxu0 %v2548_v9  ;;  %v3027_v21 = vld [vmem:[%s2986_s7 + $0x20] sm:$0xff]  ;;  %v3047_v26 = vld [vmem:[%s2986_s7 + $0x28] sm:$0xff]  ;;  %v3063_v29 = vld [vmem:[%s2986_s7 + $0x31] sm:$0xff] }
  0x18   : >> { %356 = vmatpush.msrb.mxu3 %v179_v4  ;;  %452 = vmatpush.msrb.mxu1 %v2548_v9  ;;  %v3030_v22 = vld [vmem:[%s2986_s7 + $0x22] sm:$0xff]  ;;  %v3050_v27 = vld [vmem:[%s2986_s7 + $0x2a] sm:$0xff]  ;;  %v3070_v32 = vld [vmem:[%s2986_s7 + $0x32] sm:$0xff] }
  0x19   : >> { %408 = vmatpush.msrb.mxu0 %v2547_v10  ;;  %508 = vmatpush.msra.mxu2 %v2562_v11  ;;  %v2606_v28 = vld [vmem:[%s3951_s1 + $0x68] sm:$0xff]  ;;  %v3067_v31 = vld [vmem:[%s2986_s7 + $0x30] sm:$0xff]  ;;  %v3083_v34 = vld [vmem:[%s2986_s7 + $0x39] sm:$0xf] }
  0x1a   : >> { %453 = vmatpush.msrb.mxu1 %v2547_v10  ;;  %553 = vmatpush.msra.mxu3 %v2562_v11  ;;  %v2589_v33 = vld [vmem:[%s3951_s1 + $0x50] sm:$0xff]  ;;  %v376_v35 = vld [vmem:[%s2986_s7 + $0x1a] sm:$0xf]  ;;  %v2605_v38 = vld [vmem:[%s3951_s1 + $0x60] sm:$0xff] }
  0x1b   : >> { %609 = vmatpush.msra.mxu0 %v2576_v12  ;;  %509 = vmatpush.msra.mxu2 %v2561_v16  ;;  %v3087_v36 = vld [vmem:[%s2986_s7 + $0x38] sm:$0xf]  ;;  %v474_v39 = vld [vmem:[%s2986_s7 + $0x3] sm:$0xff]  ;;  %v475_v44 = vld [vmem:[%s2986_s7 + $0xb] sm:$0xff] }
  0x1c   : >> { %654 = vmatpush.msra.mxu1 %v2576_v12  ;;  %2532 = vmatmul.msk.f32.gmra.mxu0 %vm205_vm0, %v198_v13  ;;  %v3090_v37 = vld [vmem:[%s2986_s7 + $0x3a] sm:$0xf]  ;;  %v575_v40 = vld [vmem:[%s2986_s7 + $0x4] sm:$0xff]  ;;  %v576_v45 = vld [vmem:[%s2986_s7 + $0xc] sm:$0xff] }
  0x1d   : >> { %2534 = vmatmul.msk.f32.gmra.mxu2 %vm205_vm0, %v200_v14  ;;  %2538 = vmatmul.msk.f32.gmra.mxu3 %vm205_vm0, %v186_v15  ;;  %v3105_v41 = vld [vmem:[%s2986_s7 + $0x23] sm:$0xff]  ;;  %v2620_v43 = vld [vmem:[%s3951_s1 + $0x78] sm:$0xff]  ;;  %v3122_v46 = vld [vmem:[%s2986_s7 + $0x2b] sm:$0xff] }
  0x1e   : >> { %2536 = vmatmul.msk.f32.gmra.mxu1 %vm205_vm0, %v184_v17  ;;  %554 = vmatpush.msra.mxu3 %v2561_v16  ;;  %v3108_v42 = vld [vmem:[%s2986_s7 + $0x24] sm:$0xff]  ;;  %v3125_v47 = vld [vmem:[%s2986_s7 + $0x2c] sm:$0xff]  ;;  %v577_v50 = vld [vmem:[%s2986_s7 + $0x14] sm:$0xff] }
  0x1f   : >> { %610 = vmatpush.msra.mxu0 %v2575_v18  ;;  %655 = vmatpush.msra.mxu1 %v2575_v18  ;;  %v2634_v48 = vld [vmem:[%s3951_s1 + $0x88] sm:$0xff]  ;;  %v476_v49 = vld [vmem:[%s2986_s7 + $0x13] sm:$0xff]  ;;  %v477_v54 = vld [vmem:[%s2986_s7 + $0x1b] sm:$0xf] }
  0x20   : >> { %v3139_v51 = vld [vmem:[%s2986_s7 + $0x33] sm:$0xff]  ;;  %v578_v55 = vld [vmem:[%s2986_s7 + $0x1c] sm:$0xf]  ;;  %v2633_v58 = vld [vmem:[%s3951_s1 + $0x80] sm:$0xff] }
  0x21   : >> { %v3142_v52 = vld [vmem:[%s2986_s7 + $0x34] sm:$0xff]  ;;  %v3159_v57 = vld [vmem:[%s2986_s7 + $0x3c] sm:$0xf]  ;;  %v3171_v59 = vld [vmem:[%s2986_s7 + $0x40] sm:$0xff] }
  0x22   : >> { %v2619_v53 = vld [vmem:[%s3951_s1 + $0x70] sm:$0xff]  ;;  %v3156_v56 = vld [vmem:[%s2986_s7 + $0x3b] sm:$0xf]  ;;  %v3174_v60 = vld [vmem:[%s2986_s7 + $0x41] sm:$0xff] }
  0x23   : >> { %v2648_v61 = vld [vmem:[%s3951_s1 + $0x98] sm:$0xff]  ;;  %v3188_v62 = vld [vmem:[%s2986_s7 + $0x48] sm:$0xff]  ;;  %v3205_v2 = vld [vmem:[%s2986_s7 + $0x50] sm:$0xff] }
  0x24   : >> { %2553 = vmatmul.msk.f32.vlgmr.msrb.gmra.mxu0 %vm205_vm0, %v373_v20  ;;  %v3191_v63 = vld [vmem:[%s2986_s7 + $0x49] sm:$0xff]  ;;  %v3208_v3 = vld [vmem:[%s2986_s7 + $0x51] sm:$0xff]  ;;  %v3225_v6 = vld [vmem:[%s2986_s7 + $0x59] sm:$0xf] }
  0x25   : >> { %2539 = vmatmul.msk.f32.vlgmr.msrb.gmra.mxu2 %vm205_vm0, %v3023_v19  ;;  %2543 = vmatmul.msk.f32.vlgmr.msrb.gmra.mxu3 %vm205_vm0, %v3027_v21  ;;  %v2662_v1 = vld [vmem:[%s3951_s1 + $0xa8] sm:$0xff]  ;;  %v2647_v4 = vld [vmem:[%s3951_s1 + $0x90] sm:$0xff]  ;;  %v3222_v5 = vld [vmem:[%s2986_s7 + $0x58] sm:$0xf] }
  0x26   : >> { %2557 = vmatmul.msk.f32.vlgmr.msrb.gmra.mxu1 %vm205_vm0, %v3030_v22  ;;  %697 = vmatpush.msrb.mxu2 %v2590_v23  ;;  %v2661_v7 = vld [vmem:[%s3951_s1 + $0xa0] sm:$0xff]  ;;  %v2678_v10 = vld [vmem:[%s3951_s1 + $0xb8] sm:$0xff]  ;;  %v3256_v11 = vld [vmem:[%s2986_s7 + $0x4a] sm:$0xff] }
  0x27   : >> { %742 = vmatpush.msrb.mxu3 %v2590_v23  ;;  %782 = vmatpush.msrb.mxu0 %v2606_v28  ;;  %v3239_v8 = vld [vmem:[%s2986_s7 + $0x42] sm:$0xff]  ;;  %v3259_v12 = vld [vmem:[%s2986_s7 + $0x4b] sm:$0xff]  ;;  %v3280_v17 = vld [vmem:[%s2986_s7 + $0x53] sm:$0xff] }
  0x28   : >> { %827 = vmatpush.msrb.mxu1 %v2606_v28  ;;  %698 = vmatpush.msrb.mxu2 %v2589_v33  ;;  %v3242_v9 = vld [vmem:[%s2986_s7 + $0x43] sm:$0xff]  ;;  %v3275_v15 = vld [vmem:[%s2986_s7 + $0x52] sm:$0xff]  ;;  %v3298_v23 = vld [vmem:[%s2986_s7 + $0x5a] sm:$0xf] }
  0x29   : >> { %743 = vmatpush.msrb.mxu3 %v2589_v33  ;;  %783 = vmatpush.msrb.mxu0 %v2605_v38  ;;  %v2692_v13 = vld [vmem:[%s3951_s1 + $0xc8] sm:$0xff]  ;;  %v2677_v18 = vld [vmem:[%s3951_s1 + $0xb0] sm:$0xff]  ;;  %v3324_v33 = vld [vmem:[%s2986_s7 + $0x60] sm:$0xff] }
  0x2a   : >> { %828 = vmatpush.msrb.mxu1 %v2605_v38 }
  0x2c   : >> { %2554 = vmatmul.msk.f32.gmra.mxu0 %vm205_vm0, %v374_v25  ;;  %v3303_v25 = vld [vmem:[%s2986_s7 + $0x5b] sm:$0xf] }
  0x2d   : >> { %2540 = vmatmul.msk.f32.gmra.mxu2 %vm205_vm0, %v3043_v24  ;;  %2544 = vmatmul.msk.f32.gmra.mxu3 %vm205_vm0, %v3047_v26 }
  0x2e   : >> { %2558 = vmatmul.msk.f32.gmra.mxu1 %vm205_vm0, %v3050_v27 }
  0x34   : >> { %2555 = vmatmul.msk.f32.gmra.mxu0 %vm205_vm0, %v375_v30 }
  0x35   : >> { %2541 = vmatmul.msk.f32.gmra.mxu2 %vm205_vm0, %v3063_v29  ;;  %2545 = vmatmul.msk.f32.gmra.mxu3 %vm205_vm0, %v3067_v31 }
  0x36   : >> { %2559 = vmatmul.msk.f32.gmra.mxu1 %vm205_vm0, %v3070_v32 }
  0x3c   : >> { %2556 = vmatmul.msk.f32.gmra.mxu0 %vm205_vm0, %v376_v35 }
  0x3d   : >> { %2542 = vmatmul.msk.f32.gmra.mxu2 %vm205_vm0, %v3083_v34  ;;  %2546 = vmatmul.msk.f32.gmra.mxu3 %vm205_vm0, %v3087_v36 }
  0x3e   : >> { %2560 = vmatmul.msk.f32.gmra.mxu1 %vm205_vm0, %v3090_v37 }
  0x44   : >> { %2581 = vmatmul.msk.f32.vlgmr.msra.gmra.mxu0 %vm205_vm0, %v575_v40 }
  0x45   : >> { %2567 = vmatmul.msk.f32.vlgmr.msra.gmra.mxu2 %vm205_vm0, %v474_v39  ;;  %2571 = vmatmul.msk.f32.vlgmr.msra.gmra.mxu3 %vm205_vm0, %v3105_v41  ;;  %v3340_v39 = vld [vmem:[%s2986_s7 + $0x4c] sm:$0xff] }
  0x46   : >> { %2585 = vmatmul.msk.f32.vlgmr.msra.gmra.mxu1 %vm205_vm0, %v3108_v42  ;;  %867 = vmatpush.msra.mxu2 %v2620_v43 }
  0x47   : >> { %912 = vmatpush.msra.mxu3 %v2620_v43  ;;  %952 = vmatpush.msra.mxu0 %v2634_v48  ;;  %v2720_v43 = vld [vmem:[%s3951_s1 + $0xe8] sm:$0xff] }
  0x48   : >> { %997 = vmatpush.msra.mxu1 %v2634_v48  ;;  %868 = vmatpush.msra.mxu2 %v2619_v53 }
  0x49   : >> { %913 = vmatpush.msra.mxu3 %v2619_v53  ;;  %953 = vmatpush.msra.mxu0 %v2633_v58  ;;  %v2705_v53 = vld [vmem:[%s3951_s1 + $0xd0] sm:$0xff] }
  0x4a   : >> { %998 = vmatpush.msra.mxu1 %v2633_v58 }
  0x4c   : >> { %2582 = vmatmul.msk.f32.gmra.mxu0 %vm205_vm0, %v576_v45 }
  0x4d   : >> { %2568 = vmatmul.msk.f32.gmra.mxu2 %vm205_vm0, %v475_v44  ;;  %2572 = vmatmul.msk.f32.gmra.mxu3 %vm205_vm0, %v3122_v46 }
  0x4e   : >> { %2586 = vmatmul.msk.f32.gmra.mxu1 %vm205_vm0, %v3125_v47 }
  0x54   : >> { %2583 = vmatmul.msk.f32.gmra.mxu0 %vm205_vm0, %v577_v50 }
  0x55   : >> { %2569 = vmatmul.msk.f32.gmra.mxu2 %vm205_vm0, %v476_v49  ;;  %2573 = vmatmul.msk.f32.gmra.mxu3 %vm205_vm0, %v3139_v51 }
  0x56   : >> { %2587 = vmatmul.msk.f32.gmra.mxu1 %vm205_vm0, %v3142_v52 }
  0x5c   : >> { %2584 = vmatmul.msk.f32.gmra.mxu0 %vm205_vm0, %v578_v55 }
  0x5d   : >> { %2570 = vmatmul.msk.f32.gmra.mxu2 %vm205_vm0, %v477_v54  ;;  %2574 = vmatmul.msk.f32.gmra.mxu3 %vm205_vm0, %v3156_v56 }
  0x5e   : >> { %2588 = vmatmul.msk.f32.gmra.mxu1 %vm205_vm0, %v3159_v57 }
  0x64   : >> { %2611 = vmatmul.msk.f32.vlgmr.msrb.gmra.mxu0 %vm205_vm0, %v3023_v19 }
  0x65   : >> { %2597 = vmatmul.msk.f32.vlgmr.msrb.gmra.mxu2 %vm205_vm0, %v3027_v21  ;;  %2601 = vmatmul.msk.f32.vlgmr.msrb.gmra.mxu3 %vm205_vm0, %v3171_v59 }
  0x66   : >> { %2615 = vmatmul.msk.f32.vlgmr.msrb.gmra.mxu1 %vm205_vm0, %v3174_v60  ;;  %1037 = vmatpush.msrb.mxu2 %v2648_v61 }
  0x67   : >> { %1082 = vmatpush.msrb.mxu3 %v2648_v61  ;;  %1125 = vmatpush.msrb.mxu0 %v2662_v1 }
  0x68   : >> { %1170 = vmatpush.msrb.mxu1 %v2662_v1  ;;  %1038 = vmatpush.msrb.mxu2 %v2647_v4  ;;  %v2719_v1 = vld [vmem:[%s3951_s1 + $0xe0] sm:$0xff] }
  0x69   : >> { %1083 = vmatpush.msrb.mxu3 %v2647_v4  ;;  %1126 = vmatpush.msrb.mxu0 %v2661_v7 }
  0x6a   : >> { %1171 = vmatpush.msrb.mxu1 %v2661_v7 }
  0x6c   : >> { %2612 = vmatmul.msk.f32.gmra.mxu0 %vm205_vm0, %v3043_v24 }
  0x6d   : >> { %2598 = vmatmul.msk.f32.gmra.mxu2 %vm205_vm0, %v3047_v26  ;;  %2602 = vmatmul.msk.f32.gmra.mxu3 %vm205_vm0, %v3188_v62  ;;  %v2691_v26 = vld [vmem:[%s3951_s1 + $0xc0] sm:$0xff] }
  0x6e   : >> { %2616 = vmatmul.msk.f32.gmra.mxu1 %vm205_vm0, %v3191_v63 }
  0x74   : >> { %2613 = vmatmul.msk.f32.gmra.mxu0 %vm205_vm0, %v3063_v29 }
  0x75   : >> { %2599 = vmatmul.msk.f32.gmra.mxu2 %vm205_vm0, %v3067_v31  ;;  %2603 = vmatmul.msk.f32.gmra.mxu3 %vm205_vm0, %v3205_v2  ;;  %v3321_v31 = vld [vmem:[%s2986_s7 + $0x44] sm:$0xff] }
  0x76   : >> { %2617 = vmatmul.msk.f32.gmra.mxu1 %vm205_vm0, %v3208_v3 }
  0x7c   : >> { %2614 = vmatmul.msk.f32.gmra.mxu0 %vm205_vm0, %v3083_v34  ;;  %v2706_v34 = vld [vmem:[%s3951_s1 + $0xd8] sm:$0xff] }
  0x7d   : >> { %2600 = vmatmul.msk.f32.gmra.mxu2 %vm205_vm0, %v3087_v36  ;;  %2604 = vmatmul.msk.f32.gmra.mxu3 %vm205_vm0, %v3222_v5 }
  0x7e   : >> { %2618 = vmatmul.msk.f32.gmra.mxu1 %vm205_vm0, %v3225_v6 }
  0x84   : >> { %2639 = vmatmul.msk.f32.vlgmr.msra.gmra.mxu0 %vm205_vm0, %v3105_v41 }
  0x85   : >> { %2625 = vmatmul.msk.f32.vlgmr.msra.gmra.mxu2 %vm205_vm0, %v3030_v22  ;;  %2629 = vmatmul.msk.f32.vlgmr.msra.gmra.mxu3 %vm205_vm0, %v3239_v8 }
  0x86   : >> { %2643 = vmatmul.msk.f32.vlgmr.msra.gmra.mxu1 %vm205_vm0, %v3242_v9  ;;  %1210 = vmatpush.msra.mxu2 %v2678_v10 }
  0x87   : >> { %1255 = vmatpush.msra.mxu3 %v2678_v10  ;;  %1295 = vmatpush.msra.mxu0 %v2692_v13 }
  0x88   : >> { %1340 = vmatpush.msra.mxu1 %v2692_v13  ;;  %1211 = vmatpush.msra.mxu2 %v2677_v18 }
  0x89   : >> { %1256 = vmatpush.msra.mxu3 %v2677_v18  ;;  %1296 = vmatpush.msra.mxu0 %v2691_v26  ;;  %v3404_v18 = vld [vmem:[%s2986_s7 + $0x62] sm:$0xff] }
  0x8a   : >> { %1341 = vmatpush.msra.mxu1 %v2691_v26 }
  0x8c   : >> { %2640 = vmatmul.msk.f32.gmra.mxu0 %vm205_vm0, %v3122_v46 }
  0x8d   : >> { %2626 = vmatmul.msk.f32.gmra.mxu2 %vm205_vm0, %v3050_v27  ;;  %2630 = vmatmul.msk.f32.gmra.mxu3 %vm205_vm0, %v3256_v11 }
  0x8e   : >> { %2644 = vmatmul.msk.f32.gmra.mxu1 %vm205_vm0, %v3259_v12 }
  0x90   : >> { %v3272_v14 = vpop.f32.mrf.mxu0 }
  0x93   : >> { %v3277_v16 = vpop.f32.mrf.mxu1 }
  0x94   : >> { %2641 = vmatmul.msk.f32.gmra.mxu0 %vm205_vm0, %v3139_v51  ;;  %v3364_v51 = vld [vmem:[%s2986_s7 + $0x70] sm:$0xff] }
  0x95   : >> { %2627 = vmatmul.msk.f32.gmra.mxu2 %vm205_vm0, %v3070_v32  ;;  %2631 = vmatmul.msk.f32.gmra.mxu3 %vm205_vm0, %v3275_v15 }
  0x96   : >> { %2645 = vmatmul.msk.f32.gmra.mxu1 %vm205_vm0, %v3280_v17 }
  0x97   : >> { %v282_v20 = vpop.f32.mrf.mxu3 }
  0x98   : >> { %v241_v19 = vpop.f32.mrf.mxu2 }
  0x99   : >> { %v3293_v21 = vadd.f32 %v282_v20, %v241_v19  ;;  %v3295_v22 = vpop.f32.mrf.mxu0  ;;  %v277_v19 = vadd.f32 %v3277_v16, %v3272_v14  ;;  %v2734_v20 = vld [vmem:[%s3951_s1 + $0xf8] sm:$0xff] }
  0x9b   : >> { %v3300_v24 = vpop.f32.mrf.mxu1 }
  0x9c   : >> { %2642 = vmatmul.msk.f32.gmra.mxu0 %vm205_vm0, %v3156_v56 }
  0x9d   : >> { %2628 = vmatmul.msk.f32.gmra.mxu2 %vm205_vm0, %v3090_v37  ;;  %2632 = vmatmul.msk.f32.gmra.mxu3 %vm205_vm0, %v3298_v23 }
  0x9e   : >> { %2646 = vmatmul.msk.f32.gmra.mxu1 %vm205_vm0, %v3303_v25 }
  0xa0   : >> { %v244_v27 = vpop.f32.mrf.mxu2  ;;  %v285_v28 = vpop.f32.mrf.mxu3 }
  0xa1   : >> { %v3316_v29 = vadd.f32 %v285_v28, %v244_v27  ;;  %v3318_v30 = vpop.f32.mrf.mxu0 }
  0xa2   : >> { %v422_v26 = vadd.f32 %v3318_v30, %v277_v19  ;;  %v280_v30 = vadd.f32 %v3300_v24, %v3295_v22  ;;  %v3496_v19 = vld [vmem:[%s2986_s7 + $0x63] sm:$0xff] }
  0xa3   : >> { %v455_v32 = vpop.f32.mrf.mxu1 }
  0xa4   : >> { %2669 = vmatmul.msk.f32.vlgmr.msrb.gmra.mxu0 %vm205_vm0, %v3171_v59 }
  0xa5   : >> { %2653 = vmatmul.msk.f32.vlgmr.msrb.gmra.mxu2 %vm205_vm0, %v3108_v42  ;;  %2657 = vmatmul.msk.f32.vlgmr.msrb.gmra.mxu3 %vm205_vm0, %v3321_v31  ;;  %v3343_v42 = vld [vmem:[%s2986_s7 + $0x68] sm:$0xff] }
  0xa6   : >> { %2673 = vmatmul.msk.f32.vlgmr.msrb.gmra.mxu1 %vm205_vm0, %v3324_v33  ;;  %1380 = vmatpush.msrb.mxu2 %v2706_v34 }
  0xa7   : >> { %1425 = vmatpush.msrb.mxu3 %v2706_v34  ;;  %1465 = vmatpush.msrb.mxu0 %v2720_v43 }
  0xa8   : >> { %v317_v35 = vpop.f32.mrf.mxu2  ;;  %v358_v36 = vpop.f32.mrf.mxu3  ;;  %1510 = vmatpush.msrb.mxu1 %v2720_v43  ;;  %1381 = vmatpush.msrb.mxu2 %v2705_v53 }
  0xa9   : >> { %v359_v37 = vadd.f32 %v358_v36, %v317_v35  ;;  %v3337_v38 = vpop.f32.mrf.mxu0  ;;  %1426 = vmatpush.msrb.mxu3 %v2705_v53  ;;  %1466 = vmatpush.msrb.mxu0 %v2719_v1  ;;  %v3428_v36 = vld [vmem:[%s2986_s7 + $0x6a] sm:$0xff] }
  0xaa   : >> { %1511 = vmatpush.msrb.mxu1 %v2719_v1 }
  0xab   : >> { %v467_v40 = vadd.f32 %v455_v32, %v359_v37  ;;  %v458_v41 = vpop.f32.mrf.mxu1  ;;  %v3423_v32 = vld [vmem:[%s2986_s7 + $0x69] sm:$0xff] }
  0xac   : >> { %2670 = vmatmul.msk.f32.gmra.mxu0 %vm205_vm0, %v3188_v62  ;;  %v3385_v62 = vld [vmem:[%s2986_s7 + $0x78] sm:$0xf]  ;;  %v2750_v37 = vld [vmem:[%s3951_s1 + $0x108] sm:$0xff] }
  0xad   : >> { %2654 = vmatmul.msk.f32.gmra.mxu2 %vm205_vm0, %v3125_v47  ;;  %2658 = vmatmul.msk.f32.gmra.mxu3 %vm205_vm0, %v3340_v39  ;;  %v3359_v47 = vld [vmem:[%s2986_s7 + $0x54] sm:$0xff] }
  0xae   : >> { %2674 = vmatmul.msk.f32.gmra.mxu1 %vm205_vm0, %v3343_v42 }
  0xb0   : >> { %v320_v44 = vpop.f32.mrf.mxu2  ;;  %v361_v45 = vpop.f32.mrf.mxu3 }
  0xb1   : >> { %v362_v46 = vadd.f32 %v361_v45, %v320_v44  ;;  %v3356_v48 = vpop.f32.mrf.mxu0  ;;  %v3448_v44 = vld [vmem:[%s2986_s7 + $0x71] sm:$0xff] }
  0xb3   : >> { %v3361_v49 = vadd.f32 %v458_v41, %v362_v46  ;;  %v461_v50 = vpop.f32.mrf.mxu1 }
  0xb4   : >> { %2671 = vmatmul.msk.f32.gmra.mxu0 %vm205_vm0, %v3205_v2 }
  0xb5   : >> { %2655 = vmatmul.msk.f32.gmra.mxu2 %vm205_vm0, %v3142_v52  ;;  %2659 = vmatmul.msk.f32.gmra.mxu3 %vm205_vm0, %v3359_v47  ;;  %v3380_v52 = vld [vmem:[%s2986_s7 + $0x5c] sm:$0xf] }
  0xb6   : >> { %2675 = vmatmul.msk.f32.gmra.mxu1 %vm205_vm0, %v3364_v51 }
  0xb8   : >> { %v323_v54 = vpop.f32.mrf.mxu2  ;;  %v364_v55 = vpop.f32.mrf.mxu3 }
  0xb9   : >> { %v365_v56 = vadd.f32 %v364_v55, %v323_v54  ;;  %v3377_v58 = vpop.f32.mrf.mxu0 }
  0xbb   : >> { %v3382_v59 = vadd.f32 %v461_v50, %v365_v56  ;;  %v464_v61 = vpop.f32.mrf.mxu1  ;;  %v424_v50 = vadd.f32 %v3356_v48, %v3293_v21  ;;  %v3477_v21 = vld [vmem:[%s2986_s7 + $0x7a] sm:$0xf]  ;;  %v2749_v48 = vld [vmem:[%s3951_s1 + $0x100] sm:$0xff] }
  0xbc   : >> { %2672 = vmatmul.msk.f32.gmra.mxu0 %vm205_vm0, %v3222_v5 }
  0xbd   : >> { %2656 = vmatmul.msk.f32.gmra.mxu2 %vm205_vm0, %v3159_v57  ;;  %2660 = vmatmul.msk.f32.gmra.mxu3 %vm205_vm0, %v3380_v52  ;;  %v3399_v57 = vld [vmem:[%s2986_s7 + $0x61] sm:$0xff] }
  0xbe   : >> { %2676 = vmatmul.msk.f32.gmra.mxu1 %vm205_vm0, %v3385_v62 }
  0xc0   : >> { %v326_v2 = vpop.f32.mrf.mxu2  ;;  %v367_v4 = vpop.f32.mrf.mxu3 }
  0xc1   : >> { %v368_v7 = vadd.f32 %v367_v4, %v326_v2  ;;  %v612_v10 = vpop.f32.mrf.mxu0 }
  0xc3   : >> { %v3401_v13 = vadd.f32 %v464_v61, %v368_v7  ;;  %v657_v5 = vpop.f32.mrf.mxu1  ;;  %v3472_v61 = vld [vmem:[%s2986_s7 + $0x79] sm:$0xf] }
  0xc4   : >> { %2697 = vmatmul.msk.f32.vlgmr.msra.gmra.mxu0 %vm205_vm0, %v3239_v8 }
  0xc5   : >> { %2683 = vmatmul.msk.f32.vlgmr.msra.gmra.mxu2 %vm205_vm0, %v3174_v60  ;;  %2687 = vmatmul.msk.f32.vlgmr.msra.gmra.mxu3 %vm205_vm0, %v3399_v57 }
  0xc6   : >> { %2701 = vmatmul.msk.f32.vlgmr.msra.gmra.mxu1 %vm205_vm0, %v3404_v18  ;;  %1553 = vmatpush.msra.mxu2 %v2734_v20 }
  0xc7   : >> { %1598 = vmatpush.msra.mxu3 %v2734_v20  ;;  %1638 = vmatpush.msra.mxu0 %v2750_v37 }
  0xc8   : >> { %v511_v14 = vpop.f32.mrf.mxu2  ;;  %v556_v16 = vpop.f32.mrf.mxu3  ;;  %1683 = vmatpush.msra.mxu1 %v2750_v37 }
  0xc9   : >> { %v523_v60 = vadd.f32 %v511_v14, %v422_v26  ;;  %v568_v27 = vadd.f32 %v556_v16, %v467_v40  ;;  %v615_v8 = vpop.f32.mrf.mxu0  ;;  %v423_v40 = vadd.f32 %v3337_v38, %v280_v30  ;;  %v3453_v38 = vld [vmem:[%s2986_s7 + $0x72] sm:$0xff]  ;;  %1639 = vmatpush.msra.mxu0 %v2749_v48 }
  0xca   : >> { %1684 = vmatpush.msra.mxu1 %v2749_v48  ;;  %v3524_v30 = vld [vmem:[%s2986_s7 + $0x6c] sm:$0xff] }
  0xcb   : >> { %v3420_v28 = vadd.f32 %v612_v10, %v523_v60  ;;  %v3425_v34 = vadd.f32 %v657_v5, %v568_v27  ;;  %v660_v35 = vpop.f32.mrf.mxu1  ;;  %v3519_v27 = vld [vmem:[%s2986_s7 + $0x6b] sm:$0xff] }
  0xcc   : >> { %2698 = vmatmul.msk.f32.gmra.mxu0 %vm205_vm0, %v3256_v11 }
  0xcd   : >> { %2684 = vmatmul.msk.f32.gmra.mxu2 %vm205_vm0, %v3191_v63  ;;  %2688 = vmatmul.msk.f32.gmra.mxu3 %vm205_vm0, %v3423_v32 }
  0xce   : >> { %2702 = vmatmul.msk.f32.gmra.mxu1 %vm205_vm0, %v3428_v36 }
  0xd0   : >> { %v514_v22 = vpop.f32.mrf.mxu2  ;;  %v559_v24 = vpop.f32.mrf.mxu3 }
  0xd1   : >> { %v524_v63 = vadd.f32 %v514_v22, %v423_v40  ;;  %v569_v11 = vadd.f32 %v559_v24, %v3361_v49  ;;  %v618_v41 = vpop.f32.mrf.mxu0  ;;  %v2733_v49 = vld [vmem:[%s3951_s1 + $0xf0] sm:$0xff] }
  0xd2   : >> { %1554 = vmatpush.msra.mxu2 %v2733_v49  ;;  %1599 = vmatpush.msra.mxu3 %v2733_v49 }
  0xd3   : >> { %v3445_v43 = vadd.f32 %v615_v8, %v524_v63  ;;  %v3450_v45 = vadd.f32 %v660_v35, %v569_v11  ;;  %v663_v46 = vpop.f32.mrf.mxu1  ;;  %v3542_v63 = vld [vmem:[%s2986_s7 + $0x73] sm:$0xff] }
  0xd4   : >> { %2699 = vmatmul.msk.f32.gmra.mxu0 %vm205_vm0, %v3275_v15 }
  0xd5   : >> { %2685 = vmatmul.msk.f32.gmra.mxu2 %vm205_vm0, %v3208_v3  ;;  %2689 = vmatmul.msk.f32.gmra.mxu3 %vm205_vm0, %v3448_v44 }
  0xd6   : >> { %2703 = vmatmul.msk.f32.gmra.mxu1 %vm205_vm0, %v3453_v38 }
  0xd8   : >> { %v517_v53 = vpop.f32.mrf.mxu2  ;;  %v562_v54 = vpop.f32.mrf.mxu3 }
  0xd9   : >> { %v525_v3 = vadd.f32 %v517_v53, %v424_v50  ;;  %v570_v15 = vadd.f32 %v562_v54, %v3382_v59  ;;  %v621_v55 = vpop.f32.mrf.mxu0  ;;  %v425_v59 = vadd.f32 %v3377_v58, %v3316_v29  ;;  %v3501_v29 = vld [vmem:[%s2986_s7 + $0x64] sm:$0xff]  ;;  %v2764_v58 = vld [vmem:[%s3951_s1 + $0x118] sm:$0xff] }
  0xda   : >> { %v3565_v53 = vld [vmem:[%s2986_s7 + $0x7b] sm:$0xf] }
  0xdb   : >> { %v3469_v56 = vadd.f32 %v618_v41, %v525_v3  ;;  %v3474_v1 = vadd.f32 %v663_v46, %v570_v15  ;;  %v666_v2 = vpop.f32.mrf.mxu1  ;;  %v3547_v41 = vld [vmem:[%s2986_s7 + $0x74] sm:$0xff]  ;;  %v3570_v15 = vld [vmem:[%s2986_s7 + $0x7c] sm:$0xf] }
  0xdc   : >> { %2700 = vmatmul.msk.f32.gmra.mxu0 %vm205_vm0, %v3298_v23 }
  0xdd   : >> { %2686 = vmatmul.msk.f32.gmra.mxu2 %vm205_vm0, %v3225_v6  ;;  %2690 = vmatmul.msk.f32.gmra.mxu3 %vm205_vm0, %v3472_v61 }
  0xde   : >> { %2704 = vmatmul.msk.f32.gmra.mxu1 %vm205_vm0, %v3477_v21 }
  0xe0   : >> { %v520_v4 = vpop.f32.mrf.mxu2  ;;  %v565_v7 = vpop.f32.mrf.mxu3 }
  0xe1   : >> { %v526_v6 = vadd.f32 %v520_v4, %v425_v59  ;;  %v571_v23 = vadd.f32 %v565_v7, %v3401_v13  ;;  %v785_v10 = vpop.f32.mrf.mxu0  ;;  %v3588_v59 = vld [vmem:[%s2986_s7 + $0x80] sm:$0xff] }
  0xe2   : >> { %v3593_v7 = vld [vmem:[%s2986_s7 + $0x81] sm:$0xff] }
  0xe3   : >> { %v3493_v5 = vadd.f32 %v621_v55, %v526_v6  ;;  %v3498_v20 = vadd.f32 %v666_v2, %v571_v23  ;;  %v830_v26 = vpop.f32.mrf.mxu1  ;;  %v2777_v55 = vld [vmem:[%s3951_s1 + $0x120] sm:$0xff]  ;;  %v2792_v23 = vld [vmem:[%s3951_s1 + $0x138] sm:$0xff] }
  0xe4   : >> { %2725 = vmatmul.msk.f32.vlgmr.msrb.gmra.mxu0 %vm205_vm0, %v3321_v31 }
  0xe5   : >> { %2711 = vmatmul.msk.f32.vlgmr.msrb.gmra.mxu2 %vm205_vm0, %v3242_v9  ;;  %2715 = vmatmul.msk.f32.vlgmr.msrb.gmra.mxu3 %vm205_vm0, %v3496_v19 }
  0xe6   : >> { %2729 = vmatmul.msk.f32.vlgmr.msrb.gmra.mxu1 %vm205_vm0, %v3501_v29  ;;  %1723 = vmatpush.msrb.mxu2 %v2764_v58 }
  0xe7   : >> { %1768 = vmatpush.msrb.mxu3 %v2764_v58  ;;  %v3611_v58 = vld [vmem:[%s2986_s7 + $0x88] sm:$0xff] }
  0xe8   : >> { %v700_v13 = vpop.f32.mrf.mxu2  ;;  %v745_v9 = vpop.f32.mrf.mxu3 }
  0xe9   : >> { %v712_v14 = vadd.f32 %v700_v13, %v3420_v28  ;;  %v757_v60 = vadd.f32 %v745_v9, %v3425_v34  ;;  %v788_v16 = vpop.f32.mrf.mxu0  ;;  %v2778_v28 = vld [vmem:[%s3951_s1 + $0x128] sm:$0xff] }
  0xea   : >> { %1808 = vmatpush.msrb.mxu0 %v2778_v28  ;;  %1853 = vmatpush.msrb.mxu1 %v2778_v28  ;;  %v3616_v9 = vld [vmem:[%s2986_s7 + $0x89] sm:$0xff] }
  0xeb   : >> { %v3516_v31 = vadd.f32 %v785_v10, %v712_v14  ;;  %v3521_v8 = vadd.f32 %v830_v26, %v757_v60  ;;  %v833_v35 = vpop.f32.mrf.mxu1  ;;  %v2806_v60 = vld [vmem:[%s3951_s1 + $0x148] sm:$0xff]  ;;  %v3634_v28 = vld [vmem:[%s2986_s7 + $0x90] sm:$0xff] }
  0xec   : >> { %2726 = vmatmul.msk.f32.gmra.mxu0 %vm205_vm0, %v3340_v39  ;;  %1854 = vmatpush.msrb.mxu1 %v2777_v55 }
  0xed   : >> { %2712 = vmatmul.msk.f32.gmra.mxu2 %vm205_vm0, %v3259_v12  ;;  %2716 = vmatmul.msk.f32.gmra.mxu3 %vm205_vm0, %v3519_v27 }
  0xee   : >> { %2730 = vmatmul.msk.f32.gmra.mxu1 %vm205_vm0, %v3524_v30  ;;  %1809 = vmatpush.msrb.mxu0 %v2777_v55  ;;  %v3680_v55 = vld [vmem:[%s2986_s7 + $0x82] sm:$0xff] }
  0xf0   : >> { %v703_v34 = vpop.f32.mrf.mxu2  ;;  %v748_v12 = vpop.f32.mrf.mxu3 }
  0xf1   : >> { %v713_v37 = vadd.f32 %v703_v34, %v3445_v43  ;;  %v758_v40 = vadd.f32 %v748_v12, %v3450_v45  ;;  %v791_v22 = vpop.f32.mrf.mxu0  ;;  %v2763_v43 = vld [vmem:[%s3951_s1 + $0x110] sm:$0xff] }
  0xf2   : >> { %1724 = vmatpush.msrb.mxu2 %v2763_v43  ;;  %1769 = vmatpush.msrb.mxu3 %v2763_v43  ;;  %v3639_v12 = vld [vmem:[%s2986_s7 + $0x91] sm:$0xff] }
  0xf3   : >> { %v3539_v39 = vadd.f32 %v788_v16, %v713_v37  ;;  %v3544_v24 = vadd.f32 %v833_v35, %v758_v40  ;;  %v836_v11 = vpop.f32.mrf.mxu1  ;;  %v2791_v40 = vld [vmem:[%s3951_s1 + $0x130] sm:$0xff]  ;;  %v3657_v43 = vld [vmem:[%s2986_s7 + $0x98] sm:$0xf] }
  0xf4   : >> { %2727 = vmatmul.msk.f32.gmra.mxu0 %vm205_vm0, %v3359_v47 }
  0xf5   : >> { %2713 = vmatmul.msk.f32.gmra.mxu2 %vm205_vm0, %v3280_v17  ;;  %2717 = vmatmul.msk.f32.gmra.mxu3 %vm205_vm0, %v3542_v63 }
  0xf6   : >> { %2731 = vmatmul.msk.f32.gmra.mxu1 %vm205_vm0, %v3547_v41 }
  0xf8   : >> { %v706_v45 = vpop.f32.mrf.mxu2  ;;  %v751_v17 = vpop.f32.mrf.mxu3 }
  0xf9   : >> { %v714_v46 = vadd.f32 %v706_v45, %v3469_v56  ;;  %v759_v49 = vadd.f32 %v751_v17, %v3474_v1  ;;  %v794_v50 = vpop.f32.mrf.mxu0  ;;  %v3662_v17 = vld [vmem:[%s2986_s7 + $0x99] sm:$0xf] }
  0xfb   : >> { %v3562_v47 = vadd.f32 %v791_v22, %v714_v46  ;;  %v3567_v3 = vadd.f32 %v836_v11, %v759_v49  ;;  %v839_v54 = vpop.f32.mrf.mxu1  ;;  %v2805_v49 = vld [vmem:[%s3951_s1 + $0x140] sm:$0xff] }
  0xfc   : >> { %2728 = vmatmul.msk.f32.gmra.mxu0 %vm205_vm0, %v3380_v52 }
  0xfd   : >> { %2714 = vmatmul.msk.f32.gmra.mxu2 %vm205_vm0, %v3303_v25  ;;  %2718 = vmatmul.msk.f32.gmra.mxu3 %vm205_vm0, %v3565_v53 }
  0xfe   : >> { %2732 = vmatmul.msk.f32.gmra.mxu1 %vm205_vm0, %v3570_v15 }
 0x100   : >> { %v709_v56 = vpop.f32.mrf.mxu2  ;;  %v754_v25 = vpop.f32.mrf.mxu3 }
 0x101   : >> { %v715_v1 = vadd.f32 %v709_v56, %v3493_v5  ;;  %v760_v2 = vadd.f32 %v754_v25, %v3498_v20  ;;  %v955_v48 = vpop.f32.mrf.mxu0  ;;  %v3685_v25 = vld [vmem:[%s2986_s7 + $0x83] sm:$0xff] }
 0x103   : >> { %v3585_v52 = vadd.f32 %v794_v50, %v715_v1  ;;  %v3590_v4 = vadd.f32 %v839_v54, %v760_v2  ;;  %v1000_v6 = vpop.f32.mrf.mxu1  ;;  %v2822_v2 = vld [vmem:[%s3951_s1 + $0x158] sm:$0xff] }
 0x104   : >> { %2755 = vmatmul.msk.f32.vlgmr.msra.gmra.mxu0 %vm205_vm0, %v3399_v57 }
 0x105   : >> { %2741 = vmatmul.msk.f32.vlgmr.msra.gmra.mxu2 %vm205_vm0, %v3324_v33  ;;  %2745 = vmatmul.msk.f32.vlgmr.msra.gmra.mxu3 %vm205_vm0, %v3588_v59 }
 0x106   : >> { %2759 = vmatmul.msk.f32.vlgmr.msra.gmra.mxu1 %vm205_vm0, %v3593_v7  ;;  %1893 = vmatpush.msra.mxu2 %v2792_v23 }
 0x107   : >> { %1938 = vmatpush.msra.mxu3 %v2792_v23  ;;  %1981 = vmatpush.msra.mxu0 %v2806_v60  ;;  %v3703_v23 = vld [vmem:[%s2986_s7 + $0x8a] sm:$0xff] }
 0x108   : >> { %v870_v10 = vpop.f32.mrf.mxu2  ;;  %v915_v33 = vpop.f32.mrf.mxu3  ;;  %2026 = vmatpush.msra.mxu1 %v2806_v60  ;;  %1894 = vmatpush.msra.mxu2 %v2791_v40  ;;  %v3726_v60 = vld [vmem:[%s2986_s7 + $0x92] sm:$0xff] }
 0x109   : >> { %v882_v5 = vadd.f32 %v870_v10, %v3516_v31  ;;  %v927_v20 = vadd.f32 %v915_v33, %v3521_v8  ;;  %v958_v26 = vpop.f32.mrf.mxu0  ;;  %1939 = vmatpush.msra.mxu3 %v2791_v40  ;;  %1982 = vmatpush.msra.mxu0 %v2805_v49  ;;  %v3708_v33 = vld [vmem:[%s2986_s7 + $0x8b] sm:$0xff]  ;;  %v3749_v40 = vld [vmem:[%s2986_s7 + $0x9a] sm:$0xf] }
 0x10a   : >> { %2027 = vmatpush.msra.mxu1 %v2805_v49  ;;  %v3772_v49 = vld [vmem:[%s2986_s7 + $0x84] sm:$0xff] }
 0x10b   : >> { %v3608_v57 = vadd.f32 %v955_v48, %v882_v5  ;;  %v3613_v13 = vadd.f32 %v1000_v6, %v927_v20  ;;  %v1003_v14 = vpop.f32.mrf.mxu1  ;;  %v2836_v20 = vld [vmem:[%s3951_s1 + $0x168] sm:$0xff] }
 0x10c   : >> { %2756 = vmatmul.msk.f32.gmra.mxu0 %vm205_vm0, %v3423_v32 }
 0x10d   : >> { %2742 = vmatmul.msk.f32.gmra.mxu2 %vm205_vm0, %v3343_v42  ;;  %2746 = vmatmul.msk.f32.gmra.mxu3 %vm205_vm0, %v3611_v58 }
 0x10e   : >> { %2760 = vmatmul.msk.f32.gmra.mxu1 %vm205_vm0, %v3616_v9 }
 0x110   : >> { %v873_v16 = vpop.f32.mrf.mxu2  ;;  %v918_v42 = vpop.f32.mrf.mxu3 }
 0x111   : >> { %v883_v31 = vadd.f32 %v873_v16, %v3539_v39  ;;  %v928_v8 = vadd.f32 %v918_v42, %v3544_v24  ;;  %v961_v35 = vpop.f32.mrf.mxu0  ;;  %v3731_v42 = vld [vmem:[%s2986_s7 + $0x93] sm:$0xff] }
 0x113   : >> { %v3631_v32 = vadd.f32 %v958_v26, %v883_v31  ;;  %v3636_v34 = vadd.f32 %v1003_v14, %v928_v8  ;;  %v1006_v37 = vpop.f32.mrf.mxu1  ;;  %v2821_v8 = vld [vmem:[%s3951_s1 + $0x150] sm:$0xff] }
 0x114   : >> { %2757 = vmatmul.msk.f32.gmra.mxu0 %vm205_vm0, %v3448_v44 }
 0x115   : >> { %2743 = vmatmul.msk.f32.gmra.mxu2 %vm205_vm0, %v3364_v51  ;;  %2747 = vmatmul.msk.f32.gmra.mxu3 %vm205_vm0, %v3634_v28 }
 0x116   : >> { %2761 = vmatmul.msk.f32.gmra.mxu1 %vm205_vm0, %v3639_v12 }
 0x118   : >> { %v876_v22 = vpop.f32.mrf.mxu2  ;;  %v921_v51 = vpop.f32.mrf.mxu3 }
 0x119   : >> { %v884_v39 = vadd.f32 %v876_v22, %v3562_v47  ;;  %v929_v24 = vadd.f32 %v921_v51, %v3567_v3  ;;  %v964_v11 = vpop.f32.mrf.mxu0  ;;  %v3754_v51 = vld [vmem:[%s2986_s7 + $0x9b] sm:$0xf] }
 0x11b   : >> { %v3654_v44 = vadd.f32 %v961_v35, %v884_v39  ;;  %v3659_v45 = vadd.f32 %v1006_v37, %v929_v24  ;;  %v1009_v46 = vpop.f32.mrf.mxu1  ;;  %v2835_v24 = vld [vmem:[%s3951_s1 + $0x160] sm:$0xff] }
 0x11c   : >> { %2758 = vmatmul.msk.f32.gmra.mxu0 %vm205_vm0, %v3472_v61 }
 0x11d   : >> { %2744 = vmatmul.msk.f32.gmra.mxu2 %vm205_vm0, %v3385_v62  ;;  %2748 = vmatmul.msk.f32.gmra.mxu3 %vm205_vm0, %v3657_v43 }
 0x11e   : >> { %2762 = vmatmul.msk.f32.gmra.mxu1 %vm205_vm0, %v3662_v17 }
 0x120   : >> { %v879_v50 = vpop.f32.mrf.mxu2  ;;  %v924_v62 = vpop.f32.mrf.mxu3 }
 0x121   : >> { %v885_v47 = vadd.f32 %v879_v50, %v3585_v52  ;;  %v930_v3 = vadd.f32 %v924_v62, %v3590_v4  ;;  %v1128_v54 = vpop.f32.mrf.mxu0  ;;  %v2809_v62 = vld [vmem:[%s2986_s7 + $0xa0] sm:$0xff] }
 0x123   : >> { %v3677_v61 = vadd.f32 %v964_v11, %v885_v47  ;;  %v3682_v56 = vadd.f32 %v1009_v46, %v930_v3  ;;  %v1173_v1 = vpop.f32.mrf.mxu1  ;;  %v2850_v3 = vld [vmem:[%s3951_s1 + $0x178] sm:$0xff] }
 0x124   : >> { %2783 = vmatmul.msk.f32.vlgmr.msrb.gmra.mxu0 %vm205_vm0, %v3496_v19 }
 0x125   : >> { %2769 = vmatmul.msk.f32.vlgmr.msrb.gmra.mxu2 %vm205_vm0, %v3404_v18  ;;  %2773 = vmatmul.msk.f32.vlgmr.msrb.gmra.mxu3 %vm205_vm0, %v3680_v55 }
 0x126   : >> { %2787 = vmatmul.msk.f32.vlgmr.msrb.gmra.mxu1 %vm205_vm0, %v3685_v25  ;;  %2066 = vmatpush.msrb.mxu2 %v2822_v2 }
 0x127   : >> { %2111 = vmatpush.msrb.mxu3 %v2822_v2  ;;  %2151 = vmatpush.msrb.mxu0 %v2836_v20 }
 0x128   : >> { %v1040_v48 = vpop.f32.mrf.mxu2  ;;  %v1085_v18 = vpop.f32.mrf.mxu3  ;;  %2196 = vmatpush.msrb.mxu1 %v2836_v20  ;;  %2067 = vmatpush.msrb.mxu2 %v2821_v8 }
 0x129   : >> { %v1052_v52 = vadd.f32 %v1040_v48, %v3608_v57  ;;  %v1097_v4 = vadd.f32 %v1085_v18, %v3613_v13  ;;  %v1131_v6 = vpop.f32.mrf.mxu0  ;;  %2112 = vmatpush.msrb.mxu3 %v2821_v8  ;;  %2152 = vmatpush.msrb.mxu0 %v2835_v24  ;;  %v2810_v18 = vld [vmem:[%s2986_s7 + $0xa8] sm:$0xff] }
 0x12a   : >> { %2197 = vmatpush.msrb.mxu1 %v2835_v24  ;;  %v2823_v24 = vld [vmem:[%s2986_s7 + $0xa1] sm:$0xff] }
 0x12b   : >> { %v3700_v19 = vadd.f32 %v1128_v54, %v1052_v52  ;;  %v3705_v10 = vadd.f32 %v1173_v1, %v1097_v4  ;;  %v1176_v5 = vpop.f32.mrf.mxu1  ;;  %v2864_v4 = vld [vmem:[%s3951_s1 + $0x188] sm:$0xff] }
 0x12c   : >> { %2784 = vmatmul.msk.f32.gmra.mxu0 %vm205_vm0, %v3519_v27 }
 0x12d   : >> { %2770 = vmatmul.msk.f32.gmra.mxu2 %vm205_vm0, %v3428_v36  ;;  %2774 = vmatmul.msk.f32.gmra.mxu3 %vm205_vm0, %v3703_v23 }
 0x12e   : >> { %2788 = vmatmul.msk.f32.gmra.mxu1 %vm205_vm0, %v3708_v33 }
 0x130   : >> { %v1043_v26 = vpop.f32.mrf.mxu2  ;;  %v1088_v36 = vpop.f32.mrf.mxu3 }
 0x131   : >> { %v1053_v57 = vadd.f32 %v1043_v26, %v3631_v32  ;;  %v1098_v13 = vadd.f32 %v1088_v36, %v3636_v34  ;;  %v1134_v14 = vpop.f32.mrf.mxu0  ;;  %v2811_v36 = vld [vmem:[%s2986_s7 + $0xb0] sm:$0xff] }
 0x133   : >> { %v3723_v27 = vadd.f32 %v1131_v6, %v1053_v57  ;;  %v3728_v16 = vadd.f32 %v1176_v5, %v1098_v13  ;;  %v1179_v31 = vpop.f32.mrf.mxu1  ;;  %v2849_v13 = vld [vmem:[%s3951_s1 + $0x170] sm:$0xff] }
 0x134   : >> { %2785 = vmatmul.msk.f32.gmra.mxu0 %vm205_vm0, %v3542_v63 }
 0x135   : >> { %2771 = vmatmul.msk.f32.gmra.mxu2 %vm205_vm0, %v3453_v38  ;;  %2775 = vmatmul.msk.f32.gmra.mxu3 %vm205_vm0, %v3726_v60 }
 0x136   : >> { %2789 = vmatmul.msk.f32.gmra.mxu1 %vm205_vm0, %v3731_v42 }
 0x138   : >> { %v1046_v35 = vpop.f32.mrf.mxu2  ;;  %v1091_v38 = vpop.f32.mrf.mxu3 }
 0x139   : >> { %v1054_v32 = vadd.f32 %v1046_v35, %v3654_v44  ;;  %v1099_v34 = vadd.f32 %v1091_v38, %v3659_v45  ;;  %v1137_v37 = vpop.f32.mrf.mxu0  ;;  %v2812_v38 = vld [vmem:[%s2986_s7 + $0xb8] sm:$0xf] }
 0x13b   : >> { %v3746_v63 = vadd.f32 %v1134_v14, %v1054_v32  ;;  %v3751_v22 = vadd.f32 %v1179_v31, %v1099_v34  ;;  %v1182_v39 = vpop.f32.mrf.mxu1  ;;  %v2863_v34 = vld [vmem:[%s3951_s1 + $0x180] sm:$0xff] }
 0x13c   : >> { %2786 = vmatmul.msk.f32.gmra.mxu0 %vm205_vm0, %v3565_v53 }
 0x13d   : >> { %2772 = vmatmul.msk.f32.gmra.mxu2 %vm205_vm0, %v3477_v21  ;;  %2776 = vmatmul.msk.f32.gmra.mxu3 %vm205_vm0, %v3749_v40 }
 0x13e   : >> { %2790 = vmatmul.msk.f32.gmra.mxu1 %vm205_vm0, %v3754_v51 }
 0x140   : >> { %v1049_v11 = vpop.f32.mrf.mxu2  ;;  %v1094_v21 = vpop.f32.mrf.mxu3 }
 0x141   : >> { %v1055_v44 = vadd.f32 %v1049_v11, %v3677_v61  ;;  %v1100_v45 = vadd.f32 %v1094_v21, %v3682_v56  ;;  %v1298_v46 = vpop.f32.mrf.mxu0  ;;  %v2837_v21 = vld [vmem:[%s2986_s7 + $0xa2] sm:$0xff] }
 0x143   : >> { %v3769_v53 = vadd.f32 %v1137_v37, %v1055_v44  ;;  %v3774_v50 = vadd.f32 %v1182_v39, %v1100_v45  ;;  %v1343_v47 = vpop.f32.mrf.mxu1 }
 0x144   : >> { %2813 = vmatmul.msk.f32.vlgmr.msra.gmra.mxu0 %vm205_vm0, %v3588_v59  ;;  %v3790_v59 = vld [vmem:[%s2986_s7 + $0x8c] sm:$0xff] }
 0x145   : >> { %2797 = vmatmul.msk.f32.vlgmr.msra.gmra.mxu2 %vm205_vm0, %v3501_v29  ;;  %2801 = vmatmul.msk.f32.vlgmr.msra.gmra.mxu3 %vm205_vm0, %v3772_v49 }
 0x146   : >> { %2817 = vmatmul.msk.f32.vlgmr.msra.gmra.mxu1 %vm205_vm0, %v2809_v62  ;;  %2236 = vmatpush.msra.mxu2 %v2850_v3 }
 0x147   : >> { %2281 = vmatpush.msra.mxu3 %v2850_v3  ;;  %2321 = vmatpush.msra.mxu0 %v2864_v4  ;;  %v2824_v3 = vld [vmem:[%s2986_s7 + $0xa9] sm:$0xff] }
 0x148   : >> { %v1213_v54 = vpop.f32.mrf.mxu2  ;;  %v1258_v56 = vpop.f32.mrf.mxu3  ;;  %2366 = vmatpush.msra.mxu1 %v2864_v4  ;;  %2237 = vmatpush.msra.mxu2 %v2849_v13 }
 0x149   : >> { %v1225_v61 = vadd.f32 %v1213_v54, %v3700_v19  ;;  %v1270_v29 = vadd.f32 %v1258_v56, %v3705_v10  ;;  %v1301_v1 = vpop.f32.mrf.mxu0  ;;  %2282 = vmatpush.msra.mxu3 %v2849_v13  ;;  %2322 = vmatpush.msra.mxu0 %v2863_v34  ;;  %v2838_v56 = vld [vmem:[%s2986_s7 + $0xaa] sm:$0xff] }
 0x14a   : >> { %2367 = vmatpush.msra.mxu1 %v2863_v34 }
 0x14b   : >> { %v1310_v2 = vadd.f32 %v1298_v46, %v1225_v61  ;;  %v1355_v48 = vadd.f32 %v1343_v47, %v1270_v29  ;;  %v1346_v52 = vpop.f32.mrf.mxu1 }
 0x14c   : >> { %2814 = vmatmul.msk.f32.gmra.mxu0 %vm205_vm0, %v3611_v58  ;;  %v3806_v58 = vld [vmem:[%s2986_s7 + $0x94] sm:$0xff] }
 0x14d   : >> { %2798 = vmatmul.msk.f32.gmra.mxu2 %vm205_vm0, %v3524_v30  ;;  %2802 = vmatmul.msk.f32.gmra.mxu3 %vm205_vm0, %v3790_v59 }
 0x14e   : >> { %2818 = vmatmul.msk.f32.gmra.mxu1 %vm205_vm0, %v2810_v18 }
 0x150   : >> { %v1216_v6 = vpop.f32.mrf.mxu2  ;;  %v1261_v10 = vpop.f32.mrf.mxu3 }
 0x151   : >> { %v1226_v19 = vadd.f32 %v1216_v6, %v3723_v27  ;;  %v1271_v30 = vadd.f32 %v1261_v10, %v3728_v16  ;;  %v1304_v5 = vpop.f32.mrf.mxu0  ;;  %v2839_v6 = vld [vmem:[%s2986_s7 + $0xb2] sm:$0xff] }
 0x153   : >> { %v1311_v20 = vadd.f32 %v1301_v1, %v1226_v19  ;;  %v1356_v26 = vadd.f32 %v1346_v52, %v1271_v30  ;;  %v1349_v57 = vpop.f32.mrf.mxu1  ;;  %v2825_v52 = vld [vmem:[%s2986_s7 + $0xb1] sm:$0xff] }
 0x154   : >> { %2815 = vmatmul.msk.f32.gmra.mxu0 %vm205_vm0, %v3634_v28  ;;  %v3822_v28 = vld [vmem:[%s2986_s7 + $0x9c] sm:$0xf] }
 0x155   : >> { %2799 = vmatmul.msk.f32.gmra.mxu2 %vm205_vm0, %v3547_v41  ;;  %2803 = vmatmul.msk.f32.gmra.mxu3 %vm205_vm0, %v3806_v58 }
 0x156   : >> { %2819 = vmatmul.msk.f32.gmra.mxu1 %vm205_vm0, %v2811_v36  ;;  %v2840_v36 = vld [vmem:[%s2986_s7 + $0xba] sm:$0xf] }
 0x158   : >> { %v1219_v14 = vpop.f32.mrf.mxu2  ;;  %v1264_v16 = vpop.f32.mrf.mxu3 }
 0x159   : >> { %v1227_v27 = vadd.f32 %v1219_v14, %v3746_v63  ;;  %v1272_v41 = vadd.f32 %v1264_v16, %v3751_v22  ;;  %v1307_v31 = vpop.f32.mrf.mxu0 }
 0x15b   : >> { %v1312_v8 = vadd.f32 %v1304_v5, %v1227_v27  ;;  %v1357_v35 = vadd.f32 %v1349_v57, %v1272_v41  ;;  %v1352_v32 = vpop.f32.mrf.mxu1  ;;  %v2851_v41 = vld [vmem:[%s2986_s7 + $0xa3] sm:$0xff] }
 0x15c   : >> { %2816 = vmatmul.msk.f32.gmra.mxu0 %vm205_vm0, %v3657_v43 }
 0x15d   : >> { %2800 = vmatmul.msk.f32.gmra.mxu2 %vm205_vm0, %v3570_v15  ;;  %2804 = vmatmul.msk.f32.gmra.mxu3 %vm205_vm0, %v3822_v28 }
 0x15e   : >> { %2820 = vmatmul.msk.f32.gmra.mxu1 %vm205_vm0, %v2812_v38 }
 0x160   : >> { %v1222_v37 = vpop.f32.mrf.mxu2  ;;  %v1267_v22 = vpop.f32.mrf.mxu3 }
 0x161   : >> { %v1228_v63 = vadd.f32 %v1222_v37, %v3769_v53  ;;  %v1273_v15 = vadd.f32 %v1267_v22, %v3774_v50  ;;  %v1468_v39 = vpop.f32.mrf.mxu0 }
 0x163   : >> { %v1313_v43 = vadd.f32 %v1307_v31, %v1228_v63  ;;  %v1358_v11 = vadd.f32 %v1352_v32, %v1273_v15  ;;  %v1513_v44 = vpop.f32.mrf.mxu1  ;;  %v2852_v63 = vld [vmem:[%s2986_s7 + $0xab] sm:$0xff] }
 0x164   : >> { %2841 = vmatmul.msk.f32.vlgmr.msrb.gmra.mxu0 %vm205_vm0, %v3680_v55 }
 0x165   : >> { %2827 = vmatmul.msk.f32.vlgmr.msrb.gmra.mxu2 %vm205_vm0, %v3593_v7  ;;  %2831 = vmatmul.msk.f32.vlgmr.msrb.gmra.mxu3 %vm205_vm0, %v2823_v24 }
 0x166   : >> { %2845 = vmatmul.msk.f32.vlgmr.msrb.gmra.mxu1 %vm205_vm0, %v2837_v21  ;;  %v2853_v21 = vld [vmem:[%s2986_s7 + $0xb3] sm:$0xff] }
 0x168   : >> { %v1383_v45 = vpop.f32.mrf.mxu2  ;;  %v1428_v53 = vpop.f32.mrf.mxu3 }
 0x169   : >> { %v1395_v46 = vadd.f32 %v1383_v45, %v1310_v2  ;;  %v1440_v50 = vadd.f32 %v1428_v53, %v1355_v48  ;;  %v1471_v47 = vpop.f32.mrf.mxu0  ;;  %v2867_v53 = vld [vmem:[%s2986_s7 + $0xb4] sm:$0xff] }
 0x16b   : >> { %v1480_v62 = vadd.f32 %v1468_v39, %v1395_v46  ;;  %v1525_v54 = vadd.f32 %v1513_v44, %v1440_v50  ;;  %v1516_v61 = vpop.f32.mrf.mxu1  ;;  %v2866_v39 = vld [vmem:[%s2986_s7 + $0xac] sm:$0xff] }
 0x16c   : >> { %2842 = vmatmul.msk.f32.gmra.mxu0 %vm205_vm0, %v3703_v23 }
 0x16d   : >> { %2828 = vmatmul.msk.f32.gmra.mxu2 %vm205_vm0, %v3616_v9  ;;  %2832 = vmatmul.msk.f32.gmra.mxu3 %vm205_vm0, %v2824_v3 }
 0x16e   : >> { %2846 = vmatmul.msk.f32.gmra.mxu1 %vm205_vm0, %v2838_v56 }
 0x170   : >> { %v1386_v7 = vpop.f32.mrf.mxu2  ;;  %v1431_v29 = vpop.f32.mrf.mxu3 }
 0x171   : >> { %v1396_v55 = vadd.f32 %v1386_v7, %v1311_v20  ;;  %v1441_v1 = vadd.f32 %v1431_v29, %v1356_v26  ;;  %v1474_v2 = vpop.f32.mrf.mxu0  ;;  %v2826_v20 = vld [vmem:[%s2986_s7 + $0xb9] sm:$0xf] }
 0x172   : >> { %v2868_v7 = vld [vmem:[%s2986_s7 + $0xbc] sm:$0xf] }
 0x173   : >> { %v1481_v48 = vadd.f32 %v1471_v47, %v1396_v55  ;;  %v1526_v18 = vadd.f32 %v1516_v61, %v1441_v1  ;;  %v1519_v4 = vpop.f32.mrf.mxu1 }
 0x174   : >> { %2843 = vmatmul.msk.f32.gmra.mxu0 %vm205_vm0, %v3726_v60 }
 0x175   : >> { %2829 = vmatmul.msk.f32.gmra.mxu2 %vm205_vm0, %v3639_v12  ;;  %2833 = vmatmul.msk.f32.gmra.mxu3 %vm205_vm0, %v2825_v52 }
 0x176   : >> { %2847 = vmatmul.msk.f32.gmra.mxu1 %vm205_vm0, %v2839_v6 }
 0x178   : >> { %v1389_v9 = vpop.f32.mrf.mxu2  ;;  %v1434_v19 = vpop.f32.mrf.mxu3 }
 0x179   : >> { %v1397_v23 = vadd.f32 %v1389_v9, %v1312_v8  ;;  %v1442_v10 = vadd.f32 %v1434_v19, %v1357_v35  ;;  %v1477_v30 = vpop.f32.mrf.mxu0  ;;  %v2865_v35 = vld [vmem:[%s2986_s7 + $0xa4] sm:$0xff] }
 0x17b   : >> { %v1482_v5 = vadd.f32 %v1474_v2, %v1397_v23  ;;  %v1527_v26 = vadd.f32 %v1519_v4, %v1442_v10  ;;  %v1522_v57 = vpop.f32.mrf.mxu1 }
 0x17c   : >> { %2844 = vmatmul.msk.f32.gmra.mxu0 %vm205_vm0, %v3749_v40 }
 0x17d   : >> { %2830 = vmatmul.msk.f32.gmra.mxu2 %vm205_vm0, %v3662_v17  ;;  %2834 = vmatmul.msk.f32.gmra.mxu3 %vm205_vm0, %v2826_v20 }
 0x17e   : >> { %2848 = vmatmul.msk.f32.gmra.mxu1 %vm205_vm0, %v2840_v36 }
 0x180   : >> { %v1392_v12 = vpop.f32.mrf.mxu2  ;;  %v1437_v13 = vpop.f32.mrf.mxu3 }
 0x181   : >> { %v1398_v60 = vadd.f32 %v1392_v12, %v1313_v43  ;;  %v1443_v14 = vadd.f32 %v1437_v13, %v1358_v11  ;;  %v1641_v27 = vpop.f32.mrf.mxu0 }
 0x183   : >> { %v1483_v16 = vadd.f32 %v1477_v30, %v1398_v60  ;;  %v1528_v31 = vadd.f32 %v1522_v57, %v1443_v14  ;;  %v1686_v8 = vpop.f32.mrf.mxu1 }
 0x184   : >> { %2869 = vmatmul.msk.f32.vlgmr.msra.gmra.mxu0 %vm205_vm0, %v3772_v49 }
 0x185   : >> { %2855 = vmatmul.msk.f32.vlgmr.msra.gmra.mxu2 %vm205_vm0, %v3685_v25  ;;  %2859 = vmatmul.msk.f32.vlgmr.msra.gmra.mxu3 %vm205_vm0, %v2851_v41 }
 0x186   : >> { %2873 = vmatmul.msk.f32.vlgmr.msra.gmra.mxu1 %vm205_vm0, %v2865_v35 }
 0x188   : >> { %v1556_v17 = vpop.f32.mrf.mxu2  ;;  %v1601_v32 = vpop.f32.mrf.mxu3 }
 0x189   : >> { %v1568_v40 = vadd.f32 %v1556_v17, %v1480_v62  ;;  %v1613_v38 = vadd.f32 %v1601_v32, %v1525_v54  ;;  %v1644_v34 = vpop.f32.mrf.mxu0  ;;  %v2854_v54 = vld [vmem:[%s2986_s7 + $0xbb] sm:$0xf]  ;;  %s2877_s7 = sshll.u32 %s2922_s24, 4  ;;  %s177_s24 = sadd.s32 1, %s2922_s24  }
 0x18a   : >> { %s2422_s13 = scalar_lea.vmem %s2965_s23, %s2877_s7  ;;  %p174_p4 = scmp.ge.s32.totalorder %s177_s24, 14  }
 0x18b   : >> { %v1653_v37 = vadd.f32 %v1641_v27, %v1568_v40  ;;  %v1698_v22 = vadd.f32 %v1686_v8, %v1613_v38  ;;  %v1689_v15 = vpop.f32.mrf.mxu1 }
 0x18c   : >> { %2870 = vmatmul.msk.f32.gmra.mxu0 %vm205_vm0, %v3790_v59 }
 0x18d   : >> { %2856 = vmatmul.msk.f32.gmra.mxu2 %vm205_vm0, %v3708_v33  ;;  %2860 = vmatmul.msk.f32.gmra.mxu3 %vm205_vm0, %v2852_v63 }
 0x18e   : >> { %2874 = vmatmul.msk.f32.gmra.mxu1 %vm205_vm0, %v2866_v39 }
 0x190   : >> { %v1559_v25 = vpop.f32.mrf.mxu2  ;;  %v1604_v43 = vpop.f32.mrf.mxu3 }
 0x191   : >> { %v1569_v49 = vadd.f32 %v1559_v25, %v1481_v48  ;;  %v1614_v24 = vadd.f32 %v1604_v43, %v1526_v18  ;;  %v1647_v11 = vpop.f32.mrf.mxu0 }
 0x193   : >> { %v1654_v44 = vadd.f32 %v1644_v34, %v1569_v49  ;;  %v1699_v45 = vadd.f32 %v1689_v15, %v1614_v24  ;;  %v1692_v46 = vpop.f32.mrf.mxu1 }
 0x194   : >> { %2871 = vmatmul.msk.f32.gmra.mxu0 %vm205_vm0, %v3806_v58 }
 0x195   : >> { %2857 = vmatmul.msk.f32.gmra.mxu2 %vm205_vm0, %v3731_v42  ;;  %2861 = vmatmul.msk.f32.gmra.mxu3 %vm205_vm0, %v2853_v21 }
 0x196   : >> { %2875 = vmatmul.msk.f32.gmra.mxu1 %vm205_vm0, %v2867_v53 }
 0x198   : >> { %v1562_v33 = vpop.f32.mrf.mxu2  ;;  %v1607_v50 = vpop.f32.mrf.mxu3 }
 0x199   : >> { %v1570_v59 = vadd.f32 %v1562_v33, %v1482_v5  ;;  %v1615_v47 = vadd.f32 %v1607_v50, %v1527_v26  ;;  %v1650_v62 = vpop.f32.mrf.mxu0 }
 0x19b   : >> { %v1655_v3 = vadd.f32 %v1647_v11, %v1570_v59  ;;  %v1700_v61 = vadd.f32 %v1692_v46, %v1615_v47  ;;  %v1695_v56 = vpop.f32.mrf.mxu1 }
 0x19c   : >> { %2872 = vmatmul.msk.f32.gmra.mxu0 %vm205_vm0, %v3822_v28 }
 0x19d   : >> { %2858 = vmatmul.msk.f32.gmra.mxu2 %vm205_vm0, %v3754_v51  ;;  %2862 = vmatmul.msk.f32.gmra.mxu3 %vm205_vm0, %v2854_v54 }
 0x19e   : >> { %2876 = vmatmul.msk.f32.gmra.mxu1 %vm205_vm0, %v2868_v7 }
 0x1a0   : >> { %v1565_v42 = vpop.f32.mrf.mxu2  ;;  %v1610_v55 = vpop.f32.mrf.mxu3 }
 0x1a1   : >> { %v1571_v58 = vadd.f32 %v1565_v42, %v1483_v16  ;;  %v1616_v29 = vadd.f32 %v1610_v55, %v1528_v31  ;;  %v1811_v1 = vpop.f32.mrf.mxu0 }
 0x1a3   : >> { %v1656_v2 = vadd.f32 %v1650_v62, %v1571_v58  ;;  %v1701_v48 = vadd.f32 %v1695_v56, %v1616_v29  ;;  %v1856_v52 = vpop.f32.mrf.mxu1 }
 0x1a8   : >> { %v1726_v18 = vpop.f32.mrf.mxu2  ;;  %v1771_v6 = vpop.f32.mrf.mxu3 }
 0x1a9   : >> { %v1738_v4 = vadd.f32 %v1726_v18, %v1653_v37  ;;  %v1783_v9 = vadd.f32 %v1771_v6, %v1698_v22  ;;  %v1814_v51 = vpop.f32.mrf.mxu0 }
 0x1ab   : >> { %v1823_v23 = vadd.f32 %v1811_v1, %v1738_v4  ;;  %v1868_v19 = vadd.f32 %v1856_v52, %v1783_v9  ;;  %v1859_v28 = vpop.f32.mrf.mxu1 }
 0x1b0   : >> { %v1729_v10 = vpop.f32.mrf.mxu2  ;;  %v1774_v5 = vpop.f32.mrf.mxu3 }
 0x1b1   : >> { %v1739_v30 = vadd.f32 %v1729_v10, %v1654_v44  ;;  %v1784_v20 = vadd.f32 %v1774_v5, %v1699_v45  ;;  %v1817_v26 = vpop.f32.mrf.mxu0 }
 0x1b3   : >> { %v1824_v57 = vadd.f32 %v1814_v51, %v1739_v30  ;;  %v1869_v36 = vadd.f32 %v1859_v28, %v1784_v20  ;;  %v1862_v12 = vpop.f32.mrf.mxu1 }
 0x1b8   : >> { %v1732_v60 = vpop.f32.mrf.mxu2  ;;  %v1777_v14 = vpop.f32.mrf.mxu3 }
 0x1b9   : >> { %v1740_v13 = vadd.f32 %v1732_v60, %v1655_v3  ;;  %v1785_v27 = vadd.f32 %v1777_v14, %v1700_v61  ;;  %v1820_v16 = vpop.f32.mrf.mxu0 }
 0x1bb   : >> { %v3901_v41 = vadd.f32 %v1817_v26, %v1740_v13  ;;  %v3903_v31 = vadd.f32 %v1862_v12, %v1785_v27  ;;  %v1865_v8 = vpop.f32.mrf.mxu1  ;;  %v3922_v27 = vperm.slane %v2955_v0, 0 }
 0x1c0   : >> { %v1735_v35 = vpop.f32.mrf.mxu2  ;;  %v1780_v40 = vpop.f32.mrf.mxu3 }
 0x1c1   : >> { %v1741_v17 = vadd.f32 %v1735_v35, %v1656_v2  ;;  %v1786_v32 = vadd.f32 %v1780_v40, %v1701_v48  ;;  %v1984_v38 = vpop.f32.mrf.mxu0 }
 0x1c3   : >> { %v3905_v34 = vadd.f32 %v1820_v16, %v1741_v17  ;;  %v3907_v37 = vadd.f32 %v1865_v8, %v1786_v32  ;;  %v2029_v63 = vpop.f32.mrf.mxu1 }
 0x1c8   : >> { %v1896_v22 = vpop.f32.mrf.mxu2  ;;  %v1941_v15 = vpop.f32.mrf.mxu3 }
 0x1c9   : >> { %v1987_v39 = vpop.f32.mrf.mxu0  ;;  %v1908_v2 = vadd.f32 %v1896_v22, %v1823_v23  ;;  %v1953_v48 = vadd.f32 %v1941_v15, %v1868_v19 }
 0x1cb   : >> { %v2032_v25 = vpop.f32.mrf.mxu1  ;;  %v1996_v18 = vadd.f32 %v1984_v38, %v1908_v2  ;;  %v2041_v6 = vadd.f32 %v2029_v63, %v1953_v48 }
 0x1d0   : >> { %v1899_v49 = vpop.f32.mrf.mxu2  ;;  %v1944_v43 = vpop.f32.mrf.mxu3 }
 0x1d1   : >> { %v1990_v24 = vpop.f32.mrf.mxu0  ;;  %v1909_v30 = vadd.f32 %v1899_v49, %v1824_v57  ;;  %v1954_v5 = vadd.f32 %v1944_v43, %v1869_v36 }
 0x1d3   : >> { %v2035_v11 = vpop.f32.mrf.mxu1  ;;  %v1997_v60 = vadd.f32 %v1987_v39, %v1909_v30  ;;  %v2042_v23 = vadd.f32 %v2032_v25, %v1954_v5 }
 0x1d8   : >> { %v1902_v44 = vpop.f32.mrf.mxu2  ;;  %v1947_v21 = vpop.f32.mrf.mxu3 }
 0x1d9   : >> { %v3909_v45 = vpop.f32.mrf.mxu0  ;;  %v1910_v32 = vadd.f32 %v1902_v44, %v3901_v41  ;;  %v1955_v38 = vadd.f32 %v1947_v21, %v3903_v31 }
 0x1db   : >> { %v3911_v46 = vpop.f32.mrf.mxu1  ;;  %v1998_v43 = vadd.f32 %v1990_v24, %v1910_v32 }
 0x1e0   : >> { %v3913_v53 = vpop.f32.mrf.mxu2  ;;  %v3915_v33 = vpop.f32.mrf.mxu3 }
 0x1e1   : >> { %v2154_v59 = vpop.f32.mrf.mxu0  ;;  %v1911_v31 = vadd.f32 %v3913_v53, %v3905_v34 }
 0x1e3   : >> { %v2199_v50 = vpop.f32.mrf.mxu1 }
 0x1e8   : >> { %v2069_v47 = vpop.f32.mrf.mxu2  ;;  %v2114_v62 = vpop.f32.mrf.mxu3 }
 0x1e9   : >> { %v2157_v3 = vpop.f32.mrf.mxu0  ;;  %v2081_v51 = vadd.f32 %v2069_v47, %v1996_v18  ;;  %v2126_v28 = vadd.f32 %v2114_v62, %v2041_v6  ;;  %v2043_v47 = vadd.f32 %v2035_v11, %v1955_v38 }
 0x1eb   : >> { %v2202_v54 = vpop.f32.mrf.mxu1  ;;  %v2166_v20 = vadd.f32 %v2154_v59, %v2081_v51  ;;  %v2211_v26 = vadd.f32 %v2199_v50, %v2126_v28 }
 0x1f0   : >> { %v2072_v61 = vpop.f32.mrf.mxu2  ;;  %v2117_v56 = vpop.f32.mrf.mxu3 }
 0x1f1   : >> { %v2160_v7 = vpop.f32.mrf.mxu0  ;;  %v2082_v16 = vadd.f32 %v2072_v61, %v1997_v60  ;;  %v2127_v35 = vadd.f32 %v2117_v56, %v2042_v23 }
 0x1f3   : >> { %v2205_v42 = vpop.f32.mrf.mxu1  ;;  %v2167_v22 = vadd.f32 %v2157_v3, %v2082_v16  ;;  %v2212_v39 = vadd.f32 %v2202_v54, %v2127_v35  ;;  %v1956_v3 = vadd.f32 %v3915_v33, %v3907_v37 }
 0x1f5   : >> { %v2044_v34 = vadd.f32 %v3911_v46, %v1956_v3 }
 0x1f8   : >> { %v2075_v58 = vpop.f32.mrf.mxu2  ;;  %v2120_v55 = vpop.f32.mrf.mxu3 }
 0x1f9   : >> { %v3917_v29 = vpop.f32.mrf.mxu0  ;;  %v2083_v56 = vadd.f32 %v2075_v58, %v1998_v43  ;;  %v2128_v44 = vadd.f32 %v2120_v55, %v2043_v47  ;;  %v1999_v55 = vadd.f32 %v3909_v45, %v1911_v31 }
 0x1fb   : >> { %v3919_v1 = vpop.f32.mrf.mxu1  ;;  %v2168_v48 = vadd.f32 %v2160_v7, %v2083_v56  ;;  %v2213_v6 = vadd.f32 %v2205_v42, %v2128_v44 }
 0x200   : >> { %v2078_v52 = vpop.f32.mrf.mxu2  ;;  %v2123_v4 = vpop.f32.mrf.mxu3 }
 0x201   : >> { %v2324_v9 = vpop.f32.mrf.mxu0  ;;  %v2084_v30 = vadd.f32 %v2078_v52, %v1999_v55  ;;  %v2129_v33 = vadd.f32 %v2123_v4, %v2044_v34 }
 0x203   : >> { %v2369_v10 = vpop.f32.mrf.mxu1 }
 0x208   : >> { %v2239_v12 = vpop.f32.mrf.mxu2  ;;  %v2284_v14 = vpop.f32.mrf.mxu3 }
 0x209   : >> { %v2251_v13 = vadd.f32 %v2239_v12, %v2166_v20  ;;  %v2296_v19 = vadd.f32 %v2284_v14, %v2211_v26  ;;  %v2327_v40 = vpop.f32.mrf.mxu0  ;;  %v2169_v20 = vadd.f32 %v3917_v29, %v2084_v30  ;;  %v2214_v26 = vadd.f32 %v3919_v1, %v2129_v33 }
 0x20b   : >> { %v2336_v8 = vadd.f32 %v2324_v9, %v2251_v13  ;;  %v2381_v17 = vadd.f32 %v2369_v10, %v2296_v19  ;;  %v2372_v36 = vpop.f32.mrf.mxu1 }
 0x20d   : >> { %v2388_v57 = vadd.f32 %v3922_v27, %v2336_v8  ;;  %v2396_v63 = vadd.f32 %v3922_v27, %v2381_v17 }
 0x20f   : >> { %v2392_v15 = vmax.f32 %v2388_v57, 0.0  ;;  %v2400_v49 = vmax.f32 %v2396_v63, 0.0 }
 0x210   : >> { %v2242_v25 = vpop.f32.mrf.mxu2  ;;  %v2287_v50 = vpop.f32.mrf.mxu3 }
 0x211   : >> { %v2252_v59 = vadd.f32 %v2242_v25, %v2167_v22  ;;  %v2404_v62 = vmax.f32 %v2392_v15, %v2400_v49  ;;  %v2297_v61 = vadd.f32 %v2287_v50, %v2212_v39  ;;  %v2330_v54 = vpop.f32.mrf.mxu0 }
 0x213   : >> { %v2337_v41 = vadd.f32 %v2327_v40, %v2252_v59  ;;  %2408 = vst [vmem:[#allocation2] sm:$0xff] %v2404_v62  ;;  %v2382_v2 = vadd.f32 %v2372_v36, %v2297_v61  ;;  %v2375_v18 = vpop.f32.mrf.mxu1 }
 0x215   : >> { %v2389_v21 = vadd.f32 %v3922_v27, %v2337_v41  ;;  %v2397_v24 = vadd.f32 %v3922_v27, %v2382_v2 }
 0x217   : >> { %v2393_v11 = vmax.f32 %v2389_v21, 0.0  ;;  %v2401_v58 = vmax.f32 %v2397_v24, 0.0 }
 0x218   : >> { %v2245_v9 = vpop.f32.mrf.mxu2  ;;  %v2290_v28 = vpop.f32.mrf.mxu3 }
 0x219   : >> { %v2253_v51 = vadd.f32 %v2245_v9, %v2168_v48  ;;  %v2405_v53 = vmax.f32 %v2393_v11, %v2401_v58  ;;  %v2298_v10 = vadd.f32 %v2290_v28, %v2213_v6  ;;  %v2333_v60 = vpop.f32.mrf.mxu0 }
 0x21b   : >> { %v2338_v37 = vadd.f32 %v2330_v54, %v2253_v51  ;;  %2409 = vst [vmem:[#allocation2 + $0x8] sm:$0xff] %v2405_v53  ;;  %v2383_v5 = vadd.f32 %v2375_v18, %v2298_v10  ;;  %v2378_v14 = vpop.f32.mrf.mxu1 }
 0x21d   : >> { %v2390_v7 = vadd.f32 %v3922_v27, %v2338_v37  ;;  %v2398_v42 = vadd.f32 %v3922_v27, %v2383_v5 }
 0x21f   : >> { %v2394_v45 = vmax.f32 %v2390_v7, 0.0  ;;  %v2402_v12 = vmax.f32 %v2398_v42, 0.0 }
 0x220   : >> { %v2248_v46 = vpop.f32.mrf.mxu2  ;;  %v2293_v52 = vpop.f32.mrf.mxu3 }
 0x221   : >> { %v2254_v13 = vadd.f32 %v2248_v46, %v2169_v20  ;;  %v2406_v4 = vmax.f32 %v2394_v45, %v2402_v12  ;;  %v2299_v23 = vadd.f32 %v2293_v52, %v2214_v26 }
 0x222   : >> { %v2412_v19 = vld [vmem:[#allocation2] ss:$2 sm:$0xff]  ;;  %v2416_v16 = vld [vmem:[#allocation2 + $0x1] ss:$2 sm:$0xff] }
 0x223   : >> { %v2339_v8 = vadd.f32 %v2333_v60, %v2254_v13  ;;  %v2419_v35 = vmax.f32 %v2412_v19, %v2416_v16  ;;  %2410 = vst [vmem:[#allocation2 + $0x10] sm:$0xff] %v2406_v4  ;;  %v2384_v17 = vadd.f32 %v2378_v14, %v2299_v23 }
 0x225   : >> { %v2391_v29 = vadd.f32 %v3922_v27, %v2339_v8  ;;  %2423 = vst [vmem:[%s2422_s13] sm:$0xff] %v2419_v35  ;;  %v2399_v1 = vadd.f32 %v3922_v27, %v2384_v17 }
 0x227   : >> { %v2395_v40 = vmax.f32 %v2391_v29, 0.0  ;;  %v2403_v32 = vmax.f32 %v2399_v1, 0.0 }
 0x229   : >> { %v2407_v57 = vmax.f32 %v2395_v40, %v2403_v32 }
 0x22b   : >> { %2411 = vst [vmem:[#allocation2 + $0x18] sm:$0xf] %v2407_v57 }
 0x231   : > { %176 = sbr.rel (!%p174_p4) target bundleno = 15 (0xf), region = 103 }
 0x232   : >> { %v2414_v36 = vld [vmem:[#allocation2 + $0x10] ss:$2 sm:$0x3f]  ;;  %v2418_v38 = vld [vmem:[#allocation2 + $0x11] ss:$2 sm:$0x3f] }
 0x233   : >> { %v2420_v63 = vmax.f32 %v2414_v36, %v2418_v38 }
 0x235   : >> { %2424 = vst [vmem:[%s2422_s13 + $0x8] sm:$0x3f] %v2420_v63 }
 0x236 PF: > { %s13_s12 = sadd.s32 1, %s2918_s12  }
 0x237   : > { %p10_p5 = scmp.ge.s32.totalorder %s13_s12, 4  }
 0x239   :  { %12 = sbr.rel (!%p10_p5) target bundleno = 1 (0x1), region = 114 }

// kernel: cnn_forward.4
= control target key start
LH: loop header
LB: loop body
LE: loop exit
PB: predicated region body
PF: predicated region fallthrough
CT: control target
= control target key end

     0   :  { %s2576_s12 = smov 0   ;;  %s4109_s0 = inlined_call_operand.vmem [shape: f32[2,18,18,128], index: 0, kind: input, shape index: {}]   ;;  %s4110_s1 = inlined_call_operand.vmem [shape: f32[25,128,128], index: 1, kind: input, shape index: {}]   ;;  %s4111_s2 = inlined_call_operand.vmem [shape: f32[1,128], index: 2, kind: input, shape index: {}]   ;;  %s4112_s3 = inlined_call_operand.vmem [shape: bf16[2,7,7,128], index: 3, kind: output, shape index: {}]  }
   0x1 LB: > { %s2034_s13 = sadd.s32 4294967295, %s2550_s12   ;;  %p2038_p0 = scmp.ge.s32.totalorder %s2550_s12, 1  ;;  %s2550_s12 = sphi %s2576_s12, %s13_s12  }
   0x2   : > { %p137_p1 = scmp.lt.s32.totalorder %s2550_s12, 3 }
   0x4   : > { %p138_p2 = pnand %p2038_p0, %p137_p1 }
   0x5   : > { %p161_p3 = scmp.lt.s32.totalorder (!%p138_p2), %s2034_s13, 1  ;;  %s2599_s24 = smov (!%p138_p2), 0  }
   0x6   : > { %141 = sbr.rel (%p138_p2) target bundleno = 636 (0x27c), region = 32 }
   0xb   : > { %v2587_v0 = vld [vmem:[%s4111_s2] sm:$0x1]  ;;  %s4114_s13 = smov (!%p161_p3, %s2034_s13), 1 }
   0xc   : > { %s2522_s16 = smul.u32 432, %s4114_s13 }
   0xd   : > { %s2523_s17 = smul.u32 28, %s4114_s13 }
   0xe   : > { %s2592_s20 = scalar_lea.vmem %s4109_s0, %s2522_s16 }
   0xf   : > { %s2597_s23 = scalar_lea.vmem %s4112_s3, %s2523_s17 }
  0x10 LB: >> { %v2062_v1 = vld [vmem:[%s4110_s1 + $0xf8] sm:$0xff]  ;;  %v2061_v3 = vld [vmem:[%s4110_s1 + $0xf0] sm:$0xff]  ;;  %v2060_v5 = vld [vmem:[%s4110_s1 + $0xe8] sm:$0xff]  ;;  %s2042_s25 = smul.u32 48, %s2554_s24  ;;  %vm1944_vm0 = vcmask 1043456   ;;  %s2554_s24 = sphi %s2599_s24, %s177_s24  }
  0x11   : >> { %v194_v2 = vld [vmem:[%s4110_s1 + $0x78] sm:$0xff]  ;;  %225 = vmatpush.msra.mxu0 %v2062_v1  ;;  %v193_v4 = vld [vmem:[%s4110_s1 + $0x70] sm:$0xff]  ;;  %271 = vmatpush.msra.mxu2 %v2062_v1  ;;  %v192_v6 = vld [vmem:[%s4110_s1 + $0x68] sm:$0xff]  ;;  %vm1945_vm1 = vsmask.f32 3328 }
  0x12   : >> { %248 = vmatpush.msra.mxu1 %v194_v2  ;;  %294 = vmatpush.msra.mxu3 %v194_v2  ;;  %v2059_v7 = vld [vmem:[%s4110_s1 + $0xe0] sm:$0xff]  ;;  %v2058_v9 = vld [vmem:[%s4110_s1 + $0xd8] sm:$0xff]  ;;  %v2057_v11 = vld [vmem:[%s4110_s1 + $0xd0] sm:$0xff]  ;;  %s2756_s7 = scalar_lea.vmem %s2592_s20, %s2042_s25 }
  0x13   : >> { %226 = vmatpush.msra.mxu0 %v2061_v3  ;;  %272 = vmatpush.msra.mxu2 %v2061_v3  ;;  %v191_v8 = vld [vmem:[%s4110_s1 + $0x60] sm:$0xff]  ;;  %v190_v10 = vld [vmem:[%s4110_s1 + $0x58] sm:$0xff]  ;;  %v189_v12 = vld [vmem:[%s4110_s1 + $0x50] sm:$0xff] }
  0x14   : >> { %249 = vmatpush.msra.mxu1 %v193_v4  ;;  %295 = vmatpush.msra.mxu3 %v193_v4  ;;  %v2056_v13 = vld [vmem:[%s4110_s1 + $0xc8] sm:$0xff]  ;;  %v2055_v15 = vld [vmem:[%s4110_s1 + $0xc0] sm:$0xff]  ;;  %v2054_v17 = vld [vmem:[%s4110_s1 + $0xb8] sm:$0xff] }
  0x15   : >> { %227 = vmatpush.msra.mxu0 %v2060_v5  ;;  %273 = vmatpush.msra.mxu2 %v2060_v5  ;;  %v188_v14 = vld [vmem:[%s4110_s1 + $0x48] sm:$0xff]  ;;  %v187_v16 = vld [vmem:[%s4110_s1 + $0x40] sm:$0xff]  ;;  %v186_v18 = vld [vmem:[%s4110_s1 + $0x38] sm:$0xff] }
  0x16   : >> { %250 = vmatpush.msra.mxu1 %v192_v6  ;;  %296 = vmatpush.msra.mxu3 %v192_v6  ;;  %v2053_v19 = vld [vmem:[%s4110_s1 + $0xb0] sm:$0xff]  ;;  %v2052_v21 = vld [vmem:[%s4110_s1 + $0xa8] sm:$0xff]  ;;  %v2051_v23 = vld [vmem:[%s4110_s1 + $0xa0] sm:$0xff] }
  0x17   : >> { %228 = vmatpush.msra.mxu0 %v2059_v7  ;;  %274 = vmatpush.msra.mxu2 %v2059_v7  ;;  %v185_v20 = vld [vmem:[%s4110_s1 + $0x30] sm:$0xff]  ;;  %v184_v22 = vld [vmem:[%s4110_s1 + $0x28] sm:$0xff]  ;;  %v183_v24 = vld [vmem:[%s4110_s1 + $0x20] sm:$0xff] }
  0x18   : >> { %251 = vmatpush.msra.mxu1 %v191_v8  ;;  %297 = vmatpush.msra.mxu3 %v191_v8  ;;  %v2050_v25 = vld [vmem:[%s4110_s1 + $0x98] sm:$0xff]  ;;  %v2049_v27 = vld [vmem:[%s4110_s1 + $0x90] sm:$0xff]  ;;  %v2048_v29 = vld [vmem:[%s4110_s1 + $0x88] sm:$0xff] }
  0x19   : >> { %229 = vmatpush.msra.mxu0 %v2058_v9  ;;  %275 = vmatpush.msra.mxu2 %v2058_v9  ;;  %v182_v26 = vld [vmem:[%s4110_s1 + $0x18] sm:$0xff]  ;;  %v181_v28 = vld [vmem:[%s4110_s1 + $0x10] sm:$0xff]  ;;  %v180_v30 = vld [vmem:[%s4110_s1 + $0x8] sm:$0xff] }
  0x1a   : >> { %252 = vmatpush.msra.mxu1 %v190_v10  ;;  %298 = vmatpush.msra.mxu3 %v190_v10  ;;  %v2047_v31 = vld [vmem:[%s4110_s1 + $0x80] sm:$0xff]  ;;  %v2080_v33 = vld [vmem:[%s4110_s1 + $0x178] sm:$0xff]  ;;  %v2079_v35 = vld [vmem:[%s4110_s1 + $0x170] sm:$0xff] }
  0x1b   : >> { %230 = vmatpush.msra.mxu0 %v2057_v11  ;;  %276 = vmatpush.msra.mxu2 %v2057_v11  ;;  %v179_v32 = vld [vmem:[%s4110_s1] sm:$0xff]  ;;  %v2098_v34 = vld [vmem:[%s4110_s1 + $0x1f8] sm:$0xff]  ;;  %v2097_v36 = vld [vmem:[%s4110_s1 + $0x1f0] sm:$0xff] }
  0x1c   : >> { %253 = vmatpush.msra.mxu1 %v189_v12  ;;  %299 = vmatpush.msra.mxu3 %v189_v12  ;;  %v2078_v37 = vld [vmem:[%s4110_s1 + $0x168] sm:$0xff]  ;;  %v2077_v39 = vld [vmem:[%s4110_s1 + $0x160] sm:$0xff]  ;;  %v2076_v41 = vld [vmem:[%s4110_s1 + $0x158] sm:$0xff] }
  0x1d   : >> { %231 = vmatpush.msra.mxu0 %v2056_v13  ;;  %277 = vmatpush.msra.mxu2 %v2056_v13  ;;  %v2096_v38 = vld [vmem:[%s4110_s1 + $0x1e8] sm:$0xff]  ;;  %v2095_v40 = vld [vmem:[%s4110_s1 + $0x1e0] sm:$0xff]  ;;  %v2094_v42 = vld [vmem:[%s4110_s1 + $0x1d8] sm:$0xff] }
  0x1e   : >> { %254 = vmatpush.msra.mxu1 %v188_v14  ;;  %300 = vmatpush.msra.mxu3 %v188_v14  ;;  %v2075_v43 = vld [vmem:[%s4110_s1 + $0x150] sm:$0xff]  ;;  %v2074_v45 = vld [vmem:[%s4110_s1 + $0x148] sm:$0xff]  ;;  %v2073_v47 = vld [vmem:[%s4110_s1 + $0x140] sm:$0xff] }
  0x1f   : >> { %232 = vmatpush.msra.mxu0 %v2055_v15  ;;  %278 = vmatpush.msra.mxu2 %v2055_v15  ;;  %v2093_v44 = vld [vmem:[%s4110_s1 + $0x1d0] sm:$0xff]  ;;  %v2092_v46 = vld [vmem:[%s4110_s1 + $0x1c8] sm:$0xff]  ;;  %v2091_v48 = vld [vmem:[%s4110_s1 + $0x1c0] sm:$0xff] }
  0x20   : >> { %255 = vmatpush.msra.mxu1 %v187_v16  ;;  %301 = vmatpush.msra.mxu3 %v187_v16  ;;  %v2072_v49 = vld [vmem:[%s4110_s1 + $0x138] sm:$0xff]  ;;  %v2071_v51 = vld [vmem:[%s4110_s1 + $0x130] sm:$0xff]  ;;  %v2070_v55 = vld [vmem:[%s4110_s1 + $0x128] sm:$0xff] }
  0x21   : >> { %233 = vmatpush.msra.mxu0 %v2054_v17  ;;  %279 = vmatpush.msra.mxu2 %v2054_v17  ;;  %v2090_v50 = vld [vmem:[%s4110_s1 + $0x1b8] sm:$0xff]  ;;  %v2089_v52 = vld [vmem:[%s4110_s1 + $0x1b0] sm:$0xff]  ;;  %v2088_v56 = vld [vmem:[%s4110_s1 + $0x1a8] sm:$0xff] }
  0x22   : >> { %256 = vmatpush.msra.mxu1 %v186_v18  ;;  %302 = vmatpush.msra.mxu3 %v186_v18  ;;  %v2765_v53 = vld [vmem:[%s2756_s7 + $0x19] sm:$0xff]  ;;  %v221_v59 = vld [vmem:[%s2756_s7 + $0x1] sm:$0xff]  ;;  %v2067_v63 = vld [vmem:[%s4110_s1 + $0x110] sm:$0xff] }
  0x23   : >> { %234 = vmatpush.msra.mxu0 %v2053_v19  ;;  %280 = vmatpush.msra.mxu2 %v2053_v19  ;;  %v2768_v54 = vld [vmem:[%s2756_s7 + $0x18] sm:$0xff]  ;;  %v2069_v57 = vld [vmem:[%s4110_s1 + $0x120] sm:$0xff]  ;;  %v2085_v1 = vld [vmem:[%s4110_s1 + $0x190] sm:$0xff] }
  0x24   : >> { %257 = vmatpush.msra.mxu1 %v185_v20  ;;  %303 = vmatpush.msra.mxu3 %v185_v20  ;;  %v2087_v58 = vld [vmem:[%s4110_s1 + $0x1a0] sm:$0xff]  ;;  %v2068_v61 = vld [vmem:[%s4110_s1 + $0x118] sm:$0xff]  ;;  %v2066_v4 = vld [vmem:[%s4110_s1 + $0x108] sm:$0xff] }
  0x25   : >> { %235 = vmatpush.msra.mxu0 %v2052_v21  ;;  %281 = vmatpush.msra.mxu2 %v2052_v21  ;;  %v197_v60 = vld [vmem:[%s2756_s7] sm:$0xff]  ;;  %v2086_v62 = vld [vmem:[%s4110_s1 + $0x198] sm:$0xff]  ;;  %v2084_v5 = vld [vmem:[%s4110_s1 + $0x188] sm:$0xff] }
  0x26   : >> { %258 = vmatpush.msra.mxu1 %v184_v22  ;;  %304 = vmatpush.msra.mxu3 %v184_v22  ;;  %v2799_v2 = vld [vmem:[%s2756_s7 + $0x21] sm:$0x3f]  ;;  %v222_v8 = vld [vmem:[%s2756_s7 + $0x9] sm:$0x3f]  ;;  %v2116_v10 = vld [vmem:[%s4110_s1 + $0x278] sm:$0xff] }
  0x27   : >> { %236 = vmatpush.msra.mxu0 %v2051_v23  ;;  %282 = vmatpush.msra.mxu2 %v2051_v23  ;;  %v2802_v3 = vld [vmem:[%s2756_s7 + $0x20] sm:$0x3f]  ;;  %v198_v9 = vld [vmem:[%s2756_s7 + $0x8] sm:$0x3f]  ;;  %v2134_v11 = vld [vmem:[%s4110_s1 + $0x2f8] sm:$0xff] }
  0x28   : >> { %259 = vmatpush.msra.mxu1 %v183_v24  ;;  %305 = vmatpush.msra.mxu3 %v183_v24  ;;  %v2065_v6 = vld [vmem:[%s4110_s1 + $0x100] sm:$0xff]  ;;  %v2115_v12 = vld [vmem:[%s4110_s1 + $0x270] sm:$0xff]  ;;  %v2114_v16 = vld [vmem:[%s4110_s1 + $0x268] sm:$0xff] }
  0x29   : >> { %237 = vmatpush.msra.mxu0 %v2050_v25  ;;  %283 = vmatpush.msra.mxu2 %v2050_v25  ;;  %v2083_v7 = vld [vmem:[%s4110_s1 + $0x180] sm:$0xff]  ;;  %v2133_v13 = vld [vmem:[%s4110_s1 + $0x2f0] sm:$0xff]  ;;  %v2132_v17 = vld [vmem:[%s4110_s1 + $0x2e8] sm:$0xff] }
  0x2a   : >> { %260 = vmatpush.msra.mxu1 %v182_v26  ;;  %306 = vmatpush.msra.mxu3 %v182_v26  ;;  %v405_v14 = vld [vmem:[%s2756_s7 + $0x3] sm:$0xff]  ;;  %v2834_v15 = vld [vmem:[%s2756_s7 + $0x1b] sm:$0xff]  ;;  %v2111_v24 = vld [vmem:[%s4110_s1 + $0x250] sm:$0xff] }
  0x2b   : >> { %238 = vmatpush.msra.mxu0 %v2049_v27  ;;  %284 = vmatpush.msra.mxu2 %v2049_v27  ;;  %v2113_v18 = vld [vmem:[%s4110_s1 + $0x260] sm:$0xff]  ;;  %v2112_v22 = vld [vmem:[%s4110_s1 + $0x258] sm:$0xff]  ;;  %v2129_v25 = vld [vmem:[%s4110_s1 + $0x2d0] sm:$0xff] }
  0x2c   : >> { %261 = vmatpush.msra.mxu1 %v181_v28  ;;  %307 = vmatpush.msra.mxu3 %v181_v28  ;;  %v2131_v19 = vld [vmem:[%s4110_s1 + $0x2e0] sm:$0xff]  ;;  %v2130_v23 = vld [vmem:[%s4110_s1 + $0x2d8] sm:$0xff]  ;;  %v2110_v26 = vld [vmem:[%s4110_s1 + $0x248] sm:$0xff] }
  0x2d   : >> { %239 = vmatpush.msra.mxu0 %v2048_v29  ;;  %285 = vmatpush.msra.mxu2 %v2048_v29  ;;  %v334_v20 = vld [vmem:[%s2756_s7 + $0x2] sm:$0xff]  ;;  %v2851_v21 = vld [vmem:[%s2756_s7 + $0x1a] sm:$0xff]  ;;  %vm1946_vm2 = vmand %vm1944_vm0, %vm1945_vm1 }
  0x2e   : >> { %262 = vmatpush.msra.mxu1 %v180_v30  ;;  %308 = vmatpush.msra.mxu3 %v180_v30  ;;  %v2128_v27 = vld [vmem:[%s4110_s1 + $0x2c8] sm:$0xff]  ;;  %v2109_v28 = vld [vmem:[%s4110_s1 + $0x240] sm:$0xff]  ;;  %v2108_v30 = vld [vmem:[%s4110_s1 + $0x238] sm:$0xff] }
  0x2f   : >> { %240 = vmatpush.msra.mxu0 %v2047_v31  ;;  %286 = vmatpush.msra.mxu2 %v2047_v31  ;;  %v2127_v29 = vld [vmem:[%s4110_s1 + $0x2c0] sm:$0xff]  ;;  %v2126_v31 = vld [vmem:[%s4110_s1 + $0x2b8] sm:$0xff] }
  0x30   : >> { %263 = vmatpush.msra.mxu1 %v179_v32  ;;  %309 = vmatpush.msra.mxu3 %v179_v32  ;;  %v2107_v32 = vld [vmem:[%s4110_s1 + $0x230] sm:$0xff] }
  0x31   : >> { %338 = vmatpush.msrb.mxu0 %v2080_v33  ;;  %409 = vmatpush.msrb.mxu2 %v2098_v34 }
  0x32   : >> { %363 = vmatpush.msrb.mxu1 %v2080_v33  ;;  %434 = vmatpush.msrb.mxu3 %v2098_v34  ;;  %v2125_v33 = vld [vmem:[%s4110_s1 + $0x2b0] sm:$0xff]  ;;  %v2106_v34 = vld [vmem:[%s4110_s1 + $0x228] sm:$0xff] }
  0x33   : >> { %339 = vmatpush.msrb.mxu0 %v2079_v35  ;;  %410 = vmatpush.msrb.mxu2 %v2097_v36 }
  0x34   : >> { %364 = vmatpush.msrb.mxu1 %v2079_v35  ;;  %435 = vmatpush.msrb.mxu3 %v2097_v36  ;;  %v2124_v35 = vld [vmem:[%s4110_s1 + $0x2a8] sm:$0xff]  ;;  %v2105_v36 = vld [vmem:[%s4110_s1 + $0x220] sm:$0xff] }
  0x35   : >> { %340 = vmatpush.msrb.mxu0 %v2078_v37  ;;  %411 = vmatpush.msrb.mxu2 %v2096_v38 }
  0x36   : >> { %365 = vmatpush.msrb.mxu1 %v2078_v37  ;;  %436 = vmatpush.msrb.mxu3 %v2096_v38  ;;  %v2123_v37 = vld [vmem:[%s4110_s1 + $0x2a0] sm:$0xff]  ;;  %v335_v38 = vld [vmem:[%s2756_s7 + $0xa] sm:$0x3f] }
  0x37   : >> { %341 = vmatpush.msrb.mxu0 %v2077_v39  ;;  %412 = vmatpush.msrb.mxu2 %v2095_v40 }
  0x38   : >> { %366 = vmatpush.msrb.mxu1 %v2077_v39  ;;  %437 = vmatpush.msrb.mxu3 %v2095_v40  ;;  %v2904_v39 = vld [vmem:[%s2756_s7 + $0x22] sm:$0x3f]  ;;  %v406_v40 = vld [vmem:[%s2756_s7 + $0xb] sm:$0x3f] }
  0x39   : >> { %342 = vmatpush.msrb.mxu0 %v2076_v41  ;;  %413 = vmatpush.msrb.mxu2 %v2094_v42 }
  0x3a   : >> { %367 = vmatpush.msrb.mxu1 %v2076_v41  ;;  %438 = vmatpush.msrb.mxu3 %v2094_v42  ;;  %v2908_v41 = vld [vmem:[%s2756_s7 + $0x23] sm:$0x3f]  ;;  %v2104_v42 = vld [vmem:[%s4110_s1 + $0x218] sm:$0xff] }
  0x3b   : >> { %343 = vmatpush.msrb.mxu0 %v2075_v43  ;;  %414 = vmatpush.msrb.mxu2 %v2093_v44 }
  0x3c   : >> { %368 = vmatpush.msrb.mxu1 %v2075_v43  ;;  %439 = vmatpush.msrb.mxu3 %v2093_v44  ;;  %v2122_v43 = vld [vmem:[%s4110_s1 + $0x298] sm:$0xff]  ;;  %v2103_v44 = vld [vmem:[%s4110_s1 + $0x210] sm:$0xff] }
  0x3d   : >> { %344 = vmatpush.msrb.mxu0 %v2074_v45  ;;  %415 = vmatpush.msrb.mxu2 %v2092_v46 }
  0x3e   : >> { %369 = vmatpush.msrb.mxu1 %v2074_v45  ;;  %440 = vmatpush.msrb.mxu3 %v2092_v46  ;;  %v2121_v45 = vld [vmem:[%s4110_s1 + $0x290] sm:$0xff]  ;;  %v2102_v46 = vld [vmem:[%s4110_s1 + $0x208] sm:$0xff] }
  0x3f   : >> { %345 = vmatpush.msrb.mxu0 %v2073_v47  ;;  %416 = vmatpush.msrb.mxu2 %v2091_v48 }
  0x40   : >> { %370 = vmatpush.msrb.mxu1 %v2073_v47  ;;  %441 = vmatpush.msrb.mxu3 %v2091_v48  ;;  %v2120_v47 = vld [vmem:[%s4110_s1 + $0x288] sm:$0xff]  ;;  %v2101_v48 = vld [vmem:[%s4110_s1 + $0x200] sm:$0xff] }
  0x41   : >> { %346 = vmatpush.msrb.mxu0 %v2072_v49  ;;  %417 = vmatpush.msrb.mxu2 %v2090_v50 }
  0x42   : >> { %371 = vmatpush.msrb.mxu1 %v2072_v49  ;;  %442 = vmatpush.msrb.mxu3 %v2090_v50  ;;  %v2119_v49 = vld [vmem:[%s4110_s1 + $0x280] sm:$0xff] }
  0x43   : >> { %347 = vmatpush.msrb.mxu0 %v2071_v51  ;;  %418 = vmatpush.msrb.mxu2 %v2089_v52  ;;  %v476_v50 = vld [vmem:[%s2756_s7 + $0x4] sm:$0xff] }
  0x44   : >> { %372 = vmatpush.msrb.mxu1 %v2071_v51  ;;  %443 = vmatpush.msrb.mxu3 %v2089_v52  ;;  %v2938_v51 = vld [vmem:[%s2756_s7 + $0x1c] sm:$0xff]  ;;  %v2941_v52 = vld [vmem:[%s2756_s7 + $0x30] sm:$0xff] }
  0x45   : >> { %287 = vmatmul.f32.vlgmr.msra.gmra.mxu2 %v2765_v53  ;;  %310 = vmatmul.f32.vlgmr.msra.gmra.mxu3 %v2768_v54 }
  0x46   : >> { %348 = vmatpush.msrb.mxu0 %v2070_v55  ;;  %373 = vmatpush.msrb.mxu1 %v2070_v55  ;;  %v2154_v55 = vld [vmem:[%s4110_s1 + $0x378] sm:$0xff] }
  0x47   : >> { %419 = vmatpush.msrb.mxu2 %v2088_v56  ;;  %444 = vmatpush.msrb.mxu3 %v2088_v56  ;;  %v2172_v56 = vld [vmem:[%s4110_s1 + $0x3f8] sm:$0xff] }
  0x48   : >> { %349 = vmatpush.msrb.mxu0 %v2069_v57  ;;  %374 = vmatpush.msrb.mxu1 %v2069_v57  ;;  %v2153_v57 = vld [vmem:[%s4110_s1 + $0x370] sm:$0xff] }
  0x49   : >> { %420 = vmatpush.msrb.mxu2 %v2087_v58  ;;  %445 = vmatpush.msrb.mxu3 %v2087_v58  ;;  %v2171_v58 = vld [vmem:[%s4110_s1 + $0x3f0] sm:$0xff] }
  0x4a   : >> { %241 = vmatmul.f32.vlgmr.msra.gmra.mxu0 %v221_v59  ;;  %264 = vmatmul.f32.vlgmr.msra.gmra.mxu1 %v197_v60  ;;  %v2170_v59 = vld [vmem:[%s4110_s1 + $0x3e8] sm:$0xff]  ;;  %v2151_v60 = vld [vmem:[%s4110_s1 + $0x360] sm:$0xff] }
  0x4b   : >> { %350 = vmatpush.msrb.mxu0 %v2068_v61  ;;  %375 = vmatpush.msrb.mxu1 %v2068_v61  ;;  %v2169_v61 = vld [vmem:[%s4110_s1 + $0x3e0] sm:$0xff] }
  0x4c   : >> { %421 = vmatpush.msrb.mxu2 %v2086_v62  ;;  %446 = vmatpush.msrb.mxu3 %v2086_v62  ;;  %v477_v62 = vld [vmem:[%s2756_s7 + $0xc] sm:$0x3f] }
  0x4d   : >> { %351 = vmatpush.msrb.mxu0 %v2067_v63  ;;  %376 = vmatpush.msrb.mxu1 %v2067_v63  ;;  %v2972_v63 = vld [vmem:[%s2756_s7 + $0x24] sm:$0x3f] }
  0x4e   : >> { %422 = vmatpush.msrb.mxu2 %v2085_v1  ;;  %447 = vmatpush.msrb.mxu3 %v2085_v1  ;;  %v2975_v1 = vld [vmem:[%s2756_s7 + $0x38] sm:$0x3f] }
  0x4f   : >> { %290 = vmatmul.f32.gmra.mxu2 %v2799_v2  ;;  %313 = vmatmul.f32.gmra.mxu3 %v2802_v3 }
  0x50   : >> { %352 = vmatpush.msrb.mxu0 %v2066_v4  ;;  %377 = vmatpush.msrb.mxu1 %v2066_v4  ;;  %v2150_v4 = vld [vmem:[%s4110_s1 + $0x358] sm:$0xff] }
  0x51   : >> { %423 = vmatpush.msrb.mxu2 %v2084_v5  ;;  %448 = vmatpush.msrb.mxu3 %v2084_v5  ;;  %v2168_v5 = vld [vmem:[%s4110_s1 + $0x3d8] sm:$0xff] }
  0x52   : >> { %353 = vmatpush.msrb.mxu0 %v2065_v6  ;;  %378 = vmatpush.msrb.mxu1 %v2065_v6  ;;  %v2149_v6 = vld [vmem:[%s4110_s1 + $0x350] sm:$0xff] }
  0x53   : >> { %424 = vmatpush.msrb.mxu2 %v2083_v7  ;;  %449 = vmatpush.msrb.mxu3 %v2083_v7  ;;  %v2167_v7 = vld [vmem:[%s4110_s1 + $0x3d0] sm:$0xff] }
  0x54   : >> { %244 = vmatmul.f32.gmra.mxu0 %v222_v8  ;;  %267 = vmatmul.f32.gmra.mxu1 %v198_v9  ;;  %v2148_v8 = vld [vmem:[%s4110_s1 + $0x348] sm:$0xff]  ;;  %v2147_v9 = vld [vmem:[%s4110_s1 + $0x340] sm:$0xff] }
  0x55   : >> { %480 = vmatpush.msra.mxu0 %v2116_v10  ;;  %505 = vmatpush.msra.mxu1 %v2116_v10  ;;  %v2165_v10 = vld [vmem:[%s4110_s1 + $0x3c0] sm:$0xff] }
  0x56   : >> { %552 = vmatpush.msra.mxu2 %v2134_v11  ;;  %577 = vmatpush.msra.mxu3 %v2134_v11  ;;  %v2146_v11 = vld [vmem:[%s4110_s1 + $0x338] sm:$0xff] }
  0x57   : >> { %481 = vmatpush.msra.mxu0 %v2115_v12  ;;  %506 = vmatpush.msra.mxu1 %v2115_v12  ;;  %v2164_v12 = vld [vmem:[%s4110_s1 + $0x3b8] sm:$0xff] }
  0x58   : >> { %553 = vmatpush.msra.mxu2 %v2133_v13  ;;  %578 = vmatpush.msra.mxu3 %v2133_v13  ;;  %v2145_v13 = vld [vmem:[%s4110_s1 + $0x330] sm:$0xff] }
  0x59   : >> { %425 = vmatmul.f32.vlgmr.msrb.gmra.mxu2 %v405_v14  ;;  %450 = vmatmul.f32.vlgmr.msrb.gmra.mxu3 %v2834_v15  ;;  %v2163_v14 = vld [vmem:[%s4110_s1 + $0x3b0] sm:$0xff] }
  0x5a   : >> { %482 = vmatpush.msra.mxu0 %v2114_v16  ;;  %507 = vmatpush.msra.mxu1 %v2114_v16  ;;  %v2144_v16 = vld [vmem:[%s4110_s1 + $0x328] sm:$0xff] }
  0x5b   : >> { %554 = vmatpush.msra.mxu2 %v2132_v17  ;;  %579 = vmatpush.msra.mxu3 %v2132_v17  ;;  %v2162_v17 = vld [vmem:[%s4110_s1 + $0x3a8] sm:$0xff] }
  0x5c   : >> { %483 = vmatpush.msra.mxu0 %v2113_v18  ;;  %508 = vmatpush.msra.mxu1 %v2113_v18  ;;  %v2143_v18 = vld [vmem:[%s4110_s1 + $0x320] sm:$0xff] }
  0x5d   : >> { %555 = vmatpush.msra.mxu2 %v2131_v19  ;;  %580 = vmatpush.msra.mxu3 %v2131_v19  ;;  %v2161_v19 = vld [vmem:[%s4110_s1 + $0x3a0] sm:$0xff] }
  0x5e   : >> { %354 = vmatmul.f32.vlgmr.msrb.gmra.mxu0 %v334_v20  ;;  %379 = vmatmul.f32.vlgmr.msrb.gmra.mxu1 %v2851_v21  ;;  %v2142_v20 = vld [vmem:[%s4110_s1 + $0x318] sm:$0xff] }
  0x5f   : >> { %484 = vmatpush.msra.mxu0 %v2112_v22  ;;  %509 = vmatpush.msra.mxu1 %v2112_v22  ;;  %v2160_v22 = vld [vmem:[%s4110_s1 + $0x398] sm:$0xff] }
  0x60   : >> { %556 = vmatpush.msra.mxu2 %v2130_v23  ;;  %581 = vmatpush.msra.mxu3 %v2130_v23  ;;  %v2141_v23 = vld [vmem:[%s4110_s1 + $0x310] sm:$0xff] }
  0x61   : >> { %485 = vmatpush.msra.mxu0 %v2111_v24  ;;  %510 = vmatpush.msra.mxu1 %v2111_v24  ;;  %v2159_v24 = vld [vmem:[%s4110_s1 + $0x390] sm:$0xff] }
  0x62   : >> { %557 = vmatpush.msra.mxu2 %v2129_v25  ;;  %582 = vmatpush.msra.mxu3 %v2129_v25  ;;  %v2140_v25 = vld [vmem:[%s4110_s1 + $0x308] sm:$0xff] }
  0x63   : >> { %486 = vmatpush.msra.mxu0 %v2110_v26  ;;  %511 = vmatpush.msra.mxu1 %v2110_v26  ;;  %v2158_v26 = vld [vmem:[%s4110_s1 + $0x388] sm:$0xff] }
  0x64   : >> { %558 = vmatpush.msra.mxu2 %v2128_v27  ;;  %583 = vmatpush.msra.mxu3 %v2128_v27  ;;  %v2139_v27 = vld [vmem:[%s4110_s1 + $0x300] sm:$0xff] }
  0x65   : >> { %487 = vmatpush.msra.mxu0 %v2109_v28  ;;  %512 = vmatpush.msra.mxu1 %v2109_v28  ;;  %v2157_v28 = vld [vmem:[%s4110_s1 + $0x380] sm:$0xff] }
  0x66   : >> { %559 = vmatpush.msra.mxu2 %v2127_v29  ;;  %584 = vmatpush.msra.mxu3 %v2127_v29  ;;  %v3053_v29 = vld [vmem:[%s2756_s7 + $0x31] sm:$0xff] }
  0x67   : >> { %488 = vmatpush.msra.mxu0 %v2108_v30  ;;  %513 = vmatpush.msra.mxu1 %v2108_v30  ;;  %v3056_v30 = vld [vmem:[%s2756_s7 + $0x32] sm:$0xff] }
  0x68   : >> { %560 = vmatpush.msra.mxu2 %v2126_v31  ;;  %585 = vmatpush.msra.mxu3 %v2126_v31  ;;  %v2190_v31 = vld [vmem:[%s4110_s1 + $0x478] sm:$0xff] }
  0x69   : >> { %489 = vmatpush.msra.mxu0 %v2107_v32  ;;  %514 = vmatpush.msra.mxu1 %v2107_v32  ;;  %v2208_v32 = vld [vmem:[%s4110_s1 + $0x4f8] sm:$0xff] }
  0x6a   : >> { %561 = vmatpush.msra.mxu2 %v2125_v33  ;;  %586 = vmatpush.msra.mxu3 %v2125_v33  ;;  %v2189_v33 = vld [vmem:[%s4110_s1 + $0x470] sm:$0xff] }
  0x6b   : >> { %490 = vmatpush.msra.mxu0 %v2106_v34  ;;  %515 = vmatpush.msra.mxu1 %v2106_v34  ;;  %v2206_v34 = vld [vmem:[%s4110_s1 + $0x4e8] sm:$0xff] }
  0x6c   : >> { %562 = vmatpush.msra.mxu2 %v2124_v35  ;;  %587 = vmatpush.msra.mxu3 %v2124_v35  ;;  %v2187_v35 = vld [vmem:[%s4110_s1 + $0x460] sm:$0xff] }
  0x6d   : >> { %491 = vmatpush.msra.mxu0 %v2105_v36  ;;  %516 = vmatpush.msra.mxu1 %v2105_v36  ;;  %v2205_v36 = vld [vmem:[%s4110_s1 + $0x4e0] sm:$0xff] }
  0x6e   : >> { %563 = vmatpush.msra.mxu2 %v2123_v37  ;;  %588 = vmatpush.msra.mxu3 %v2123_v37  ;;  %v3087_v37 = vld [vmem:[%s2756_s7 + $0x39] sm:$0x3f] }
  0x6f   : >> { %357 = vmatmul.f32.gmra.mxu0 %v335_v38  ;;  %382 = vmatmul.f32.gmra.mxu1 %v2904_v39  ;;  %v3090_v38 = vld [vmem:[%s2756_s7 + $0x3a] sm:$0x3f] }
  0x70   : >> { %428 = vmatmul.f32.gmra.mxu2 %v406_v40  ;;  %453 = vmatmul.f32.gmra.mxu3 %v2908_v41  ;;  %v2186_v40 = vld [vmem:[%s4110_s1 + $0x458] sm:$0xff] }
  0x71   : >> { %492 = vmatpush.msra.mxu0 %v2104_v42  ;;  %517 = vmatpush.msra.mxu1 %v2104_v42  ;;  %v2204_v42 = vld [vmem:[%s4110_s1 + $0x4d8] sm:$0xff] }
  0x72   : >> { %564 = vmatpush.msra.mxu2 %v2122_v43  ;;  %589 = vmatpush.msra.mxu3 %v2122_v43  ;;  %v2185_v43 = vld [vmem:[%s4110_s1 + $0x450] sm:$0xff] }
  0x73   : >> { %493 = vmatpush.msra.mxu0 %v2103_v44  ;;  %518 = vmatpush.msra.mxu1 %v2103_v44  ;;  %v2184_v44 = vld [vmem:[%s4110_s1 + $0x448] sm:$0xff] }
  0x74   : >> { %565 = vmatpush.msra.mxu2 %v2121_v45  ;;  %590 = vmatpush.msra.mxu3 %v2121_v45  ;;  %v2183_v45 = vld [vmem:[%s4110_s1 + $0x440] sm:$0xff] }
  0x75   : >> { %494 = vmatpush.msra.mxu0 %v2102_v46  ;;  %519 = vmatpush.msra.mxu1 %v2102_v46  ;;  %v2201_v46 = vld [vmem:[%s4110_s1 + $0x4c0] sm:$0xff] }
  0x76   : >> { %566 = vmatpush.msra.mxu2 %v2120_v47  ;;  %591 = vmatpush.msra.mxu3 %v2120_v47  ;;  %v2182_v47 = vld [vmem:[%s4110_s1 + $0x438] sm:$0xff] }
  0x77   : >> { %495 = vmatpush.msra.mxu0 %v2101_v48  ;;  %520 = vmatpush.msra.mxu1 %v2101_v48  ;;  %v2200_v48 = vld [vmem:[%s4110_s1 + $0x4b8] sm:$0xff] }
  0x78   : >> { %567 = vmatpush.msra.mxu2 %v2119_v49  ;;  %592 = vmatpush.msra.mxu3 %v2119_v49  ;;  %v2181_v49 = vld [vmem:[%s4110_s1 + $0x430] sm:$0xff] }
  0x79   : >> { %496 = vmatmul.f32.vlgmr.msra.gmra.mxu0 %v476_v50  ;;  %521 = vmatmul.f32.vlgmr.msra.gmra.mxu1 %v2938_v51  ;;  %v2199_v50 = vld [vmem:[%s4110_s1 + $0x4b0] sm:$0xff] }
  0x7a   : >> { %568 = vmatmul.f32.vlgmr.msra.gmra.mxu2 %v2768_v54  ;;  %593 = vmatmul.f32.vlgmr.msra.gmra.mxu3 %v2941_v52  ;;  %v2152_v54 = vld [vmem:[%s4110_s1 + $0x368] sm:$0xff] }
  0x7b   : >> { %621 = vmatpush.msrb.mxu0 %v2154_v55  ;;  %646 = vmatpush.msrb.mxu1 %v2154_v55  ;;  %v2180_v55 = vld [vmem:[%s4110_s1 + $0x428] sm:$0xff] }
  0x7c   : >> { %690 = vmatpush.msrb.mxu2 %v2172_v56  ;;  %715 = vmatpush.msrb.mxu3 %v2172_v56  ;;  %v2198_v56 = vld [vmem:[%s4110_s1 + $0x4a8] sm:$0xff] }
  0x7d   : >> { %622 = vmatpush.msrb.mxu0 %v2153_v57  ;;  %647 = vmatpush.msrb.mxu1 %v2153_v57  ;;  %v2179_v57 = vld [vmem:[%s4110_s1 + $0x420] sm:$0xff] }
  0x7e   : >> { %691 = vmatpush.msrb.mxu2 %v2171_v58  ;;  %716 = vmatpush.msrb.mxu3 %v2171_v58  ;;  %v2197_v58 = vld [vmem:[%s4110_s1 + $0x4a0] sm:$0xff] }
  0x7f   : >> { %623 = vmatpush.msrb.mxu0 %v2152_v54  ;;  %648 = vmatpush.msrb.mxu1 %v2152_v54  ;;  %v2178_v54 = vld [vmem:[%s4110_s1 + $0x418] sm:$0xff] }
  0x80   : >> { %692 = vmatpush.msrb.mxu2 %v2170_v59  ;;  %717 = vmatpush.msrb.mxu3 %v2170_v59  ;;  %v2196_v59 = vld [vmem:[%s4110_s1 + $0x498] sm:$0xff] }
  0x81   : >> { %624 = vmatpush.msrb.mxu0 %v2151_v60  ;;  %649 = vmatpush.msrb.mxu1 %v2151_v60  ;;  %v2177_v60 = vld [vmem:[%s4110_s1 + $0x410] sm:$0xff] }
  0x82   : >> { %693 = vmatpush.msrb.mxu2 %v2169_v61  ;;  %718 = vmatpush.msrb.mxu3 %v2169_v61  ;;  %v2195_v61 = vld [vmem:[%s4110_s1 + $0x490] sm:$0xff] }
  0x83   : >> { %499 = vmatmul.f32.gmra.mxu0 %v477_v62  ;;  %524 = vmatmul.f32.gmra.mxu1 %v2972_v63  ;;  %v2176_v62 = vld [vmem:[%s4110_s1 + $0x408] sm:$0xff] }
  0x84   : >> { %571 = vmatmul.f32.gmra.mxu2 %v2802_v3  ;;  %596 = vmatmul.f32.gmra.mxu3 %v2975_v1  ;;  %v2166_v3 = vld [vmem:[%s4110_s1 + $0x3c8] sm:$0xff] }
  0x85   : >> { %625 = vmatpush.msrb.mxu0 %v2150_v4  ;;  %650 = vmatpush.msrb.mxu1 %v2150_v4  ;;  %v2194_v4 = vld [vmem:[%s4110_s1 + $0x488] sm:$0xff] }
  0x86   : >> { %694 = vmatpush.msrb.mxu2 %v2168_v5  ;;  %719 = vmatpush.msrb.mxu3 %v2168_v5  ;;  %v2175_v5 = vld [vmem:[%s4110_s1 + $0x400] sm:$0xff] }
  0x87   : >> { %626 = vmatpush.msrb.mxu0 %v2149_v6  ;;  %651 = vmatpush.msrb.mxu1 %v2149_v6  ;;  %v2193_v6 = vld [vmem:[%s4110_s1 + $0x480] sm:$0xff] }
  0x88   : >> { %695 = vmatpush.msrb.mxu2 %v2167_v7  ;;  %720 = vmatpush.msrb.mxu3 %v2167_v7  ;;  %v3169_v7 = vld [vmem:[%s2756_s7 + $0x33] sm:$0xff] }
  0x89   : >> { %627 = vmatpush.msrb.mxu0 %v2148_v8  ;;  %652 = vmatpush.msrb.mxu1 %v2148_v8  ;;  %v3172_v8 = vld [vmem:[%s2756_s7 + $0x34] sm:$0xff] }
  0x8a   : >> { %696 = vmatpush.msrb.mxu2 %v2166_v3  ;;  %721 = vmatpush.msrb.mxu3 %v2166_v3  ;;  %v2226_v3 = vld [vmem:[%s4110_s1 + $0x578] sm:$0xff] }
  0x8b   : >> { %628 = vmatpush.msrb.mxu0 %v2147_v9  ;;  %653 = vmatpush.msrb.mxu1 %v2147_v9  ;;  %v2246_v9 = vld [vmem:[%s4110_s1 + $0x5f8] sm:$0xff] }
  0x8c   : >> { %697 = vmatpush.msrb.mxu2 %v2165_v10  ;;  %722 = vmatpush.msrb.mxu3 %v2165_v10  ;;  %v2225_v10 = vld [vmem:[%s4110_s1 + $0x570] sm:$0xff] }
  0x8d   : >> { %629 = vmatpush.msrb.mxu0 %v2146_v11  ;;  %654 = vmatpush.msrb.mxu1 %v2146_v11  ;;  %v2224_v11 = vld [vmem:[%s4110_s1 + $0x568] sm:$0xff] }
  0x8e   : >> { %698 = vmatpush.msrb.mxu2 %v2164_v12  ;;  %723 = vmatpush.msrb.mxu3 %v2164_v12  ;;  %v2223_v12 = vld [vmem:[%s4110_s1 + $0x560] sm:$0xff] }
  0x8f   : >> { %630 = vmatpush.msrb.mxu0 %v2145_v13  ;;  %655 = vmatpush.msrb.mxu1 %v2145_v13  ;;  %v2243_v13 = vld [vmem:[%s4110_s1 + $0x5e0] sm:$0xff] }
  0x90   : >> { %699 = vmatpush.msrb.mxu2 %v2163_v14  ;;  %724 = vmatpush.msrb.mxu3 %v2163_v14 }
  0x91   : >> { %631 = vmatpush.msrb.mxu0 %v2144_v16  ;;  %656 = vmatpush.msrb.mxu1 %v2144_v16 }
  0x92   : >> { %700 = vmatpush.msrb.mxu2 %v2162_v17  ;;  %725 = vmatpush.msrb.mxu3 %v2162_v17  ;;  %v3203_v17 = vld [vmem:[%s2756_s7 + $0x3b] sm:$0x3f] }
  0x93   : >> { %632 = vmatpush.msrb.mxu0 %v2143_v18  ;;  %657 = vmatpush.msrb.mxu1 %v2143_v18 }
  0x94   : >> { %701 = vmatpush.msrb.mxu2 %v2161_v19  ;;  %726 = vmatpush.msrb.mxu3 %v2161_v19 }
  0x95   : >> { %633 = vmatpush.msrb.mxu0 %v2142_v20  ;;  %658 = vmatpush.msrb.mxu1 %v2142_v20  ;;  %v3206_v20 = vld [vmem:[%s2756_s7 + $0x3c] sm:$0x3f] }
  0x96   : >> { %702 = vmatpush.msrb.mxu2 %v2160_v22  ;;  %727 = vmatpush.msrb.mxu3 %v2160_v22  ;;  %v2222_v22 = vld [vmem:[%s4110_s1 + $0x558] sm:$0xff] }
  0x97   : >> { %634 = vmatpush.msrb.mxu0 %v2141_v23  ;;  %659 = vmatpush.msrb.mxu1 %v2141_v23  ;;  %v2242_v23 = vld [vmem:[%s4110_s1 + $0x5d8] sm:$0xff] }
  0x98   : >> { %703 = vmatpush.msrb.mxu2 %v2159_v24  ;;  %728 = vmatpush.msrb.mxu3 %v2159_v24  ;;  %v2221_v24 = vld [vmem:[%s4110_s1 + $0x550] sm:$0xff] }
  0x99   : >> { %635 = vmatpush.msrb.mxu0 %v2140_v25  ;;  %660 = vmatpush.msrb.mxu1 %v2140_v25  ;;  %v2220_v25 = vld [vmem:[%s4110_s1 + $0x548] sm:$0xff] }
  0x9a   : >> { %704 = vmatpush.msrb.mxu2 %v2158_v26  ;;  %729 = vmatpush.msrb.mxu3 %v2158_v26  ;;  %v2219_v26 = vld [vmem:[%s4110_s1 + $0x540] sm:$0xff] }
  0x9b   : >> { %636 = vmatpush.msrb.mxu0 %v2139_v27  ;;  %661 = vmatpush.msrb.mxu1 %v2139_v27  ;;  %v2239_v27 = vld [vmem:[%s4110_s1 + $0x5c0] sm:$0xff] }
  0x9c   : >> { %705 = vmatpush.msrb.mxu2 %v2157_v28  ;;  %730 = vmatpush.msrb.mxu3 %v2157_v28 }
  0x9d   : >> { %637 = vmatmul.f32.vlgmr.msrb.gmra.mxu0 %v2765_v53  ;;  %662 = vmatmul.f32.vlgmr.msrb.gmra.mxu1 %v3053_v29  ;;  %v2207_v53 = vld [vmem:[%s4110_s1 + $0x4f0] sm:$0xff] }
  0x9e   : >> { %706 = vmatmul.f32.vlgmr.msrb.gmra.mxu2 %v2851_v21  ;;  %731 = vmatmul.f32.vlgmr.msrb.gmra.mxu3 %v3056_v30  ;;  %v2188_v21 = vld [vmem:[%s4110_s1 + $0x468] sm:$0xff] }
  0x9f   : >> { %759 = vmatpush.msra.mxu0 %v2190_v31  ;;  %784 = vmatpush.msra.mxu1 %v2190_v31 }
  0xa0   : >> { %828 = vmatpush.msra.mxu2 %v2208_v32  ;;  %853 = vmatpush.msra.mxu3 %v2208_v32  ;;  %v2218_v32 = vld [vmem:[%s4110_s1 + $0x538] sm:$0xff] }
  0xa1   : >> { %760 = vmatpush.msra.mxu0 %v2189_v33  ;;  %785 = vmatpush.msra.mxu1 %v2189_v33 }
  0xa2   : >> { %829 = vmatpush.msra.mxu2 %v2207_v53  ;;  %854 = vmatpush.msra.mxu3 %v2207_v53 }
  0xa3   : >> { %761 = vmatpush.msra.mxu0 %v2188_v21  ;;  %786 = vmatpush.msra.mxu1 %v2188_v21 }
  0xa4   : >> { %830 = vmatpush.msra.mxu2 %v2206_v34  ;;  %855 = vmatpush.msra.mxu3 %v2206_v34  ;;  %v2238_v34 = vld [vmem:[%s4110_s1 + $0x5b8] sm:$0xff] }
  0xa5   : >> { %762 = vmatpush.msra.mxu0 %v2187_v35  ;;  %787 = vmatpush.msra.mxu1 %v2187_v35 }
  0xa6   : >> { %831 = vmatpush.msra.mxu2 %v2205_v36  ;;  %856 = vmatpush.msra.mxu3 %v2205_v36  ;;  %v2217_v36 = vld [vmem:[%s4110_s1 + $0x530] sm:$0xff] }
  0xa7   : >> { %640 = vmatmul.f32.gmra.mxu0 %v2799_v2  ;;  %665 = vmatmul.f32.gmra.mxu1 %v3087_v37  ;;  %v2203_v2 = vld [vmem:[%s4110_s1 + $0x4d0] sm:$0xff] }
  0xa8   : >> { %709 = vmatmul.f32.gmra.mxu2 %v2904_v39  ;;  %734 = vmatmul.f32.gmra.mxu3 %v3090_v38  ;;  %v2202_v39 = vld [vmem:[%s4110_s1 + $0x4c8] sm:$0xff] }
  0xa9   : >> { %763 = vmatpush.msra.mxu0 %v2186_v40  ;;  %788 = vmatpush.msra.mxu1 %v2186_v40  ;;  %v2237_v40 = vld [vmem:[%s4110_s1 + $0x5b0] sm:$0xff] }
  0xaa   : >> { %832 = vmatpush.msra.mxu2 %v2204_v42  ;;  %857 = vmatpush.msra.mxu3 %v2204_v42  ;;  %v2216_v42 = vld [vmem:[%s4110_s1 + $0x528] sm:$0xff] }
  0xab   : >> { %764 = vmatpush.msra.mxu0 %v2185_v43  ;;  %789 = vmatpush.msra.mxu1 %v2185_v43  ;;  %v2236_v43 = vld [vmem:[%s4110_s1 + $0x5a8] sm:$0xff] }
  0xac   : >> { %833 = vmatpush.msra.mxu2 %v2203_v2  ;;  %858 = vmatpush.msra.mxu3 %v2203_v2  ;;  %v2215_v2 = vld [vmem:[%s4110_s1 + $0x520] sm:$0xff] }
  0xad   : >> { %765 = vmatpush.msra.mxu0 %v2184_v44  ;;  %790 = vmatpush.msra.mxu1 %v2184_v44 }
  0xae   : >> { %834 = vmatpush.msra.mxu2 %v2202_v39  ;;  %859 = vmatpush.msra.mxu3 %v2202_v39 }
  0xaf   : >> { %766 = vmatpush.msra.mxu0 %v2183_v45  ;;  %791 = vmatpush.msra.mxu1 %v2183_v45  ;;  %v2235_v45 = vld [vmem:[%s4110_s1 + $0x5a0] sm:$0xff] }
  0xb0   : >> { %835 = vmatpush.msra.mxu2 %v2201_v46  ;;  %860 = vmatpush.msra.mxu3 %v2201_v46  ;;  %v2214_v46 = vld [vmem:[%s4110_s1 + $0x518] sm:$0xff] }
  0xb1   : >> { %767 = vmatpush.msra.mxu0 %v2182_v47  ;;  %792 = vmatpush.msra.mxu1 %v2182_v47  ;;  %v2234_v47 = vld [vmem:[%s4110_s1 + $0x598] sm:$0xff] }
  0xb2   : >> { %836 = vmatpush.msra.mxu2 %v2200_v48  ;;  %861 = vmatpush.msra.mxu3 %v2200_v48 }
  0xb3   : >> { %768 = vmatpush.msra.mxu0 %v2181_v49  ;;  %793 = vmatpush.msra.mxu1 %v2181_v49 }
  0xb4   : >> { %837 = vmatpush.msra.mxu2 %v2199_v50  ;;  %862 = vmatpush.msra.mxu3 %v2199_v50  ;;  %v2213_v50 = vld [vmem:[%s4110_s1 + $0x510] sm:$0xff] }
  0xb5   : >> { %769 = vmatpush.msra.mxu0 %v2180_v55  ;;  %794 = vmatpush.msra.mxu1 %v2180_v55 }
  0xb6   : >> { %838 = vmatpush.msra.mxu2 %v2198_v56  ;;  %863 = vmatpush.msra.mxu3 %v2198_v56 }
  0xb7   : >> { %770 = vmatpush.msra.mxu0 %v2179_v57  ;;  %795 = vmatpush.msra.mxu1 %v2179_v57 }
  0xb8   : >> { %839 = vmatpush.msra.mxu2 %v2197_v58  ;;  %864 = vmatpush.msra.mxu3 %v2197_v58 }
  0xb9   : >> { %771 = vmatpush.msra.mxu0 %v2178_v54  ;;  %796 = vmatpush.msra.mxu1 %v2178_v54  ;;  %v2233_v54 = vld [vmem:[%s4110_s1 + $0x590] sm:$0xff] }
  0xba   : >> { %840 = vmatpush.msra.mxu2 %v2196_v59  ;;  %865 = vmatpush.msra.mxu3 %v2196_v59  ;;  %v2212_v59 = vld [vmem:[%s4110_s1 + $0x508] sm:$0xff] }
  0xbb   : >> { %772 = vmatpush.msra.mxu0 %v2177_v60  ;;  %797 = vmatpush.msra.mxu1 %v2177_v60 }
  0xbc   : >> { %841 = vmatpush.msra.mxu2 %v2195_v61  ;;  %866 = vmatpush.msra.mxu3 %v2195_v61 }
  0xbd   : >> { %773 = vmatpush.msra.mxu0 %v2176_v62  ;;  %798 = vmatpush.msra.mxu1 %v2176_v62  ;;  %v2232_v62 = vld [vmem:[%s4110_s1 + $0x588] sm:$0xff] }
  0xbe   : >> { %842 = vmatpush.msra.mxu2 %v2194_v4  ;;  %867 = vmatpush.msra.mxu3 %v2194_v4  ;;  %v2211_v4 = vld [vmem:[%s4110_s1 + $0x500] sm:$0xff] }
  0xbf   : >> { %774 = vmatpush.msra.mxu0 %v2175_v5  ;;  %799 = vmatpush.msra.mxu1 %v2175_v5  ;;  %v2231_v5 = vld [vmem:[%s4110_s1 + $0x580] sm:$0xff] }
  0xc0   : >> { %843 = vmatpush.msra.mxu2 %v2193_v6  ;;  %868 = vmatpush.msra.mxu3 %v2193_v6  ;;  %v3293_v6 = vld [vmem:[%s2756_s7 + $0x48] sm:$0xff] }
  0xc1   : >> { %775 = vmatmul.f32.vlgmr.msra.gmra.mxu0 %v2834_v15  ;;  %800 = vmatmul.f32.vlgmr.msra.gmra.mxu1 %v3169_v7  ;;  %v2245_v15 = vld [vmem:[%s4110_s1 + $0x5f0] sm:$0xff] }
  0xc2   : >> { %844 = vmatmul.f32.vlgmr.msra.gmra.mxu2 %v2938_v51  ;;  %869 = vmatmul.f32.vlgmr.msra.gmra.mxu3 %v3172_v8  ;;  %v2244_v51 = vld [vmem:[%s4110_s1 + $0x5e8] sm:$0xff] }
  0xc3   : >> { %900 = vmatpush.msrb.mxu0 %v2226_v3  ;;  %925 = vmatpush.msrb.mxu1 %v2226_v3  ;;  %v3296_v3 = vld [vmem:[%s2756_s7 + $0x49] sm:$0xff] }
  0xc4   : >> { %969 = vmatpush.msrb.mxu2 %v2246_v9  ;;  %994 = vmatpush.msrb.mxu3 %v2246_v9  ;;  %v2264_v9 = vld [vmem:[%s4110_s1 + $0x678] sm:$0xff] }
  0xc5   : >> { %901 = vmatpush.msrb.mxu0 %v2225_v10  ;;  %926 = vmatpush.msrb.mxu1 %v2225_v10  ;;  %v2282_v10 = vld [vmem:[%s4110_s1 + $0x6f8] sm:$0xff] }
  0xc6   : >> { %970 = vmatpush.msrb.mxu2 %v2245_v15  ;;  %995 = vmatpush.msrb.mxu3 %v2245_v15  ;;  %v2263_v15 = vld [vmem:[%s4110_s1 + $0x670] sm:$0xff] }
  0xc7   : >> { %902 = vmatpush.msrb.mxu0 %v2224_v11  ;;  %927 = vmatpush.msrb.mxu1 %v2224_v11  ;;  %v242_v14 = vpop.f32.mrf.mxu0  ;;  %v265_v16 = vpop.f32.mrf.mxu1  ;;  %v2262_v11 = vld [vmem:[%s4110_s1 + $0x668] sm:$0xff] }
  0xc8   : >> { %971 = vmatpush.msrb.mxu2 %v2244_v51  ;;  %996 = vmatpush.msrb.mxu3 %v2244_v51  ;;  %v288_v18 = vpop.f32.mrf.mxu2  ;;  %v311_v19 = vpop.f32.mrf.mxu3  ;;  %v266_v44 = vadd.f32 %v265_v16, %v242_v14  ;;  %v2261_v51 = vld [vmem:[%s4110_s1 + $0x660] sm:$0xff] }
  0xc9   : >> { %903 = vmatpush.msrb.mxu0 %v2223_v12  ;;  %928 = vmatpush.msrb.mxu1 %v2223_v12  ;;  %v312_v39 = vadd.f32 %v311_v19, %v288_v18  ;;  %v2279_v12 = vld [vmem:[%s4110_s1 + $0x6e0] sm:$0xff]  ;;  %v3330_v18 = vld [vmem:[%s2756_s7 + $0x51] sm:$0x3f] }
  0xca   : >> { %972 = vmatpush.msrb.mxu2 %v2243_v13  ;;  %997 = vmatpush.msrb.mxu3 %v2243_v13  ;;  %v3327_v13 = vld [vmem:[%s2756_s7 + $0x50] sm:$0x3f] }
  0xcb   : >> { %778 = vmatmul.f32.gmra.mxu0 %v2908_v41  ;;  %803 = vmatmul.f32.gmra.mxu1 %v3203_v17  ;;  %v2241_v41 = vld [vmem:[%s4110_s1 + $0x5d0] sm:$0xff] }
  0xcc   : >> { %847 = vmatmul.f32.gmra.mxu2 %v2972_v63  ;;  %872 = vmatmul.f32.gmra.mxu3 %v3206_v20  ;;  %v2240_v63 = vld [vmem:[%s4110_s1 + $0x5c8] sm:$0xff] }
  0xcd   : >> { %904 = vmatpush.msrb.mxu0 %v2222_v22  ;;  %929 = vmatpush.msrb.mxu1 %v2222_v22 }
  0xce   : >> { %973 = vmatpush.msrb.mxu2 %v2242_v23  ;;  %998 = vmatpush.msrb.mxu3 %v2242_v23  ;;  %v2260_v23 = vld [vmem:[%s4110_s1 + $0x658] sm:$0xff] }
  0xcf   : >> { %905 = vmatpush.msrb.mxu0 %v2221_v24  ;;  %930 = vmatpush.msrb.mxu1 %v2221_v24  ;;  %v2278_v24 = vld [vmem:[%s4110_s1 + $0x6d8] sm:$0xff] }
  0xd0   : >> { %974 = vmatpush.msrb.mxu2 %v2241_v41  ;;  %999 = vmatpush.msrb.mxu3 %v2241_v41  ;;  %v2259_v41 = vld [vmem:[%s4110_s1 + $0x650] sm:$0xff] }
  0xd1   : >> { %906 = vmatpush.msrb.mxu0 %v2220_v25  ;;  %931 = vmatpush.msrb.mxu1 %v2220_v25  ;;  %v245_v28 = vpop.f32.mrf.mxu0  ;;  %v268_v31 = vpop.f32.mrf.mxu1  ;;  %v2258_v25 = vld [vmem:[%s4110_s1 + $0x648] sm:$0xff] }
  0xd2   : >> { %975 = vmatpush.msrb.mxu2 %v2240_v63  ;;  %1000 = vmatpush.msrb.mxu3 %v2240_v63  ;;  %v3239_v33 = vadd.f32 %v268_v31, %v245_v28  ;;  %v291_v53 = vpop.f32.mrf.mxu2  ;;  %v314_v21 = vpop.f32.mrf.mxu3 }
  0xd3   : >> { %907 = vmatpush.msrb.mxu0 %v2219_v26  ;;  %932 = vmatpush.msrb.mxu1 %v2219_v26  ;;  %v3244_v35 = vadd.f32 %v314_v21, %v291_v53 }
  0xd4   : >> { %976 = vmatpush.msrb.mxu2 %v2239_v27  ;;  %1001 = vmatpush.msrb.mxu3 %v2239_v27  ;;  %v2257_v27 = vld [vmem:[%s4110_s1 + $0x640] sm:$0xff] }
  0xd5   : >> { %908 = vmatpush.msrb.mxu0 %v2218_v32  ;;  %933 = vmatpush.msrb.mxu1 %v2218_v32  ;;  %v2275_v32 = vld [vmem:[%s4110_s1 + $0x6c0] sm:$0xff] }
  0xd6   : >> { %977 = vmatpush.msrb.mxu2 %v2238_v34  ;;  %1002 = vmatpush.msrb.mxu3 %v2238_v34  ;;  %v2274_v34 = vld [vmem:[%s4110_s1 + $0x6b8] sm:$0xff] }
  0xd7   : >> { %909 = vmatpush.msrb.mxu0 %v2217_v36  ;;  %934 = vmatpush.msrb.mxu1 %v2217_v36 }
  0xd8   : >> { %978 = vmatpush.msrb.mxu2 %v2237_v40  ;;  %1003 = vmatpush.msrb.mxu3 %v2237_v40  ;;  %v2255_v40 = vld [vmem:[%s4110_s1 + $0x630] sm:$0xff] }
  0xd9   : >> { %910 = vmatpush.msrb.mxu0 %v2216_v42  ;;  %935 = vmatpush.msrb.mxu1 %v2216_v42  ;;  %v2273_v42 = vld [vmem:[%s4110_s1 + $0x6b0] sm:$0xff] }
  0xda   : >> { %979 = vmatpush.msrb.mxu2 %v2236_v43  ;;  %1004 = vmatpush.msrb.mxu3 %v2236_v43  ;;  %v2254_v43 = vld [vmem:[%s4110_s1 + $0x628] sm:$0xff] }
  0xdb   : >> { %911 = vmatpush.msrb.mxu0 %v2215_v2  ;;  %936 = vmatpush.msrb.mxu1 %v2215_v2  ;;  %v355_v48 = vpop.f32.mrf.mxu0  ;;  %v380_v49 = vpop.f32.mrf.mxu1  ;;  %v2272_v2 = vld [vmem:[%s4110_s1 + $0x6a8] sm:$0xff] }
  0xdc   : >> { %980 = vmatpush.msrb.mxu2 %v2235_v45  ;;  %1005 = vmatpush.msrb.mxu3 %v2235_v45  ;;  %v361_v55 = vadd.f32 %v355_v48, %v266_v44  ;;  %v386_v56 = vadd.f32 %v380_v49, %v312_v39  ;;  %v426_v57 = vpop.f32.mrf.mxu2  ;;  %v451_v58 = vpop.f32.mrf.mxu3  ;;  %v2253_v44 = vld [vmem:[%s4110_s1 + $0x620] sm:$0xff] }
  0xdd   : >> { %912 = vmatpush.msrb.mxu0 %v2214_v46  ;;  %937 = vmatpush.msrb.mxu1 %v2214_v46  ;;  %v2271_v39 = vld [vmem:[%s4110_s1 + $0x6a0] sm:$0xff] }
  0xde   : >> { %981 = vmatpush.msrb.mxu2 %v2234_v47  ;;  %1006 = vmatpush.msrb.mxu3 %v2234_v47  ;;  %v3279_v60 = vadd.f32 %v426_v57, %v361_v55  ;;  %v3281_v61 = vadd.f32 %v451_v58, %v386_v56  ;;  %v2252_v47 = vld [vmem:[%s4110_s1 + $0x618] sm:$0xff]  ;;  %v2251_v55 = vld [vmem:[%s4110_s1 + $0x610] sm:$0xff] }
  0xdf   : >> { %913 = vmatpush.msrb.mxu0 %v2213_v50  ;;  %938 = vmatpush.msrb.mxu1 %v2213_v50  ;;  %v2270_v50 = vld [vmem:[%s4110_s1 + $0x698] sm:$0xff]  ;;  %v2269_v58 = vld [vmem:[%s4110_s1 + $0x690] sm:$0xff] }
  0xe0   : >> { %982 = vmatpush.msrb.mxu2 %v2233_v54  ;;  %1007 = vmatpush.msrb.mxu3 %v2233_v54 }
  0xe1   : >> { %914 = vmatpush.msrb.mxu0 %v2212_v59  ;;  %939 = vmatpush.msrb.mxu1 %v2212_v59 }
  0xe2   : >> { %983 = vmatpush.msrb.mxu2 %v2232_v62  ;;  %1008 = vmatpush.msrb.mxu3 %v2232_v62  ;;  %v2249_v62 = vld [vmem:[%s4110_s1 + $0x600] sm:$0xff] }
  0xe3   : >> { %915 = vmatpush.msrb.mxu0 %v2211_v4  ;;  %940 = vmatpush.msrb.mxu1 %v2211_v4  ;;  %v2267_v4 = vld [vmem:[%s4110_s1 + $0x680] sm:$0xff] }
  0xe4   : >> { %984 = vmatpush.msrb.mxu2 %v2231_v5  ;;  %1009 = vmatpush.msrb.mxu3 %v2231_v5  ;;  %v3417_v5 = vld [vmem:[%s2756_s7 + $0x4a] sm:$0xff] }
  0xe5   : >> { %916 = vmatmul.f32.vlgmr.msrb.gmra.mxu0 %v2941_v52  ;;  %941 = vmatmul.f32.vlgmr.msrb.gmra.mxu1 %v3293_v6  ;;  %v2281_v52 = vld [vmem:[%s4110_s1 + $0x6f0] sm:$0xff] }
  0xe6   : >> { %985 = vmatmul.f32.vlgmr.msrb.gmra.mxu2 %v3053_v29  ;;  %1010 = vmatmul.f32.vlgmr.msrb.gmra.mxu3 %v3296_v3  ;;  %v2280_v29 = vld [vmem:[%s4110_s1 + $0x6e8] sm:$0xff] }
  0xe7   : >> { %1038 = vmatpush.msra.mxu0 %v2264_v9  ;;  %1063 = vmatpush.msra.mxu1 %v2264_v9  ;;  %v3420_v9 = vld [vmem:[%s2756_s7 + $0x4b] sm:$0xff] }
  0xe8   : >> { %1107 = vmatpush.msra.mxu2 %v2282_v10  ;;  %1132 = vmatpush.msra.mxu3 %v2282_v10 }
  0xe9   : >> { %1039 = vmatpush.msra.mxu0 %v2263_v15  ;;  %1064 = vmatpush.msra.mxu1 %v2263_v15 }
  0xea   : >> { %1108 = vmatpush.msra.mxu2 %v2281_v52  ;;  %1133 = vmatpush.msra.mxu3 %v2281_v52  ;;  %v2300_v52 = vld [vmem:[%s4110_s1 + $0x778] sm:$0xff] }
  0xeb   : >> { %1040 = vmatpush.msra.mxu0 %v2262_v11  ;;  %1065 = vmatpush.msra.mxu1 %v2262_v11 }
  0xec   : >> { %1109 = vmatpush.msra.mxu2 %v2280_v29  ;;  %1134 = vmatpush.msra.mxu3 %v2280_v29  ;;  %v358_v14 = vpop.f32.mrf.mxu0  ;;  %v383_v16 = vpop.f32.mrf.mxu1 }
  0xed   : >> { %1041 = vmatpush.msra.mxu0 %v2261_v51  ;;  %1066 = vmatpush.msra.mxu1 %v2261_v51  ;;  %v362_v19 = vadd.f32 %v358_v14, %v3239_v33  ;;  %v387_v22 = vadd.f32 %v383_v16, %v3244_v35  ;;  %v2256_v33 = vld [vmem:[%s4110_s1 + $0x638] sm:$0xff]  ;;  %v2316_v14 = vld [vmem:[%s4110_s1 + $0x7e8] sm:$0xff]  ;;  %v2297_v16 = vld [vmem:[%s4110_s1 + $0x760] sm:$0xff] }
  0xee   : >> { %1110 = vmatpush.msra.mxu2 %v2279_v12  ;;  %1135 = vmatpush.msra.mxu3 %v2279_v12  ;;  %v2318_v51 = vld [vmem:[%s4110_s1 + $0x7f8] sm:$0xff]  ;;  %v2299_v12 = vld [vmem:[%s4110_s1 + $0x770] sm:$0xff] }
  0xef   : >> { %919 = vmatmul.f32.gmra.mxu0 %v2975_v1  ;;  %944 = vmatmul.f32.gmra.mxu1 %v3327_v13  ;;  %v2277_v1 = vld [vmem:[%s4110_s1 + $0x6d0] sm:$0xff] }
  0xf0   : >> { %988 = vmatmul.f32.gmra.mxu2 %v3087_v37  ;;  %1013 = vmatmul.f32.gmra.mxu3 %v3330_v18  ;;  %v2276_v37 = vld [vmem:[%s4110_s1 + $0x6c8] sm:$0xff] }
  0xf1   : >> { %1042 = vmatpush.msra.mxu0 %v2260_v23  ;;  %1067 = vmatpush.msra.mxu1 %v2260_v23  ;;  %v3458_v23 = vld [vmem:[%s2756_s7 + $0x53] sm:$0x3f] }
  0xf2   : >> { %1111 = vmatpush.msra.mxu2 %v2278_v24  ;;  %1136 = vmatpush.msra.mxu3 %v2278_v24  ;;  %v2296_v24 = vld [vmem:[%s4110_s1 + $0x758] sm:$0xff] }
  0xf3   : >> { %1043 = vmatpush.msra.mxu0 %v2259_v41  ;;  %1068 = vmatpush.msra.mxu1 %v2259_v41  ;;  %v429_v63 = vpop.f32.mrf.mxu2  ;;  %v454_v26 = vpop.f32.mrf.mxu3  ;;  %v2314_v41 = vld [vmem:[%s4110_s1 + $0x7d8] sm:$0xff] }
  0xf4   : >> { %1112 = vmatpush.msra.mxu2 %v2277_v1  ;;  %1137 = vmatpush.msra.mxu3 %v2277_v1  ;;  %v433_v28 = vadd.f32 %v429_v63, %v362_v19  ;;  %v458_v31 = vadd.f32 %v454_v26, %v387_v22  ;;  %v2315_v19 = vld [vmem:[%s4110_s1 + $0x7e0] sm:$0xff]  ;;  %v3455_v22 = vld [vmem:[%s2756_s7 + $0x52] sm:$0x3f]  ;;  %v2292_v26 = vld [vmem:[%s4110_s1 + $0x738] sm:$0xff] }
  0xf5   : >> { %1044 = vmatpush.msra.mxu0 %v2258_v25  ;;  %1069 = vmatpush.msra.mxu1 %v2258_v25  ;;  %v2295_v1 = vld [vmem:[%s4110_s1 + $0x750] sm:$0xff]  ;;  %v2294_v25 = vld [vmem:[%s4110_s1 + $0x748] sm:$0xff]  ;;  %v2311_v63 = vld [vmem:[%s4110_s1 + $0x7c0] sm:$0xff] }
  0xf6   : >> { %1113 = vmatpush.msra.mxu2 %v2276_v37  ;;  %1138 = vmatpush.msra.mxu3 %v2276_v37  ;;  %v497_v53 = vpop.f32.mrf.mxu0  ;;  %v522_v21 = vpop.f32.mrf.mxu1  ;;  %v2293_v37 = vld [vmem:[%s4110_s1 + $0x740] sm:$0xff] }
  0xf7   : >> { %1045 = vmatpush.msra.mxu0 %v2257_v27  ;;  %1070 = vmatpush.msra.mxu1 %v2257_v27  ;;  %v503_v35 = vadd.f32 %v497_v53, %v3279_v60  ;;  %v528_v36 = vadd.f32 %v522_v21, %v3281_v61  ;;  %v2250_v60 = vld [vmem:[%s4110_s1 + $0x608] sm:$0xff]  ;;  %v2291_v53 = vld [vmem:[%s4110_s1 + $0x730] sm:$0xff] }
  0xf8   : >> { %1114 = vmatpush.msra.mxu2 %v2275_v32  ;;  %1139 = vmatpush.msra.mxu3 %v2275_v32  ;;  %v2268_v61 = vld [vmem:[%s4110_s1 + $0x688] sm:$0xff]  ;;  %v2309_v21 = vld [vmem:[%s4110_s1 + $0x7b0] sm:$0xff] }
  0xf9   : >> { %1046 = vmatpush.msra.mxu0 %v2256_v33  ;;  %1071 = vmatpush.msra.mxu1 %v2256_v33 }
  0xfa   : >> { %1115 = vmatpush.msra.mxu2 %v2274_v34  ;;  %1140 = vmatpush.msra.mxu3 %v2274_v34  ;;  %v2290_v34 = vld [vmem:[%s4110_s1 + $0x728] sm:$0xff] }
  0xfb   : >> { %1047 = vmatpush.msra.mxu0 %v2255_v40  ;;  %1072 = vmatpush.msra.mxu1 %v2255_v40  ;;  %v2307_v40 = vld [vmem:[%s4110_s1 + $0x7a0] sm:$0xff] }
  0xfc   : >> { %1116 = vmatpush.msra.mxu2 %v2273_v42  ;;  %1141 = vmatpush.msra.mxu3 %v2273_v42 }
  0xfd   : >> { %1048 = vmatpush.msra.mxu0 %v2254_v43  ;;  %1073 = vmatpush.msra.mxu1 %v2254_v43  ;;  %v569_v45 = vpop.f32.mrf.mxu2  ;;  %v594_v46 = vpop.f32.mrf.mxu3 }
  0xfe   : >> { %1117 = vmatpush.msra.mxu2 %v2272_v2  ;;  %1142 = vmatpush.msra.mxu3 %v2272_v2  ;;  %v3391_v48 = vadd.f32 %v569_v45, %v503_v35  ;;  %v3393_v49 = vadd.f32 %v594_v46, %v528_v36  ;;  %v2308_v35 = vld [vmem:[%s4110_s1 + $0x7a8] sm:$0xff]  ;;  %v2289_v36 = vld [vmem:[%s4110_s1 + $0x720] sm:$0xff]  ;;  %v2288_v2 = vld [vmem:[%s4110_s1 + $0x718] sm:$0xff] }
  0xff   : >> { %1049 = vmatpush.msra.mxu0 %v2253_v44  ;;  %1074 = vmatpush.msra.mxu1 %v2253_v44  ;;  %v2306_v45 = vld [vmem:[%s4110_s1 + $0x798] sm:$0xff]  ;;  %v2287_v46 = vld [vmem:[%s4110_s1 + $0x710] sm:$0xff] }
 0x100   : >> { %1118 = vmatpush.msra.mxu2 %v2271_v39  ;;  %1143 = vmatpush.msra.mxu3 %v2271_v39  ;;  %v500_v56 = vpop.f32.mrf.mxu0  ;;  %v525_v57 = vpop.f32.mrf.mxu1 }
 0x101   : >> { %1050 = vmatpush.msra.mxu0 %v2252_v47  ;;  %1075 = vmatpush.msra.mxu1 %v2252_v47  ;;  %v504_v54 = vadd.f32 %v500_v56, %v433_v28  ;;  %v529_v59 = vadd.f32 %v525_v57, %v458_v31  ;;  %v2310_v31 = vld [vmem:[%s4110_s1 + $0x7b8] sm:$0xff]  ;;  %v2286_v56 = vld [vmem:[%s4110_s1 + $0x708] sm:$0xff] }
 0x102   : >> { %1119 = vmatpush.msra.mxu2 %v2270_v50  ;;  %1144 = vmatpush.msra.mxu3 %v2270_v50  ;;  %v2304_v57 = vld [vmem:[%s4110_s1 + $0x788] sm:$0xff] }
 0x103   : >> { %1051 = vmatpush.msra.mxu0 %v2251_v55  ;;  %1076 = vmatpush.msra.mxu1 %v2251_v55 }
 0x104   : >> { %1120 = vmatpush.msra.mxu2 %v2269_v58  ;;  %1145 = vmatpush.msra.mxu3 %v2269_v58  ;;  %v2285_v58 = vld [vmem:[%s4110_s1 + $0x700] sm:$0xff] }
 0x105   : >> { %1052 = vmatpush.msra.mxu0 %v2250_v60  ;;  %1077 = vmatpush.msra.mxu1 %v2250_v60  ;;  %v3548_v60 = vld [vmem:[%s2756_s7 + $0x60] sm:$0xff] }
 0x106   : >> { %1121 = vmatpush.msra.mxu2 %v2268_v61  ;;  %1146 = vmatpush.msra.mxu3 %v2268_v61 }
 0x107   : >> { %1053 = vmatpush.msra.mxu0 %v2249_v62  ;;  %1078 = vmatpush.msra.mxu1 %v2249_v62  ;;  %v572_v10 = vpop.f32.mrf.mxu2  ;;  %v597_v15 = vpop.f32.mrf.mxu3 }
 0x108   : >> { %1122 = vmatpush.msra.mxu2 %v2267_v4  ;;  %1147 = vmatpush.msra.mxu3 %v2267_v4  ;;  %v3425_v11 = vadd.f32 %v572_v10, %v504_v54  ;;  %v3427_v29 = vadd.f32 %v597_v15, %v529_v59  ;;  %v2303_v54 = vld [vmem:[%s4110_s1 + $0x780] sm:$0xff]  ;;  %v3545_v59 = vld [vmem:[%s2756_s7 + $0x4c] sm:$0xff]  ;;  %v2338_v4 = vld [vmem:[%s4110_s1 + $0x878] sm:$0xff] }
 0x109   : >> { %1054 = vmatmul.f32.vlgmr.msra.gmra.mxu0 %v3056_v30  ;;  %1079 = vmatmul.f32.vlgmr.msra.gmra.mxu1 %v3417_v5  ;;  %v2317_v30 = vld [vmem:[%s4110_s1 + $0x7f0] sm:$0xff] }
 0x10a   : >> { %1123 = vmatmul.f32.vlgmr.msra.gmra.mxu2 %v3169_v7  ;;  %1148 = vmatmul.f32.vlgmr.msra.gmra.mxu3 %v3420_v9  ;;  %v2298_v7 = vld [vmem:[%s4110_s1 + $0x768] sm:$0xff] }
 0x10b   : >> { %1176 = vmatpush.msrb.mxu0 %v2300_v52  ;;  %1201 = vmatpush.msrb.mxu1 %v2300_v52  ;;  %v2356_v52 = vld [vmem:[%s4110_s1 + $0x8f8] sm:$0xff] }
 0x10c   : >> { %1248 = vmatpush.msrb.mxu2 %v2318_v51  ;;  %1273 = vmatpush.msrb.mxu3 %v2318_v51  ;;  %v2335_v51 = vld [vmem:[%s4110_s1 + $0x860] sm:$0xff] }
 0x10d   : >> { %1177 = vmatpush.msrb.mxu0 %v2299_v12  ;;  %1202 = vmatpush.msrb.mxu1 %v2299_v12  ;;  %v2353_v12 = vld [vmem:[%s4110_s1 + $0x8e0] sm:$0xff] }
 0x10e   : >> { %1249 = vmatpush.msrb.mxu2 %v2317_v30  ;;  %1274 = vmatpush.msrb.mxu3 %v2317_v30  ;;  %v3583_v30 = vld [vmem:[%s2756_s7 + $0x54] sm:$0x3f] }
 0x10f   : >> { %1178 = vmatpush.msrb.mxu0 %v2298_v7  ;;  %1203 = vmatpush.msrb.mxu1 %v2298_v7  ;;  %v3586_v7 = vld [vmem:[%s2756_s7 + $0x68] sm:$0x3f] }
 0x110   : >> { %1250 = vmatpush.msrb.mxu2 %v2316_v14  ;;  %1275 = vmatpush.msrb.mxu3 %v2316_v14  ;;  %v2334_v14 = vld [vmem:[%s4110_s1 + $0x858] sm:$0xff] }
 0x111   : >> { %1179 = vmatpush.msrb.mxu0 %v2297_v16  ;;  %1204 = vmatpush.msrb.mxu1 %v2297_v16  ;;  %v2352_v16 = vld [vmem:[%s4110_s1 + $0x8d8] sm:$0xff] }
 0x112   : >> { %1251 = vmatpush.msrb.mxu2 %v2315_v19  ;;  %1276 = vmatpush.msrb.mxu3 %v2315_v19  ;;  %v2333_v19 = vld [vmem:[%s4110_s1 + $0x850] sm:$0xff] }
 0x113   : >> { %1057 = vmatmul.f32.gmra.mxu0 %v3090_v38  ;;  %1082 = vmatmul.f32.gmra.mxu1 %v3455_v22  ;;  %v2313_v38 = vld [vmem:[%s4110_s1 + $0x7d0] sm:$0xff] }
 0x114   : >> { %1126 = vmatmul.f32.gmra.mxu2 %v3203_v17  ;;  %1151 = vmatmul.f32.gmra.mxu3 %v3458_v23  ;;  %v2312_v17 = vld [vmem:[%s4110_s1 + $0x7c8] sm:$0xff] }
 0x115   : >> { %1180 = vmatpush.msrb.mxu0 %v2296_v24  ;;  %1205 = vmatpush.msrb.mxu1 %v2296_v24  ;;  %v2332_v24 = vld [vmem:[%s4110_s1 + $0x848] sm:$0xff] }
 0x116   : >> { %1252 = vmatpush.msrb.mxu2 %v2314_v41  ;;  %1277 = vmatpush.msrb.mxu3 %v2314_v41  ;;  %v2331_v41 = vld [vmem:[%s4110_s1 + $0x840] sm:$0xff] }
 0x117   : >> { %1181 = vmatpush.msrb.mxu0 %v2295_v1  ;;  %1206 = vmatpush.msrb.mxu1 %v2295_v1  ;;  %v2349_v1 = vld [vmem:[%s4110_s1 + $0x8c0] sm:$0xff] }
 0x118   : >> { %1253 = vmatpush.msrb.mxu2 %v2313_v38  ;;  %1278 = vmatpush.msrb.mxu3 %v2313_v38  ;;  %v2330_v38 = vld [vmem:[%s4110_s1 + $0x838] sm:$0xff] }
 0x119   : >> { %1182 = vmatpush.msrb.mxu0 %v2294_v25  ;;  %1207 = vmatpush.msrb.mxu1 %v2294_v25 }
 0x11a   : >> { %1254 = vmatpush.msrb.mxu2 %v2312_v17  ;;  %1279 = vmatpush.msrb.mxu3 %v2312_v17  ;;  %v638_v27 = vpop.f32.mrf.mxu0  ;;  %v663_v28 = vpop.f32.mrf.mxu1 }
 0x11b   : >> { %1183 = vmatpush.msrb.mxu0 %v2293_v37  ;;  %1208 = vmatpush.msrb.mxu1 %v2293_v37  ;;  %v644_v32 = vadd.f32 %v638_v27, %v3391_v48  ;;  %v669_v33 = vadd.f32 %v663_v28, %v3393_v49  ;;  %v2305_v49 = vld [vmem:[%s4110_s1 + $0x790] sm:$0xff]  ;;  %v2348_v37 = vld [vmem:[%s4110_s1 + $0x8b8] sm:$0xff] }
 0x11c   : >> { %1255 = vmatpush.msrb.mxu2 %v2311_v63  ;;  %1280 = vmatpush.msrb.mxu3 %v2311_v63  ;;  %v2329_v27 = vld [vmem:[%s4110_s1 + $0x830] sm:$0xff] }
 0x11d   : >> { %1184 = vmatpush.msrb.mxu0 %v2292_v26  ;;  %1209 = vmatpush.msrb.mxu1 %v2292_v26  ;;  %v2347_v28 = vld [vmem:[%s4110_s1 + $0x8b0] sm:$0xff] }
 0x11e   : >> { %1256 = vmatpush.msrb.mxu2 %v2310_v31  ;;  %1281 = vmatpush.msrb.mxu3 %v2310_v31  ;;  %v2328_v31 = vld [vmem:[%s4110_s1 + $0x828] sm:$0xff] }
 0x11f   : >> { %1185 = vmatpush.msrb.mxu0 %v2291_v53  ;;  %1210 = vmatpush.msrb.mxu1 %v2291_v53  ;;  %v2345_v53 = vld [vmem:[%s4110_s1 + $0x8a0] sm:$0xff] }
 0x120   : >> { %1257 = vmatpush.msrb.mxu2 %v2309_v21  ;;  %1282 = vmatpush.msrb.mxu3 %v2309_v21 }
 0x121   : >> { %1186 = vmatpush.msrb.mxu0 %v2290_v34  ;;  %1211 = vmatpush.msrb.mxu1 %v2290_v34  ;;  %v707_v42 = vpop.f32.mrf.mxu2  ;;  %v732_v43 = vpop.f32.mrf.mxu3 }
 0x122   : >> { %1258 = vmatpush.msrb.mxu2 %v2308_v35  ;;  %1283 = vmatpush.msrb.mxu3 %v2308_v35  ;;  %v3517_v44 = vadd.f32 %v707_v42, %v644_v32  ;;  %v3519_v39 = vadd.f32 %v732_v43, %v669_v33  ;;  %v2346_v32 = vld [vmem:[%s4110_s1 + $0x8a8] sm:$0xff]  ;;  %v2327_v33 = vld [vmem:[%s4110_s1 + $0x820] sm:$0xff]  ;;  %v2326_v35 = vld [vmem:[%s4110_s1 + $0x818] sm:$0xff] }
 0x123   : >> { %1187 = vmatpush.msrb.mxu0 %v2289_v36  ;;  %1212 = vmatpush.msrb.mxu1 %v2289_v36  ;;  %v2344_v42 = vld [vmem:[%s4110_s1 + $0x898] sm:$0xff]  ;;  %v2325_v43 = vld [vmem:[%s4110_s1 + $0x810] sm:$0xff] }
 0x124   : >> { %1259 = vmatpush.msrb.mxu2 %v2307_v40  ;;  %1284 = vmatpush.msrb.mxu3 %v2307_v40  ;;  %v641_v47 = vpop.f32.mrf.mxu0  ;;  %v666_v48 = vpop.f32.mrf.mxu1 }
 0x125   : >> { %1188 = vmatpush.msrb.mxu0 %v2288_v2  ;;  %1213 = vmatpush.msrb.mxu1 %v2288_v2  ;;  %v645_v50 = vadd.f32 %v641_v47, %v3425_v11  ;;  %v670_v55 = vadd.f32 %v666_v48, %v3427_v29  ;;  %v2337_v11 = vld [vmem:[%s4110_s1 + $0x870] sm:$0xff]  ;;  %v2354_v29 = vld [vmem:[%s4110_s1 + $0x8e8] sm:$0xff] }
 0x126   : >> { %1260 = vmatpush.msrb.mxu2 %v2306_v45  ;;  %1285 = vmatpush.msrb.mxu3 %v2306_v45  ;;  %v2324_v47 = vld [vmem:[%s4110_s1 + $0x808] sm:$0xff] }
 0x127   : >> { %1189 = vmatpush.msrb.mxu0 %v2287_v46  ;;  %1214 = vmatpush.msrb.mxu1 %v2287_v46  ;;  %v2342_v48 = vld [vmem:[%s4110_s1 + $0x888] sm:$0xff] }
 0x128   : >> { %1261 = vmatpush.msrb.mxu2 %v2305_v49  ;;  %1286 = vmatpush.msrb.mxu3 %v2305_v49  ;;  %v2323_v49 = vld [vmem:[%s4110_s1 + $0x800] sm:$0xff] }
 0x129   : >> { %1190 = vmatpush.msrb.mxu0 %v2286_v56  ;;  %1215 = vmatpush.msrb.mxu1 %v2286_v56  ;;  %v3676_v56 = vld [vmem:[%s2756_s7 + $0x62] sm:$0xff] }
 0x12a   : >> { %1262 = vmatpush.msrb.mxu2 %v2304_v57  ;;  %1287 = vmatpush.msrb.mxu3 %v2304_v57 }
 0x12b   : >> { %1191 = vmatpush.msrb.mxu0 %v2285_v58  ;;  %1216 = vmatpush.msrb.mxu1 %v2285_v58  ;;  %v710_v61 = vpop.f32.mrf.mxu2  ;;  %v735_v62 = vpop.f32.mrf.mxu3 }
 0x12c   : >> { %1263 = vmatpush.msrb.mxu2 %v2303_v54  ;;  %1288 = vmatpush.msrb.mxu3 %v2303_v54  ;;  %v3553_v10 = vadd.f32 %v710_v61, %v645_v50  ;;  %v3555_v15 = vadd.f32 %v735_v62, %v670_v55  ;;  %v2341_v50 = vld [vmem:[%s4110_s1 + $0x880] sm:$0xff]  ;;  %v2374_v54 = vld [vmem:[%s4110_s1 + $0x978] sm:$0xff] }
 0x12d   : >> { %1192 = vmatmul.f32.vlgmr.msrb.gmra.mxu0 %v3172_v8  ;;  %1217 = vmatmul.f32.vlgmr.msrb.gmra.mxu1 %v3545_v59  ;;  %v2355_v8 = vld [vmem:[%s4110_s1 + $0x8f0] sm:$0xff]  ;;  %v3673_v55 = vld [vmem:[%s2756_s7 + $0x61] sm:$0xff] }
 0x12e   : >> { %1264 = vmatmul.f32.vlgmr.msrb.gmra.mxu2 %v3293_v6  ;;  %1289 = vmatmul.f32.vlgmr.msrb.gmra.mxu3 %v3548_v60  ;;  %v2336_v6 = vld [vmem:[%s4110_s1 + $0x868] sm:$0xff] }
 0x12f   : >> { %1317 = vmatpush.msra.mxu0 %v2338_v4  ;;  %1342 = vmatpush.msra.mxu1 %v2338_v4  ;;  %v2392_v4 = vld [vmem:[%s4110_s1 + $0x9f8] sm:$0xff] }
 0x130   : >> { %1386 = vmatpush.msra.mxu2 %v2356_v52  ;;  %1411 = vmatpush.msra.mxu3 %v2356_v52  ;;  %v2371_v52 = vld [vmem:[%s4110_s1 + $0x960] sm:$0xff] }
 0x131   : >> { %1318 = vmatpush.msra.mxu0 %v2337_v11  ;;  %1343 = vmatpush.msra.mxu1 %v2337_v11  ;;  %v2389_v11 = vld [vmem:[%s4110_s1 + $0x9e0] sm:$0xff] }
 0x132   : >> { %1387 = vmatpush.msra.mxu2 %v2355_v8  ;;  %1412 = vmatpush.msra.mxu3 %v2355_v8  ;;  %v3711_v8 = vld [vmem:[%s2756_s7 + $0x69] sm:$0x3f] }
 0x133   : >> { %1319 = vmatpush.msra.mxu0 %v2336_v6  ;;  %1344 = vmatpush.msra.mxu1 %v2336_v6  ;;  %v3714_v6 = vld [vmem:[%s2756_s7 + $0x6a] sm:$0x3f] }
 0x134   : >> { %1388 = vmatpush.msra.mxu2 %v2354_v29  ;;  %1413 = vmatpush.msra.mxu3 %v2354_v29  ;;  %v2370_v29 = vld [vmem:[%s4110_s1 + $0x958] sm:$0xff] }
 0x135   : >> { %1320 = vmatpush.msra.mxu0 %v2335_v51  ;;  %1345 = vmatpush.msra.mxu1 %v2335_v51  ;;  %v2388_v51 = vld [vmem:[%s4110_s1 + $0x9d8] sm:$0xff] }
 0x136   : >> { %1389 = vmatpush.msra.mxu2 %v2353_v12  ;;  %1414 = vmatpush.msra.mxu3 %v2353_v12  ;;  %v2369_v12 = vld [vmem:[%s4110_s1 + $0x950] sm:$0xff] }
 0x137   : >> { %1195 = vmatmul.f32.gmra.mxu0 %v3206_v20  ;;  %1220 = vmatmul.f32.gmra.mxu1 %v3583_v30  ;;  %v2351_v20 = vld [vmem:[%s4110_s1 + $0x8d0] sm:$0xff] }
 0x138   : >> { %1267 = vmatmul.f32.gmra.mxu2 %v3327_v13  ;;  %1292 = vmatmul.f32.gmra.mxu3 %v3586_v7  ;;  %v2350_v13 = vld [vmem:[%s4110_s1 + $0x8c8] sm:$0xff] }
 0x139   : >> { %1321 = vmatpush.msra.mxu0 %v2334_v14  ;;  %1346 = vmatpush.msra.mxu1 %v2334_v14  ;;  %v2368_v14 = vld [vmem:[%s4110_s1 + $0x948] sm:$0xff] }
 0x13a   : >> { %1390 = vmatpush.msra.mxu2 %v2352_v16  ;;  %1415 = vmatpush.msra.mxu3 %v2352_v16  ;;  %v2367_v16 = vld [vmem:[%s4110_s1 + $0x940] sm:$0xff] }
 0x13b   : >> { %1322 = vmatpush.msra.mxu0 %v2333_v19  ;;  %1347 = vmatpush.msra.mxu1 %v2333_v19  ;;  %v2385_v19 = vld [vmem:[%s4110_s1 + $0x9c0] sm:$0xff] }
 0x13c   : >> { %1391 = vmatpush.msra.mxu2 %v2351_v20  ;;  %1416 = vmatpush.msra.mxu3 %v2351_v20  ;;  %v2366_v20 = vld [vmem:[%s4110_s1 + $0x938] sm:$0xff] }
 0x13d   : >> { %1323 = vmatpush.msra.mxu0 %v2332_v24  ;;  %1348 = vmatpush.msra.mxu1 %v2332_v24 }
 0x13e   : >> { %1392 = vmatpush.msra.mxu2 %v2350_v13  ;;  %1417 = vmatpush.msra.mxu3 %v2350_v13  ;;  %v776_v25 = vpop.f32.mrf.mxu0  ;;  %v801_v17 = vpop.f32.mrf.mxu1 }
 0x13f   : >> { %1324 = vmatpush.msra.mxu0 %v2331_v41  ;;  %1349 = vmatpush.msra.mxu1 %v2331_v41  ;;  %v782_v63 = vadd.f32 %v776_v25, %v3517_v44  ;;  %v807_v26 = vadd.f32 %v801_v17, %v3519_v39  ;;  %v2343_v39 = vld [vmem:[%s4110_s1 + $0x890] sm:$0xff]  ;;  %v2384_v41 = vld [vmem:[%s4110_s1 + $0x9b8] sm:$0xff] }
 0x140   : >> { %1393 = vmatpush.msra.mxu2 %v2349_v1  ;;  %1418 = vmatpush.msra.mxu3 %v2349_v1  ;;  %v2365_v25 = vld [vmem:[%s4110_s1 + $0x930] sm:$0xff] }
 0x141   : >> { %1325 = vmatpush.msra.mxu0 %v2330_v38  ;;  %1350 = vmatpush.msra.mxu1 %v2330_v38  ;;  %v2383_v17 = vld [vmem:[%s4110_s1 + $0x9b0] sm:$0xff] }
 0x142   : >> { %1394 = vmatpush.msra.mxu2 %v2348_v37  ;;  %1419 = vmatpush.msra.mxu3 %v2348_v37  ;;  %v2364_v37 = vld [vmem:[%s4110_s1 + $0x928] sm:$0xff] }
 0x143   : >> { %1326 = vmatpush.msra.mxu0 %v2329_v27  ;;  %1351 = vmatpush.msra.mxu1 %v2329_v27  ;;  %v2381_v27 = vld [vmem:[%s4110_s1 + $0x9a0] sm:$0xff] }
 0x144   : >> { %1395 = vmatpush.msra.mxu2 %v2347_v28  ;;  %1420 = vmatpush.msra.mxu3 %v2347_v28 }
 0x145   : >> { %1327 = vmatpush.msra.mxu0 %v2328_v31  ;;  %1352 = vmatpush.msra.mxu1 %v2328_v31  ;;  %v845_v21 = vpop.f32.mrf.mxu2  ;;  %v870_v34 = vpop.f32.mrf.mxu3 }
 0x146   : >> { %1396 = vmatpush.msra.mxu2 %v2346_v32  ;;  %1421 = vmatpush.msra.mxu3 %v2346_v32  ;;  %v3645_v36 = vadd.f32 %v845_v21, %v782_v63  ;;  %v3647_v40 = vadd.f32 %v870_v34, %v807_v26  ;;  %v2382_v63 = vld [vmem:[%s4110_s1 + $0x9a8] sm:$0xff]  ;;  %v2363_v26 = vld [vmem:[%s4110_s1 + $0x920] sm:$0xff]  ;;  %v2362_v32 = vld [vmem:[%s4110_s1 + $0x918] sm:$0xff] }
 0x147   : >> { %1328 = vmatpush.msra.mxu0 %v2327_v33  ;;  %1353 = vmatpush.msra.mxu1 %v2327_v33  ;;  %v2380_v21 = vld [vmem:[%s4110_s1 + $0x998] sm:$0xff]  ;;  %v2361_v34 = vld [vmem:[%s4110_s1 + $0x910] sm:$0xff] }
 0x148   : >> { %1397 = vmatpush.msra.mxu2 %v2345_v53  ;;  %1422 = vmatpush.msra.mxu3 %v2345_v53  ;;  %v779_v2 = vpop.f32.mrf.mxu0  ;;  %v804_v44 = vpop.f32.mrf.mxu1 }
 0x149   : >> { %1329 = vmatpush.msra.mxu0 %v2326_v35  ;;  %1354 = vmatpush.msra.mxu1 %v2326_v35  ;;  %v783_v45 = vadd.f32 %v779_v2, %v3553_v10  ;;  %v808_v46 = vadd.f32 %v804_v44, %v3555_v15  ;;  %v2373_v10 = vld [vmem:[%s4110_s1 + $0x970] sm:$0xff]  ;;  %v2390_v15 = vld [vmem:[%s4110_s1 + $0x9e8] sm:$0xff] }
 0x14a   : >> { %1398 = vmatpush.msra.mxu2 %v2344_v42  ;;  %1423 = vmatpush.msra.mxu3 %v2344_v42  ;;  %v2360_v2 = vld [vmem:[%s4110_s1 + $0x908] sm:$0xff] }
 0x14b   : >> { %1330 = vmatpush.msra.mxu0 %v2325_v43  ;;  %1355 = vmatpush.msra.mxu1 %v2325_v43  ;;  %v2378_v44 = vld [vmem:[%s4110_s1 + $0x988] sm:$0xff] }
 0x14c   : >> { %1399 = vmatpush.msra.mxu2 %v2343_v39  ;;  %1424 = vmatpush.msra.mxu3 %v2343_v39  ;;  %v2359_v39 = vld [vmem:[%s4110_s1 + $0x900] sm:$0xff] }
 0x14d   : >> { %1331 = vmatpush.msra.mxu0 %v2324_v47  ;;  %1356 = vmatpush.msra.mxu1 %v2324_v47  ;;  %v3804_v47 = vld [vmem:[%s2756_s7 + $0x64] sm:$0xff] }
 0x14e   : >> { %1400 = vmatpush.msra.mxu2 %v2342_v48  ;;  %1425 = vmatpush.msra.mxu3 %v2342_v48 }
 0x14f   : >> { %1332 = vmatpush.msra.mxu0 %v2323_v49  ;;  %1357 = vmatpush.msra.mxu1 %v2323_v49  ;;  %v848_v57 = vpop.f32.mrf.mxu2  ;;  %v873_v58 = vpop.f32.mrf.mxu3 }
 0x150   : >> { %1401 = vmatpush.msra.mxu2 %v2341_v50  ;;  %1426 = vmatpush.msra.mxu3 %v2341_v50  ;;  %v3681_v61 = vadd.f32 %v848_v57, %v783_v45  ;;  %v3683_v62 = vadd.f32 %v873_v58, %v808_v46  ;;  %v2377_v45 = vld [vmem:[%s4110_s1 + $0x980] sm:$0xff]  ;;  %v2410_v50 = vld [vmem:[%s4110_s1 + $0xa78] sm:$0xff] }
 0x151   : >> { %1333 = vmatmul.f32.vlgmr.msra.gmra.mxu0 %v3296_v3  ;;  %1358 = vmatmul.f32.vlgmr.msra.gmra.mxu1 %v3673_v55  ;;  %v2391_v3 = vld [vmem:[%s4110_s1 + $0x9f0] sm:$0xff]  ;;  %v3801_v46 = vld [vmem:[%s2756_s7 + $0x63] sm:$0xff] }
 0x152   : >> { %1402 = vmatmul.f32.vlgmr.msra.gmra.mxu2 %v3417_v5  ;;  %1427 = vmatmul.f32.vlgmr.msra.gmra.mxu3 %v3676_v56  ;;  %v2372_v5 = vld [vmem:[%s4110_s1 + $0x968] sm:$0xff] }
 0x153   : >> { %1455 = vmatpush.msrb.mxu0 %v2374_v54  ;;  %1480 = vmatpush.msrb.mxu1 %v2374_v54  ;;  %v2430_v54 = vld [vmem:[%s4110_s1 + $0xaf8] sm:$0xff] }
 0x154   : >> { %1524 = vmatpush.msrb.mxu2 %v2392_v4  ;;  %1549 = vmatpush.msrb.mxu3 %v2392_v4  ;;  %v2407_v4 = vld [vmem:[%s4110_s1 + $0xa60] sm:$0xff] }
 0x155   : >> { %1456 = vmatpush.msrb.mxu0 %v2373_v10  ;;  %1481 = vmatpush.msrb.mxu1 %v2373_v10  ;;  %v2427_v10 = vld [vmem:[%s4110_s1 + $0xae0] sm:$0xff] }
 0x156   : >> { %1525 = vmatpush.msrb.mxu2 %v2391_v3  ;;  %1550 = vmatpush.msrb.mxu3 %v2391_v3  ;;  %v3839_v3 = vld [vmem:[%s2756_s7 + $0x6b] sm:$0x3f] }
 0x157   : >> { %1457 = vmatpush.msrb.mxu0 %v2372_v5  ;;  %1482 = vmatpush.msrb.mxu1 %v2372_v5  ;;  %v3842_v5 = vld [vmem:[%s2756_s7 + $0x6c] sm:$0x3f] }
 0x158   : >> { %1526 = vmatpush.msrb.mxu2 %v2390_v15  ;;  %1551 = vmatpush.msrb.mxu3 %v2390_v15  ;;  %v2406_v15 = vld [vmem:[%s4110_s1 + $0xa58] sm:$0xff] }
 0x159   : >> { %1458 = vmatpush.msrb.mxu0 %v2371_v52  ;;  %1483 = vmatpush.msrb.mxu1 %v2371_v52  ;;  %v2426_v52 = vld [vmem:[%s4110_s1 + $0xad8] sm:$0xff] }
 0x15a   : >> { %1527 = vmatpush.msrb.mxu2 %v2389_v11  ;;  %1552 = vmatpush.msrb.mxu3 %v2389_v11  ;;  %v2405_v11 = vld [vmem:[%s4110_s1 + $0xa50] sm:$0xff] }
 0x15b   : >> { %1336 = vmatmul.f32.gmra.mxu0 %v3330_v18  ;;  %1361 = vmatmul.f32.gmra.mxu1 %v3711_v8  ;;  %v2387_v18 = vld [vmem:[%s4110_s1 + $0x9d0] sm:$0xff] }
 0x15c   : >> { %1405 = vmatmul.f32.gmra.mxu2 %v3455_v22  ;;  %1430 = vmatmul.f32.gmra.mxu3 %v3714_v6  ;;  %v2386_v22 = vld [vmem:[%s4110_s1 + $0x9c8] sm:$0xff] }
 0x15d   : >> { %1459 = vmatpush.msrb.mxu0 %v2370_v29  ;;  %1484 = vmatpush.msrb.mxu1 %v2370_v29  ;;  %v2404_v29 = vld [vmem:[%s4110_s1 + $0xa48] sm:$0xff] }
 0x15e   : >> { %1528 = vmatpush.msrb.mxu2 %v2388_v51  ;;  %1553 = vmatpush.msrb.mxu3 %v2388_v51  ;;  %v2403_v51 = vld [vmem:[%s4110_s1 + $0xa40] sm:$0xff] }
 0x15f   : >> { %1460 = vmatpush.msrb.mxu0 %v2369_v12  ;;  %1485 = vmatpush.msrb.mxu1 %v2369_v12  ;;  %v2423_v12 = vld [vmem:[%s4110_s1 + $0xac0] sm:$0xff] }
 0x160   : >> { %1529 = vmatpush.msrb.mxu2 %v2387_v18  ;;  %1554 = vmatpush.msrb.mxu3 %v2387_v18  ;;  %v2402_v18 = vld [vmem:[%s4110_s1 + $0xa38] sm:$0xff] }
 0x161   : >> { %1461 = vmatpush.msrb.mxu0 %v2368_v14  ;;  %1486 = vmatpush.msrb.mxu1 %v2368_v14 }
 0x162   : >> { %1530 = vmatpush.msrb.mxu2 %v2386_v22  ;;  %1555 = vmatpush.msrb.mxu3 %v2386_v22  ;;  %v917_v24 = vpop.f32.mrf.mxu0  ;;  %v942_v13 = vpop.f32.mrf.mxu1 }
 0x163   : >> { %1462 = vmatpush.msrb.mxu0 %v2367_v16  ;;  %1487 = vmatpush.msrb.mxu1 %v2367_v16  ;;  %v923_v1 = vadd.f32 %v917_v24, %v3645_v36  ;;  %v948_v38 = vadd.f32 %v942_v13, %v3647_v40  ;;  %v2379_v40 = vld [vmem:[%s4110_s1 + $0x990] sm:$0xff]  ;;  %v2422_v16 = vld [vmem:[%s4110_s1 + $0xab8] sm:$0xff] }
 0x164   : >> { %1531 = vmatpush.msrb.mxu2 %v2385_v19  ;;  %1556 = vmatpush.msrb.mxu3 %v2385_v19  ;;  %v2401_v24 = vld [vmem:[%s4110_s1 + $0xa30] sm:$0xff] }
 0x165   : >> { %1463 = vmatpush.msrb.mxu0 %v2366_v20  ;;  %1488 = vmatpush.msrb.mxu1 %v2366_v20  ;;  %v2421_v13 = vld [vmem:[%s4110_s1 + $0xab0] sm:$0xff] }
 0x166   : >> { %1532 = vmatpush.msrb.mxu2 %v2384_v41  ;;  %1557 = vmatpush.msrb.mxu3 %v2384_v41  ;;  %v2400_v41 = vld [vmem:[%s4110_s1 + $0xa28] sm:$0xff] }
 0x167   : >> { %1464 = vmatpush.msrb.mxu0 %v2365_v25  ;;  %1489 = vmatpush.msrb.mxu1 %v2365_v25  ;;  %v2419_v25 = vld [vmem:[%s4110_s1 + $0xaa0] sm:$0xff] }
 0x168   : >> { %1533 = vmatpush.msrb.mxu2 %v2383_v17  ;;  %1558 = vmatpush.msrb.mxu3 %v2383_v17 }
 0x169   : >> { %1465 = vmatpush.msrb.mxu0 %v2364_v37  ;;  %1490 = vmatpush.msrb.mxu1 %v2364_v37  ;;  %v986_v28 = vpop.f32.mrf.mxu2  ;;  %v1011_v31 = vpop.f32.mrf.mxu3 }
 0x16a   : >> { %1534 = vmatpush.msrb.mxu2 %v2382_v63  ;;  %1559 = vmatpush.msrb.mxu3 %v2382_v63  ;;  %v3773_v33 = vadd.f32 %v986_v28, %v923_v1  ;;  %v3775_v53 = vadd.f32 %v1011_v31, %v948_v38  ;;  %v2420_v1 = vld [vmem:[%s4110_s1 + $0xaa8] sm:$0xff]  ;;  %v2399_v38 = vld [vmem:[%s4110_s1 + $0xa20] sm:$0xff]  ;;  %v2398_v63 = vld [vmem:[%s4110_s1 + $0xa18] sm:$0xff] }
 0x16b   : >> { %1466 = vmatpush.msrb.mxu0 %v2363_v26  ;;  %1491 = vmatpush.msrb.mxu1 %v2363_v26  ;;  %v2418_v28 = vld [vmem:[%s4110_s1 + $0xa98] sm:$0xff]  ;;  %v2397_v31 = vld [vmem:[%s4110_s1 + $0xa10] sm:$0xff] }
 0x16c   : >> { %1535 = vmatpush.msrb.mxu2 %v2381_v27  ;;  %1560 = vmatpush.msrb.mxu3 %v2381_v27  ;;  %v920_v35 = vpop.f32.mrf.mxu0  ;;  %v945_v36 = vpop.f32.mrf.mxu1 }
 0x16d   : >> { %1467 = vmatpush.msrb.mxu0 %v2362_v32  ;;  %1492 = vmatpush.msrb.mxu1 %v2362_v32  ;;  %v924_v42 = vadd.f32 %v920_v35, %v3681_v61  ;;  %v949_v43 = vadd.f32 %v945_v36, %v3683_v62  ;;  %v2409_v61 = vld [vmem:[%s4110_s1 + $0xa70] sm:$0xff]  ;;  %v2428_v62 = vld [vmem:[%s4110_s1 + $0xae8] sm:$0xff] }
 0x16e   : >> { %1536 = vmatpush.msrb.mxu2 %v2380_v21  ;;  %1561 = vmatpush.msrb.mxu3 %v2380_v21  ;;  %v2396_v35 = vld [vmem:[%s4110_s1 + $0xa08] sm:$0xff] }
 0x16f   : >> { %1468 = vmatpush.msrb.mxu0 %v2361_v34  ;;  %1493 = vmatpush.msrb.mxu1 %v2361_v34  ;;  %v2416_v36 = vld [vmem:[%s4110_s1 + $0xa88] sm:$0xff] }
 0x170   : >> { %1537 = vmatpush.msrb.mxu2 %v2379_v40  ;;  %1562 = vmatpush.msrb.mxu3 %v2379_v40  ;;  %v2395_v40 = vld [vmem:[%s4110_s1 + $0xa00] sm:$0xff] }
 0x171   : >> { %1469 = vmatpush.msrb.mxu0 %v2360_v2  ;;  %1494 = vmatpush.msrb.mxu1 %v2360_v2  ;;  %v2431_v2 = vld [vmem:[%s2756_s7 + $0x79] sm:$0xff] }
 0x172   : >> { %1538 = vmatpush.msrb.mxu2 %v2378_v44  ;;  %1563 = vmatpush.msrb.mxu3 %v2378_v44 }
 0x173   : >> { %1470 = vmatpush.msrb.mxu0 %v2359_v39  ;;  %1495 = vmatpush.msrb.mxu1 %v2359_v39  ;;  %v989_v48 = vpop.f32.mrf.mxu2  ;;  %v1014_v49 = vpop.f32.mrf.mxu3 }
 0x174   : >> { %1539 = vmatpush.msrb.mxu2 %v2377_v45  ;;  %1564 = vmatpush.msrb.mxu3 %v2377_v45  ;;  %v3809_v57 = vadd.f32 %v989_v48, %v924_v42  ;;  %v3811_v58 = vadd.f32 %v1014_v49, %v949_v43  ;;  %v2415_v42 = vld [vmem:[%s4110_s1 + $0xa80] sm:$0xff]  ;;  %v2413_v43 = vld [vmem:[%s2756_s7 + $0x78] sm:$0xff] }
 0x175   : >> { %1471 = vmatmul.f32.vlgmr.msrb.gmra.mxu0 %v3420_v9  ;;  %1496 = vmatmul.f32.vlgmr.msrb.gmra.mxu1 %v3801_v46  ;;  %v2429_v9 = vld [vmem:[%s4110_s1 + $0xaf0] sm:$0xff]  ;;  %v2448_v45 = vld [vmem:[%s4110_s1 + $0xb78] sm:$0xff] }
 0x176   : >> { %1540 = vmatmul.f32.vlgmr.msrb.gmra.mxu2 %v3545_v59  ;;  %1565 = vmatmul.f32.vlgmr.msrb.gmra.mxu3 %v3804_v47  ;;  %v2408_v59 = vld [vmem:[%s4110_s1 + $0xa68] sm:$0xff] }
 0x177   : >> { %1596 = vmatpush.msra.mxu0 %v2410_v50  ;;  %1621 = vmatpush.msra.mxu1 %v2410_v50  ;;  %v2466_v50 = vld [vmem:[%s4110_s1 + $0xbf8] sm:$0xff] }
 0x178   : >> { %1665 = vmatpush.msra.mxu2 %v2430_v54  ;;  %1690 = vmatpush.msra.mxu3 %v2430_v54  ;;  %v2445_v54 = vld [vmem:[%s4110_s1 + $0xb60] sm:$0xff] }
 0x179   : >> { %1597 = vmatpush.msra.mxu0 %v2409_v61  ;;  %1622 = vmatpush.msra.mxu1 %v2409_v61  ;;  %v2463_v61 = vld [vmem:[%s4110_s1 + $0xbe0] sm:$0xff] }
 0x17a   : >> { %1666 = vmatpush.msra.mxu2 %v2429_v9  ;;  %1691 = vmatpush.msra.mxu3 %v2429_v9  ;;  %v2414_v9 = vld [vmem:[%s2756_s7 + $0x80] sm:$0x3f] }
 0x17b   : >> { %1598 = vmatpush.msra.mxu0 %v2408_v59  ;;  %1623 = vmatpush.msra.mxu1 %v2408_v59  ;;  %v2432_v59 = vld [vmem:[%s2756_s7 + $0x81] sm:$0x3f] }
 0x17c   : >> { %1667 = vmatpush.msra.mxu2 %v2428_v62  ;;  %1692 = vmatpush.msra.mxu3 %v2428_v62  ;;  %v2444_v62 = vld [vmem:[%s4110_s1 + $0xb58] sm:$0xff] }
 0x17d   : >> { %1599 = vmatpush.msra.mxu0 %v2407_v4  ;;  %1624 = vmatpush.msra.mxu1 %v2407_v4  ;;  %v2462_v4 = vld [vmem:[%s4110_s1 + $0xbd8] sm:$0xff] }
 0x17e   : >> { %1668 = vmatpush.msra.mxu2 %v2427_v10  ;;  %1693 = vmatpush.msra.mxu3 %v2427_v10  ;;  %v2443_v10 = vld [vmem:[%s4110_s1 + $0xb50] sm:$0xff] }
 0x17f   : >> { %1474 = vmatmul.f32.gmra.mxu0 %v3458_v23  ;;  %1499 = vmatmul.f32.gmra.mxu1 %v3839_v3  ;;  %v2425_v23 = vld [vmem:[%s4110_s1 + $0xad0] sm:$0xff] }
 0x180   : >> { %1543 = vmatmul.f32.gmra.mxu2 %v3583_v30  ;;  %1568 = vmatmul.f32.gmra.mxu3 %v3842_v5  ;;  %v2424_v30 = vld [vmem:[%s4110_s1 + $0xac8] sm:$0xff] }
 0x181   : >> { %1600 = vmatpush.msra.mxu0 %v2406_v15  ;;  %1625 = vmatpush.msra.mxu1 %v2406_v15  ;;  %v2461_v15 = vld [vmem:[%s4110_s1 + $0xbd0] sm:$0xff] }
 0x182   : >> { %1669 = vmatpush.msra.mxu2 %v2426_v52  ;;  %1694 = vmatpush.msra.mxu3 %v2426_v52  ;;  %v2441_v52 = vld [vmem:[%s4110_s1 + $0xb40] sm:$0xff] }
 0x183   : >> { %1601 = vmatpush.msra.mxu0 %v2405_v11  ;;  %1626 = vmatpush.msra.mxu1 %v2405_v11  ;;  %v2459_v11 = vld [vmem:[%s4110_s1 + $0xbc0] sm:$0xff] }
 0x184   : >> { %1670 = vmatpush.msra.mxu2 %v2425_v23  ;;  %1695 = vmatpush.msra.mxu3 %v2425_v23  ;;  %v2440_v23 = vld [vmem:[%s4110_s1 + $0xb38] sm:$0xff] }
 0x185   : >> { %1602 = vmatpush.msra.mxu0 %v2404_v29  ;;  %1627 = vmatpush.msra.mxu1 %v2404_v29  ;;  %v2458_v29 = vld [vmem:[%s4110_s1 + $0xbb8] sm:$0xff] }
 0x186   : >> { %1671 = vmatpush.msra.mxu2 %v2424_v30  ;;  %1696 = vmatpush.msra.mxu3 %v2424_v30  ;;  %v1055_v14 = vpop.f32.mrf.mxu0  ;;  %v1080_v22 = vpop.f32.mrf.mxu1  ;;  %v2439_v30 = vld [vmem:[%s4110_s1 + $0xb30] sm:$0xff] }
 0x187   : >> { %1603 = vmatpush.msra.mxu0 %v2403_v51  ;;  %1628 = vmatpush.msra.mxu1 %v2403_v51  ;;  %v1061_v19 = vadd.f32 %v1055_v14, %v3773_v33  ;;  %v1086_v20 = vadd.f32 %v1080_v22, %v3775_v53  ;;  %v2417_v53 = vld [vmem:[%s4110_s1 + $0xa90] sm:$0xff]  ;;  %v2437_v14 = vld [vmem:[%s4110_s1 + $0xb20] sm:$0xff] }
 0x188   : >> { %1672 = vmatpush.msra.mxu2 %v2423_v12  ;;  %1697 = vmatpush.msra.mxu3 %v2423_v12  ;;  %v2457_v51 = vld [vmem:[%s4110_s1 + $0xbb0] sm:$0xff]  ;;  %v2438_v12 = vld [vmem:[%s4110_s1 + $0xb28] sm:$0xff]  ;;  %v2455_v22 = vld [vmem:[%s4110_s1 + $0xba0] sm:$0xff] }
 0x189   : >> { %1604 = vmatpush.msra.mxu0 %v2402_v18  ;;  %1629 = vmatpush.msra.mxu1 %v2402_v18  ;;  %v2456_v18 = vld [vmem:[%s4110_s1 + $0xba8] sm:$0xff] }
 0x18a   : >> { %1673 = vmatpush.msra.mxu2 %v2422_v16  ;;  %1698 = vmatpush.msra.mxu3 %v2422_v16  ;;  %v2436_v16 = vld [vmem:[%s4110_s1 + $0xb18] sm:$0xff] }
 0x18b   : >> { %1605 = vmatpush.msra.mxu0 %v2401_v24  ;;  %1630 = vmatpush.msra.mxu1 %v2401_v24  ;;  %v2453_v24 = vld [vmem:[%s4110_s1 + $0xb90] sm:$0xff] }
 0x18c   : >> { %1674 = vmatpush.msra.mxu2 %v2421_v13  ;;  %1699 = vmatpush.msra.mxu3 %v2421_v13  ;;  %v2434_v13 = vld [vmem:[%s4110_s1 + $0xb08] sm:$0xff] }
 0x18d   : >> { %1606 = vmatpush.msra.mxu0 %v2400_v41  ;;  %1631 = vmatpush.msra.mxu1 %v2400_v41  ;;  %v1124_v17 = vpop.f32.mrf.mxu2  ;;  %v1149_v37 = vpop.f32.mrf.mxu3  ;;  %v2452_v41 = vld [vmem:[%s4110_s1 + $0xb88] sm:$0xff] }
 0x18e   : >> { %1675 = vmatpush.msra.mxu2 %v2420_v1  ;;  %1700 = vmatpush.msra.mxu3 %v2420_v1  ;;  %v3901_v26 = vadd.f32 %v1124_v17, %v1061_v19  ;;  %v3903_v27 = vadd.f32 %v1149_v37, %v1086_v20  ;;  %v2454_v19 = vld [vmem:[%s4110_s1 + $0xb98] sm:$0xff]  ;;  %v2435_v20 = vld [vmem:[%s4110_s1 + $0xb10] sm:$0xff]  ;;  %v2433_v1 = vld [vmem:[%s4110_s1 + $0xb00] sm:$0xff] }
 0x18f   : >> { %1607 = vmatpush.msra.mxu0 %v2399_v38  ;;  %1632 = vmatpush.msra.mxu1 %v2399_v38  ;;  %v2451_v38 = vld [vmem:[%s4110_s1 + $0xb80] sm:$0xff]  ;;  %v2484_v37 = vld [vmem:[%s4110_s1 + $0xc78] sm:$0xff] }
 0x190   : >> { %1676 = vmatpush.msra.mxu2 %v2419_v25  ;;  %1701 = vmatpush.msra.mxu3 %v2419_v25  ;;  %v1058_v32 = vpop.f32.mrf.mxu0  ;;  %v1083_v33 = vpop.f32.mrf.mxu1  ;;  %v2449_v25 = vld [vmem:[%s2756_s7 + $0x7a] sm:$0xff] }
 0x191   : >> { %1608 = vmatpush.msra.mxu0 %v2398_v63  ;;  %1633 = vmatpush.msra.mxu1 %v2398_v63  ;;  %v1062_v21 = vadd.f32 %v1058_v32, %v3809_v57  ;;  %v1087_v34 = vadd.f32 %v1083_v33, %v3811_v58  ;;  %v2447_v57 = vld [vmem:[%s4110_s1 + $0xb70] sm:$0xff]  ;;  %v2467_v17 = vld [vmem:[%s2756_s7 + $0x7b] sm:$0xff] }
 0x192   : >> { %1677 = vmatpush.msra.mxu2 %v2418_v28  ;;  %1702 = vmatpush.msra.mxu3 %v2418_v28  ;;  %v2465_v58 = vld [vmem:[%s4110_s1 + $0xbf0] sm:$0xff]  ;;  %v2482_v28 = vld [vmem:[%s4110_s1 + $0xc68] sm:$0xff]  ;;  %v2480_v32 = vld [vmem:[%s4110_s1 + $0xc58] sm:$0xff] }
 0x193   : >> { %1609 = vmatpush.msra.mxu0 %v2397_v31  ;;  %1634 = vmatpush.msra.mxu1 %v2397_v31  ;;  %v2483_v63 = vld [vmem:[%s4110_s1 + $0xc70] sm:$0xff]  ;;  %v2468_v31 = vld [vmem:[%s2756_s7 + $0x83] sm:$0x3f] }
 0x194   : >> { %1678 = vmatpush.msra.mxu2 %v2417_v53  ;;  %1703 = vmatpush.msra.mxu3 %v2417_v53  ;;  %v2479_v33 = vld [vmem:[%s4110_s1 + $0xc50] sm:$0xff]  ;;  %v2478_v53 = vld [vmem:[%s4110_s1 + $0xc48] sm:$0xff] }
 0x195   : >> { %1610 = vmatpush.msra.mxu0 %v2396_v35  ;;  %1635 = vmatpush.msra.mxu1 %v2396_v35  ;;  %v2473_v35 = vld [vmem:[%s4110_s1 + $0xc20] sm:$0xff] }
 0x196   : >> { %1679 = vmatpush.msra.mxu2 %v2416_v36  ;;  %1704 = vmatpush.msra.mxu3 %v2416_v36  ;;  %v2472_v36 = vld [vmem:[%s4110_s1 + $0xc18] sm:$0xff] }
 0x197   : >> { %1611 = vmatpush.msra.mxu0 %v2395_v40  ;;  %1636 = vmatpush.msra.mxu1 %v2395_v40  ;;  %v1127_v44 = vpop.f32.mrf.mxu2  ;;  %v1152_v39 = vpop.f32.mrf.mxu3  ;;  %v2471_v40 = vld [vmem:[%s4110_s1 + $0xc10] sm:$0xff] }
 0x198   : >> { %1680 = vmatpush.msra.mxu2 %v2415_v42  ;;  %1705 = vmatpush.msra.mxu3 %v2415_v42  ;;  %v3933_v48 = vadd.f32 %v1127_v44, %v1062_v21  ;;  %v3935_v49 = vadd.f32 %v1152_v39, %v1087_v34  ;;  %v2475_v21 = vld [vmem:[%s4110_s1 + $0xc30] sm:$0xff]  ;;  %v2474_v34 = vld [vmem:[%s4110_s1 + $0xc28] sm:$0xff] }
 0x199   : >> { %1612 = vmatmul.f32.vlgmr.msra.gmra.mxu0 %v3548_v60  ;;  %1637 = vmatmul.f32.vlgmr.msra.gmra.mxu1 %v2413_v43  ;;  %v2446_v60 = vld [vmem:[%s4110_s1 + $0xb68] sm:$0xff]  ;;  %v2469_v43 = vld [vmem:[%s4110_s1 + $0xc00] sm:$0xff] }
 0x19a   : >> { %1681 = vmatmul.f32.vlgmr.msra.gmra.mxu2 %v3673_v55  ;;  %1706 = vmatmul.f32.vlgmr.msra.gmra.mxu3 %v2431_v2  ;;  %v2464_v55 = vld [vmem:[%s4110_s1 + $0xbe8] sm:$0xff]  ;;  %v2485_v2 = vld [vmem:[%s2756_s7 + $0x7c] sm:$0xff] }
 0x19b   : >> { %1734 = vmatpush.msrb.mxu0 %v2448_v45  ;;  %1759 = vmatpush.msrb.mxu1 %v2448_v45  ;;  %v2470_v42 = vld [vmem:[%s4110_s1 + $0xc08] sm:$0xff] }
 0x19c   : >> { %1803 = vmatpush.msrb.mxu2 %v2466_v50  ;;  %1828 = vmatpush.msrb.mxu3 %v2466_v50  ;;  %v2486_v44 = vld [vmem:[%s2756_s7 + $0x84] sm:$0x3f] }
 0x19d   : >> { %1735 = vmatpush.msrb.mxu0 %v2447_v57  ;;  %1760 = vmatpush.msrb.mxu1 %v2447_v57 }
 0x19e   : >> { %1804 = vmatpush.msrb.mxu2 %v2465_v58  ;;  %1829 = vmatpush.msrb.mxu3 %v2465_v58 }
 0x19f   : >> { %1736 = vmatpush.msrb.mxu0 %v2446_v60  ;;  %1761 = vmatpush.msrb.mxu1 %v2446_v60 }
 0x1a0   : >> { %1805 = vmatpush.msrb.mxu2 %v2464_v55  ;;  %1830 = vmatpush.msrb.mxu3 %v2464_v55 }
 0x1a1   : >> { %1737 = vmatpush.msrb.mxu0 %v2445_v54  ;;  %1762 = vmatpush.msrb.mxu1 %v2445_v54 }
 0x1a2   : >> { %1806 = vmatpush.msrb.mxu2 %v2463_v61  ;;  %1831 = vmatpush.msrb.mxu3 %v2463_v61 }
 0x1a3   : >> { %1615 = vmatmul.f32.gmra.mxu0 %v3586_v7  ;;  %1640 = vmatmul.f32.gmra.mxu1 %v2414_v9  ;;  %v2442_v7 = vld [vmem:[%s4110_s1 + $0xb48] sm:$0xff] }
 0x1a4   : >> { %1684 = vmatmul.f32.gmra.mxu2 %v3711_v8  ;;  %1709 = vmatmul.f32.gmra.mxu3 %v2432_v59  ;;  %v2460_v8 = vld [vmem:[%s4110_s1 + $0xbc8] sm:$0xff] }
 0x1a5   : >> { %1738 = vmatpush.msrb.mxu0 %v2444_v62  ;;  %1763 = vmatpush.msrb.mxu1 %v2444_v62 }
 0x1a6   : >> { %1807 = vmatpush.msrb.mxu2 %v2462_v4  ;;  %1832 = vmatpush.msrb.mxu3 %v2462_v4 }
 0x1a7   : >> { %1739 = vmatpush.msrb.mxu0 %v2443_v10  ;;  %1764 = vmatpush.msrb.mxu1 %v2443_v10 }
 0x1a8   : >> { %1808 = vmatpush.msrb.mxu2 %v2461_v15  ;;  %1833 = vmatpush.msrb.mxu3 %v2461_v15 }
 0x1a9   : >> { %1740 = vmatpush.msrb.mxu0 %v2442_v7  ;;  %1765 = vmatpush.msrb.mxu1 %v2442_v7 }
 0x1aa   : >> { %1809 = vmatpush.msrb.mxu2 %v2460_v8  ;;  %1834 = vmatpush.msrb.mxu3 %v2460_v8  ;;  %v1193_v39 = vpop.f32.mrf.mxu0  ;;  %v1218_v45 = vpop.f32.mrf.mxu1 }
 0x1ab   : >> { %1741 = vmatpush.msrb.mxu0 %v2441_v52  ;;  %1766 = vmatpush.msrb.mxu1 %v2441_v52 }
 0x1ac   : >> { %1810 = vmatpush.msrb.mxu2 %v2459_v11  ;;  %1835 = vmatpush.msrb.mxu3 %v2459_v11 }
 0x1ad   : >> { %1742 = vmatpush.msrb.mxu0 %v2440_v23  ;;  %1767 = vmatpush.msrb.mxu1 %v2440_v23 }
 0x1ae   : >> { %1811 = vmatpush.msrb.mxu2 %v2458_v29  ;;  %1836 = vmatpush.msrb.mxu3 %v2458_v29 }
 0x1af   : >> { %1743 = vmatpush.msrb.mxu0 %v2439_v30  ;;  %1768 = vmatpush.msrb.mxu1 %v2439_v30 }
 0x1b0   : >> { %1812 = vmatpush.msrb.mxu2 %v2457_v51  ;;  %1837 = vmatpush.msrb.mxu3 %v2457_v51 }
 0x1b1   : >> { %1744 = vmatpush.msrb.mxu0 %v2438_v12  ;;  %1769 = vmatpush.msrb.mxu1 %v2438_v12  ;;  %v1265_v50 = vpop.f32.mrf.mxu2  ;;  %v1290_v57 = vpop.f32.mrf.mxu3 }
 0x1b2   : >> { %1813 = vmatpush.msrb.mxu2 %v2456_v18  ;;  %1838 = vmatpush.msrb.mxu3 %v2456_v18 }
 0x1b3   : >> { %1745 = vmatpush.msrb.mxu0 %v2437_v14  ;;  %1770 = vmatpush.msrb.mxu1 %v2437_v14 }
 0x1b4   : >> { %1814 = vmatpush.msrb.mxu2 %v2455_v22  ;;  %1839 = vmatpush.msrb.mxu3 %v2455_v22  ;;  %v1196_v58 = vpop.f32.mrf.mxu0  ;;  %v1221_v60 = vpop.f32.mrf.mxu1 }
 0x1b5   : >> { %1746 = vmatpush.msrb.mxu0 %v2436_v16  ;;  %1771 = vmatpush.msrb.mxu1 %v2436_v16 }
 0x1b6   : >> { %1815 = vmatpush.msrb.mxu2 %v2454_v19  ;;  %1840 = vmatpush.msrb.mxu3 %v2454_v19 }
 0x1b7   : >> { %1747 = vmatpush.msrb.mxu0 %v2435_v20  ;;  %1772 = vmatpush.msrb.mxu1 %v2435_v20  ;;  %v1199_v20 = vadd.f32 %v1193_v39, %v3901_v26 }
 0x1b8   : >> { %1816 = vmatpush.msrb.mxu2 %v2453_v24  ;;  %1841 = vmatpush.msrb.mxu3 %v2453_v24 }
 0x1b9   : >> { %1748 = vmatpush.msrb.mxu0 %v2434_v13  ;;  %1773 = vmatpush.msrb.mxu1 %v2434_v13  ;;  %v1224_v13 = vadd.f32 %v1218_v45, %v3903_v27 }
 0x1ba   : >> { %1817 = vmatpush.msrb.mxu2 %v2452_v41  ;;  %1842 = vmatpush.msrb.mxu3 %v2452_v41 }
 0x1bb   : >> { %1749 = vmatpush.msrb.mxu0 %v2433_v1  ;;  %1774 = vmatpush.msrb.mxu1 %v2433_v1  ;;  %v1268_v55 = vpop.f32.mrf.mxu2  ;;  %v1293_v54 = vpop.f32.mrf.mxu3  ;;  %v1271_v1 = vadd.f32 %v1265_v50, %v1199_v20 }
 0x1bc   : >> { %1818 = vmatpush.msrb.mxu2 %v2451_v38  ;;  %1843 = vmatpush.msrb.mxu3 %v2451_v38 }
 0x1bd   : >> { %1750 = vmatmul.f32.vlgmr.msrb.gmra.mxu0 %v3676_v56  ;;  %1775 = vmatmul.f32.vlgmr.msrb.gmra.mxu1 %v2449_v25  ;;  %v2481_v56 = vld [vmem:[%s4110_s1 + $0xc60] sm:$0xff]  ;;  %v1296_v25 = vadd.f32 %v1290_v57, %v1224_v13 }
 0x1be   : >> { %1819 = vmatmul.f32.vlgmr.msrb.gmra.mxu2 %v3801_v46  ;;  %1844 = vmatmul.f32.vlgmr.msrb.gmra.mxu3 %v2467_v17  ;;  %v2450_v46 = vld [vmem:[%s2756_s7 + $0x82] sm:$0x3f]  ;;  %s2487_s7 = sshll.u32 %s2554_s24, 2  ;;  %s177_s24 = sadd.s32 1, %s2554_s24  }
 0x1bf   : >> { %1872 = vmatpush.msra.mxu0 %v2484_v37  ;;  %2490 = vmatpush.msra.mxu2 %v2484_v37  ;;  %s1943_s30 = scalar_lea.vmem %s2597_s23, %s2487_s7  ;;  %p174_p4 = scmp.ge.s32.totalorder %s177_s24, 7  }
 0x1c0   : >> { %1897 = vmatpush.msra.mxu1 %v2484_v37  ;;  %2506 = vmatpush.msra.mxu3 %v2484_v37 }
 0x1c1   : >> { %1873 = vmatpush.msra.mxu0 %v2483_v63  ;;  %2491 = vmatpush.msra.mxu2 %v2483_v63 }
 0x1c2   : >> { %1898 = vmatpush.msra.mxu1 %v2483_v63  ;;  %2507 = vmatpush.msra.mxu3 %v2483_v63  ;;  %v1200_v63 = vadd.f32 %v1196_v58, %v3933_v48 }
 0x1c3   : >> { %1874 = vmatpush.msra.mxu0 %v2482_v28  ;;  %2492 = vmatpush.msra.mxu2 %v2482_v28 }
 0x1c4   : >> { %1899 = vmatpush.msra.mxu1 %v2482_v28  ;;  %2508 = vmatpush.msra.mxu3 %v2482_v28 }
 0x1c5   : >> { %1875 = vmatpush.msra.mxu0 %v2481_v56  ;;  %2493 = vmatpush.msra.mxu2 %v2481_v56 }
 0x1c6   : >> { %1900 = vmatpush.msra.mxu1 %v2481_v56  ;;  %2509 = vmatpush.msra.mxu3 %v2481_v56  ;;  %v1225_v56 = vadd.f32 %v1221_v60, %v3935_v49 }
 0x1c7   : >> { %1753 = vmatmul.f32.gmra.mxu0 %v3714_v6  ;;  %1778 = vmatmul.f32.gmra.mxu1 %v2450_v46  ;;  %v2477_v6 = vld [vmem:[%s4110_s1 + $0xc40] sm:$0xff] }
 0x1c8   : >> { %1822 = vmatmul.f32.gmra.mxu2 %v3839_v3  ;;  %1847 = vmatmul.f32.gmra.mxu3 %v2468_v31  ;;  %v2476_v3 = vld [vmem:[%s4110_s1 + $0xc38] sm:$0xff]  ;;  %v1297_v26 = vadd.f32 %v1293_v54, %v1225_v56 }
 0x1c9   : >> { %1876 = vmatpush.msra.mxu0 %v2480_v32  ;;  %2494 = vmatpush.msra.mxu2 %v2480_v32 }
 0x1ca   : >> { %1901 = vmatpush.msra.mxu1 %v2480_v32  ;;  %2510 = vmatpush.msra.mxu3 %v2480_v32  ;;  %v1272_v32 = vadd.f32 %v1268_v55, %v1200_v63 }
 0x1cb   : >> { %1877 = vmatpush.msra.mxu0 %v2479_v33  ;;  %2495 = vmatpush.msra.mxu2 %v2479_v33 }
 0x1cc   : >> { %1902 = vmatpush.msra.mxu1 %v2479_v33  ;;  %2511 = vmatpush.msra.mxu3 %v2479_v33 }
 0x1cd   : >> { %1878 = vmatpush.msra.mxu0 %v2478_v53  ;;  %2496 = vmatpush.msra.mxu2 %v2478_v53 }
 0x1ce   : >> { %1903 = vmatpush.msra.mxu1 %v2478_v53  ;;  %2512 = vmatpush.msra.mxu3 %v2478_v53  ;;  %v1334_v61 = vpop.f32.mrf.mxu0  ;;  %v1359_v9 = vpop.f32.mrf.mxu1 }
 0x1cf   : >> { %1879 = vmatpush.msra.mxu0 %v2477_v6  ;;  %2497 = vmatpush.msra.mxu2 %v2477_v6  ;;  %v1340_v17 = vadd.f32 %v1334_v61, %v1271_v1  ;;  %v1365_v37 = vadd.f32 %v1359_v9, %v1296_v25  ;;  %v1923_v9 = vperm.slane %v2587_v0, 0 }
 0x1d0   : >> { %1904 = vmatpush.msra.mxu1 %v2477_v6  ;;  %2513 = vmatpush.msra.mxu3 %v2477_v6 }
 0x1d1   : >> { %1880 = vmatpush.msra.mxu0 %v2476_v3  ;;  %2498 = vmatpush.msra.mxu2 %v2476_v3 }
 0x1d2   : >> { %1905 = vmatpush.msra.mxu1 %v2476_v3  ;;  %2514 = vmatpush.msra.mxu3 %v2476_v3 }
 0x1d3   : >> { %1881 = vmatpush.msra.mxu0 %v2475_v21  ;;  %2499 = vmatpush.msra.mxu2 %v2475_v21 }
 0x1d4   : >> { %1906 = vmatpush.msra.mxu1 %v2475_v21  ;;  %2515 = vmatpush.msra.mxu3 %v2475_v21 }
 0x1d5   : >> { %1882 = vmatpush.msra.mxu0 %v2474_v34  ;;  %2500 = vmatpush.msra.mxu2 %v2474_v34  ;;  %v1403_v59 = vpop.f32.mrf.mxu2  ;;  %v1428_v62 = vpop.f32.mrf.mxu3 }
 0x1d6   : >> { %1907 = vmatpush.msra.mxu1 %v2474_v34  ;;  %2516 = vmatpush.msra.mxu3 %v2474_v34  ;;  %v1409_v28 = vadd.f32 %v1403_v59, %v1340_v17  ;;  %v1434_v46 = vadd.f32 %v1428_v62, %v1365_v37  ;;  %v1947_v37 = vld [vmem:[%s1943_s30] sm:$0xf] }
 0x1d7   : >> { %1883 = vmatpush.msra.mxu0 %v2473_v35  ;;  %2501 = vmatpush.msra.mxu2 %v2473_v35 }
 0x1d8   : >> { %1908 = vmatpush.msra.mxu1 %v2473_v35  ;;  %2517 = vmatpush.msra.mxu3 %v2473_v35  ;;  %v1337_v4 = vpop.f32.mrf.mxu0  ;;  %v1362_v10 = vpop.f32.mrf.mxu1 }
 0x1d9   : >> { %1884 = vmatpush.msra.mxu0 %v2472_v36  ;;  %2502 = vmatpush.msra.mxu2 %v2472_v36  ;;  %v1341_v3 = vadd.f32 %v1337_v4, %v1272_v32  ;;  %v1366_v21 = vadd.f32 %v1362_v10, %v1297_v26 }
 0x1da   : >> { %1909 = vmatpush.msra.mxu1 %v2472_v36  ;;  %2518 = vmatpush.msra.mxu3 %v2472_v36 }
 0x1db   : >> { %1885 = vmatpush.msra.mxu0 %v2471_v40  ;;  %2503 = vmatpush.msra.mxu2 %v2471_v40 }
 0x1dc   : >> { %1910 = vmatpush.msra.mxu1 %v2471_v40  ;;  %2519 = vmatpush.msra.mxu3 %v2471_v40 }
 0x1dd   : >> { %1886 = vmatpush.msra.mxu0 %v2470_v42  ;;  %2504 = vmatpush.msra.mxu2 %v2470_v42 }
 0x1de   : >> { %1911 = vmatpush.msra.mxu1 %v2470_v42  ;;  %2520 = vmatpush.msra.mxu3 %v2470_v42 }
 0x1df   : >> { %1887 = vmatpush.msra.mxu0 %v2469_v43  ;;  %2505 = vmatpush.msra.mxu2 %v2469_v43  ;;  %v1406_v15 = vpop.f32.mrf.mxu2 }
 0x1e0   : >> { %1912 = vmatpush.msra.mxu1 %v2469_v43  ;;  %2521 = vmatpush.msra.mxu3 %v2469_v43  ;;  %v1410_v36 = vadd.f32 %v1406_v15, %v1341_v3 }
 0x1e1   : >> { %1888 = vmatmul.f32.vlgmr.msra.gmra.mxu0 %v3804_v47  ;;  %1891 = vmatmul.f32.vlgmr.msra.gmra.mxu2 %v3842_v5  ;;  %v1431_v47 = vpop.f32.mrf.mxu3 }
 0x1e2   : >> { %1913 = vmatmul.f32.vlgmr.msra.gmra.mxu1 %v2485_v2  ;;  %1916 = vmatmul.f32.vlgmr.msra.gmra.mxu3 %v2486_v44  ;;  %v1435_v43 = vadd.f32 %v1431_v47, %v1366_v21 }
 0x1f2   : >> { %v1472_v7 = vpop.f32.mrf.mxu0  ;;  %v1497_v5 = vpop.f32.mrf.mxu1 }
 0x1f3   : >> { %v1478_v33 = vadd.f32 %v1472_v7, %v1409_v28  ;;  %v1503_v6 = vadd.f32 %v1497_v5, %v1434_v46 }
 0x1f9   : >> { %v1541_v8 = vpop.f32.mrf.mxu2  ;;  %v1566_v52 = vpop.f32.mrf.mxu3 }
 0x1fa   : >> { %v1547_v27 = vadd.f32 %v1541_v8, %v1478_v33  ;;  %v1572_v34 = vadd.f32 %v1566_v52, %v1503_v6 }
 0x1fc   : >> { %v1475_v11 = vpop.f32.mrf.mxu0  ;;  %v1500_v23 = vpop.f32.mrf.mxu1 }
 0x1fd   : >> { %v1479_v2 = vadd.f32 %v1475_v11, %v1410_v36  ;;  %v1504_v49 = vadd.f32 %v1500_v23, %v1435_v43 }
 0x203   : >> { %v1544_v29 = vpop.f32.mrf.mxu2  ;;  %v1569_v30 = vpop.f32.mrf.mxu3 }
 0x204   : >> { %v1548_v45 = vadd.f32 %v1544_v29, %v1479_v2  ;;  %v1573_v57 = vadd.f32 %v1569_v30, %v1504_v49 }
 0x216   : >> { %v1613_v51 = vpop.f32.mrf.mxu0  ;;  %v1638_v12 = vpop.f32.mrf.mxu1 }
 0x217   : >> { %v1619_v40 = vadd.f32 %v1613_v51, %v1547_v27  ;;  %v1644_v48 = vadd.f32 %v1638_v12, %v1572_v34 }
 0x21d   : >> { %v1682_v18 = vpop.f32.mrf.mxu2  ;;  %v1707_v14 = vpop.f32.mrf.mxu3 }
 0x21e   : >> { %v1688_v44 = vadd.f32 %v1682_v18, %v1619_v40  ;;  %v1713_v39 = vadd.f32 %v1707_v14, %v1644_v48 }
 0x220   : >> { %v1616_v22 = vpop.f32.mrf.mxu0  ;;  %v1641_v16 = vpop.f32.mrf.mxu1 }
 0x221   : >> { %v1620_v55 = vadd.f32 %v1616_v22, %v1548_v45  ;;  %v1645_v59 = vadd.f32 %v1641_v16, %v1573_v57 }
 0x227   : >> { %v1685_v19 = vpop.f32.mrf.mxu2  ;;  %v1710_v24 = vpop.f32.mrf.mxu3 }
 0x228   : >> { %v1689_v10 = vadd.f32 %v1685_v19, %v1620_v55  ;;  %v1714_v7 = vadd.f32 %v1710_v24, %v1645_v59 }
 0x23a   : >> { %v1751_v41 = vpop.f32.mrf.mxu0  ;;  %v1776_v38 = vpop.f32.mrf.mxu1 }
 0x23b   : >> { %v1757_v50 = vadd.f32 %v1751_v41, %v1688_v44  ;;  %v1782_v58 = vadd.f32 %v1776_v38, %v1713_v39 }
 0x241   : >> { %v1820_v31 = vpop.f32.mrf.mxu2  ;;  %v1845_v53 = vpop.f32.mrf.mxu3 }
 0x242   : >> { %v1826_v54 = vadd.f32 %v1820_v31, %v1757_v50  ;;  %v1851_v62 = vadd.f32 %v1845_v53, %v1782_v58 }
 0x244   : >> { %v1754_v35 = vpop.f32.mrf.mxu0  ;;  %v1779_v42 = vpop.f32.mrf.mxu1 }
 0x245   : >> { %v1758_v8 = vadd.f32 %v1754_v35, %v1689_v10  ;;  %v1783_v11 = vadd.f32 %v1779_v42, %v1714_v7 }
 0x24b   : >> { %v1823_v60 = vpop.f32.mrf.mxu2  ;;  %v1848_v61 = vpop.f32.mrf.mxu3 }
 0x24c   : >> { %v1827_v29 = vadd.f32 %v1823_v60, %v1758_v8  ;;  %v1852_v51 = vadd.f32 %v1848_v61, %v1783_v11 }
 0x25e   : >> { %v1889_v4 = vpop.f32.mrf.mxu0 }
 0x25f   : >> { %v1895_v15 = vadd.f32 %v1889_v4, %v1826_v54  ;;  %v1914_v47 = vpop.f32.mrf.mxu1 }
 0x260   : >> { %v1920_v5 = vadd.f32 %v1914_v47, %v1851_v62 }
 0x261   : >> { %v1925_v52 = vadd.f32 %v1923_v9, %v1895_v15 }
 0x262   : >> { %v1929_v23 = vadd.f32 %v1923_v9, %v1920_v5 }
 0x263   : >> { %v1927_v30 = vmax.f32 %v1925_v52, 0.0 }
 0x264   : >> { %v1931_v12 = vmax.f32 %v1929_v23, 0.0  ;;  %v1892_v18 = vpop.f32.mrf.mxu2 }
 0x265   : >> { %v1896_v14 = vadd.f32 %v1892_v18, %v1827_v29  ;;  %v1917_v22 = vpop.f32.mrf.mxu3 }
 0x266   : >> { %v1933_v16 = vmax.f32 %v1927_v30, %v1931_v12  ;;  %v1921_v20 = vadd.f32 %v1917_v22, %v1852_v51 }
 0x267   : >> { %v1926_v19 = vadd.f32 %v1923_v9, %v1896_v14 }
 0x268   : >> { %1935 = vst [vmem:[#allocation2] sm:$0xff] %v1933_v16  ;;  %v1930_v13 = vadd.f32 %v1923_v9, %v1921_v20 }
 0x269   : >> { %v1928_v24 = vmax.f32 %v1926_v19, 0.0 }
 0x26a   : >> { %v1932_v41 = vmax.f32 %v1930_v13, 0.0 }
 0x26c   : >> { %v1934_v1 = vmax.f32 %v1928_v24, %v1932_v41 }
 0x26e   : >> { %1936 = vst [vmem:[#allocation2 + $0x8] sm:$0x3f] %v1934_v1 }
 0x275   : >> { %v1937_v38 = vld [vmem:[#allocation2] ss:$2 sm:$0x7f]  ;;  %v1939_v25 = vld [vmem:[#allocation2 + $0x1] ss:$2 sm:$0x7f] }
 0x276   : >> { %v1940_v17 = vmax.f32 %v1937_v38, %v1939_v25 }
 0x277   : > { %176 = sbr.rel (!%p174_p4) target bundleno = 16 (0x10), region = 101 }
 0x278   : >> { %v1941_v63 = vpack.c.bf16 %v1940_v17, %v1940_v17 }
 0x27a   : >> { %v1948_v28 = vsel %vm1946_vm2, %v1941_v63, %v1947_v37 }
 0x27b   : >> { %1949 = vst [vmem:[%s1943_s30] sm:$0xf] %v1948_v28 }
 0x27c PF: > { %s13_s12 = sadd.s32 1, %s2550_s12  }
 0x27d   : > { %p10_p5 = scmp.ge.s32.totalorder %s13_s12, 4  }
 0x27f   :  { %12 = sbr.rel (!%p10_p5) target bundleno = 1 (0x1), region = 112 }

// kernel: cnn_forward.5
= control target key start
LH: loop header
LB: loop body
LE: loop exit
PB: predicated region body
PF: predicated region fallthrough
CT: control target
= control target key end

     0   :  { %s7158_s0 = inlined_call_operand.vmem [shape: bf16[2,6272], index: 0, kind: input, shape index: {}]   ;;  %s7159_s1 = inlined_call_operand.vmem [shape: bf16[6272,128], index: 1, kind: input, shape index: {}]   ;;  %s7160_s2 = inlined_call_operand.vmem [shape: f32[1,128], index: 2, kind: input, shape index: {}]   ;;  %s7161_s3 = inlined_call_operand.hbm [shape: f32[2,128], index: 3, kind: output, shape index: {}]  }
   0x1   :  { %v5503_v0 = vld [vmem:[%s7159_s1 + $0x38] sm:$0xff]  ;;  %v5502_v4 = vld [vmem:[%s7159_s1 + $0x30] sm:$0xff]  ;;  %v5501_v8 = vld [vmem:[%s7159_s1 + $0x28] sm:$0xff] }
   0x2   :  { %v5519_v1 = vld [vmem:[%s7159_s1 + $0xb8] sm:$0xff]  ;;  %3274 = vmatpush.bf16.msra.mxu0 %v5503_v0  ;;  %v5518_v5 = vld [vmem:[%s7159_s1 + $0xb0] sm:$0xff]  ;;  %v5517_v9 = vld [vmem:[%s7159_s1 + $0xa8] sm:$0xff] }
   0x3   :  { %v5511_v2 = vld [vmem:[%s7159_s1 + $0x78] sm:$0xff]  ;;  %3300 = vmatpush.bf16.msra.mxu2 %v5519_v1  ;;  %v5510_v6 = vld [vmem:[%s7159_s1 + $0x70] sm:$0xff]  ;;  %v5509_v10 = vld [vmem:[%s7159_s1 + $0x68] sm:$0xff] }
   0x4   :  { %v5527_v3 = vld [vmem:[%s7159_s1 + $0xf8] sm:$0xff]  ;;  %3287 = vmatpush.bf16.msra.mxu1 %v5511_v2  ;;  %v5526_v7 = vld [vmem:[%s7159_s1 + $0xf0] sm:$0xff]  ;;  %v5525_v11 = vld [vmem:[%s7159_s1 + $0xe8] sm:$0xff] }
   0x5   :  { %3313 = vmatpush.bf16.msra.mxu3 %v5527_v3  ;;  %v5500_v12 = vld [vmem:[%s7159_s1 + $0x20] sm:$0xff]  ;;  %v5499_v16 = vld [vmem:[%s7159_s1 + $0x18] sm:$0xff]  ;;  %v5498_v21 = vld [vmem:[%s7159_s1 + $0x10] sm:$0xff] }
   0x6   :  { %3275 = vmatpush.bf16.msra.mxu0 %v5502_v4  ;;  %v5516_v13 = vld [vmem:[%s7159_s1 + $0xa0] sm:$0xff]  ;;  %v5515_v17 = vld [vmem:[%s7159_s1 + $0x98] sm:$0xff]  ;;  %v5514_v22 = vld [vmem:[%s7159_s1 + $0x90] sm:$0xff] }
   0x7   :  { %3301 = vmatpush.bf16.msra.mxu2 %v5518_v5  ;;  %v5508_v14 = vld [vmem:[%s7159_s1 + $0x60] sm:$0xff]  ;;  %v5507_v18 = vld [vmem:[%s7159_s1 + $0x58] sm:$0xff]  ;;  %v5506_v23 = vld [vmem:[%s7159_s1 + $0x50] sm:$0xff] }
   0x8   :  { %3288 = vmatpush.bf16.msra.mxu1 %v5510_v6  ;;  %v5524_v15 = vld [vmem:[%s7159_s1 + $0xe0] sm:$0xff]  ;;  %v5523_v19 = vld [vmem:[%s7159_s1 + $0xd8] sm:$0xff]  ;;  %v5522_v24 = vld [vmem:[%s7159_s1 + $0xd0] sm:$0xff] }
   0x9   :  { %3314 = vmatpush.bf16.msra.mxu3 %v5526_v7  ;;  %v15_v20 = vld [vmem:[%s7158_s0] sm:$0xff] }
   0xa   :  { %3276 = vmatpush.bf16.msra.mxu0 %v5501_v8  ;;  %811 = vst [vmem:[#allocation1] ss:$9 sm:$0xff] %v15_v20 }
   0xb   :  { %3302 = vmatpush.bf16.msra.mxu2 %v5517_v9 }
   0xc   :  { %3289 = vmatpush.bf16.msra.mxu1 %v5509_v10 }
   0xd   :  { %3315 = vmatpush.bf16.msra.mxu3 %v5525_v11 }
   0xe   :  { %3277 = vmatpush.bf16.msra.mxu0 %v5500_v12 }
   0xf   :  { %3303 = vmatpush.bf16.msra.mxu2 %v5516_v13 }
  0x10   :  { %3290 = vmatpush.bf16.msra.mxu1 %v5508_v14 }
  0x11   :  { %3316 = vmatpush.bf16.msra.mxu3 %v5524_v15 }
  0x12   :  { %3278 = vmatpush.bf16.msra.mxu0 %v5499_v16 }
  0x13   :  { %3304 = vmatpush.bf16.msra.mxu2 %v5515_v17 }
  0x14   :  { %3291 = vmatpush.bf16.msra.mxu1 %v5507_v18 }
  0x15   :  { %3317 = vmatpush.bf16.msra.mxu3 %v5523_v19 }
  0x16   :  { %8 = vsyncpa [#allocation3], 0  ;;  %3279 = vmatpush.bf16.msra.mxu0 %v5498_v21  ;;  %v5497_v25 = vld [vmem:[%s7159_s1 + $0x8] sm:$0xff]  ;;  %v5496_v29 = vld [vmem:[%s7159_s1] sm:$0xff]  ;;  %s3919_s15 = sshll.u32 %s7161_s3, 4  ;;  %s3920_s15 = int_to_ptr.hbm [resolvable:$true] %s3919_s15 }
  0x17   :  { %3305 = vmatpush.bf16.msra.mxu2 %v5514_v22  ;;  %v5513_v26 = vld [vmem:[%s7159_s1 + $0x88] sm:$0xff]  ;;  %v5512_v30 = vld [vmem:[%s7159_s1 + $0x80] sm:$0xff]  ;;  %v5535_v31 = vld [vmem:[%s7159_s1 + $0x138] sm:$0xff] }
  0x18   :  { %3292 = vmatpush.bf16.msra.mxu1 %v5506_v23  ;;  %v5505_v27 = vld [vmem:[%s7159_s1 + $0x48] sm:$0xff]  ;;  %v5551_v32 = vld [vmem:[%s7159_s1 + $0x1b8] sm:$0xff]  ;;  %v5504_v33 = vld [vmem:[%s7159_s1 + $0x40] sm:$0xff] }
  0x19   :  { %3318 = vmatpush.bf16.msra.mxu3 %v5522_v24  ;;  %v5521_v28 = vld [vmem:[%s7159_s1 + $0xc8] sm:$0xff]  ;;  %v5520_v34 = vld [vmem:[%s7159_s1 + $0xc0] sm:$0xff]  ;;  %v5543_v35 = vld [vmem:[%s7159_s1 + $0x178] sm:$0xff] }
  0x1a   :  { %3280 = vmatpush.bf16.msra.mxu0 %v5497_v25  ;;  %v5559_v36 = vld [vmem:[%s7159_s1 + $0x1f8] sm:$0xff]  ;;  %v5534_v37 = vld [vmem:[%s7159_s1 + $0x130] sm:$0xff]  ;;  %v812_v40 = vld [vmem:[#allocation1] sm:$0xff] }
  0x1b   :  { %3306 = vmatpush.bf16.msra.mxu2 %v5513_v26  ;;  %v5550_v38 = vld [vmem:[%s7159_s1 + $0x1b0] sm:$0xff]  ;;  %v815_v43 = vld [vmem:[#allocation1 + $0x1b] sm:$0xff]  ;;  %v5533_v45 = vld [vmem:[%s7159_s1 + $0x128] sm:$0xff] }
  0x1c   :  { %3293 = vmatpush.bf16.msra.mxu1 %v5505_v27  ;;  %v814_v39 = vld [vmem:[#allocation1 + $0x12] sm:$0xff]  ;;  %v813_v44 = vld [vmem:[#allocation1 + $0x9] sm:$0xff]  ;;  %v6070_v49 = vld [vmem:[#allocation1 + $0x3f] sm:$0xff] }
  0x1d   :  { %3319 = vmatpush.bf16.msra.mxu3 %v5521_v28  ;;  %v5542_v41 = vld [vmem:[%s7159_s1 + $0x170] sm:$0xff]  ;;  %v5549_v46 = vld [vmem:[%s7159_s1 + $0x1a8] sm:$0xff]  ;;  %v5532_v54 = vld [vmem:[%s7159_s1 + $0x120] sm:$0xff] }
  0x1e   :  { %3281 = vmatpush.bf16.msra.mxu0 %v5496_v29  ;;  %v5558_v42 = vld [vmem:[%s7159_s1 + $0x1f0] sm:$0xff]  ;;  %v6068_v48 = vld [vmem:[#allocation1 + $0x24] sm:$0xff]  ;;  %v5531_v58 = vld [vmem:[%s7159_s1 + $0x118] sm:$0xff] }
  0x1f   :  { %3307 = vmatpush.bf16.msra.mxu2 %v5512_v30  ;;  %v6066_v47 = vld [vmem:[#allocation1 + $0x36] sm:$0xff]  ;;  %v16_v50 = vld [vmem:[%s7158_s0 + $0x8] sm:$0xff]  ;;  %v5548_v55 = vld [vmem:[%s7159_s1 + $0x1a0] sm:$0xff] }
  0x20   :  { %3294 = vmatpush.bf16.msra.mxu1 %v5504_v33  ;;  %v6075_v51 = vld [vmem:[#allocation1 + $0x2d] sm:$0xff]  ;;  %v5540_v56 = vld [vmem:[%s7159_s1 + $0x160] sm:$0xff]  ;;  %v5547_v59 = vld [vmem:[%s7159_s1 + $0x198] sm:$0xff] }
  0x21   :  { %3320 = vmatpush.bf16.msra.mxu3 %v5520_v34  ;;  %3282 = vmatmul.bf16.vlgmr.msra.gmra.mxu0 %v812_v40  ;;  %v5541_v52 = vld [vmem:[%s7159_s1 + $0x168] sm:$0xff]  ;;  %821 = vst [vmem:[#allocation1] ss:$9 sm:$0xff] %v16_v50  ;;  %v5556_v57 = vld [vmem:[%s7159_s1 + $0x1e0] sm:$0xff]  ;;  %v5539_v60 = vld [vmem:[%s7159_s1 + $0x158] sm:$0xff] }
  0x22   :  { %3326 = vmatpush.bf16.msrb.mxu0 %v5535_v31  ;;  %3308 = vmatmul.bf16.vlgmr.msra.gmra.mxu2 %v814_v39  ;;  %v5557_v53 = vld [vmem:[%s7159_s1 + $0x1e8] sm:$0xff]  ;;  %v5555_v61 = vld [vmem:[%s7159_s1 + $0x1d8] sm:$0xff]  ;;  %v5530_v62 = vld [vmem:[%s7159_s1 + $0x110] sm:$0xff] }
  0x23   :  { %3352 = vmatpush.bf16.msrb.mxu2 %v5551_v32  ;;  %3295 = vmatmul.bf16.vlgmr.msra.gmra.mxu1 %v813_v44  ;;  %v5546_v63 = vld [vmem:[%s7159_s1 + $0x190] sm:$0xff]  ;;  %v5529_v2 = vld [vmem:[%s7159_s1 + $0x108] sm:$0xff]  ;;  %v5528_v6 = vld [vmem:[%s7159_s1 + $0x100] sm:$0xff] }
  0x24   :  { %3339 = vmatpush.bf16.msrb.mxu1 %v5543_v35  ;;  %3321 = vmatmul.bf16.vlgmr.msra.gmra.mxu3 %v815_v43  ;;  %v5538_v0 = vld [vmem:[%s7159_s1 + $0x150] sm:$0xff]  ;;  %v5545_v3 = vld [vmem:[%s7159_s1 + $0x188] sm:$0xff]  ;;  %v5544_v7 = vld [vmem:[%s7159_s1 + $0x180] sm:$0xff] }
  0x25   :  { %3365 = vmatpush.bf16.msrb.mxu3 %v5559_v36  ;;  %v5554_v1 = vld [vmem:[%s7159_s1 + $0x1d0] sm:$0xff]  ;;  %v5537_v4 = vld [vmem:[%s7159_s1 + $0x148] sm:$0xff]  ;;  %v5567_v8 = vld [vmem:[%s7159_s1 + $0x238] sm:$0xff] }
  0x26   :  { %3327 = vmatpush.bf16.msrb.mxu0 %v5534_v37  ;;  %v5553_v5 = vld [vmem:[%s7159_s1 + $0x1c8] sm:$0xff]  ;;  %v5583_v9 = vld [vmem:[%s7159_s1 + $0x2b8] sm:$0xff]  ;;  %v5536_v10 = vld [vmem:[%s7159_s1 + $0x140] sm:$0xff] }
  0x27   :  { %3353 = vmatpush.bf16.msrb.mxu2 %v5550_v38  ;;  %v5552_v11 = vld [vmem:[%s7159_s1 + $0x1c0] sm:$0xff]  ;;  %v5575_v12 = vld [vmem:[%s7159_s1 + $0x278] sm:$0xff]  ;;  %v5566_v14 = vld [vmem:[%s7159_s1 + $0x230] sm:$0xff] }
  0x28   :  { %3340 = vmatpush.bf16.msrb.mxu1 %v5542_v41  ;;  %v5591_v13 = vld [vmem:[%s7159_s1 + $0x2f8] sm:$0xff]  ;;  %v5582_v15 = vld [vmem:[%s7159_s1 + $0x2b0] sm:$0xff]  ;;  %v5565_v18 = vld [vmem:[%s7159_s1 + $0x228] sm:$0xff] }
  0x29   :  { %3366 = vmatpush.bf16.msrb.mxu3 %v5558_v42  ;;  %v5574_v16 = vld [vmem:[%s7159_s1 + $0x270] sm:$0xff]  ;;  %v5581_v19 = vld [vmem:[%s7159_s1 + $0x2a8] sm:$0xff]  ;;  %v5564_v22 = vld [vmem:[%s7159_s1 + $0x220] sm:$0xff] }
  0x2a   :  { %3328 = vmatpush.bf16.msrb.mxu0 %v5533_v45  ;;  %v5590_v17 = vld [vmem:[%s7159_s1 + $0x2f0] sm:$0xff]  ;;  %v5573_v20 = vld [vmem:[%s7159_s1 + $0x268] sm:$0xff]  ;;  %v5580_v23 = vld [vmem:[%s7159_s1 + $0x2a0] sm:$0xff] }
  0x2b   :  { %3354 = vmatpush.bf16.msrb.mxu2 %v5549_v46  ;;  %v5589_v21 = vld [vmem:[%s7159_s1 + $0x2e8] sm:$0xff]  ;;  %v5572_v24 = vld [vmem:[%s7159_s1 + $0x260] sm:$0xff]  ;;  %v5563_v26 = vld [vmem:[%s7159_s1 + $0x218] sm:$0xff] }
  0x2c   :  { %3341 = vmatpush.bf16.msrb.mxu1 %v5541_v52  ;;  %v5588_v25 = vld [vmem:[%s7159_s1 + $0x2e0] sm:$0xff]  ;;  %v5579_v27 = vld [vmem:[%s7159_s1 + $0x298] sm:$0xff]  ;;  %v5562_v30 = vld [vmem:[%s7159_s1 + $0x210] sm:$0xff] }
  0x2d   :  { %3367 = vmatpush.bf16.msrb.mxu3 %v5557_v53  ;;  %v5571_v28 = vld [vmem:[%s7159_s1 + $0x258] sm:$0xff]  ;;  %v5578_v31 = vld [vmem:[%s7159_s1 + $0x290] sm:$0xff]  ;;  %v5561_v34 = vld [vmem:[%s7159_s1 + $0x208] sm:$0xff] }
  0x2e   :  { %3329 = vmatpush.bf16.msrb.mxu0 %v5532_v54  ;;  %v5587_v29 = vld [vmem:[%s7159_s1 + $0x2d8] sm:$0xff]  ;;  %v5570_v32 = vld [vmem:[%s7159_s1 + $0x250] sm:$0xff]  ;;  %v5577_v35 = vld [vmem:[%s7159_s1 + $0x288] sm:$0xff] }
  0x2f   :  { %3355 = vmatpush.bf16.msrb.mxu2 %v5548_v55  ;;  %v5586_v33 = vld [vmem:[%s7159_s1 + $0x2d0] sm:$0xff]  ;;  %v5569_v36 = vld [vmem:[%s7159_s1 + $0x248] sm:$0xff]  ;;  %v5560_v38 = vld [vmem:[%s7159_s1 + $0x200] sm:$0xff] }
  0x30   :  { %3342 = vmatpush.bf16.msrb.mxu1 %v5540_v56  ;;  %v5585_v37 = vld [vmem:[%s7159_s1 + $0x2c8] sm:$0xff]  ;;  %v5576_v39 = vld [vmem:[%s7159_s1 + $0x280] sm:$0xff]  ;;  %v5599_v40 = vld [vmem:[%s7159_s1 + $0x338] sm:$0xff] }
  0x31   :  { %3368 = vmatpush.bf16.msrb.mxu3 %v5556_v57  ;;  %v5615_v41 = vld [vmem:[%s7159_s1 + $0x3b8] sm:$0xff]  ;;  %v5568_v42 = vld [vmem:[%s7159_s1 + $0x240] sm:$0xff]  ;;  %v5598_v50 = vld [vmem:[%s7159_s1 + $0x330] sm:$0xff] }
  0x32   :  { %3330 = vmatpush.bf16.msrb.mxu0 %v5531_v58  ;;  %v5584_v43 = vld [vmem:[%s7159_s1 + $0x2c0] sm:$0xff]  ;;  %v5607_v44 = vld [vmem:[%s7159_s1 + $0x378] sm:$0xff]  ;;  %v5606_v52 = vld [vmem:[%s7159_s1 + $0x370] sm:$0xff] }
  0x33   :  { %3356 = vmatpush.bf16.msrb.mxu2 %v5547_v59  ;;  %v822_v45 = vld [vmem:[#allocation1] sm:$0xff]  ;;  %v824_v46 = vld [vmem:[#allocation1 + $0x12] sm:$0xff]  ;;  %v5597_v54 = vld [vmem:[%s7159_s1 + $0x328] sm:$0xff] }
  0x34   :  { %3343 = vmatpush.bf16.msrb.mxu1 %v5539_v60  ;;  %v5622_v53 = vld [vmem:[%s7159_s1 + $0x3f0] sm:$0xff]  ;;  %v5613_v55 = vld [vmem:[%s7159_s1 + $0x3a8] sm:$0xff]  ;;  %v5596_v58 = vld [vmem:[%s7159_s1 + $0x320] sm:$0xff] }
  0x35   :  { %3369 = vmatpush.bf16.msrb.mxu3 %v5555_v61  ;;  %v5605_v56 = vld [vmem:[%s7159_s1 + $0x368] sm:$0xff]  ;;  %v5612_v59 = vld [vmem:[%s7159_s1 + $0x3a0] sm:$0xff] }
  0x36   :  { %3331 = vmatpush.bf16.msrb.mxu0 %v5530_v62  ;;  %v5621_v57 = vld [vmem:[%s7159_s1 + $0x3e8] sm:$0xff]  ;;  %v5604_v60 = vld [vmem:[%s7159_s1 + $0x360] sm:$0xff]  ;;  %v5595_v62 = vld [vmem:[%s7159_s1 + $0x318] sm:$0xff] }
  0x37   :  { %3357 = vmatpush.bf16.msrb.mxu2 %v5546_v63  ;;  %v5620_v61 = vld [vmem:[%s7159_s1 + $0x3e0] sm:$0xff]  ;;  %v5611_v63 = vld [vmem:[%s7159_s1 + $0x398] sm:$0xff] }
  0x38   :  { %3344 = vmatpush.bf16.msrb.mxu1 %v5538_v0  ;;  %v5603_v0 = vld [vmem:[%s7159_s1 + $0x358] sm:$0xff] }
  0x39   :  { %3370 = vmatpush.bf16.msrb.mxu3 %v5554_v1  ;;  %v5619_v1 = vld [vmem:[%s7159_s1 + $0x3d8] sm:$0xff] }
  0x3a   :  { %3332 = vmatpush.bf16.msrb.mxu0 %v5529_v2  ;;  %v5594_v2 = vld [vmem:[%s7159_s1 + $0x310] sm:$0xff] }
  0x3b   :  { %3358 = vmatpush.bf16.msrb.mxu2 %v5545_v3  ;;  %v5610_v3 = vld [vmem:[%s7159_s1 + $0x390] sm:$0xff] }
  0x3c   :  { %3345 = vmatpush.bf16.msrb.mxu1 %v5537_v4  ;;  %v5602_v4 = vld [vmem:[%s7159_s1 + $0x350] sm:$0xff] }
  0x3d   :  { %3371 = vmatpush.bf16.msrb.mxu3 %v5553_v5  ;;  %v5618_v5 = vld [vmem:[%s7159_s1 + $0x3d0] sm:$0xff] }
  0x3e   :  { %3333 = vmatpush.bf16.msrb.mxu0 %v5528_v6  ;;  %v5593_v6 = vld [vmem:[%s7159_s1 + $0x308] sm:$0xff] }
  0x3f   :  { %3359 = vmatpush.bf16.msrb.mxu2 %v5544_v7  ;;  %v5609_v7 = vld [vmem:[%s7159_s1 + $0x388] sm:$0xff] }
  0x40   :  { %3346 = vmatpush.bf16.msrb.mxu1 %v5536_v10  ;;  %v827_v10 = vld [vmem:[#allocation1 + $0x2d] sm:$0xff] }
  0x41   :  { %3372 = vmatpush.bf16.msrb.mxu3 %v5552_v11  ;;  %3334 = vmatmul.bf16.vlgmr.msrb.gmra.mxu0 %v6068_v48  ;;  %v823_v48 = vld [vmem:[#allocation1 + $0x9] sm:$0xff]  ;;  %v829_v11 = vld [vmem:[#allocation1 + $0x3f] sm:$0xff] }
  0x42   :  { %3378 = vmatpush.bf16.msra.mxu0 %v5567_v8  ;;  %3360 = vmatmul.bf16.vlgmr.msrb.gmra.mxu2 %v6066_v47  ;;  %v5623_v47 = vld [vmem:[%s7159_s1 + $0x3f8] sm:$0xff]  ;;  %v826_v8 = vld [vmem:[#allocation1 + $0x24] sm:$0xff] }
  0x43   :  { %3404 = vmatpush.bf16.msra.mxu2 %v5583_v9  ;;  %3347 = vmatmul.bf16.vlgmr.msrb.gmra.mxu1 %v6075_v51  ;;  %v5614_v51 = vld [vmem:[%s7159_s1 + $0x3b0] sm:$0xff] }
  0x44   :  { %3391 = vmatpush.bf16.msra.mxu1 %v5575_v12  ;;  %3373 = vmatmul.bf16.vlgmr.msrb.gmra.mxu3 %v6070_v49  ;;  %v825_v49 = vld [vmem:[#allocation1 + $0x1b] sm:$0xff]  ;;  %v17_v12 = vld [vmem:[%s7158_s0 + $0x10] sm:$0xff] }
  0x45   :  { %3417 = vmatpush.bf16.msra.mxu3 %v5591_v13  ;;  %v828_v9 = vld [vmem:[#allocation1 + $0x36] sm:$0xff]  ;;  %v5601_v13 = vld [vmem:[%s7159_s1 + $0x348] sm:$0xff] }
  0x46   :  { %3379 = vmatpush.bf16.msra.mxu0 %v5566_v14  ;;  %831 = vst [vmem:[#allocation1] ss:$9 sm:$0xff] %v17_v12  ;;  %v5617_v14 = vld [vmem:[%s7159_s1 + $0x3c8] sm:$0xff]  ;;  %v5675_v12 = vld [vmem:[%s7159_s1 + $0x598] sm:$0xff] }
  0x47   :  { %3405 = vmatpush.bf16.msra.mxu2 %v5582_v15  ;;  %v5592_v15 = vld [vmem:[%s7159_s1 + $0x300] sm:$0xff] }
  0x48   :  { %3392 = vmatpush.bf16.msra.mxu1 %v5574_v16  ;;  %v5608_v16 = vld [vmem:[%s7159_s1 + $0x380] sm:$0xff] }
  0x49   :  { %3418 = vmatpush.bf16.msra.mxu3 %v5590_v17  ;;  %v5631_v17 = vld [vmem:[%s7159_s1 + $0x438] sm:$0xff] }
  0x4a   :  { %3380 = vmatpush.bf16.msra.mxu0 %v5565_v18  ;;  %v5647_v18 = vld [vmem:[%s7159_s1 + $0x4b8] sm:$0xff] }
  0x4b   :  { %3406 = vmatpush.bf16.msra.mxu2 %v5581_v19  ;;  %v5600_v19 = vld [vmem:[%s7159_s1 + $0x340] sm:$0xff] }
  0x4c   :  { %3393 = vmatpush.bf16.msra.mxu1 %v5573_v20  ;;  %v5616_v20 = vld [vmem:[%s7159_s1 + $0x3c0] sm:$0xff] }
  0x4d   :  { %3419 = vmatpush.bf16.msra.mxu3 %v5589_v21  ;;  %v5639_v21 = vld [vmem:[%s7159_s1 + $0x478] sm:$0xff] }
  0x4e   :  { %3381 = vmatpush.bf16.msra.mxu0 %v5564_v22  ;;  %v5655_v22 = vld [vmem:[%s7159_s1 + $0x4f8] sm:$0xff] }
  0x4f   :  { %3407 = vmatpush.bf16.msra.mxu2 %v5580_v23  ;;  %v5630_v23 = vld [vmem:[%s7159_s1 + $0x430] sm:$0xff] }
  0x50   :  { %3394 = vmatpush.bf16.msra.mxu1 %v5572_v24  ;;  %v5646_v24 = vld [vmem:[%s7159_s1 + $0x4b0] sm:$0xff] }
  0x51   :  { %3420 = vmatpush.bf16.msra.mxu3 %v5588_v25  ;;  %v5638_v25 = vld [vmem:[%s7159_s1 + $0x470] sm:$0xff] }
  0x52   :  { %3382 = vmatpush.bf16.msra.mxu0 %v5563_v26  ;;  %v5654_v26 = vld [vmem:[%s7159_s1 + $0x4f0] sm:$0xff] }
  0x53   :  { %3408 = vmatpush.bf16.msra.mxu2 %v5579_v27  ;;  %v5629_v27 = vld [vmem:[%s7159_s1 + $0x428] sm:$0xff] }
  0x54   :  { %3395 = vmatpush.bf16.msra.mxu1 %v5571_v28  ;;  %v5645_v28 = vld [vmem:[%s7159_s1 + $0x4a8] sm:$0xff] }
  0x55   :  { %3421 = vmatpush.bf16.msra.mxu3 %v5587_v29  ;;  %v5637_v29 = vld [vmem:[%s7159_s1 + $0x468] sm:$0xff] }
  0x56   :  { %3383 = vmatpush.bf16.msra.mxu0 %v5562_v30  ;;  %v5653_v30 = vld [vmem:[%s7159_s1 + $0x4e8] sm:$0xff] }
  0x57   :  { %3409 = vmatpush.bf16.msra.mxu2 %v5578_v31  ;;  %v5628_v31 = vld [vmem:[%s7159_s1 + $0x420] sm:$0xff] }
  0x58   :  { %3396 = vmatpush.bf16.msra.mxu1 %v5570_v32  ;;  %v5644_v32 = vld [vmem:[%s7159_s1 + $0x4a0] sm:$0xff] }
  0x59   :  { %3422 = vmatpush.bf16.msra.mxu3 %v5586_v33  ;;  %v5636_v33 = vld [vmem:[%s7159_s1 + $0x460] sm:$0xff] }
  0x5a   :  { %3384 = vmatpush.bf16.msra.mxu0 %v5561_v34  ;;  %v5652_v34 = vld [vmem:[%s7159_s1 + $0x4e0] sm:$0xff] }
  0x5b   :  { %3410 = vmatpush.bf16.msra.mxu2 %v5577_v35  ;;  %v5627_v35 = vld [vmem:[%s7159_s1 + $0x418] sm:$0xff] }
  0x5c   :  { %3397 = vmatpush.bf16.msra.mxu1 %v5569_v36  ;;  %v5643_v36 = vld [vmem:[%s7159_s1 + $0x498] sm:$0xff] }
  0x5d   :  { %3423 = vmatpush.bf16.msra.mxu3 %v5585_v37  ;;  %v5635_v37 = vld [vmem:[%s7159_s1 + $0x458] sm:$0xff] }
  0x5e   :  { %3385 = vmatpush.bf16.msra.mxu0 %v5560_v38  ;;  %v5651_v38 = vld [vmem:[%s7159_s1 + $0x4d8] sm:$0xff] }
  0x5f   :  { %3411 = vmatpush.bf16.msra.mxu2 %v5576_v39  ;;  %v5626_v39 = vld [vmem:[%s7159_s1 + $0x410] sm:$0xff] }
  0x60   :  { %3398 = vmatpush.bf16.msra.mxu1 %v5568_v42  ;;  %v5650_v42 = vld [vmem:[%s7159_s1 + $0x4d0] sm:$0xff] }
  0x61   :  { %3424 = vmatpush.bf16.msra.mxu3 %v5584_v43  ;;  %3386 = vmatmul.bf16.vlgmr.msra.gmra.mxu0 %v822_v45  ;;  %v5625_v43 = vld [vmem:[%s7159_s1 + $0x408] sm:$0xff] }
  0x62   :  { %3430 = vmatpush.bf16.msrb.mxu0 %v5599_v40  ;;  %3412 = vmatmul.bf16.vlgmr.msra.gmra.mxu2 %v824_v46  ;;  %v5642_v40 = vld [vmem:[%s7159_s1 + $0x490] sm:$0xff]  ;;  %v5633_v45 = vld [vmem:[%s7159_s1 + $0x448] sm:$0xff] }
  0x63   :  { %3456 = vmatpush.bf16.msrb.mxu2 %v5615_v41  ;;  %3399 = vmatmul.bf16.vlgmr.msra.gmra.mxu1 %v823_v48  ;;  %v5634_v41 = vld [vmem:[%s7159_s1 + $0x450] sm:$0xff]  ;;  %v5649_v46 = vld [vmem:[%s7159_s1 + $0x4c8] sm:$0xff]  ;;  %v5640_v48 = vld [vmem:[%s7159_s1 + $0x480] sm:$0xff] }
  0x64   :  { %3443 = vmatpush.bf16.msrb.mxu1 %v5607_v44  ;;  %3425 = vmatmul.bf16.vlgmr.msra.gmra.mxu3 %v825_v49  ;;  %v5641_v44 = vld [vmem:[%s7159_s1 + $0x488] sm:$0xff]  ;;  %v5663_v49 = vld [vmem:[%s7159_s1 + $0x538] sm:$0xff] }
  0x65   :  { %3469 = vmatpush.bf16.msrb.mxu3 %v5623_v47  ;;  %v5624_v47 = vld [vmem:[%s7159_s1 + $0x400] sm:$0xff] }
  0x66   :  { %3431 = vmatpush.bf16.msrb.mxu0 %v5598_v50  ;;  %v5679_v50 = vld [vmem:[%s7159_s1 + $0x5b8] sm:$0xff] }
  0x67   :  { %3457 = vmatpush.bf16.msrb.mxu2 %v5614_v51  ;;  %v5632_v51 = vld [vmem:[%s7159_s1 + $0x440] sm:$0xff] }
  0x68   :  { %3444 = vmatpush.bf16.msrb.mxu1 %v5606_v52  ;;  %v5648_v52 = vld [vmem:[%s7159_s1 + $0x4c0] sm:$0xff] }
  0x69   :  { %3470 = vmatpush.bf16.msrb.mxu3 %v5622_v53  ;;  %v5671_v53 = vld [vmem:[%s7159_s1 + $0x578] sm:$0xff] }
  0x6a   :  { %3432 = vmatpush.bf16.msrb.mxu0 %v5597_v54  ;;  %v832_v54 = vld [vmem:[#allocation1] sm:$0xff] }
  0x6b   :  { %3458 = vmatpush.bf16.msrb.mxu2 %v5613_v55  ;;  %v834_v55 = vld [vmem:[#allocation1 + $0x12] sm:$0xff] }
  0x6c   :  { %3445 = vmatpush.bf16.msrb.mxu1 %v5605_v56  ;;  %v5687_v56 = vld [vmem:[%s7159_s1 + $0x5f8] sm:$0xff] }
  0x6d   :  { %3471 = vmatpush.bf16.msrb.mxu3 %v5621_v57  ;;  %v833_v57 = vld [vmem:[#allocation1 + $0x9] sm:$0xff] }
  0x6e   :  { %3433 = vmatpush.bf16.msrb.mxu0 %v5596_v58  ;;  %v835_v58 = vld [vmem:[#allocation1 + $0x1b] sm:$0xff] }
  0x6f   :  { %3459 = vmatpush.bf16.msrb.mxu2 %v5612_v59  ;;  %v5662_v59 = vld [vmem:[%s7159_s1 + $0x530] sm:$0xff] }
  0x70   :  { %3446 = vmatpush.bf16.msrb.mxu1 %v5604_v60  ;;  %v5678_v60 = vld [vmem:[%s7159_s1 + $0x5b0] sm:$0xff] }
  0x71   :  { %3472 = vmatpush.bf16.msrb.mxu3 %v5620_v61  ;;  %v5670_v61 = vld [vmem:[%s7159_s1 + $0x570] sm:$0xff] }
  0x72   :  { %3434 = vmatpush.bf16.msrb.mxu0 %v5595_v62  ;;  %v5686_v62 = vld [vmem:[%s7159_s1 + $0x5f0] sm:$0xff] }
  0x73   :  { %3460 = vmatpush.bf16.msrb.mxu2 %v5611_v63  ;;  %v5661_v63 = vld [vmem:[%s7159_s1 + $0x528] sm:$0xff] }
  0x74   :  { %3447 = vmatpush.bf16.msrb.mxu1 %v5603_v0  ;;  %v5677_v0 = vld [vmem:[%s7159_s1 + $0x5a8] sm:$0xff] }
  0x75   :  { %3473 = vmatpush.bf16.msrb.mxu3 %v5619_v1  ;;  %v5669_v1 = vld [vmem:[%s7159_s1 + $0x568] sm:$0xff] }
  0x76   :  { %3435 = vmatpush.bf16.msrb.mxu0 %v5594_v2  ;;  %v5685_v2 = vld [vmem:[%s7159_s1 + $0x5e8] sm:$0xff] }
  0x77   :  { %3461 = vmatpush.bf16.msrb.mxu2 %v5610_v3  ;;  %v5889_v3 = vld [vmem:[%s7160_s2] ss:$0 sm:$0xff] }
  0x78   :  { %3448 = vmatpush.bf16.msrb.mxu1 %v5602_v4  ;;  %v5660_v4 = vld [vmem:[%s7159_s1 + $0x520] sm:$0xff] }
  0x79   :  { %3474 = vmatpush.bf16.msrb.mxu3 %v5618_v5  ;;  %v5676_v5 = vld [vmem:[%s7159_s1 + $0x5a0] sm:$0xff] }
  0x7a   :  { %3436 = vmatpush.bf16.msrb.mxu0 %v5593_v6 }
  0x7b   :  { %3462 = vmatpush.bf16.msrb.mxu2 %v5609_v7  ;;  %v5668_v7 = vld [vmem:[%s7159_s1 + $0x560] sm:$0xff] }
  0x7c   :  { %3449 = vmatpush.bf16.msrb.mxu1 %v5601_v13 }
  0x7d   :  { %3475 = vmatpush.bf16.msrb.mxu3 %v5617_v14  ;;  %v5667_v14 = vld [vmem:[%s7159_s1 + $0x558] sm:$0xff] }
  0x7e   :  { %3437 = vmatpush.bf16.msrb.mxu0 %v5592_v15  ;;  %v5683_v15 = vld [vmem:[%s7159_s1 + $0x5d8] sm:$0xff] }
  0x7f   :  { %3463 = vmatpush.bf16.msrb.mxu2 %v5608_v16 }
  0x80   :  { %3450 = vmatpush.bf16.msrb.mxu1 %v5600_v19 }
  0x81   :  { %3476 = vmatpush.bf16.msrb.mxu3 %v5616_v20  ;;  %3438 = vmatmul.bf16.vlgmr.msrb.gmra.mxu0 %v826_v8  ;;  %v5684_v8 = vld [vmem:[%s7159_s1 + $0x5e0] sm:$0xff] }
  0x82   :  { %3482 = vmatpush.bf16.msra.mxu0 %v5631_v17  ;;  %3464 = vmatmul.bf16.vlgmr.msrb.gmra.mxu2 %v828_v9  ;;  %v5658_v17 = vld [vmem:[%s7159_s1 + $0x510] sm:$0xff] }
  0x83   :  { %3508 = vmatpush.bf16.msra.mxu2 %v5647_v18  ;;  %3451 = vmatmul.bf16.vlgmr.msrb.gmra.mxu1 %v827_v10  ;;  %v5674_v18 = vld [vmem:[%s7159_s1 + $0x590] sm:$0xff] }
  0x84   :  { %3495 = vmatpush.bf16.msra.mxu1 %v5639_v21  ;;  %3477 = vmatmul.bf16.vlgmr.msrb.gmra.mxu3 %v829_v11  ;;  %v5659_v11 = vld [vmem:[%s7159_s1 + $0x518] sm:$0xff] }
  0x85   :  { %3521 = vmatpush.bf16.msra.mxu3 %v5655_v22  ;;  %v5666_v22 = vld [vmem:[%s7159_s1 + $0x550] sm:$0xff] }
  0x86   :  { %3483 = vmatpush.bf16.msra.mxu0 %v5630_v23  ;;  %v5682_v23 = vld [vmem:[%s7159_s1 + $0x5d0] sm:$0xff] }
  0x87   :  { %3509 = vmatpush.bf16.msra.mxu2 %v5646_v24  ;;  %v5657_v24 = vld [vmem:[%s7159_s1 + $0x508] sm:$0xff] }
  0x88   :  { %3496 = vmatpush.bf16.msra.mxu1 %v5638_v25 }
  0x89   :  { %3522 = vmatpush.bf16.msra.mxu3 %v5654_v26  ;;  %v5673_v26 = vld [vmem:[%s7159_s1 + $0x588] sm:$0xff] }
  0x8a   :  { %3484 = vmatpush.bf16.msra.mxu0 %v5629_v27  ;;  %v836_v27 = vld [vmem:[#allocation1 + $0x24] sm:$0xff] }
  0x8b   :  { %3510 = vmatpush.bf16.msra.mxu2 %v5645_v28  ;;  %v838_v28 = vld [vmem:[#allocation1 + $0x36] sm:$0xff] }
  0x8c   :  { %3497 = vmatpush.bf16.msra.mxu1 %v5637_v29 }
  0x8d   :  { %3523 = vmatpush.bf16.msra.mxu3 %v5653_v30  ;;  %v837_v30 = vld [vmem:[#allocation1 + $0x2d] sm:$0xff] }
  0x8e   :  { %3485 = vmatpush.bf16.msra.mxu0 %v5628_v31  ;;  %v839_v31 = vld [vmem:[#allocation1 + $0x3f] sm:$0xff] }
  0x8f   :  { %3511 = vmatpush.bf16.msra.mxu2 %v5644_v32  ;;  %v18_v32 = vld [vmem:[%s7158_s0 + $0x18] sm:$0xff] }
  0x90   :  { %3498 = vmatpush.bf16.msra.mxu1 %v5636_v33  ;;  %841 = vst [vmem:[#allocation1] ss:$9 sm:$0xff] %v18_v32  ;;  %v5665_v33 = vld [vmem:[%s7159_s1 + $0x548] sm:$0xff]  ;;  %v5750_v32 = vld [vmem:[%s7159_s1 + $0x7f0] sm:$0xff] }
  0x91   :  { %3524 = vmatpush.bf16.msra.mxu3 %v5652_v34  ;;  %v5681_v34 = vld [vmem:[%s7159_s1 + $0x5c8] sm:$0xff] }
  0x92   :  { %3486 = vmatpush.bf16.msra.mxu0 %v5627_v35 }
  0x93   :  { %3512 = vmatpush.bf16.msra.mxu2 %v5643_v36  ;;  %v5656_v36 = vld [vmem:[%s7159_s1 + $0x500] sm:$0xff] }
  0x94   :  { %3499 = vmatpush.bf16.msra.mxu1 %v5635_v37  ;;  %v5672_v37 = vld [vmem:[%s7159_s1 + $0x580] sm:$0xff] }
  0x95   :  { %3525 = vmatpush.bf16.msra.mxu3 %v5651_v38  ;;  %v5695_v38 = vld [vmem:[%s7159_s1 + $0x638] sm:$0xff] }
  0x96   :  { %3487 = vmatpush.bf16.msra.mxu0 %v5626_v39  ;;  %v5711_v39 = vld [vmem:[%s7159_s1 + $0x6b8] sm:$0xff] }
  0x97   :  { %3513 = vmatpush.bf16.msra.mxu2 %v5642_v40 }
  0x98   :  { %3500 = vmatpush.bf16.msra.mxu1 %v5634_v41  ;;  %v5664_v41 = vld [vmem:[%s7159_s1 + $0x540] sm:$0xff] }
  0x99   :  { %3526 = vmatpush.bf16.msra.mxu3 %v5650_v42  ;;  %v5680_v42 = vld [vmem:[%s7159_s1 + $0x5c0] sm:$0xff] }
  0x9a   :  { %3488 = vmatpush.bf16.msra.mxu0 %v5625_v43  ;;  %v5703_v43 = vld [vmem:[%s7159_s1 + $0x678] sm:$0xff] }
  0x9b   :  { %3514 = vmatpush.bf16.msra.mxu2 %v5641_v44  ;;  %v5719_v44 = vld [vmem:[%s7159_s1 + $0x6f8] sm:$0xff] }
  0x9c   :  { %3501 = vmatpush.bf16.msra.mxu1 %v5633_v45  ;;  %v5694_v45 = vld [vmem:[%s7159_s1 + $0x630] sm:$0xff] }
  0x9d   :  { %3527 = vmatpush.bf16.msra.mxu3 %v5649_v46  ;;  %v5710_v46 = vld [vmem:[%s7159_s1 + $0x6b0] sm:$0xff] }
  0x9e   :  { %3489 = vmatpush.bf16.msra.mxu0 %v5624_v47  ;;  %v3283_v6 = vpop.f32.mrf.mxu0  ;;  %v5702_v47 = vld [vmem:[%s7159_s1 + $0x670] sm:$0xff] }
  0x9f   :  { %3515 = vmatpush.bf16.msra.mxu2 %v5640_v48  ;;  %v3284_v9 = vadd.f32 %v5889_v3, %v3283_v6  ;;  %v5718_v48 = vld [vmem:[%s7159_s1 + $0x6f0] sm:$0xff] }
  0xa0   :  { %3502 = vmatpush.bf16.msra.mxu1 %v5632_v51  ;;  %v3296_v10 = vpop.f32.mrf.mxu1  ;;  %v5701_v51 = vld [vmem:[%s7159_s1 + $0x668] sm:$0xff]  ;;  %v5690_v3 = vld [vmem:[%s7159_s1 + $0x610] sm:$0xff] }
  0xa1   :  { %3528 = vmatpush.bf16.msra.mxu3 %v5648_v52  ;;  %3490 = vmatmul.bf16.vlgmr.msra.gmra.mxu0 %v832_v54  ;;  %v3297_v13 = vadd.f32 %v3296_v10, %v3284_v9  ;;  %v5717_v52 = vld [vmem:[%s7159_s1 + $0x6e8] sm:$0xff]  ;;  %v5708_v54 = vld [vmem:[%s7159_s1 + $0x6a0] sm:$0xff]  ;;  %v5714_v9 = vld [vmem:[%s7159_s1 + $0x6d0] sm:$0xff] }
  0xa2   :  { %3534 = vmatpush.bf16.msrb.mxu0 %v5663_v49  ;;  %3516 = vmatmul.bf16.vlgmr.msra.gmra.mxu2 %v834_v55  ;;  %v5693_v49 = vld [vmem:[%s7159_s1 + $0x628] sm:$0xff] }
  0xa3   :  { %3560 = vmatpush.bf16.msrb.mxu2 %v5679_v50  ;;  %3503 = vmatmul.bf16.vlgmr.msra.gmra.mxu1 %v833_v57  ;;  %v5709_v50 = vld [vmem:[%s7159_s1 + $0x6a8] sm:$0xff]  ;;  %v5700_v57 = vld [vmem:[%s7159_s1 + $0x660] sm:$0xff] }
  0xa4   :  { %3547 = vmatpush.bf16.msrb.mxu1 %v5671_v53  ;;  %3529 = vmatmul.bf16.vlgmr.msra.gmra.mxu3 %v835_v58  ;;  %v5692_v53 = vld [vmem:[%s7159_s1 + $0x620] sm:$0xff] }
  0xa5   :  { %3573 = vmatpush.bf16.msrb.mxu3 %v5687_v56  ;;  %v3309_v16 = vpop.f32.mrf.mxu2  ;;  %v5716_v58 = vld [vmem:[%s7159_s1 + $0x6e0] sm:$0xff] }
  0xa6   :  { %3535 = vmatpush.bf16.msrb.mxu0 %v5662_v59  ;;  %v3310_v19 = vadd.f32 %v3309_v16, %v3297_v13  ;;  %v3285_v21 = vpop.f32.mrf.mxu0  ;;  %v5697_v13 = vld [vmem:[%s7159_s1 + $0x648] sm:$0xff]  ;;  %v5688_v16 = vld [vmem:[%s7159_s1 + $0x600] sm:$0xff] }
  0xa7   :  { %3561 = vmatpush.bf16.msrb.mxu2 %v5678_v60  ;;  %v3322_v20 = vpop.f32.mrf.mxu3  ;;  %v5696_v21 = vld [vmem:[%s7159_s1 + $0x640] sm:$0xff] }
  0xa8   :  { %3548 = vmatpush.bf16.msrb.mxu1 %v5670_v61  ;;  %v3323_v25 = vadd.f32 %v3322_v20, %v3310_v19  ;;  %v3298_v29 = vpop.f32.mrf.mxu1  ;;  %v5691_v61 = vld [vmem:[%s7159_s1 + $0x618] sm:$0xff] }
  0xa9   :  { %3574 = vmatpush.bf16.msrb.mxu3 %v5686_v62  ;;  %v5707_v62 = vld [vmem:[%s7159_s1 + $0x698] sm:$0xff]  ;;  %v5726_v29 = vld [vmem:[%s7159_s1 + $0x730] sm:$0xff] }
  0xaa   :  { %3536 = vmatpush.bf16.msrb.mxu0 %v5661_v63  ;;  %v5699_v63 = vld [vmem:[%s7159_s1 + $0x658] sm:$0xff] }
  0xab   :  { %3562 = vmatpush.bf16.msrb.mxu2 %v5677_v0  ;;  %v5715_v0 = vld [vmem:[%s7159_s1 + $0x6d8] sm:$0xff] }
  0xac   :  { %3549 = vmatpush.bf16.msrb.mxu1 %v5669_v1  ;;  %v5727_v19 = vld [vmem:[%s7159_s1 + $0x738] sm:$0xff] }
  0xad   :  { %3575 = vmatpush.bf16.msrb.mxu3 %v5685_v2  ;;  %v3311_v35 = vpop.f32.mrf.mxu2  ;;  %v5743_v20 = vld [vmem:[%s7159_s1 + $0x7b8] sm:$0xff] }
  0xae   :  { %3537 = vmatpush.bf16.msrb.mxu0 %v5660_v4  ;;  %v5706_v4 = vld [vmem:[%s7159_s1 + $0x690] sm:$0xff]  ;;  %v5733_v35 = vld [vmem:[%s7159_s1 + $0x768] sm:$0xff] }
  0xaf   :  { %3563 = vmatpush.bf16.msrb.mxu2 %v5676_v5  ;;  %v3324_v40 = vpop.f32.mrf.mxu3 }
  0xb0   :  { %3550 = vmatpush.bf16.msrb.mxu1 %v5668_v7  ;;  %v5740_v40 = vld [vmem:[%s7159_s1 + $0x7a0] sm:$0xff] }
  0xb1   :  { %3576 = vmatpush.bf16.msrb.mxu3 %v5684_v8  ;;  %v5698_v8 = vld [vmem:[%s7159_s1 + $0x650] sm:$0xff] }
  0xb2   :  { %3538 = vmatpush.bf16.msrb.mxu0 %v5659_v11  ;;  %v5689_v11 = vld [vmem:[%s7159_s1 + $0x608] sm:$0xff] }
  0xb3   :  { %3564 = vmatpush.bf16.msrb.mxu2 %v5675_v12  ;;  %v5705_v12 = vld [vmem:[%s7159_s1 + $0x688] sm:$0xff] }
  0xb4   :  { %3551 = vmatpush.bf16.msrb.mxu1 %v5667_v14  ;;  %v5713_v14 = vld [vmem:[%s7159_s1 + $0x6c8] sm:$0xff] }
  0xb5   :  { %3577 = vmatpush.bf16.msrb.mxu3 %v5683_v15 }
  0xb6   :  { %3539 = vmatpush.bf16.msrb.mxu0 %v5658_v17  ;;  %v5704_v17 = vld [vmem:[%s7159_s1 + $0x680] sm:$0xff] }
  0xb7   :  { %3565 = vmatpush.bf16.msrb.mxu2 %v5674_v18 }
  0xb8   :  { %3552 = vmatpush.bf16.msrb.mxu1 %v5666_v22  ;;  %v5712_v22 = vld [vmem:[%s7159_s1 + $0x6c0] sm:$0xff] }
  0xb9   :  { %3578 = vmatpush.bf16.msrb.mxu3 %v5682_v23  ;;  %v5735_v23 = vld [vmem:[%s7159_s1 + $0x778] sm:$0xff] }
  0xba   :  { %3540 = vmatpush.bf16.msrb.mxu0 %v5657_v24  ;;  %v842_v24 = vld [vmem:[#allocation1] sm:$0xff] }
  0xbb   :  { %3566 = vmatpush.bf16.msrb.mxu2 %v5673_v26  ;;  %v5751_v26 = vld [vmem:[%s7159_s1 + $0x7f8] sm:$0xff] }
  0xbc   :  { %3553 = vmatpush.bf16.msrb.mxu1 %v5665_v33  ;;  %v5725_v33 = vld [vmem:[%s7159_s1 + $0x728] sm:$0xff] }
  0xbd   :  { %3579 = vmatpush.bf16.msrb.mxu3 %v5681_v34  ;;  %v5741_v34 = vld [vmem:[%s7159_s1 + $0x7a8] sm:$0xff] }
  0xbe   :  { %3541 = vmatpush.bf16.msrb.mxu0 %v5656_v36  ;;  %v3335_v55 = vpop.f32.mrf.mxu0  ;;  %v5749_v36 = vld [vmem:[%s7159_s1 + $0x7e8] sm:$0xff] }
  0xbf   :  { %3567 = vmatpush.bf16.msrb.mxu2 %v5672_v37  ;;  %v3336_v56 = vadd.f32 %v3335_v55, %v3323_v25  ;;  %v844_v25 = vld [vmem:[#allocation1 + $0x12] sm:$0xff] }
  0xc0   :  { %3554 = vmatpush.bf16.msrb.mxu1 %v5664_v41  ;;  %v3348_v59 = vpop.f32.mrf.mxu1  ;;  %v5738_v55 = vld [vmem:[%s7159_s1 + $0x790] sm:$0xff] }
  0xc1   :  { %3580 = vmatpush.bf16.msrb.mxu3 %v5680_v42  ;;  %3542 = vmatmul.bf16.vlgmr.msrb.gmra.mxu0 %v836_v27  ;;  %v3349_v60 = vadd.f32 %v3348_v59, %v3336_v56  ;;  %v843_v27 = vld [vmem:[#allocation1 + $0x9] sm:$0xff] }
  0xc2   :  { %3586 = vmatpush.bf16.msra.mxu0 %v5695_v38  ;;  %3568 = vmatmul.bf16.vlgmr.msrb.gmra.mxu2 %v838_v28  ;;  %v845_v28 = vld [vmem:[#allocation1 + $0x1b] sm:$0xff]  ;;  %v5721_v59 = vld [vmem:[%s7159_s1 + $0x708] sm:$0xff] }
  0xc3   :  { %3612 = vmatpush.bf16.msra.mxu2 %v5711_v39  ;;  %3555 = vmatmul.bf16.vlgmr.msrb.gmra.mxu1 %v837_v30  ;;  %v5742_v30 = vld [vmem:[%s7159_s1 + $0x7b0] sm:$0xff]  ;;  %v5724_v39 = vld [vmem:[%s7159_s1 + $0x720] sm:$0xff] }
  0xc4   :  { %3599 = vmatpush.bf16.msra.mxu1 %v5703_v43  ;;  %3581 = vmatmul.bf16.vlgmr.msrb.gmra.mxu3 %v839_v31  ;;  %v5734_v31 = vld [vmem:[%s7159_s1 + $0x770] sm:$0xff]  ;;  %v5732_v43 = vld [vmem:[%s7159_s1 + $0x760] sm:$0xff] }
  0xc5   :  { %3625 = vmatpush.bf16.msra.mxu3 %v5719_v44  ;;  %v3361_v1 = vpop.f32.mrf.mxu2  ;;  %v5748_v44 = vld [vmem:[%s7159_s1 + $0x7e0] sm:$0xff] }
  0xc6   :  { %3587 = vmatpush.bf16.msra.mxu0 %v5694_v45  ;;  %v3362_v2 = vadd.f32 %v3361_v1, %v3349_v60  ;;  %v3337_v6 = vpop.f32.mrf.mxu0  ;;  %v5723_v45 = vld [vmem:[%s7159_s1 + $0x718] sm:$0xff]  ;;  %v5737_v60 = vld [vmem:[%s7159_s1 + $0x788] sm:$0xff] }
  0xc7   :  { %3613 = vmatpush.bf16.msra.mxu2 %v5710_v46  ;;  %v3374_v5 = vpop.f32.mrf.mxu3  ;;  %v5739_v46 = vld [vmem:[%s7159_s1 + $0x798] sm:$0xff]  ;;  %v5720_v6 = vld [vmem:[%s7159_s1 + $0x700] sm:$0xff] }
  0xc8   :  { %3600 = vmatpush.bf16.msra.mxu1 %v5702_v47  ;;  %v3375_v7 = vadd.f32 %v3374_v5, %v3362_v2  ;;  %v3350_v10 = vpop.f32.mrf.mxu1  ;;  %v19_v2 = vld [vmem:[%s7158_s0 + $0x20] sm:$0xff] }
  0xc9   :  { %3626 = vmatpush.bf16.msra.mxu3 %v5718_v48  ;;  %v5728_v10 = vld [vmem:[%s7159_s1 + $0x740] sm:$0xff] }
  0xca   :  { %3588 = vmatpush.bf16.msra.mxu0 %v5693_v49  ;;  %v5731_v49 = vld [vmem:[%s7159_s1 + $0x758] sm:$0xff] }
  0xcb   :  { %3614 = vmatpush.bf16.msra.mxu2 %v5709_v50  ;;  %v5747_v50 = vld [vmem:[%s7159_s1 + $0x7d8] sm:$0xff] }
  0xcc   :  { %3601 = vmatpush.bf16.msra.mxu1 %v5701_v51 }
  0xcd   :  { %3627 = vmatpush.bf16.msra.mxu3 %v5717_v52  ;;  %v3363_v15 = vpop.f32.mrf.mxu2 }
  0xce   :  { %3589 = vmatpush.bf16.msra.mxu0 %v5692_v53  ;;  %v5774_v15 = vld [vmem:[%s7159_s1 + $0x8b0] sm:$0xff] }
  0xcf   :  { %3615 = vmatpush.bf16.msra.mxu2 %v5708_v54  ;;  %v3376_v18 = vpop.f32.mrf.mxu3  ;;  %v5722_v54 = vld [vmem:[%s7159_s1 + $0x710] sm:$0xff] }
  0xd0   :  { %3602 = vmatpush.bf16.msra.mxu1 %v5700_v57  ;;  %v5730_v57 = vld [vmem:[%s7159_s1 + $0x750] sm:$0xff]  ;;  %v5757_v18 = vld [vmem:[%s7159_s1 + $0x828] sm:$0xff] }
  0xd1   :  { %3628 = vmatpush.bf16.msra.mxu3 %v5716_v58  ;;  %v5746_v58 = vld [vmem:[%s7159_s1 + $0x7d0] sm:$0xff] }
  0xd2   :  { %3590 = vmatpush.bf16.msra.mxu0 %v5691_v61  ;;  %v846_v61 = vld [vmem:[#allocation1 + $0x24] sm:$0xff] }
  0xd3   :  { %3616 = vmatpush.bf16.msra.mxu2 %v5707_v62  ;;  %v848_v62 = vld [vmem:[#allocation1 + $0x36] sm:$0xff] }
  0xd4   :  { %3603 = vmatpush.bf16.msra.mxu1 %v5699_v63  ;;  %v847_v63 = vld [vmem:[#allocation1 + $0x2d] sm:$0xff] }
  0xd5   :  { %3629 = vmatpush.bf16.msra.mxu3 %v5715_v0  ;;  %v849_v0 = vld [vmem:[#allocation1 + $0x3f] sm:$0xff] }
  0xd6   :  { %3591 = vmatpush.bf16.msra.mxu0 %v5690_v3  ;;  %851 = vst [vmem:[#allocation1] ss:$9 sm:$0xff] %v19_v2  ;;  %v5729_v3 = vld [vmem:[%s7159_s1 + $0x748] sm:$0xff] }
  0xd7   :  { %3617 = vmatpush.bf16.msra.mxu2 %v5706_v4  ;;  %v5745_v4 = vld [vmem:[%s7159_s1 + $0x7c8] sm:$0xff] }
  0xd8   :  { %3604 = vmatpush.bf16.msra.mxu1 %v5698_v8  ;;  %v5759_v8 = vld [vmem:[%s7159_s1 + $0x838] sm:$0xff]  ;;  %v5789_v2 = vld [vmem:[%s7159_s1 + $0x928] sm:$0xff] }
  0xd9   :  { %3630 = vmatpush.bf16.msra.mxu3 %v5714_v9  ;;  %v5775_v9 = vld [vmem:[%s7159_s1 + $0x8b8] sm:$0xff] }
  0xda   :  { %3592 = vmatpush.bf16.msra.mxu0 %v5689_v11  ;;  %v5744_v11 = vld [vmem:[%s7159_s1 + $0x7c0] sm:$0xff] }
  0xdb   :  { %3618 = vmatpush.bf16.msra.mxu2 %v5705_v12  ;;  %v5767_v12 = vld [vmem:[%s7159_s1 + $0x878] sm:$0xff] }
  0xdc   :  { %3605 = vmatpush.bf16.msra.mxu1 %v5697_v13  ;;  %v5783_v13 = vld [vmem:[%s7159_s1 + $0x8f8] sm:$0xff] }
  0xdd   :  { %3631 = vmatpush.bf16.msra.mxu3 %v5713_v14  ;;  %v5758_v14 = vld [vmem:[%s7159_s1 + $0x830] sm:$0xff] }
  0xde   :  { %3593 = vmatpush.bf16.msra.mxu0 %v5688_v16  ;;  %v3387_v37 = vpop.f32.mrf.mxu0  ;;  %v5766_v16 = vld [vmem:[%s7159_s1 + $0x870] sm:$0xff] }
  0xdf   :  { %3619 = vmatpush.bf16.msra.mxu2 %v5704_v17  ;;  %v3388_v38 = vadd.f32 %v3387_v37, %v3375_v7  ;;  %v5736_v7 = vld [vmem:[%s7159_s1 + $0x780] sm:$0xff]  ;;  %v5782_v17 = vld [vmem:[%s7159_s1 + $0x8f0] sm:$0xff] }
  0xe0   :  { %3606 = vmatpush.bf16.msra.mxu1 %v5696_v21  ;;  %v3400_v41 = vpop.f32.mrf.mxu1  ;;  %v5781_v21 = vld [vmem:[%s7159_s1 + $0x8e8] sm:$0xff] }
  0xe1   :  { %3632 = vmatpush.bf16.msra.mxu3 %v5712_v22  ;;  %3594 = vmatmul.bf16.vlgmr.msra.gmra.mxu0 %v842_v24  ;;  %v3401_v42 = vadd.f32 %v3400_v41, %v3388_v38  ;;  %v5756_v24 = vld [vmem:[%s7159_s1 + $0x820] sm:$0xff] }
  0xe2   :  { %3638 = vmatpush.bf16.msrb.mxu0 %v5727_v19  ;;  %3620 = vmatmul.bf16.vlgmr.msra.gmra.mxu2 %v844_v25  ;;  %v5773_v19 = vld [vmem:[%s7159_s1 + $0x8a8] sm:$0xff]  ;;  %v5772_v25 = vld [vmem:[%s7159_s1 + $0x8a0] sm:$0xff] }
  0xe3   :  { %3664 = vmatpush.bf16.msrb.mxu2 %v5743_v20  ;;  %3607 = vmatmul.bf16.vlgmr.msra.gmra.mxu1 %v843_v27  ;;  %v5765_v20 = vld [vmem:[%s7159_s1 + $0x868] sm:$0xff] }
  0xe4   :  { %3651 = vmatpush.bf16.msrb.mxu1 %v5735_v23  ;;  %3633 = vmatmul.bf16.vlgmr.msra.gmra.mxu3 %v845_v28  ;;  %v5764_v28 = vld [vmem:[%s7159_s1 + $0x860] sm:$0xff] }
  0xe5   :  { %3677 = vmatpush.bf16.msrb.mxu3 %v5751_v26  ;;  %v3413_v47 = vpop.f32.mrf.mxu2 }
  0xe6   :  { %3639 = vmatpush.bf16.msrb.mxu0 %v5726_v29  ;;  %v3414_v48 = vadd.f32 %v3413_v47, %v3401_v42  ;;  %v3389_v52 = vpop.f32.mrf.mxu0  ;;  %v5780_v29 = vld [vmem:[%s7159_s1 + $0x8e0] sm:$0xff]  ;;  %v5762_v42 = vld [vmem:[%s7159_s1 + $0x850] sm:$0xff]  ;;  %v5761_v47 = vld [vmem:[%s7159_s1 + $0x848] sm:$0xff] }
  0xe7   :  { %3665 = vmatpush.bf16.msrb.mxu2 %v5742_v30  ;;  %v3426_v51 = vpop.f32.mrf.mxu3  ;;  %v5755_v30 = vld [vmem:[%s7159_s1 + $0x818] sm:$0xff] }
  0xe8   :  { %3652 = vmatpush.bf16.msrb.mxu1 %v5734_v31  ;;  %v6696_v53 = vadd.f32 %v3426_v51, %v3414_v48  ;;  %v3402_v56 = vpop.f32.mrf.mxu1  ;;  %v5771_v31 = vld [vmem:[%s7159_s1 + $0x898] sm:$0xff]  ;;  %v5777_v48 = vld [vmem:[%s7159_s1 + $0x8c8] sm:$0xff]  ;;  %v5768_v51 = vld [vmem:[%s7159_s1 + $0x880] sm:$0xff] }
  0xe9   :  { %3678 = vmatpush.bf16.msrb.mxu3 %v5750_v32  ;;  %v5791_v52 = vld [vmem:[%s7159_s1 + $0x938] sm:$0xff] }
  0xea   :  { %3640 = vmatpush.bf16.msrb.mxu0 %v5725_v33  ;;  %v5799_v56 = vld [vmem:[%s7159_s1 + $0x978] sm:$0xff] }
  0xeb   :  { %3666 = vmatpush.bf16.msrb.mxu2 %v5741_v34  ;;  %v5763_v34 = vld [vmem:[%s7159_s1 + $0x858] sm:$0xff] }
  0xec   :  { %3653 = vmatpush.bf16.msrb.mxu1 %v5733_v35  ;;  %v5779_v35 = vld [vmem:[%s7159_s1 + $0x8d8] sm:$0xff] }
  0xed   :  { %3679 = vmatpush.bf16.msrb.mxu3 %v5749_v36  ;;  %v3415_v1 = vpop.f32.mrf.mxu2 }
  0xee   :  { %3641 = vmatpush.bf16.msrb.mxu0 %v5724_v39  ;;  %v5754_v39 = vld [vmem:[%s7159_s1 + $0x810] sm:$0xff] }
  0xef   :  { %3667 = vmatpush.bf16.msrb.mxu2 %v5740_v40  ;;  %v3428_v5 = vpop.f32.mrf.mxu3  ;;  %v5770_v40 = vld [vmem:[%s7159_s1 + $0x890] sm:$0xff] }
  0xf0   :  { %3654 = vmatpush.bf16.msrb.mxu1 %v5732_v43  ;;  %v5778_v43 = vld [vmem:[%s7159_s1 + $0x8d0] sm:$0xff]  ;;  %v5813_v5 = vld [vmem:[%s7159_s1 + $0x9e8] sm:$0xff] }
  0xf1   :  { %3680 = vmatpush.bf16.msrb.mxu3 %v5748_v44  ;;  %v5753_v44 = vld [vmem:[%s7159_s1 + $0x808] sm:$0xff]  ;;  %v5814_v1 = vld [vmem:[%s7159_s1 + $0x9f0] sm:$0xff] }
  0xf2   :  { %3642 = vmatpush.bf16.msrb.mxu0 %v5723_v45  ;;  %v5769_v45 = vld [vmem:[%s7159_s1 + $0x888] sm:$0xff] }
  0xf3   :  { %3668 = vmatpush.bf16.msrb.mxu2 %v5739_v46 }
  0xf4   :  { %3655 = vmatpush.bf16.msrb.mxu1 %v5731_v49 }
  0xf5   :  { %3681 = vmatpush.bf16.msrb.mxu3 %v5747_v50  ;;  %v5752_v50 = vld [vmem:[%s7159_s1 + $0x800] sm:$0xff] }
  0xf6   :  { %3643 = vmatpush.bf16.msrb.mxu0 %v5722_v54  ;;  %v5760_v54 = vld [vmem:[%s7159_s1 + $0x840] sm:$0xff] }
  0xf7   :  { %3669 = vmatpush.bf16.msrb.mxu2 %v5738_v55  ;;  %v5776_v55 = vld [vmem:[%s7159_s1 + $0x8c0] sm:$0xff] }
  0xf8   :  { %3656 = vmatpush.bf16.msrb.mxu1 %v5730_v57  ;;  %v852_v57 = vld [vmem:[#allocation1] sm:$0xff] }
  0xf9   :  { %3682 = vmatpush.bf16.msrb.mxu3 %v5746_v58  ;;  %v854_v58 = vld [vmem:[#allocation1 + $0x12] sm:$0xff] }
  0xfa   :  { %3644 = vmatpush.bf16.msrb.mxu0 %v5721_v59  ;;  %v5815_v59 = vld [vmem:[%s7159_s1 + $0x9f8] sm:$0xff] }
  0xfb   :  { %3670 = vmatpush.bf16.msrb.mxu2 %v5737_v60  ;;  %v853_v60 = vld [vmem:[#allocation1 + $0x9] sm:$0xff] }
  0xfc   :  { %3657 = vmatpush.bf16.msrb.mxu1 %v5729_v3  ;;  %v5805_v3 = vld [vmem:[%s7159_s1 + $0x9a8] sm:$0xff] }
  0xfd   :  { %3683 = vmatpush.bf16.msrb.mxu3 %v5745_v4  ;;  %v5797_v4 = vld [vmem:[%s7159_s1 + $0x968] sm:$0xff] }
  0xfe   :  { %3645 = vmatpush.bf16.msrb.mxu0 %v5720_v6  ;;  %v3439_v22 = vpop.f32.mrf.mxu0 }
  0xff   :  { %3671 = vmatpush.bf16.msrb.mxu2 %v5736_v7  ;;  %v3440_v23 = vadd.f32 %v3439_v22, %v6696_v53  ;;  %v5807_v53 = vld [vmem:[%s7159_s1 + $0x9b8] sm:$0xff] }
 0x100   :  { %3658 = vmatpush.bf16.msrb.mxu1 %v5728_v10  ;;  %v3452_v26 = vpop.f32.mrf.mxu1 }
 0x101   :  { %3684 = vmatpush.bf16.msrb.mxu3 %v5744_v11  ;;  %3646 = vmatmul.bf16.vlgmr.msrb.gmra.mxu0 %v846_v61  ;;  %v3453_v27 = vadd.f32 %v3452_v26, %v3440_v23  ;;  %v855_v61 = vld [vmem:[#allocation1 + $0x1b] sm:$0xff]  ;;  %v5786_v23 = vld [vmem:[%s7159_s1 + $0x910] sm:$0xff] }
 0x102   :  { %3690 = vmatpush.bf16.msra.mxu0 %v5759_v8  ;;  %3672 = vmatmul.bf16.vlgmr.msrb.gmra.mxu2 %v848_v62  ;;  %v5790_v62 = vld [vmem:[%s7159_s1 + $0x930] sm:$0xff]  ;;  %v5788_v8 = vld [vmem:[%s7159_s1 + $0x920] sm:$0xff] }
 0x103   :  { %3716 = vmatpush.bf16.msra.mxu2 %v5775_v9  ;;  %3659 = vmatmul.bf16.vlgmr.msrb.gmra.mxu1 %v847_v63  ;;  %v5806_v63 = vld [vmem:[%s7159_s1 + $0x9b0] sm:$0xff]  ;;  %v5804_v9 = vld [vmem:[%s7159_s1 + $0x9a0] sm:$0xff] }
 0x104   :  { %3703 = vmatpush.bf16.msra.mxu1 %v5767_v12  ;;  %3685 = vmatmul.bf16.vlgmr.msrb.gmra.mxu3 %v849_v0  ;;  %v5798_v0 = vld [vmem:[%s7159_s1 + $0x970] sm:$0xff]  ;;  %v5796_v12 = vld [vmem:[%s7159_s1 + $0x960] sm:$0xff] }
 0x105   :  { %3729 = vmatpush.bf16.msra.mxu3 %v5783_v13  ;;  %v3465_v32 = vpop.f32.mrf.mxu2  ;;  %v5812_v13 = vld [vmem:[%s7159_s1 + $0x9e0] sm:$0xff]  ;;  %v5794_v26 = vld [vmem:[%s7159_s1 + $0x950] sm:$0xff] }
 0x106   :  { %3691 = vmatpush.bf16.msra.mxu0 %v5758_v14  ;;  %v3466_v33 = vadd.f32 %v3465_v32, %v3453_v27  ;;  %v3441_v37 = vpop.f32.mrf.mxu0  ;;  %v5787_v14 = vld [vmem:[%s7159_s1 + $0x918] sm:$0xff]  ;;  %v5810_v27 = vld [vmem:[%s7159_s1 + $0x9d0] sm:$0xff] }
 0x107   :  { %3717 = vmatpush.bf16.msra.mxu2 %v5774_v15  ;;  %v3478_v36 = vpop.f32.mrf.mxu3  ;;  %v5803_v15 = vld [vmem:[%s7159_s1 + $0x998] sm:$0xff]  ;;  %v857_v32 = vld [vmem:[#allocation1 + $0x2d] sm:$0xff] }
 0x108   :  { %3704 = vmatpush.bf16.msra.mxu1 %v5766_v16  ;;  %v3479_v38 = vadd.f32 %v3478_v36, %v3466_v33  ;;  %v3454_v41 = vpop.f32.mrf.mxu1  ;;  %v859_v33 = vld [vmem:[#allocation1 + $0x3f] sm:$0xff]  ;;  %v5793_v36 = vld [vmem:[%s7159_s1 + $0x948] sm:$0xff] }
 0x109   :  { %3730 = vmatpush.bf16.msra.mxu3 %v5782_v17  ;;  %v5809_v37 = vld [vmem:[%s7159_s1 + $0x9c8] sm:$0xff]  ;;  %v5823_v41 = vld [vmem:[%s7159_s1 + $0xa38] sm:$0xff] }
 0x10a   :  { %3692 = vmatpush.bf16.msra.mxu0 %v5757_v18  ;;  %v5795_v18 = vld [vmem:[%s7159_s1 + $0x958] sm:$0xff] }
 0x10b   :  { %3718 = vmatpush.bf16.msra.mxu2 %v5773_v19  ;;  %v5811_v19 = vld [vmem:[%s7159_s1 + $0x9d8] sm:$0xff] }
 0x10c   :  { %3705 = vmatpush.bf16.msra.mxu1 %v5765_v20 }
 0x10d   :  { %3731 = vmatpush.bf16.msra.mxu3 %v5781_v21  ;;  %v3467_v46 = vpop.f32.mrf.mxu2 }
 0x10e   :  { %3693 = vmatpush.bf16.msra.mxu0 %v5756_v24  ;;  %v5802_v24 = vld [vmem:[%s7159_s1 + $0x990] sm:$0xff]  ;;  %v5847_v46 = vld [vmem:[%s7159_s1 + $0xaf8] sm:$0xff] }
 0x10f   :  { %3719 = vmatpush.bf16.msra.mxu2 %v5772_v25  ;;  %v3480_v49 = vpop.f32.mrf.mxu3 }
 0x110   :  { %3706 = vmatpush.bf16.msra.mxu1 %v5764_v28  ;;  %v5785_v28 = vld [vmem:[%s7159_s1 + $0x908] sm:$0xff]  ;;  %v5830_v49 = vld [vmem:[%s7159_s1 + $0xa70] sm:$0xff] }
 0x111   :  { %3732 = vmatpush.bf16.msra.mxu3 %v5780_v29  ;;  %v5801_v29 = vld [vmem:[%s7159_s1 + $0x988] sm:$0xff] }
 0x112   :  { %3694 = vmatpush.bf16.msra.mxu0 %v5755_v30  ;;  %v856_v30 = vld [vmem:[#allocation1 + $0x24] sm:$0xff] }
 0x113   :  { %3720 = vmatpush.bf16.msra.mxu2 %v5771_v31  ;;  %v858_v31 = vld [vmem:[#allocation1 + $0x36] sm:$0xff] }
 0x114   :  { %3707 = vmatpush.bf16.msra.mxu1 %v5763_v34 }
 0x115   :  { %3733 = vmatpush.bf16.msra.mxu3 %v5779_v35  ;;  %v20_v35 = vld [vmem:[%s7158_s0 + $0x28] sm:$0xff] }
 0x116   :  { %3695 = vmatpush.bf16.msra.mxu0 %v5754_v39  ;;  %861 = vst [vmem:[#allocation1] ss:$9 sm:$0xff] %v20_v35  ;;  %v5784_v39 = vld [vmem:[%s7159_s1 + $0x900] sm:$0xff]  ;;  %v5853_v35 = vld [vmem:[%s7159_s1 + $0xb28] sm:$0xff] }
 0x117   :  { %3721 = vmatpush.bf16.msra.mxu2 %v5770_v40  ;;  %v5800_v40 = vld [vmem:[%s7159_s1 + $0x980] sm:$0xff] }
 0x118   :  { %3708 = vmatpush.bf16.msra.mxu1 %v5762_v42  ;;  %v5839_v42 = vld [vmem:[%s7159_s1 + $0xab8] sm:$0xff] }
 0x119   :  { %3734 = vmatpush.bf16.msra.mxu3 %v5778_v43  ;;  %v5792_v43 = vld [vmem:[%s7159_s1 + $0x940] sm:$0xff] }
 0x11a   :  { %3696 = vmatpush.bf16.msra.mxu0 %v5753_v44  ;;  %v5808_v44 = vld [vmem:[%s7159_s1 + $0x9c0] sm:$0xff] }
 0x11b   :  { %3722 = vmatpush.bf16.msra.mxu2 %v5769_v45  ;;  %v5831_v45 = vld [vmem:[%s7159_s1 + $0xa78] sm:$0xff] }
 0x11c   :  { %3709 = vmatpush.bf16.msra.mxu1 %v5761_v47  ;;  %v5822_v47 = vld [vmem:[%s7159_s1 + $0xa30] sm:$0xff] }
 0x11d   :  { %3735 = vmatpush.bf16.msra.mxu3 %v5777_v48  ;;  %v5838_v48 = vld [vmem:[%s7159_s1 + $0xab0] sm:$0xff] }
 0x11e   :  { %3697 = vmatpush.bf16.msra.mxu0 %v5752_v50  ;;  %v3491_v6 = vpop.f32.mrf.mxu0  ;;  %v5846_v50 = vld [vmem:[%s7159_s1 + $0xaf0] sm:$0xff] }
 0x11f   :  { %3723 = vmatpush.bf16.msra.mxu2 %v5768_v51  ;;  %v3492_v7 = vadd.f32 %v3491_v6, %v3479_v38  ;;  %v5821_v51 = vld [vmem:[%s7159_s1 + $0xa28] sm:$0xff] }
 0x120   :  { %3710 = vmatpush.bf16.msra.mxu1 %v5760_v54  ;;  %v3504_v10 = vpop.f32.mrf.mxu1  ;;  %v5845_v54 = vld [vmem:[%s7159_s1 + $0xae8] sm:$0xff] }
 0x121   :  { %3736 = vmatpush.bf16.msra.mxu3 %v5776_v55  ;;  %3698 = vmatmul.bf16.vlgmr.msra.gmra.mxu0 %v852_v57  ;;  %v3505_v11 = vadd.f32 %v3504_v10, %v3492_v7  ;;  %v5820_v57 = vld [vmem:[%s7159_s1 + $0xa20] sm:$0xff] }
 0x122   :  { %3742 = vmatpush.bf16.msrb.mxu0 %v5791_v52  ;;  %3724 = vmatmul.bf16.vlgmr.msra.gmra.mxu2 %v854_v58  ;;  %v5837_v52 = vld [vmem:[%s7159_s1 + $0xaa8] sm:$0xff]  ;;  %v5836_v58 = vld [vmem:[%s7159_s1 + $0xaa0] sm:$0xff] }
 0x123   :  { %3768 = vmatpush.bf16.msrb.mxu2 %v5807_v53  ;;  %3711 = vmatmul.bf16.vlgmr.msra.gmra.mxu1 %v853_v60  ;;  %v5829_v53 = vld [vmem:[%s7159_s1 + $0xa68] sm:$0xff] }
 0x124   :  { %3755 = vmatpush.bf16.msrb.mxu1 %v5799_v56  ;;  %3737 = vmatmul.bf16.vlgmr.msra.gmra.mxu3 %v855_v61  ;;  %v5828_v61 = vld [vmem:[%s7159_s1 + $0xa60] sm:$0xff] }
 0x125   :  { %3781 = vmatpush.bf16.msrb.mxu3 %v5815_v59  ;;  %v3517_v16 = vpop.f32.mrf.mxu2 }
 0x126   :  { %3743 = vmatpush.bf16.msrb.mxu0 %v5790_v62  ;;  %v3518_v17 = vadd.f32 %v3517_v16, %v3505_v11  ;;  %v3493_v21 = vpop.f32.mrf.mxu0  ;;  %v5844_v62 = vld [vmem:[%s7159_s1 + $0xae0] sm:$0xff]  ;;  %v5826_v11 = vld [vmem:[%s7159_s1 + $0xa50] sm:$0xff]  ;;  %v5825_v16 = vld [vmem:[%s7159_s1 + $0xa48] sm:$0xff] }
 0x127   :  { %3769 = vmatpush.bf16.msrb.mxu2 %v5806_v63  ;;  %v3530_v20 = vpop.f32.mrf.mxu3  ;;  %v5819_v63 = vld [vmem:[%s7159_s1 + $0xa18] sm:$0xff] }
 0x128   :  { %3756 = vmatpush.bf16.msrb.mxu1 %v5798_v0  ;;  %v6894_v22 = vadd.f32 %v3530_v20, %v3518_v17  ;;  %v3506_v25 = vpop.f32.mrf.mxu1  ;;  %v5835_v0 = vld [vmem:[%s7159_s1 + $0xa98] sm:$0xff]  ;;  %v5841_v17 = vld [vmem:[%s7159_s1 + $0xac8] sm:$0xff]  ;;  %v5832_v20 = vld [vmem:[%s7159_s1 + $0xa80] sm:$0xff] }
 0x129   :  { %3782 = vmatpush.bf16.msrb.mxu3 %v5814_v1  ;;  %v5855_v21 = vld [vmem:[%s7159_s1 + $0xb38] sm:$0xff] }
 0x12a   :  { %3744 = vmatpush.bf16.msrb.mxu0 %v5789_v2  ;;  %v5863_v25 = vld [vmem:[%s7159_s1 + $0xb78] sm:$0xff] }
 0x12b   :  { %3770 = vmatpush.bf16.msrb.mxu2 %v5805_v3  ;;  %v5827_v3 = vld [vmem:[%s7159_s1 + $0xa58] sm:$0xff] }
 0x12c   :  { %3757 = vmatpush.bf16.msrb.mxu1 %v5797_v4  ;;  %v5843_v4 = vld [vmem:[%s7159_s1 + $0xad8] sm:$0xff] }
 0x12d   :  { %3783 = vmatpush.bf16.msrb.mxu3 %v5813_v5  ;;  %v3519_v34 = vpop.f32.mrf.mxu2 }
 0x12e   :  { %3745 = vmatpush.bf16.msrb.mxu0 %v5788_v8  ;;  %v5818_v8 = vld [vmem:[%s7159_s1 + $0xa10] sm:$0xff] }
 0x12f   :  { %3771 = vmatpush.bf16.msrb.mxu2 %v5804_v9  ;;  %v3532_v38 = vpop.f32.mrf.mxu3  ;;  %v5834_v9 = vld [vmem:[%s7159_s1 + $0xa90] sm:$0xff] }
 0x130   :  { %3758 = vmatpush.bf16.msrb.mxu1 %v5796_v12  ;;  %v5842_v12 = vld [vmem:[%s7159_s1 + $0xad0] sm:$0xff]  ;;  %v5877_v38 = vld [vmem:[%s7159_s1 + $0xbe8] sm:$0xff] }
 0x131   :  { %3784 = vmatpush.bf16.msrb.mxu3 %v5812_v13  ;;  %v5817_v13 = vld [vmem:[%s7159_s1 + $0xa08] sm:$0xff]  ;;  %v5878_v34 = vld [vmem:[%s7159_s1 + $0xbf0] sm:$0xff] }
 0x132   :  { %3746 = vmatpush.bf16.msrb.mxu0 %v5787_v14  ;;  %v5833_v14 = vld [vmem:[%s7159_s1 + $0xa88] sm:$0xff] }
 0x133   :  { %3772 = vmatpush.bf16.msrb.mxu2 %v5803_v15 }
 0x134   :  { %3759 = vmatpush.bf16.msrb.mxu1 %v5795_v18 }
 0x135   :  { %3785 = vmatpush.bf16.msrb.mxu3 %v5811_v19  ;;  %v5816_v19 = vld [vmem:[%s7159_s1 + $0xa00] sm:$0xff] }
 0x136   :  { %3747 = vmatpush.bf16.msrb.mxu0 %v5786_v23  ;;  %v5824_v23 = vld [vmem:[%s7159_s1 + $0xa40] sm:$0xff] }
 0x137   :  { %3773 = vmatpush.bf16.msrb.mxu2 %v5802_v24  ;;  %v5840_v24 = vld [vmem:[%s7159_s1 + $0xac0] sm:$0xff] }
 0x138   :  { %3760 = vmatpush.bf16.msrb.mxu1 %v5794_v26  ;;  %v862_v26 = vld [vmem:[#allocation1] sm:$0xff] }
 0x139   :  { %3786 = vmatpush.bf16.msrb.mxu3 %v5810_v27  ;;  %v864_v27 = vld [vmem:[#allocation1 + $0x12] sm:$0xff] }
 0x13a   :  { %3748 = vmatpush.bf16.msrb.mxu0 %v5785_v28  ;;  %v5879_v28 = vld [vmem:[%s7159_s1 + $0xbf8] sm:$0xff] }
 0x13b   :  { %3774 = vmatpush.bf16.msrb.mxu2 %v5801_v29  ;;  %v863_v29 = vld [vmem:[#allocation1 + $0x9] sm:$0xff] }
 0x13c   :  { %3761 = vmatpush.bf16.msrb.mxu1 %v5793_v36  ;;  %v5869_v36 = vld [vmem:[%s7159_s1 + $0xba8] sm:$0xff] }
 0x13d   :  { %3787 = vmatpush.bf16.msrb.mxu3 %v5809_v37  ;;  %v5861_v37 = vld [vmem:[%s7159_s1 + $0xb68] sm:$0xff] }
 0x13e   :  { %3749 = vmatpush.bf16.msrb.mxu0 %v5784_v39  ;;  %v3543_v55 = vpop.f32.mrf.mxu0 }
 0x13f   :  { %3775 = vmatpush.bf16.msrb.mxu2 %v5800_v40  ;;  %v3544_v56 = vadd.f32 %v3543_v55, %v6894_v22  ;;  %v5871_v22 = vld [vmem:[%s7159_s1 + $0xbb8] sm:$0xff] }
 0x140   :  { %3762 = vmatpush.bf16.msrb.mxu1 %v5792_v43  ;;  %v3556_v59 = vpop.f32.mrf.mxu1 }
 0x141   :  { %3788 = vmatpush.bf16.msrb.mxu3 %v5808_v44  ;;  %3750 = vmatmul.bf16.vlgmr.msrb.gmra.mxu0 %v856_v30  ;;  %v3557_v60 = vadd.f32 %v3556_v59, %v3544_v56  ;;  %v865_v30 = vld [vmem:[#allocation1 + $0x1b] sm:$0xff]  ;;  %v5850_v56 = vld [vmem:[%s7159_s1 + $0xb10] sm:$0xff] }
 0x142   :  { %3794 = vmatpush.bf16.msra.mxu0 %v5823_v41  ;;  %3776 = vmatmul.bf16.vlgmr.msrb.gmra.mxu2 %v858_v31  ;;  %v5854_v31 = vld [vmem:[%s7159_s1 + $0xb30] sm:$0xff]  ;;  %v5852_v41 = vld [vmem:[%s7159_s1 + $0xb20] sm:$0xff] }
 0x143   :  { %3820 = vmatpush.bf16.msra.mxu2 %v5839_v42  ;;  %3763 = vmatmul.bf16.vlgmr.msrb.gmra.mxu1 %v857_v32  ;;  %v5870_v32 = vld [vmem:[%s7159_s1 + $0xbb0] sm:$0xff]  ;;  %v5868_v42 = vld [vmem:[%s7159_s1 + $0xba0] sm:$0xff] }
 0x144   :  { %3807 = vmatpush.bf16.msra.mxu1 %v5831_v45  ;;  %3789 = vmatmul.bf16.vlgmr.msrb.gmra.mxu3 %v859_v33  ;;  %v5862_v33 = vld [vmem:[%s7159_s1 + $0xb70] sm:$0xff]  ;;  %v5860_v45 = vld [vmem:[%s7159_s1 + $0xb60] sm:$0xff] }
 0x145   :  { %3833 = vmatpush.bf16.msra.mxu3 %v5847_v46  ;;  %v3569_v1 = vpop.f32.mrf.mxu2  ;;  %v5876_v46 = vld [vmem:[%s7159_s1 + $0xbe0] sm:$0xff]  ;;  %v5858_v59 = vld [vmem:[%s7159_s1 + $0xb50] sm:$0xff] }
 0x146   :  { %3795 = vmatpush.bf16.msra.mxu0 %v5822_v47  ;;  %v3570_v2 = vadd.f32 %v3569_v1, %v3557_v60  ;;  %v3545_v6 = vpop.f32.mrf.mxu0  ;;  %v5851_v47 = vld [vmem:[%s7159_s1 + $0xb18] sm:$0xff]  ;;  %v5874_v60 = vld [vmem:[%s7159_s1 + $0xbd0] sm:$0xff] }
 0x147   :  { %3821 = vmatpush.bf16.msra.mxu2 %v5838_v48  ;;  %v3582_v5 = vpop.f32.mrf.mxu3  ;;  %v5867_v48 = vld [vmem:[%s7159_s1 + $0xb98] sm:$0xff]  ;;  %v867_v1 = vld [vmem:[#allocation1 + $0x2d] sm:$0xff] }
 0x148   :  { %3808 = vmatpush.bf16.msra.mxu1 %v5830_v49  ;;  %v3583_v7 = vadd.f32 %v3582_v5, %v3570_v2  ;;  %v3558_v10 = vpop.f32.mrf.mxu1  ;;  %v869_v2 = vld [vmem:[#allocation1 + $0x3f] sm:$0xff]  ;;  %v5857_v5 = vld [vmem:[%s7159_s1 + $0xb48] sm:$0xff] }
 0x149   :  { %3834 = vmatpush.bf16.msra.mxu3 %v5846_v50  ;;  %v5873_v6 = vld [vmem:[%s7159_s1 + $0xbc8] sm:$0xff]  ;;  %v5887_v10 = vld [vmem:[%s7159_s1 + $0xc38] sm:$0xff] }
 0x14a   :  { %3796 = vmatpush.bf16.msra.mxu0 %v5821_v51  ;;  %v5859_v51 = vld [vmem:[%s7159_s1 + $0xb58] sm:$0xff] }
 0x14b   :  { %3822 = vmatpush.bf16.msra.mxu2 %v5837_v52  ;;  %v5875_v52 = vld [vmem:[%s7159_s1 + $0xbd8] sm:$0xff] }
 0x14c   :  { %3809 = vmatpush.bf16.msra.mxu1 %v5829_v53 }
 0x14d   :  { %3835 = vmatpush.bf16.msra.mxu3 %v5845_v54  ;;  %v3571_v15 = vpop.f32.mrf.mxu2 }
 0x14e   :  { %3797 = vmatpush.bf16.msra.mxu0 %v5820_v57  ;;  %v5866_v57 = vld [vmem:[%s7159_s1 + $0xb90] sm:$0xff] }
 0x14f   :  { %3823 = vmatpush.bf16.msra.mxu2 %v5836_v58  ;;  %v3584_v18 = vpop.f32.mrf.mxu3 }
 0x150   :  { %3810 = vmatpush.bf16.msra.mxu1 %v5828_v61  ;;  %v5849_v61 = vld [vmem:[%s7159_s1 + $0xb08] sm:$0xff] }
 0x151   :  { %3836 = vmatpush.bf16.msra.mxu3 %v5844_v62  ;;  %v5865_v62 = vld [vmem:[%s7159_s1 + $0xb88] sm:$0xff] }
 0x152   :  { %3798 = vmatpush.bf16.msra.mxu0 %v5819_v63  ;;  %v866_v63 = vld [vmem:[#allocation1 + $0x24] sm:$0xff] }
 0x153   :  { %3824 = vmatpush.bf16.msra.mxu2 %v5835_v0  ;;  %v868_v0 = vld [vmem:[#allocation1 + $0x36] sm:$0xff] }
 0x154   :  { %3811 = vmatpush.bf16.msra.mxu1 %v5827_v3 }
 0x155   :  { %3837 = vmatpush.bf16.msra.mxu3 %v5843_v4  ;;  %v21_v4 = vld [vmem:[%s7158_s0 + $0x30] sm:$0x1] }
 0x156   :  { %3799 = vmatpush.bf16.msra.mxu0 %v5818_v8  ;;  %871 = vst [vmem:[#allocation1] ss:$9 sm:$0xff] %v21_v4  ;;  %v5848_v8 = vld [vmem:[%s7159_s1 + $0xb00] sm:$0xff] }
 0x157   :  { %3825 = vmatpush.bf16.msra.mxu2 %v5834_v9  ;;  %v5864_v9 = vld [vmem:[%s7159_s1 + $0xb80] sm:$0xff] }
 0x158   :  { %3812 = vmatpush.bf16.msra.mxu1 %v5826_v11  ;;  %v5856_v11 = vld [vmem:[%s7159_s1 + $0xb40] sm:$0xff] }
 0x159   :  { %3838 = vmatpush.bf16.msra.mxu3 %v5842_v12  ;;  %v5872_v12 = vld [vmem:[%s7159_s1 + $0xbc0] sm:$0xff] }
 0x15a   :  { %3800 = vmatpush.bf16.msra.mxu0 %v5817_v13  ;;  %v5886_v13 = vld [vmem:[%s7159_s1 + $0xc30] sm:$0xff] }
 0x15b   :  { %3826 = vmatpush.bf16.msra.mxu2 %v5833_v14  ;;  %v5885_v14 = vld [vmem:[%s7159_s1 + $0xc28] sm:$0xff] }
 0x15c   :  { %3813 = vmatpush.bf16.msra.mxu1 %v5825_v16 }
 0x15d   :  { %3839 = vmatpush.bf16.msra.mxu3 %v5841_v17  ;;  %v5884_v17 = vld [vmem:[%s7159_s1 + $0xc20] sm:$0xff] }
 0x15e   :  { %3801 = vmatpush.bf16.msra.mxu0 %v5816_v19  ;;  %v3595_v39 = vpop.f32.mrf.mxu0 }
 0x15f   :  { %3827 = vmatpush.bf16.msra.mxu2 %v5832_v20  ;;  %v3596_v40 = vadd.f32 %v3595_v39, %v3583_v7  ;;  %v5883_v20 = vld [vmem:[%s7159_s1 + $0xc18] sm:$0xff] }
 0x160   :  { %3814 = vmatpush.bf16.msra.mxu1 %v5824_v23  ;;  %v3608_v43 = vpop.f32.mrf.mxu1 }
 0x161   :  { %3840 = vmatpush.bf16.msra.mxu3 %v5840_v24  ;;  %3802 = vmatmul.bf16.vlgmr.msra.gmra.mxu0 %v862_v26  ;;  %v3609_v44 = vadd.f32 %v3608_v43, %v3596_v40  ;;  %v5882_v26 = vld [vmem:[%s7159_s1 + $0xc10] sm:$0xff] }
 0x162   :  { %3846 = vmatpush.bf16.msrb.mxu0 %v5855_v21  ;;  %3828 = vmatmul.bf16.vlgmr.msra.gmra.mxu2 %v864_v27 }
 0x163   :  { %3872 = vmatpush.bf16.msrb.mxu2 %v5871_v22  ;;  %3815 = vmatmul.bf16.vlgmr.msra.gmra.mxu1 %v863_v29 }
 0x164   :  { %3859 = vmatpush.bf16.msrb.mxu1 %v5863_v25  ;;  %3841 = vmatmul.bf16.vlgmr.msra.gmra.mxu3 %v865_v30 }
 0x165   :  { %3885 = vmatpush.bf16.msrb.mxu3 %v5879_v28  ;;  %v3621_v49 = vpop.f32.mrf.mxu2  ;;  %v5881_v28 = vld [vmem:[%s7159_s1 + $0xc08] sm:$0xff] }
 0x166   :  { %3847 = vmatpush.bf16.msrb.mxu0 %v5854_v31  ;;  %v3622_v50 = vadd.f32 %v3621_v49, %v3609_v44  ;;  %v3597_v54 = vpop.f32.mrf.mxu0  ;;  %v5880_v31 = vld [vmem:[%s7159_s1 + $0xc00] sm:$0xff]  ;;  %s5916_s1 = smov [#allocation2]  }
 0x167   :  { %3873 = vmatpush.bf16.msrb.mxu2 %v5870_v32  ;;  %v3634_v53 = vpop.f32.mrf.mxu3  ;;  %v872_v32 = vld [vmem:[#allocation1] sm:$0xff]  ;;  %s3917_s12 = sshll.u32 %s5916_s1, 4  ;;  %s3918_s12 = int_to_ptr.vmem [resolvable:$true] %s3917_s12 }
 0x168   :  { %3860 = vmatpush.bf16.msrb.mxu1 %v5862_v33  ;;  %v3635_v55 = vadd.f32 %v3634_v53, %v3622_v50  ;;  %v3610_v58 = vpop.f32.mrf.mxu1 }
 0x169   :  { %3886 = vmatpush.bf16.msrb.mxu3 %v5878_v34 }
 0x16a   :  { %3848 = vmatpush.bf16.msrb.mxu0 %v5853_v35 }
 0x16b   :  { %3874 = vmatpush.bf16.msrb.mxu2 %v5869_v36 }
 0x16c   :  { %3861 = vmatpush.bf16.msrb.mxu1 %v5861_v37 }
 0x16d   :  { %3887 = vmatpush.bf16.msrb.mxu3 %v5877_v38  ;;  %v3623_v3 = vpop.f32.mrf.mxu2 }
 0x16e   :  { %3849 = vmatpush.bf16.msrb.mxu0 %v5852_v41 }
 0x16f   :  { %3875 = vmatpush.bf16.msrb.mxu2 %v5868_v42  ;;  %v3636_v7 = vpop.f32.mrf.mxu3 }
 0x170   :  { %3862 = vmatpush.bf16.msrb.mxu1 %v5860_v45 }
 0x171   :  { %3888 = vmatpush.bf16.msrb.mxu3 %v5876_v46 }
 0x172   :  { %3850 = vmatpush.bf16.msrb.mxu0 %v5851_v47 }
 0x173   :  { %3876 = vmatpush.bf16.msrb.mxu2 %v5867_v48 }
 0x174   :  { %3863 = vmatpush.bf16.msrb.mxu1 %v5859_v51 }
 0x175   :  { %3889 = vmatpush.bf16.msrb.mxu3 %v5875_v52 }
 0x176   :  { %3851 = vmatpush.bf16.msrb.mxu0 %v5850_v56 }
 0x177   :  { %3877 = vmatpush.bf16.msrb.mxu2 %v5866_v57 }
 0x178   :  { %3864 = vmatpush.bf16.msrb.mxu1 %v5858_v59 }
 0x179   :  { %3890 = vmatpush.bf16.msrb.mxu3 %v5874_v60 }
 0x17a   :  { %3852 = vmatpush.bf16.msrb.mxu0 %v5849_v61 }
 0x17b   :  { %3878 = vmatpush.bf16.msrb.mxu2 %v5865_v62 }
 0x17c   :  { %3865 = vmatpush.bf16.msrb.mxu1 %v5857_v5 }
 0x17d   :  { %3891 = vmatpush.bf16.msrb.mxu3 %v5873_v6 }
 0x17e   :  { %3853 = vmatpush.bf16.msrb.mxu0 %v5848_v8  ;;  %v3647_v15 = vpop.f32.mrf.mxu0 }
 0x17f   :  { %3879 = vmatpush.bf16.msrb.mxu2 %v5864_v9  ;;  %v3648_v16 = vadd.f32 %v3647_v15, %v3635_v55 }
 0x180   :  { %3866 = vmatpush.bf16.msrb.mxu1 %v5856_v11  ;;  %v3660_v18 = vpop.f32.mrf.mxu1 }
 0x181   :  { %3892 = vmatpush.bf16.msrb.mxu3 %v5872_v12  ;;  %3854 = vmatmul.bf16.vlgmr.msrb.gmra.mxu0 %v866_v63  ;;  %v3661_v19 = vadd.f32 %v3660_v18, %v3648_v16 }
 0x182   :  { %3898 = vmatpush.bf16.msra.mxu0 %v5887_v10  ;;  %3880 = vmatmul.bf16.vlgmr.msrb.gmra.mxu2 %v868_v0 }
 0x183   :  { %3867 = vmatmul.bf16.vlgmr.msrb.gmra.mxu1 %v867_v1 }
 0x184   :  { %3893 = vmatmul.bf16.vlgmr.msrb.gmra.mxu3 %v869_v2 }
 0x185   :  { %v3673_v21 = vpop.f32.mrf.mxu2 }
 0x186   :  { %3899 = vmatpush.bf16.msra.mxu0 %v5886_v13  ;;  %v3674_v22 = vadd.f32 %v3673_v21, %v3661_v19  ;;  %v3649_v24 = vpop.f32.mrf.mxu0 }
 0x187   :  { %v3686_v23 = vpop.f32.mrf.mxu3 }
 0x188   :  { %v3687_v25 = vadd.f32 %v3686_v23, %v3674_v22  ;;  %v3662_v27 = vpop.f32.mrf.mxu1 }
 0x18a   :  { %3900 = vmatpush.bf16.msra.mxu0 %v5885_v14 }
 0x18d   :  { %v3675_v29 = vpop.f32.mrf.mxu2 }
 0x18e   :  { %3901 = vmatpush.bf16.msra.mxu0 %v5884_v17 }
 0x18f   :  { %v3688_v30 = vpop.f32.mrf.mxu3 }
 0x192   :  { %3902 = vmatpush.bf16.msra.mxu0 %v5883_v20 }
 0x196   :  { %3903 = vmatpush.bf16.msra.mxu0 %v5882_v26 }
 0x19a   :  { %3904 = vmatpush.bf16.msra.mxu0 %v5881_v28 }
 0x19e   :  { %3905 = vmatpush.bf16.msra.mxu0 %v5880_v31  ;;  %v3699_v33 = vpop.f32.mrf.mxu0 }
 0x19f   :  { %v3700_v34 = vadd.f32 %v3699_v33, %v3687_v25 }
 0x1a0   :  { %v3712_v35 = vpop.f32.mrf.mxu1 }
 0x1a1   :  { %3906 = vmatmul.bf16.vlgmr.msra.gmra.mxu0 %v872_v32  ;;  %v3713_v36 = vadd.f32 %v3712_v35, %v3700_v34 }
 0x1a5   :  { %v3725_v37 = vpop.f32.mrf.mxu2 }
 0x1a6   :  { %v3726_v38 = vadd.f32 %v3725_v37, %v3713_v36  ;;  %v3701_v40 = vpop.f32.mrf.mxu0 }
 0x1a7   :  { %v3738_v39 = vpop.f32.mrf.mxu3 }
 0x1a8   :  { %v3739_v41 = vadd.f32 %v3738_v39, %v3726_v38  ;;  %v3714_v42 = vpop.f32.mrf.mxu1 }
 0x1ad   :  { %v3727_v43 = vpop.f32.mrf.mxu2 }
 0x1af   :  { %v3740_v44 = vpop.f32.mrf.mxu3 }
 0x1be   :  { %v3751_v45 = vpop.f32.mrf.mxu0 }
 0x1bf   :  { %v3752_v46 = vadd.f32 %v3751_v45, %v3739_v41 }
 0x1c0   :  { %v3764_v47 = vpop.f32.mrf.mxu1 }
 0x1c1   :  { %v3765_v48 = vadd.f32 %v3764_v47, %v3752_v46 }
 0x1c5   :  { %v3777_v49 = vpop.f32.mrf.mxu2 }
 0x1c6   :  { %v3778_v50 = vadd.f32 %v3777_v49, %v3765_v48  ;;  %v3753_v52 = vpop.f32.mrf.mxu0 }
 0x1c7   :  { %v3790_v51 = vpop.f32.mrf.mxu3 }
 0x1c8   :  { %v3791_v53 = vadd.f32 %v3790_v51, %v3778_v50  ;;  %v3766_v54 = vpop.f32.mrf.mxu1 }
 0x1cd   :  { %v3779_v55 = vpop.f32.mrf.mxu2 }
 0x1cf   :  { %v3792_v56 = vpop.f32.mrf.mxu3 }
 0x1de   :  { %v3803_v57 = vpop.f32.mrf.mxu0 }
 0x1df   :  { %v3804_v4 = vadd.f32 %v3803_v57, %v3791_v53 }
 0x1e0   :  { %v3816_v58 = vpop.f32.mrf.mxu1 }
 0x1e1   :  { %v3817_v8 = vadd.f32 %v3816_v58, %v3804_v4 }
 0x1e5   :  { %v3829_v59 = vpop.f32.mrf.mxu2 }
 0x1e6   :  { %v3805_v61 = vpop.f32.mrf.mxu0  ;;  %v3830_v9 = vadd.f32 %v3829_v59, %v3817_v8 }
 0x1e7   :  { %v3842_v60 = vpop.f32.mrf.mxu3 }
 0x1e8   :  { %v3818_v62 = vpop.f32.mrf.mxu1  ;;  %v3843_v12 = vadd.f32 %v3842_v60, %v3830_v9 }
 0x1ed   :  { %v3831_v63 = vpop.f32.mrf.mxu2 }
 0x1ef   :  { %v3844_v0 = vpop.f32.mrf.mxu3 }
 0x1fe   :  { %v3855_v1 = vpop.f32.mrf.mxu0 }
 0x1ff   :  { %v3856_v13 = vadd.f32 %v3855_v1, %v3843_v12 }
 0x200   :  { %v3868_v2 = vpop.f32.mrf.mxu1 }
 0x201   :  { %v3869_v14 = vadd.f32 %v3868_v2, %v3856_v13 }
 0x205   :  { %v3881_v3 = vpop.f32.mrf.mxu2 }
 0x206   :  { %v3857_v6 = vpop.f32.mrf.mxu0  ;;  %v3882_v15 = vadd.f32 %v3881_v3, %v3869_v14 }
 0x207   :  { %v3894_v5 = vpop.f32.mrf.mxu3 }
 0x208   :  { %v3870_v7 = vpop.f32.mrf.mxu1  ;;  %v3895_v16 = vadd.f32 %v3894_v5, %v3882_v15 }
 0x20d   :  { %v3883_v10 = vpop.f32.mrf.mxu2 }
 0x20f   :  { %v3896_v11 = vpop.f32.mrf.mxu3 }
 0x21e   :  { %v3907_v17 = vpop.f32.mrf.mxu0 }
 0x21f   :  { %v3908_v18 = vadd.f32 %v3907_v17, %v3895_v16 }
 0x221   :  { %3911 = vst [vmem:[#allocation2] sm:$0x3] %v3908_v18 }
 0x222   :  { %3922 = dma.vmem_to_hbm [thread:$0]  %s3918_s12, 32, %s3920_s15, [#allocation3]  }
 0x226   :  { %v3909_v19 = vpop.f32.mrf.mxu0 }
 0x227   :  { %5914 = dma.done.wait [#allocation3], 32  }
 0x228   :  { %5915 = vsyncadd [#allocation3], 4294967264 }
 0x229   :  { %3927 = vsyncpa [#allocation3], 1 }

</bundles_post_ra>
